<compile_context>
chip_gen: v6e
topology: v6e:2x2x1
jax: 0.10.0
libtpu: 0.0.40
codegen_flags: <defaults>
</compile_context>

<pallas_src>
import functools

import numpy as np
import jax
import jax.numpy as jnp
from jax.experimental import pallas as pl
from jax.experimental.pallas import tpu as pltpu

MEL_N_CHANNELS = 8   # in_channels of the first conv (the module's global `mel_n_channels`)
KERNEL = 3           # the module's global `kernel_size` = (3, 3)
STRIDE = 2           # the module's global `stride` = (2, 2)
HID = 128            # GRU / projection width
BN_EPS = 1e-5
LANE = 128           # TPU lane width; conv outputs padded to this for dense stores
TM_MAX = 2048        # max im2col rows per grid step (raised per perf review)

# bf16 MXU operands and bf16 inter-layer activations (f32 accumulate + f32
# bias/ReLU/BN epilogue). Set to jnp.float32 for bit-faithful comparison vs PyTorch.
MATMUL_DTYPE = jnp.bfloat16


# ----------------------------- small static helpers -----------------------------

def _round_up(v, m):
    return (v + m - 1) // m * m


def _same_pad_quirk(h, cin):
    # Replicates SamePaddedConv2d.same_paddify exactly, including its quirk of using
    # x.shape[2] (=H in NCHW) as "input_y" and x.shape[1] (=C in NCHW) as "input_x",
    # i.e. the width padding is derived from the channel count, not from W.
    hp = max(KERNEL - STRIDE, 0) if h % STRIDE == 0 else max(KERNEL - h % STRIDE, 0)
    wp = max(KERNEL - STRIDE, 0) if cin % STRIDE == 0 else max(KERNEL - cin % STRIDE, 0)
    return hp // 2, hp - hp // 2, wp // 2, wp - wp // 2


def _conv_out_dims(h, w, pads):
    top, bottom, left, right = pads
    return ((h + top + bottom - KERNEL) // STRIDE + 1,
            (w + left + right - KERNEL) // STRIDE + 1)


def _im2col(x_nhwc, pads, ho, wo):
    # Patch layout: K ordered (kh, kw, cin); rows ordered (n, ho, wo). XLA glue.
    top, bottom, left, right = pads
    xp = jnp.pad(x_nhwc, ((0, 0), (top, bottom), (left, right), (0, 0)))
    cols = []
    for kh in range(KERNEL):
        for kw in range(KERNEL):
            cols.append(xp[:, kh:kh + (ho - 1) * STRIDE + 1:STRIDE,
                              kw:kw + (wo - 1) * STRIDE + 1:STRIDE, :])
    n, cin = x_nhwc.shape[0], x_nhwc.shape[-1]
    return jnp.concatenate(cols, axis=-1).reshape(n * ho * wo, KERNEL * KERNEL * cin)


# ----------------------------- conv + ReLU + BN kernel (layers 1-3) -----------------------------

def _conv_bn_relu_kernel(p_ref, w_ref, b_ref, scale_ref, shift_ref, o_ref):
    acc = jnp.dot(p_ref[...], w_ref[...], preferred_element_type=jnp.float32)
    y = jnp.maximum(acc + b_ref[...], 0.0)                 # conv bias + ReLU (Conv->ReLU->BN)
    # BatchNorm2d eval-mode affine; cast to bf16 in the epilogue (halves HBM writeback).
    o_ref[...] = (y * scale_ref[...] + shift_ref[...]).astype(o_ref.dtype)


def conv_bn_relu_layer(x_nhwc, lp):
    n = x_nhwc.shape[0]
    ho, wo, cout, kp = lp["Ho"], lp["Wo"], lp["Cout"], lp["KP"]

    # TODO(synk): head-layer im2col still materializes `patches` in HBM (~2.25x the
    # activation, now bf16); consider allow_input_fusion on this operand or in-kernel
    # per-tap accumulation once overlapping-window block indexing is worth it.
    patches = _im2col(x_nhwc, lp["pads"], ho, wo).astype(MATMUL_DTYPE)
    m, k = patches.shape
    if kp != k:
        patches = jnp.pad(patches, ((0, 0), (0, kp - k)))  # lane-friendly K (layer 1: 72->128)
    cp = lp["w"].shape[-1]

    # Big tiles (fewer fixed-overhead grid steps), but keep >= 2 steps whenever there
    # is enough work so ("parallel",) can shard across v7x's two TensorCores.
    if m <= 512:
        tm = m
    else:
        tm = min(TM_MAX, m)
        if tm == m:
            tm = _round_up(pl.cdiv(m, 2), 16)
    grid = (pl.cdiv(m, tm),)

    out = pl.pallas_call(
        _conv_bn_relu_kernel,
        out_shape=jax.ShapeDtypeStruct((m, cp), MATMUL_DTYPE),
        grid=grid,
        in_specs=[
            pl.BlockSpec((tm, kp), lambda i: (i, 0)),
            pl.BlockSpec((kp, cp), lambda i: (0, 0)),
            pl.BlockSpec((1, cp), lambda i: (0, 0)),
            pl.BlockSpec((1, cp), lambda i: (0, 0)),
            pl.BlockSpec((1, cp), lambda i: (0, 0)),
        ],
        out_specs=pl.BlockSpec((tm, cp), lambda i: (i, 0)),
        compiler_params=pltpu.CompilerParams(
            dimension_semantics=("parallel",),
            # ~2.5 MB/step worst case; 32 MiB is safe on every generation incl. v7x (64 MiB phys).
            vmem_limit_bytes=32 * 1024 * 1024,
        ),
    )(patches, lp["w"], lp["b"], lp["scale"], lp["shift"])

    return out[:, :cout].reshape(n, ho, wo, cout)          # slice lane padding, stays bf16


# ----------------------------- fused tail: conv 4-6 + GRU + Linear + tanh -----------------------------

def _tail_kernel(p4_ref, w4_ref, b4_ref, s4_ref, t4_ref,
                 g5_ref, w5_ref, b5_ref, s5_ref, t5_ref,
                 g6_ref, w6_ref, b6_ref, s6_ref, t6_ref,
                 wih_ref, whh_ref, bi_ref, bhn_ref, wout_ref, bout_ref,
                 o_ref, *, T, NP, m5, m6, c4, c5):
    def conv_epi(acc, b_ref, sc_ref, sh_ref):
        return jnp.maximum(acc + b_ref[...], 0.0) * sc_ref[...] + sh_ref[...]

    # ---- layer 4: im2col matmul (patches prepared by the wrapper) ----
    acc4 = jnp.dot(p4_ref[...], w4_ref[...], preferred_element_type=jnp.float32)
    y4 = conv_epi(acc4, b4_ref, s4_ref, t4_ref).astype(MATMUL_DTYPE)   # (m4, c4)

    # ---- layers 5 & 6: in-VMEM im2col via static 0/1 gather matrices ----
    # Per tap: rows of the (spatially zero-padded) previous activation are selected
    # with a tiny matmul, then contracted with that tap's weight slice — MXU only,
    # no strided gathers / reshapes inside the kernel.
    def conv_gather(y_prev, g_ref, w_ref, b_ref, sc_ref, sh_ref, m_out, cin):
        acc = jnp.zeros((m_out, w_ref.shape[-1]), jnp.float32)
        for tap in range(KERNEL * KERNEL):
            gt = g_ref[tap * m_out:(tap + 1) * m_out, :]
            wt = w_ref[tap * cin:(tap + 1) * cin, :]
            pt = jnp.dot(gt, y_prev, preferred_element_type=jnp.float32)
            acc = acc + jnp.dot(pt.astype(MATMUL_DTYPE), wt,
                                preferred_element_type=jnp.float32)
        return conv_epi(acc, b_ref, sc_ref, sh_ref)

    y5 = conv_gather(y4, g5_ref, w5_ref, b5_ref, s5_ref, t5_ref, m5, c4).astype(MATMUL_DTYPE)
    # Layer-6 gather already emits rows time-major with batch padded to NP sublanes.
    y6 = conv_gather(y5, g6_ref, w6_ref, b6_ref, s6_ref, t6_ref, m6, c5)   # (T*NP, 128) f32

    # ---- GRU: input projection batched over all timesteps (off the serial path) ----
    gi_all = jnp.dot(y6.astype(MATMUL_DTYPE), wih_ref[...],
                     preferred_element_type=jnp.float32) + bi_ref[...]
    bhn = bhn_ref[...]
    h = jnp.zeros((NP, HID), jnp.float32)
    # T is tiny after six stride-2 convs -> fully unrolled static recurrence.
    # TODO(synk): for very long sequences this should chunk T across a grid axis
    # with h carried in VMEM scratch.
    for t in range(T):
        gi = gi_all[t * NP:(t + 1) * NP, :]        # clean full-tile slice (NP % 8 == 0)
        gh = jnp.dot(h.astype(MATMUL_DTYPE), whh_ref[...],
                     preferred_element_type=jnp.float32)
        r = jax.nn.sigmoid(gi[:, :HID] + gh[:, :HID])
        z = jax.nn.sigmoid(gi[:, HID:2 * HID] + gh[:, HID:2 * HID])
        cand = jnp.tanh(gi[:, 2 * HID:] + r * (gh[:, 2 * HID:] + bhn))
        h = (1.0 - z) * cand + z * h

    o_ref[...] = jnp.tanh(jnp.dot(h.astype(MATMUL_DTYPE), wout_ref[...],
                                  preferred_element_type=jnp.float32) + bout_ref[...])


def _const_spec(arr):
    nd = arr.ndim
    return pl.BlockSpec(arr.shape, lambda i: (0,) * nd)


def tail_forward(x3, tp):
    # x3: layer-3 output (N, H, W, 64) bf16; im2col for layer 4 happens here,
    # everything downstream (conv 4-6 + GRU + Linear + tanh) is one fused kernel.
    p4 = _im2col(x3, tp["pads4"], tp["Ho4"], tp["Wo4"]).astype(MATMUL_DTYPE)

    operands = (p4, tp["w4"], tp["b4"], tp["sc4"], tp["sh4"],
                tp["g5"], tp["w5"], tp["b5"], tp["sc5"], tp["sh5"],
                tp["g6"], tp["w6"], tp["b6"], tp["sc6"], tp["sh6"],
                tp["wih"], tp["whh"], tp["bi"], tp["bhn"], tp["wout"], tp["bout"])

    return pl.pallas_call(
        functools.partial(_tail_kernel, T=tp["T"], NP=tp["NP"], m5=tp["m5"], m6=tp["m6"],
                          c4=tp["w4"].shape[-1], c5=tp["w5"].shape[-1]),
        out_shape=jax.ShapeDtypeStruct((tp["NP"], HID), jnp.float32),
        grid=(1,),
        in_specs=[_const_spec(a) for a in operands],
        out_specs=pl.BlockSpec((tp["NP"], HID), lambda i: (0, 0)),
        compiler_params=pltpu.CompilerParams(
            dimension_semantics=("arbitrary",),
            vmem_limit_bytes=32 * 1024 * 1024,
        ),
    )(*operands)


# ----------------------------- one-time parameter preparation (outside jit) -----------------------------

def _fold_bn(lp):
    # TODO(synk): BatchNorm implemented in eval/inference mode (running stats), not
    # training batch-statistics mode.
    scale = lp["gamma"] / jnp.sqrt(lp["var"] + BN_EPS)
    shift = lp["beta"] - lp["mean"] * scale
    return lp["b"], scale, shift


def prepare_params(params, input_shape):
    """Hoisted prep: BN folding, weight flatten/pad, bf16 casts, static gather matrices."""
    n, c0, h, w = input_shape
    chans = [c0] + [lc["w"].shape[-1] for lc in params["conv"]]

    shapes = []
    hh, ww = h, w
    for i in range(6):
        pads = _same_pad_quirk(hh, chans[i])
        ho, wo = _conv_out_dims(hh, ww, pads)
        shapes.append(dict(H=hh, W=ww, Cin=chans[i], Cout=chans[i + 1],
                           pads=pads, Ho=ho, Wo=wo))
        hh, ww = ho, wo

    np_batch = _round_up(max(n, 1), 8)
    prepped = {"N": n}

    # ---- head layers 0-2: padded flat weights / folded BN for the standalone kernel ----
    head = []
    for i in range(3):
        lp, s = params["conv"][i], shapes[i]
        k = KERNEL * KERNEL * s["Cin"]
        kp = _round_up(k, LANE) if k < LANE else _round_up(k, 16)
        cp = _round_up(s["Cout"], LANE)
        w_flat = jnp.pad(lp["w"].reshape(k, s["Cout"]),
                         ((0, kp - k), (0, cp - s["Cout"]))).astype(MATMUL_DTYPE)
        b, scale, shift = _fold_bn(lp)
        pad_c = cp - s["Cout"]
        head.append(dict(
            w=w_flat,
            b=jnp.pad(b, (0, pad_c)).reshape(1, cp).astype(jnp.float32),
            scale=jnp.pad(scale, (0, pad_c)).reshape(1, cp).astype(jnp.float32),
            shift=jnp.pad(shift, (0, pad_c)).reshape(1, cp).astype(jnp.float32),
            KP=kp, Cout=s["Cout"], pads=s["pads"], Ho=s["Ho"], Wo=s["Wo"]))
    prepped["head"] = head

    # ---- tail layers 3-5 + GRU/out ----
    s4, s5, s6 = shapes[3], shapes[4], shapes[5]
    m5 = n * s5["Ho"] * s5["Wo"]
    T = s6["Ho"] * s6["Wo"]
    m6 = T * np_batch

    def gather(hin, win, pads, ho_n, wo_n, n_out, out_index):
        # Static 0/1 matrix: maps flattened rows of the previous activation (order
        # n, h, w) to im2col patch rows per tap; SAME-padding positions -> zero rows.
        top, _, left, _ = pads
        g = np.zeros((KERNEL * KERNEL * n_out, n * hin * win), np.float32)
        for kh in range(KERNEL):
            for kw in range(KERNEL):
                tap = kh * KERNEL + kw
                for b_ in range(n):
                    for ho in range(ho_n):
                        for wo in range(wo_n):
                            hi = ho * STRIDE + kh - top
                            wi = wo * STRIDE + kw - left
                            if 0 <= hi < hin and 0 <= wi < win:
                                g[tap * n_out + out_index(b_, ho, wo),
                                  (b_ * hin + hi) * win + wi] = 1.0
        return jnp.asarray(g, dtype=MATMUL_DTYPE)

    g5 = gather(s5["H"], s5["W"], s5["pads"], s5["Ho"], s5["Wo"], m5,
                lambda b_, ho, wo: (b_ * s5["Ho"] + ho) * s5["Wo"] + wo)
    # Layer-6 rows come out time-major with the batch padded to NP sublanes so GRU
    # timestep slices are tile-aligned (per perf review).
    g6 = gather(s6["H"], s6["W"], s6["pads"], s6["Ho"], s6["Wo"], m6,
                lambda b_, ho, wo: (ho * s6["Wo"] + wo) * np_batch + b_)

    def tail_conv(i, s):
        lp = params["conv"][i]
        k = KERNEL * KERNEL * s["Cin"]
        b, scale, shift = _fold_bn(lp)
        return (lp["w"].reshape(k, s["Cout"]).astype(MATMUL_DTYPE),
                b.reshape(1, s["Cout"]).astype(jnp.float32),
                scale.reshape(1, s["Cout"]).astype(jnp.float32),
                shift.reshape(1, s["Cout"]).astype(jnp.float32))

    w4, b4, sc4, sh4 = tail_conv(3, s4)
    w5, b5, sc5, sh5 = tail_conv(4, s5)
    w6, b6, sc6, sh6 = tail_conv(5, s6)

    g = params["gru"]
    o = params["out"]
    # Fold the r/z halves of b_hh into the input-side bias; keep b_hn separate
    # (PyTorch GRU keeps it inside r * (W_hn h + b_hn)).
    bi = g["bih"] + jnp.concatenate([g["bhh"][:2 * HID], jnp.zeros((HID,), jnp.float32)])

    prepped["tail"] = dict(
        pads4=s4["pads"], Ho4=s4["Ho"], Wo4=s4["Wo"],
        w4=w4, b4=b4, sc4=sc4, sh4=sh4,
        g5=g5, w5=w5, b5=b5, sc5=sc5, sh5=sh5,
        g6=g6, w6=w6, b6=b6, sc6=sc6, sh6=sh6,
        T=T, NP=np_batch, m5=m5, m6=m6,
        wih=g["wih_t"].astype(MATMUL_DTYPE), whh=g["whh_t"].astype(MATMUL_DTYPE),
        bi=bi.reshape(1, 3 * HID).astype(jnp.float32),
        bhn=g["bhh"][2 * HID:].reshape(1, HID).astype(jnp.float32),
        wout=o["w_t"].astype(MATMUL_DTYPE),
        bout=o["b"].reshape(1, HID).astype(jnp.float32))
    return prepped


# ----------------------------- parameters & forward -----------------------------

def init_params(key):
    chans = [MEL_N_CHANNELS, 32, 32, 64, 64, 128, 128]
    params = {"conv": []}
    for i in range(6):
        cin, cout = chans[i], chans[i + 1]
        key, k1, k2, k3, k4, k5, k6 = jax.random.split(key, 7)
        params["conv"].append(dict(
            w=0.08 * jax.random.normal(k1, (KERNEL, KERNEL, cin, cout), jnp.float32),
            b=0.01 * jax.random.normal(k2, (cout,), jnp.float32),
            gamma=1.0 + 0.05 * jax.random.normal(k3, (cout,), jnp.float32),
            beta=0.05 * jax.random.normal(k4, (cout,), jnp.float32),
            mean=0.05 * jax.random.normal(k5, (cout,), jnp.float32),
            var=1.0 + 0.1 * jnp.abs(jax.random.normal(k6, (cout,), jnp.float32)),
        ))
    key, k1, k2, k3, k4, k5, k6 = jax.random.split(key, 7)
    params["gru"] = dict(
        wih_t=0.08 * jax.random.normal(k1, (HID, 3 * HID), jnp.float32),  # W_ih^T, gates [r|z|n]
        whh_t=0.08 * jax.random.normal(k2, (HID, 3 * HID), jnp.float32),  # W_hh^T
        bih=0.01 * jax.random.normal(k3, (3 * HID,), jnp.float32),
        bhh=0.01 * jax.random.normal(k4, (3 * HID,), jnp.float32),
    )
    params["out"] = dict(
        w_t=0.08 * jax.random.normal(k5, (HID, HID), jnp.float32),        # Linear W^T
        b=0.01 * jax.random.normal(k6, (HID,), jnp.float32),
    )
    return params


def prosody_encoder_forward(prepped, m_nchw):
    # NCHW -> NHWC; bf16 inter-layer activations (memory-bound conv stack).
    x = jnp.transpose(m_nchw, (0, 2, 3, 1)).astype(MATMUL_DTYPE)
    for lp in prepped["head"]:
        x = conv_bn_relu_layer(x, lp)
    # TODO(synk): the reference `m.permute(1, 0, 2)` is invalid on a 4-D conv output;
    # we implement the intended semantics (N, T', 128) -> (T', N, 128) for the GRU,
    # realized by the layer-6 gather matrix inside the fused tail kernel.
    out = tail_forward(x, prepped["tail"])
    return out[:prepped["N"], :]


if __name__ == "__main__":
    key = jax.random.PRNGKey(0)
    kp, kx = jax.random.split(key)
    params = init_params(kp)
    # small shapes: batch=2, mel_n_channels=8, time=128, freq=64
    m = jax.random.normal(kx, (2, MEL_N_CHANNELS, 128, 64), jnp.float32)

    prepped = prepare_params(params, m.shape)          # one-time prep, outside jit
    fwd = jax.jit(functools.partial(prosody_encoder_forward, prepped))

    out = jax.block_until_ready(fwd(m))
    assert out.shape == (2, HID), out.shape
    assert bool(jnp.all(jnp.isfinite(out)))
    print("KERNEL_OK")
</pallas_src>

<mosaic_0001>
module attributes {stable_mosaic.version = 11 : i64} {
  func.func @_conv_bn_relu_kernel(%arg0: i32, %arg1: memref<2048x128xbf16, #tpu.memory_space<vmem>>, %arg2: memref<128x128xbf16, #tpu.memory_space<vmem>>, %arg3: memref<1x128xf32, #tpu.memory_space<vmem>>, %arg4: memref<1x128xf32, #tpu.memory_space<vmem>>, %arg5: memref<1x128xf32, #tpu.memory_space<vmem>>, %arg6: memref<2048x128xbf16, #tpu.memory_space<vmem>>) attributes {dimension_semantics = [#tpu.dimension_semantics<parallel>], iteration_bounds = array<i64: 2>, scalar_prefetch = 0 : i64, scratch_operands = 0 : i64, tpu.core_type = #tpu.core_type<tc>, window_params = [{transform_indices = @transform_0, window_bounds = array<i64: 2048, 128>}, {pipeline_mode = #tpu.pipeline_mode<synchronous>, transform_indices = @transform_1, window_bounds = array<i64: 128, 128>}, {pipeline_mode = #tpu.pipeline_mode<synchronous>, transform_indices = @transform_2, window_bounds = array<i64: 1, 128>}, {pipeline_mode = #tpu.pipeline_mode<synchronous>, transform_indices = @transform_3, window_bounds = array<i64: 1, 128>}, {pipeline_mode = #tpu.pipeline_mode<synchronous>, transform_indices = @transform_4, window_bounds = array<i64: 1, 128>}, {transform_indices = @transform_5, window_bounds = array<i64: 2048, 128>}]} {
    %c0 = arith.constant 0 : index
    %c0_0 = arith.constant 0 : index
    %0 = vector.load %arg1[%c0, %c0_0] : memref<2048x128xbf16, #tpu.memory_space<vmem>>, vector<2048x128xbf16>
    %c0_1 = arith.constant 0 : index
    %c0_2 = arith.constant 0 : index
    %1 = vector.load %arg2[%c0_1, %c0_2] : memref<128x128xbf16, #tpu.memory_space<vmem>>, vector<128x128xbf16>
    %cst = arith.constant dense<0.000000e+00> : vector<2048x128xf32>
    %2 = tpu.matmul %0, %1, %cst {dimension_numbers = #tpu.dot_dimension_numbers<[1], [0], [0], [1], [0, 0, 1, 1], [], []>} : vector<2048x128xbf16>, vector<128x128xbf16>, vector<2048x128xf32> -> vector<2048x128xf32>
    %c0_3 = arith.constant 0 : index
    %c0_4 = arith.constant 0 : index
    %3 = vector.load %arg3[%c0_3, %c0_4] : memref<1x128xf32, #tpu.memory_space<vmem>>, vector<1x128xf32>
    %4 = vector.broadcast %3 : vector<1x128xf32> to vector<2048x128xf32>
    %5 = arith.addf %2, %4 : vector<2048x128xf32>
    %cst_5 = arith.constant 0.000000e+00 : f32
    %6 = vector.broadcast %cst_5 : f32 to vector<2048x128xf32>
    %7 = arith.maximumf %5, %6 : vector<2048x128xf32>
    %c0_6 = arith.constant 0 : index
    %c0_7 = arith.constant 0 : index
    %8 = vector.load %arg4[%c0_6, %c0_7] : memref<1x128xf32, #tpu.memory_space<vmem>>, vector<1x128xf32>
    %9 = vector.broadcast %8 : vector<1x128xf32> to vector<2048x128xf32>
    %10 = arith.mulf %7, %9 : vector<2048x128xf32>
    %c0_8 = arith.constant 0 : index
    %c0_9 = arith.constant 0 : index
    %11 = vector.load %arg5[%c0_8, %c0_9] : memref<1x128xf32, #tpu.memory_space<vmem>>, vector<1x128xf32>
    %12 = vector.broadcast %11 : vector<1x128xf32> to vector<2048x128xf32>
    %13 = arith.addf %10, %12 : vector<2048x128xf32>
    %14 = arith.truncf %13 : vector<2048x128xf32> to vector<2048x128xbf16>
    %c0_10 = arith.constant 0 : index
    %c0_11 = arith.constant 0 : index
    %15 = vector.load %arg6[%c0_10, %c0_11] : memref<2048x128xbf16, #tpu.memory_space<vmem>>, vector<2048x128xbf16>
    tpu.vector_store %arg6[%c0_10, %c0_11], %14 {strides = array<i32>} : memref<2048x128xbf16, #tpu.memory_space<vmem>>, vector<2048x128xbf16>,
    return
  }
  func.func @transform_0(%arg0: i32) -> (i32, i32) {
    %c0_i32 = arith.constant 0 : i32
    %c0_i32_0 = arith.constant 0 : i32
    return %arg0, %c0_i32 : i32, i32
  }
  func.func @transform_1(%arg0: i32) -> (i32, i32) {
    %c0_i32 = arith.constant 0 : i32
    %c0_i32_0 = arith.constant 0 : i32
    %c0_i32_1 = arith.constant 0 : i32
    return %c0_i32, %c0_i32_0 : i32, i32
  }
  func.func @transform_2(%arg0: i32) -> (i32, i32) {
    %c0_i32 = arith.constant 0 : i32
    %c0_i32_0 = arith.constant 0 : i32
    %c0_i32_1 = arith.constant 0 : i32
    return %c0_i32, %c0_i32_0 : i32, i32
  }
  func.func @transform_3(%arg0: i32) -> (i32, i32) {
    %c0_i32 = arith.constant 0 : i32
    %c0_i32_0 = arith.constant 0 : i32
    %c0_i32_1 = arith.constant 0 : i32
    return %c0_i32, %c0_i32_0 : i32, i32
  }
  func.func @transform_4(%arg0: i32) -> (i32, i32) {
    %c0_i32 = arith.constant 0 : i32
    %c0_i32_0 = arith.constant 0 : i32
    %c0_i32_1 = arith.constant 0 : i32
    return %c0_i32, %c0_i32_0 : i32, i32
  }
  func.func @transform_5(%arg0: i32) -> (i32, i32) {
    %c0_i32 = arith.constant 0 : i32
    %c0_i32_0 = arith.constant 0 : i32
    return %arg0, %c0_i32 : i32, i32
  }
}

module attributes {stable_mosaic.version = 11 : i64} {
  func.func @_conv_bn_relu_kernel(%arg0: i32, %arg1: memref<512x288xbf16, #tpu.memory_space<vmem>>, %arg2: memref<288x128xbf16, #tpu.memory_space<vmem>>, %arg3: memref<1x128xf32, #tpu.memory_space<vmem>>, %arg4: memref<1x128xf32, #tpu.memory_space<vmem>>, %arg5: memref<1x128xf32, #tpu.memory_space<vmem>>, %arg6: memref<512x128xbf16, #tpu.memory_space<vmem>>) attributes {dimension_semantics = [#tpu.dimension_semantics<parallel>], iteration_bounds = array<i64: 2>, scalar_prefetch = 0 : i64, scratch_operands = 0 : i64, tpu.core_type = #tpu.core_type<tc>, window_params = [{transform_indices = @transform_0, window_bounds = array<i64: 512, 288>}, {pipeline_mode = #tpu.pipeline_mode<synchronous>, transform_indices = @transform_1, window_bounds = array<i64: 288, 128>}, {pipeline_mode = #tpu.pipeline_mode<synchronous>, transform_indices = @transform_2, window_bounds = array<i64: 1, 128>}, {pipeline_mode = #tpu.pipeline_mode<synchronous>, transform_indices = @transform_3, window_bounds = array<i64: 1, 128>}, {pipeline_mode = #tpu.pipeline_mode<synchronous>, transform_indices = @transform_4, window_bounds = array<i64: 1, 128>}, {transform_indices = @transform_5, window_bounds = array<i64: 512, 128>}]} {
    %c0 = arith.constant 0 : index
    %c0_0 = arith.constant 0 : index
    %0 = vector.load %arg1[%c0, %c0_0] : memref<512x288xbf16, #tpu.memory_space<vmem>>, vector<512x288xbf16>
    %c0_1 = arith.constant 0 : index
    %c0_2 = arith.constant 0 : index
    %1 = vector.load %arg2[%c0_1, %c0_2] : memref<288x128xbf16, #tpu.memory_space<vmem>>, vector<288x128xbf16>
    %cst = arith.constant dense<0.000000e+00> : vector<512x128xf32>
    %2 = tpu.matmul %0, %1, %cst {dimension_numbers = #tpu.dot_dimension_numbers<[1], [0], [0], [1], [0, 0, 1, 1], [], []>} : vector<512x288xbf16>, vector<288x128xbf16>, vector<512x128xf32> -> vector<512x128xf32>
    %c0_3 = arith.constant 0 : index
    %c0_4 = arith.constant 0 : index
    %3 = vector.load %arg3[%c0_3, %c0_4] : memref<1x128xf32, #tpu.memory_space<vmem>>, vector<1x128xf32>
    %4 = vector.broadcast %3 : vector<1x128xf32> to vector<512x128xf32>
    %5 = arith.addf %2, %4 : vector<512x128xf32>
    %cst_5 = arith.constant 0.000000e+00 : f32
    %6 = vector.broadcast %cst_5 : f32 to vector<512x128xf32>
    %7 = arith.maximumf %5, %6 : vector<512x128xf32>
    %c0_6 = arith.constant 0 : index
    %c0_7 = arith.constant 0 : index
    %8 = vector.load %arg4[%c0_6, %c0_7] : memref<1x128xf32, #tpu.memory_space<vmem>>, vector<1x128xf32>
    %9 = vector.broadcast %8 : vector<1x128xf32> to vector<512x128xf32>
    %10 = arith.mulf %7, %9 : vector<512x128xf32>
    %c0_8 = arith.constant 0 : index
    %c0_9 = arith.constant 0 : index
    %11 = vector.load %arg5[%c0_8, %c0_9] : memref<1x128xf32, #tpu.memory_space<vmem>>, vector<1x128xf32>
    %12 = vector.broadcast %11 : vector<1x128xf32> to vector<512x128xf32>
    %13 = arith.addf %10, %12 : vector<512x128xf32>
    %14 = arith.truncf %13 : vector<512x128xf32> to vector<512x128xbf16>
    %c0_10 = arith.constant 0 : index
    %c0_11 = arith.constant 0 : index
    %15 = vector.load %arg6[%c0_10, %c0_11] : memref<512x128xbf16, #tpu.memory_space<vmem>>, vector<512x128xbf16>
    tpu.vector_store %arg6[%c0_10, %c0_11], %14 {strides = array<i32>} : memref<512x128xbf16, #tpu.memory_space<vmem>>, vector<512x128xbf16>,
    return
  }
  func.func @transform_0(%arg0: i32) -> (i32, i32) {
    %c0_i32 = arith.constant 0 : i32
    %c0_i32_0 = arith.constant 0 : i32
    return %arg0, %c0_i32 : i32, i32
  }
  func.func @transform_1(%arg0: i32) -> (i32, i32) {
    %c0_i32 = arith.constant 0 : i32
    %c0_i32_0 = arith.constant 0 : i32
    %c0_i32_1 = arith.constant 0 : i32
    return %c0_i32, %c0_i32_0 : i32, i32
  }
  func.func @transform_2(%arg0: i32) -> (i32, i32) {
    %c0_i32 = arith.constant 0 : i32
    %c0_i32_0 = arith.constant 0 : i32
    %c0_i32_1 = arith.constant 0 : i32
    return %c0_i32, %c0_i32_0 : i32, i32
  }
  func.func @transform_3(%arg0: i32) -> (i32, i32) {
    %c0_i32 = arith.constant 0 : i32
    %c0_i32_0 = arith.constant 0 : i32
    %c0_i32_1 = arith.constant 0 : i32
    return %c0_i32, %c0_i32_0 : i32, i32
  }
  func.func @transform_4(%arg0: i32) -> (i32, i32) {
    %c0_i32 = arith.constant 0 : i32
    %c0_i32_0 = arith.constant 0 : i32
    %c0_i32_1 = arith.constant 0 : i32
    return %c0_i32, %c0_i32_0 : i32, i32
  }
  func.func @transform_5(%arg0: i32) -> (i32, i32) {
    %c0_i32 = arith.constant 0 : i32
    %c0_i32_0 = arith.constant 0 : i32
    return %arg0, %c0_i32 : i32, i32
  }
}

module attributes {stable_mosaic.version = 11 : i64} {
  func.func @_conv_bn_relu_kernel(%arg0: i32, %arg1: memref<256x288xbf16, #tpu.memory_space<vmem>>, %arg2: memref<288x128xbf16, #tpu.memory_space<vmem>>, %arg3: memref<1x128xf32, #tpu.memory_space<vmem>>, %arg4: memref<1x128xf32, #tpu.memory_space<vmem>>, %arg5: memref<1x128xf32, #tpu.memory_space<vmem>>, %arg6: memref<256x128xbf16, #tpu.memory_space<vmem>>) attributes {dimension_semantics = [#tpu.dimension_semantics<parallel>], iteration_bounds = array<i64: 1>, scalar_prefetch = 0 : i64, scratch_operands = 0 : i64, tpu.core_type = #tpu.core_type<tc>, window_params = [{transform_indices = @transform_0, window_bounds = array<i64: 256, 288>}, {pipeline_mode = #tpu.pipeline_mode<synchronous>, transform_indices = @transform_1, window_bounds = array<i64: 288, 128>}, {pipeline_mode = #tpu.pipeline_mode<synchronous>, transform_indices = @transform_2, window_bounds = array<i64: 1, 128>}, {pipeline_mode = #tpu.pipeline_mode<synchronous>, transform_indices = @transform_3, window_bounds = array<i64: 1, 128>}, {pipeline_mode = #tpu.pipeline_mode<synchronous>, transform_indices = @transform_4, window_bounds = array<i64: 1, 128>}, {transform_indices = @transform_5, window_bounds = array<i64: 256, 128>}]} {
    %c0 = arith.constant 0 : index
    %c0_0 = arith.constant 0 : index
    %0 = vector.load %arg1[%c0, %c0_0] : memref<256x288xbf16, #tpu.memory_space<vmem>>, vector<256x288xbf16>
    %c0_1 = arith.constant 0 : index
    %c0_2 = arith.constant 0 : index
    %1 = vector.load %arg2[%c0_1, %c0_2] : memref<288x128xbf16, #tpu.memory_space<vmem>>, vector<288x128xbf16>
    %cst = arith.constant dense<0.000000e+00> : vector<256x128xf32>
    %2 = tpu.matmul %0, %1, %cst {dimension_numbers = #tpu.dot_dimension_numbers<[1], [0], [0], [1], [0, 0, 1, 1], [], []>} : vector<256x288xbf16>, vector<288x128xbf16>, vector<256x128xf32> -> vector<256x128xf32>
    %c0_3 = arith.constant 0 : index
    %c0_4 = arith.constant 0 : index
    %3 = vector.load %arg3[%c0_3, %c0_4] : memref<1x128xf32, #tpu.memory_space<vmem>>, vector<1x128xf32>
    %4 = vector.broadcast %3 : vector<1x128xf32> to vector<256x128xf32>
    %5 = arith.addf %2, %4 : vector<256x128xf32>
    %cst_5 = arith.constant 0.000000e+00 : f32
    %6 = vector.broadcast %cst_5 : f32 to vector<256x128xf32>
    %7 = arith.maximumf %5, %6 : vector<256x128xf32>
    %c0_6 = arith.constant 0 : index
    %c0_7 = arith.constant 0 : index
    %8 = vector.load %arg4[%c0_6, %c0_7] : memref<1x128xf32, #tpu.memory_space<vmem>>, vector<1x128xf32>
    %9 = vector.broadcast %8 : vector<1x128xf32> to vector<256x128xf32>
    %10 = arith.mulf %7, %9 : vector<256x128xf32>
    %c0_8 = arith.constant 0 : index
    %c0_9 = arith.constant 0 : index
    %11 = vector.load %arg5[%c0_8, %c0_9] : memref<1x128xf32, #tpu.memory_space<vmem>>, vector<1x128xf32>
    %12 = vector.broadcast %11 : vector<1x128xf32> to vector<256x128xf32>
    %13 = arith.addf %10, %12 : vector<256x128xf32>
    %14 = arith.truncf %13 : vector<256x128xf32> to vector<256x128xbf16>
    %c0_10 = arith.constant 0 : index
    %c0_11 = arith.constant 0 : index
    %15 = vector.load %arg6[%c0_10, %c0_11] : memref<256x128xbf16, #tpu.memory_space<vmem>>, vector<256x128xbf16>
    tpu.vector_store %arg6[%c0_10, %c0_11], %14 {strides = array<i32>} : memref<256x128xbf16, #tpu.memory_space<vmem>>, vector<256x128xbf16>,
    return
  }
  func.func @transform_0(%arg0: i32) -> (i32, i32) {
    %c0_i32 = arith.constant 0 : i32
    %c0_i32_0 = arith.constant 0 : i32
    return %arg0, %c0_i32 : i32, i32
  }
  func.func @transform_1(%arg0: i32) -> (i32, i32) {
    %c0_i32 = arith.constant 0 : i32
    %c0_i32_0 = arith.constant 0 : i32
    %c0_i32_1 = arith.constant 0 : i32
    return %c0_i32, %c0_i32_0 : i32, i32
  }
  func.func @transform_2(%arg0: i32) -> (i32, i32) {
    %c0_i32 = arith.constant 0 : i32
    %c0_i32_0 = arith.constant 0 : i32
    %c0_i32_1 = arith.constant 0 : i32
    return %c0_i32, %c0_i32_0 : i32, i32
  }
  func.func @transform_3(%arg0: i32) -> (i32, i32) {
    %c0_i32 = arith.constant 0 : i32
    %c0_i32_0 = arith.constant 0 : i32
    %c0_i32_1 = arith.constant 0 : i32
    return %c0_i32, %c0_i32_0 : i32, i32
  }
  func.func @transform_4(%arg0: i32) -> (i32, i32) {
    %c0_i32 = arith.constant 0 : i32
    %c0_i32_0 = arith.constant 0 : i32
    %c0_i32_1 = arith.constant 0 : i32
    return %c0_i32, %c0_i32_0 : i32, i32
  }
  func.func @transform_5(%arg0: i32) -> (i32, i32) {
    %c0_i32 = arith.constant 0 : i32
    %c0_i32_0 = arith.constant 0 : i32
    return %arg0, %c0_i32 : i32, i32
  }
}

module attributes {stable_mosaic.version = 11 : i64} {
  func.func @_tail_kernel(%arg0: i32, %arg1: memref<64x576xbf16, #tpu.memory_space<vmem>>, %arg2: memref<576x64xbf16, #tpu.memory_space<vmem>>, %arg3: memref<1x64xf32, #tpu.memory_space<vmem>>, %arg4: memref<1x64xf32, #tpu.memory_space<vmem>>, %arg5: memref<1x64xf32, #tpu.memory_space<vmem>>, %arg6: memref<144x64xbf16, #tpu.memory_space<vmem>>, %arg7: memref<576x128xbf16, #tpu.memory_space<vmem>>, %arg8: memref<1x128xf32, #tpu.memory_space<vmem>>, %arg9: memref<1x128xf32, #tpu.memory_space<vmem>>, %arg10: memref<1x128xf32, #tpu.memory_space<vmem>>, %arg11: memref<144x16xbf16, #tpu.memory_space<vmem>>, %arg12: memref<1152x128xbf16, #tpu.memory_space<vmem>>, %arg13: memref<1x128xf32, #tpu.memory_space<vmem>>, %arg14: memref<1x128xf32, #tpu.memory_space<vmem>>, %arg15: memref<1x128xf32, #tpu.memory_space<vmem>>, %arg16: memref<128x384xbf16, #tpu.memory_space<vmem>>, %arg17: memref<128x384xbf16, #tpu.memory_space<vmem>>, %arg18: memref<1x384xf32, #tpu.memory_space<vmem>>, %arg19: memref<1x128xf32, #tpu.memory_space<vmem>>, %arg20: memref<128x128xbf16, #tpu.memory_space<vmem>>, %arg21: memref<1x128xf32, #tpu.memory_space<vmem>>, %arg22: memref<8x128xf32, #tpu.memory_space<vmem>>) attributes {dimension_semantics = [#tpu.dimension_semantics<arbitrary>], iteration_bounds = array<i64: 1>, scalar_prefetch = 0 : i64, scratch_operands = 0 : i64, tpu.core_type = #tpu.core_type<tc>, window_params = [{pipeline_mode = #tpu.pipeline_mode<synchronous>, transform_indices = @transform_0, window_bounds = array<i64: 64, 576>}, {pipeline_mode = #tpu.pipeline_mode<synchronous>, transform_indices = @transform_1, window_bounds = array<i64: 576, 64>}, {pipeline_mode = #tpu.pipeline_mode<synchronous>, transform_indices = @transform_2, window_bounds = array<i64: 1, 64>}, {pipeline_mode = #tpu.pipeline_mode<synchronous>, transform_indices = @transform_3, window_bounds = array<i64: 1, 64>}, {pipeline_mode = #tpu.pipeline_mode<synchronous>, transform_indices = @transform_4, window_bounds = array<i64: 1, 64>}, {pipeline_mode = #tpu.pipeline_mode<synchronous>, transform_indices = @transform_5, window_bounds = array<i64: 144, 64>}, {pipeline_mode = #tpu.pipeline_mode<synchronous>, transform_indices = @transform_6, window_bounds = array<i64: 576, 128>}, {pipeline_mode = #tpu.pipeline_mode<synchronous>, transform_indices = @transform_7, window_bounds = array<i64: 1, 128>}, {pipeline_mode = #tpu.pipeline_mode<synchronous>, transform_indices = @transform_8, window_bounds = array<i64: 1, 128>}, {pipeline_mode = #tpu.pipeline_mode<synchronous>, transform_indices = @transform_9, window_bounds = array<i64: 1, 128>}, {pipeline_mode = #tpu.pipeline_mode<synchronous>, transform_indices = @transform_10, window_bounds = array<i64: 144, 16>}, {pipeline_mode = #tpu.pipeline_mode<synchronous>, transform_indices = @transform_11, window_bounds = array<i64: 1152, 128>}, {pipeline_mode = #tpu.pipeline_mode<synchronous>, transform_indices = @transform_12, window_bounds = array<i64: 1, 128>}, {pipeline_mode = #tpu.pipeline_mode<synchronous>, transform_indices = @transform_13, window_bounds = array<i64: 1, 128>}, {pipeline_mode = #tpu.pipeline_mode<synchronous>, transform_indices = @transform_14, window_bounds = array<i64: 1, 128>}, {pipeline_mode = #tpu.pipeline_mode<synchronous>, transform_indices = @transform_15, window_bounds = array<i64: 128, 384>}, {pipeline_mode = #tpu.pipeline_mode<synchronous>, transform_indices = @transform_16, window_bounds = array<i64: 128, 384>}, {pipeline_mode = #tpu.pipeline_mode<synchronous>, transform_indices = @transform_17, window_bounds = array<i64: 1, 384>}, {pipeline_mode = #tpu.pipeline_mode<synchronous>, transform_indices = @transform_18, window_bounds = array<i64: 1, 128>}, {pipeline_mode = #tpu.pipeline_mode<synchronous>, transform_indices = @transform_19, window_bounds = array<i64: 128, 128>}, {pipeline_mode = #tpu.pipeline_mode<synchronous>, transform_indices = @transform_20, window_bounds = array<i64: 1, 128>}, {pipeline_mode = #tpu.pipeline_mode<synchronous>, transform_indices = @transform_21, window_bounds = array<i64: 8, 128>}]} {
    %c0 = arith.constant 0 : index
    %c0_0 = arith.constant 0 : index
    %0 = vector.load %arg1[%c0, %c0_0] : memref<64x576xbf16, #tpu.memory_space<vmem>>, vector<64x576xbf16>
    %c0_1 = arith.constant 0 : index
    %c0_2 = arith.constant 0 : index
    %1 = vector.load %arg2[%c0_1, %c0_2] : memref<576x64xbf16, #tpu.memory_space<vmem>>, vector<576x64xbf16>
    %cst = arith.constant dense<0.000000e+00> : vector<64x64xf32>
    %2 = tpu.matmul %0, %1, %cst {dimension_numbers = #tpu.dot_dimension_numbers<[1], [0], [0], [1], [0, 0, 1, 1], [], []>} : vector<64x576xbf16>, vector<576x64xbf16>, vector<64x64xf32> -> vector<64x64xf32>
    %c0_3 = arith.constant 0 : index
    %c0_4 = arith.constant 0 : index
    %3 = vector.load %arg3[%c0_3, %c0_4] : memref<1x64xf32, #tpu.memory_space<vmem>>, vector<1x64xf32>
    %4 = vector.broadcast %3 : vector<1x64xf32> to vector<64x64xf32>
    %5 = arith.addf %2, %4 : vector<64x64xf32>
    %cst_5 = arith.constant 0.000000e+00 : f32
    %6 = vector.broadcast %cst_5 : f32 to vector<64x64xf32>
    %7 = arith.maximumf %5, %6 : vector<64x64xf32>
    %c0_6 = arith.constant 0 : index
    %c0_7 = arith.constant 0 : index
    %8 = vector.load %arg4[%c0_6, %c0_7] : memref<1x64xf32, #tpu.memory_space<vmem>>, vector<1x64xf32>
    %9 = vector.broadcast %8 : vector<1x64xf32> to vector<64x64xf32>
    %10 = arith.mulf %7, %9 : vector<64x64xf32>
    %c0_8 = arith.constant 0 : index
    %c0_9 = arith.constant 0 : index
    %11 = vector.load %arg5[%c0_8, %c0_9] : memref<1x64xf32, #tpu.memory_space<vmem>>, vector<1x64xf32>
    %12 = vector.broadcast %11 : vector<1x64xf32> to vector<64x64xf32>
    %13 = arith.addf %10, %12 : vector<64x64xf32>
    %14 = arith.truncf %13 : vector<64x64xf32> to vector<64x64xbf16>
    %cst_10 = arith.constant 0.000000e+00 : f32
    %15 = vector.broadcast %cst_10 : f32 to vector<16x128xf32>
    %c0_11 = arith.constant 0 : index
    %c0_12 = arith.constant 0 : index
    %16 = vector.load %arg6[%c0_11, %c0_12] : memref<144x64xbf16, #tpu.memory_space<vmem>>, vector<16x64xbf16>
    %c0_13 = arith.constant 0 : index
    %c0_14 = arith.constant 0 : index
    %17 = vector.load %arg7[%c0_13, %c0_14] : memref<576x128xbf16, #tpu.memory_space<vmem>>, vector<64x128xbf16>
    %cst_15 = arith.constant dense<0.000000e+00> : vector<16x64xf32>
    %18 = tpu.matmul %16, %14, %cst_15 {dimension_numbers = #tpu.dot_dimension_numbers<[1], [0], [0], [1], [0, 0, 1, 1], [], []>} : vector<16x64xbf16>, vector<64x64xbf16>, vector<16x64xf32> -> vector<16x64xf32>
    %19 = arith.truncf %18 : vector<16x64xf32> to vector<16x64xbf16>
    %cst_16 = arith.constant dense<0.000000e+00> : vector<16x128xf32>
    %20 = tpu.matmul %19, %17, %cst_16 {dimension_numbers = #tpu.dot_dimension_numbers<[1], [0], [0], [1], [0, 0, 1, 1], [], []>} : vector<16x64xbf16>, vector<64x128xbf16>, vector<16x128xf32> -> vector<16x128xf32>
    %21 = arith.addf %15, %20 : vector<16x128xf32>
    %c16 = arith.constant 16 : index
    %c0_17 = arith.constant 0 : index
    %22 = vector.load %arg6[%c16, %c0_17] : memref<144x64xbf16, #tpu.memory_space<vmem>>, vector<16x64xbf16>
    %c64 = arith.constant 64 : index
    %c0_18 = arith.constant 0 : index
    %23 = vector.load %arg7[%c64, %c0_18] : memref<576x128xbf16, #tpu.memory_space<vmem>>, vector<64x128xbf16>
    %cst_19 = arith.constant dense<0.000000e+00> : vector<16x64xf32>
    %24 = tpu.matmul %22, %14, %cst_19 {dimension_numbers = #tpu.dot_dimension_numbers<[1], [0], [0], [1], [0, 0, 1, 1], [], []>} : vector<16x64xbf16>, vector<64x64xbf16>, vector<16x64xf32> -> vector<16x64xf32>
    %25 = arith.truncf %24 : vector<16x64xf32> to vector<16x64xbf16>
    %cst_20 = arith.constant dense<0.000000e+00> : vector<16x128xf32>
    %26 = tpu.matmul %25, %23, %cst_20 {dimension_numbers = #tpu.dot_dimension_numbers<[1], [0], [0], [1], [0, 0, 1, 1], [], []>} : vector<16x64xbf16>, vector<64x128xbf16>, vector<16x128xf32> -> vector<16x128xf32>
    %27 = arith.addf %21, %26 : vector<16x128xf32>
    %c32 = arith.constant 32 : index
    %c0_21 = arith.constant 0 : index
    %28 = vector.load %arg6[%c32, %c0_21] : memref<144x64xbf16, #tpu.memory_space<vmem>>, vector<16x64xbf16>
    %c128 = arith.constant 128 : index
    %c0_22 = arith.constant 0 : index
    %29 = vector.load %arg7[%c128, %c0_22] : memref<576x128xbf16, #tpu.memory_space<vmem>>, vector<64x128xbf16>
    %cst_23 = arith.constant dense<0.000000e+00> : vector<16x64xf32>
    %30 = tpu.matmul %28, %14, %cst_23 {dimension_numbers = #tpu.dot_dimension_numbers<[1], [0], [0], [1], [0, 0, 1, 1], [], []>} : vector<16x64xbf16>, vector<64x64xbf16>, vector<16x64xf32> -> vector<16x64xf32>
    %31 = arith.truncf %30 : vector<16x64xf32> to vector<16x64xbf16>
    %cst_24 = arith.constant dense<0.000000e+00> : vector<16x128xf32>
    %32 = tpu.matmul %31, %29, %cst_24 {dimension_numbers = #tpu.dot_dimension_numbers<[1], [0], [0], [1], [0, 0, 1, 1], [], []>} : vector<16x64xbf16>, vector<64x128xbf16>, vector<16x128xf32> -> vector<16x128xf32>
    %33 = arith.addf %27, %32 : vector<16x128xf32>
    %c48 = arith.constant 48 : index
    %c0_25 = arith.constant 0 : index
    %34 = vector.load %arg6[%c48, %c0_25] : memref<144x64xbf16, #tpu.memory_space<vmem>>, vector<16x64xbf16>
    %c192 = arith.constant 192 : index
    %c0_26 = arith.constant 0 : index
    %35 = vector.load %arg7[%c192, %c0_26] : memref<576x128xbf16, #tpu.memory_space<vmem>>, vector<64x128xbf16>
    %cst_27 = arith.constant dense<0.000000e+00> : vector<16x64xf32>
    %36 = tpu.matmul %34, %14, %cst_27 {dimension_numbers = #tpu.dot_dimension_numbers<[1], [0], [0], [1], [0, 0, 1, 1], [], []>} : vector<16x64xbf16>, vector<64x64xbf16>, vector<16x64xf32> -> vector<16x64xf32>
    %37 = arith.truncf %36 : vector<16x64xf32> to vector<16x64xbf16>
    %cst_28 = arith.constant dense<0.000000e+00> : vector<16x128xf32>
    %38 = tpu.matmul %37, %35, %cst_28 {dimension_numbers = #tpu.dot_dimension_numbers<[1], [0], [0], [1], [0, 0, 1, 1], [], []>} : vector<16x64xbf16>, vector<64x128xbf16>, vector<16x128xf32> -> vector<16x128xf32>
    %39 = arith.addf %33, %38 : vector<16x128xf32>
    %c64_29 = arith.constant 64 : index
    %c0_30 = arith.constant 0 : index
    %40 = vector.load %arg6[%c64_29, %c0_30] : memref<144x64xbf16, #tpu.memory_space<vmem>>, vector<16x64xbf16>
    %c256 = arith.constant 256 : index
    %c0_31 = arith.constant 0 : index
    %41 = vector.load %arg7[%c256, %c0_31] : memref<576x128xbf16, #tpu.memory_space<vmem>>, vector<64x128xbf16>
    %cst_32 = arith.constant dense<0.000000e+00> : vector<16x64xf32>
    %42 = tpu.matmul %40, %14, %cst_32 {dimension_numbers = #tpu.dot_dimension_numbers<[1], [0], [0], [1], [0, 0, 1, 1], [], []>} : vector<16x64xbf16>, vector<64x64xbf16>, vector<16x64xf32> -> vector<16x64xf32>
    %43 = arith.truncf %42 : vector<16x64xf32> to vector<16x64xbf16>
    %cst_33 = arith.constant dense<0.000000e+00> : vector<16x128xf32>
    %44 = tpu.matmul %43, %41, %cst_33 {dimension_numbers = #tpu.dot_dimension_numbers<[1], [0], [0], [1], [0, 0, 1, 1], [], []>} : vector<16x64xbf16>, vector<64x128xbf16>, vector<16x128xf32> -> vector<16x128xf32>
    %45 = arith.addf %39, %44 : vector<16x128xf32>
    %c80 = arith.constant 80 : index
    %c0_34 = arith.constant 0 : index
    %46 = vector.load %arg6[%c80, %c0_34] : memref<144x64xbf16, #tpu.memory_space<vmem>>, vector<16x64xbf16>
    %c320 = arith.constant 320 : index
    %c0_35 = arith.constant 0 : index
    %47 = vector.load %arg7[%c320, %c0_35] : memref<576x128xbf16, #tpu.memory_space<vmem>>, vector<64x128xbf16>
    %cst_36 = arith.constant dense<0.000000e+00> : vector<16x64xf32>
    %48 = tpu.matmul %46, %14, %cst_36 {dimension_numbers = #tpu.dot_dimension_numbers<[1], [0], [0], [1], [0, 0, 1, 1], [], []>} : vector<16x64xbf16>, vector<64x64xbf16>, vector<16x64xf32> -> vector<16x64xf32>
    %49 = arith.truncf %48 : vector<16x64xf32> to vector<16x64xbf16>
    %cst_37 = arith.constant dense<0.000000e+00> : vector<16x128xf32>
    %50 = tpu.matmul %49, %47, %cst_37 {dimension_numbers = #tpu.dot_dimension_numbers<[1], [0], [0], [1], [0, 0, 1, 1], [], []>} : vector<16x64xbf16>, vector<64x128xbf16>, vector<16x128xf32> -> vector<16x128xf32>
    %51 = arith.addf %45, %50 : vector<16x128xf32>
    %c96 = arith.constant 96 : index
    %c0_38 = arith.constant 0 : index
    %52 = vector.load %arg6[%c96, %c0_38] : memref<144x64xbf16, #tpu.memory_space<vmem>>, vector<16x64xbf16>
    %c384 = arith.constant 384 : index
    %c0_39 = arith.constant 0 : index
    %53 = vector.load %arg7[%c384, %c0_39] : memref<576x128xbf16, #tpu.memory_space<vmem>>, vector<64x128xbf16>
    %cst_40 = arith.constant dense<0.000000e+00> : vector<16x64xf32>
    %54 = tpu.matmul %52, %14, %cst_40 {dimension_numbers = #tpu.dot_dimension_numbers<[1], [0], [0], [1], [0, 0, 1, 1], [], []>} : vector<16x64xbf16>, vector<64x64xbf16>, vector<16x64xf32> -> vector<16x64xf32>
    %55 = arith.truncf %54 : vector<16x64xf32> to vector<16x64xbf16>
    %cst_41 = arith.constant dense<0.000000e+00> : vector<16x128xf32>
    %56 = tpu.matmul %55, %53, %cst_41 {dimension_numbers = #tpu.dot_dimension_numbers<[1], [0], [0], [1], [0, 0, 1, 1], [], []>} : vector<16x64xbf16>, vector<64x128xbf16>, vector<16x128xf32> -> vector<16x128xf32>
    %57 = arith.addf %51, %56 : vector<16x128xf32>
    %c112 = arith.constant 112 : index
    %c0_42 = arith.constant 0 : index
    %58 = vector.load %arg6[%c112, %c0_42] : memref<144x64xbf16, #tpu.memory_space<vmem>>, vector<16x64xbf16>
    %c448 = arith.constant 448 : index
    %c0_43 = arith.constant 0 : index
    %59 = vector.load %arg7[%c448, %c0_43] : memref<576x128xbf16, #tpu.memory_space<vmem>>, vector<64x128xbf16>
    %cst_44 = arith.constant dense<0.000000e+00> : vector<16x64xf32>
    %60 = tpu.matmul %58, %14, %cst_44 {dimension_numbers = #tpu.dot_dimension_numbers<[1], [0], [0], [1], [0, 0, 1, 1], [], []>} : vector<16x64xbf16>, vector<64x64xbf16>, vector<16x64xf32> -> vector<16x64xf32>
    %61 = arith.truncf %60 : vector<16x64xf32> to vector<16x64xbf16>
    %cst_45 = arith.constant dense<0.000000e+00> : vector<16x128xf32>
    %62 = tpu.matmul %61, %59, %cst_45 {dimension_numbers = #tpu.dot_dimension_numbers<[1], [0], [0], [1], [0, 0, 1, 1], [], []>} : vector<16x64xbf16>, vector<64x128xbf16>, vector<16x128xf32> -> vector<16x128xf32>
    %63 = arith.addf %57, %62 : vector<16x128xf32>
    %c128_46 = arith.constant 128 : index
    %c0_47 = arith.constant 0 : index
    %64 = vector.load %arg6[%c128_46, %c0_47] : memref<144x64xbf16, #tpu.memory_space<vmem>>, vector<16x64xbf16>
    %c512 = arith.constant 512 : index
    %c0_48 = arith.constant 0 : index
    %65 = vector.load %arg7[%c512, %c0_48] : memref<576x128xbf16, #tpu.memory_space<vmem>>, vector<64x128xbf16>
    %cst_49 = arith.constant dense<0.000000e+00> : vector<16x64xf32>
    %66 = tpu.matmul %64, %14, %cst_49 {dimension_numbers = #tpu.dot_dimension_numbers<[1], [0], [0], [1], [0, 0, 1, 1], [], []>} : vector<16x64xbf16>, vector<64x64xbf16>, vector<16x64xf32> -> vector<16x64xf32>
    %67 = arith.truncf %66 : vector<16x64xf32> to vector<16x64xbf16>
    %cst_50 = arith.constant dense<0.000000e+00> : vector<16x128xf32>
    %68 = tpu.matmul %67, %65, %cst_50 {dimension_numbers = #tpu.dot_dimension_numbers<[1], [0], [0], [1], [0, 0, 1, 1], [], []>} : vector<16x64xbf16>, vector<64x128xbf16>, vector<16x128xf32> -> vector<16x128xf32>
    %69 = arith.addf %63, %68 : vector<16x128xf32>
    %c0_51 = arith.constant 0 : index
    %c0_52 = arith.constant 0 : index
    %70 = vector.load %arg8[%c0_51, %c0_52] : memref<1x128xf32, #tpu.memory_space<vmem>>, vector<1x128xf32>
    %71 = vector.broadcast %70 : vector<1x128xf32> to vector<16x128xf32>
    %72 = arith.addf %69, %71 : vector<16x128xf32>
    %cst_53 = arith.constant 0.000000e+00 : f32
    %73 = vector.broadcast %cst_53 : f32 to vector<16x128xf32>
    %74 = arith.maximumf %72, %73 : vector<16x128xf32>
    %c0_54 = arith.constant 0 : index
    %c0_55 = arith.constant 0 : index
    %75 = vector.load %arg9[%c0_54, %c0_55] : memref<1x128xf32, #tpu.memory_space<vmem>>, vector<1x128xf32>
    %76 = vector.broadcast %75 : vector<1x128xf32> to vector<16x128xf32>
    %77 = arith.mulf %74, %76 : vector<16x128xf32>
    %c0_56 = arith.constant 0 : index
    %c0_57 = arith.constant 0 : index
    %78 = vector.load %arg10[%c0_56, %c0_57] : memref<1x128xf32, #tpu.memory_space<vmem>>, vector<1x128xf32>
    %79 = vector.broadcast %78 : vector<1x128xf32> to vector<16x128xf32>
    %80 = arith.addf %77, %79 : vector<16x128xf32>
    %81 = arith.truncf %80 : vector<16x128xf32> to vector<16x128xbf16>
    %cst_58 = arith.constant 0.000000e+00 : f32
    %82 = vector.broadcast %cst_58 : f32 to vector<16x128xf32>
    %c0_59 = arith.constant 0 : index
    %c0_60 = arith.constant 0 : index
    %83 = vector.load %arg11[%c0_59, %c0_60] : memref<144x16xbf16, #tpu.memory_space<vmem>>, vector<16x16xbf16>
    %c0_61 = arith.constant 0 : index
    %c0_62 = arith.constant 0 : index
    %84 = vector.load %arg12[%c0_61, %c0_62] : memref<1152x128xbf16, #tpu.memory_space<vmem>>, vector<128x128xbf16>
    %cst_63 = arith.constant dense<0.000000e+00> : vector<16x128xf32>
    %85 = tpu.matmul %83, %81, %cst_63 {dimension_numbers = #tpu.dot_dimension_numbers<[1], [0], [0], [1], [0, 0, 1, 1], [], []>} : vector<16x16xbf16>, vector<16x128xbf16>, vector<16x128xf32> -> vector<16x128xf32>
    %86 = arith.truncf %85 : vector<16x128xf32> to vector<16x128xbf16>
    %cst_64 = arith.constant dense<0.000000e+00> : vector<16x128xf32>
    %87 = tpu.matmul %86, %84, %cst_64 {dimension_numbers = #tpu.dot_dimension_numbers<[1], [0], [0], [1], [0, 0, 1, 1], [], []>} : vector<16x128xbf16>, vector<128x128xbf16>, vector<16x128xf32> -> vector<16x128xf32>
    %88 = arith.addf %82, %87 : vector<16x128xf32>
    %c16_65 = arith.constant 16 : index
    %c0_66 = arith.constant 0 : index
    %89 = vector.load %arg11[%c16_65, %c0_66] : memref<144x16xbf16, #tpu.memory_space<vmem>>, vector<16x16xbf16>
    %c128_67 = arith.constant 128 : index
    %c0_68 = arith.constant 0 : index
    %90 = vector.load %arg12[%c128_67, %c0_68] : memref<1152x128xbf16, #tpu.memory_space<vmem>>, vector<128x128xbf16>
    %cst_69 = arith.constant dense<0.000000e+00> : vector<16x128xf32>
    %91 = tpu.matmul %89, %81, %cst_69 {dimension_numbers = #tpu.dot_dimension_numbers<[1], [0], [0], [1], [0, 0, 1, 1], [], []>} : vector<16x16xbf16>, vector<16x128xbf16>, vector<16x128xf32> -> vector<16x128xf32>
    %92 = arith.truncf %91 : vector<16x128xf32> to vector<16x128xbf16>
    %cst_70 = arith.constant dense<0.000000e+00> : vector<16x128xf32>
    %93 = tpu.matmul %92, %90, %cst_70 {dimension_numbers = #tpu.dot_dimension_numbers<[1], [0], [0], [1], [0, 0, 1, 1], [], []>} : vector<16x128xbf16>, vector<128x128xbf16>, vector<16x128xf32> -> vector<16x128xf32>
    %94 = arith.addf %88, %93 : vector<16x128xf32>
    %c32_71 = arith.constant 32 : index
    %c0_72 = arith.constant 0 : index
    %95 = vector.load %arg11[%c32_71, %c0_72] : memref<144x16xbf16, #tpu.memory_space<vmem>>, vector<16x16xbf16>
    %c256_73 = arith.constant 256 : index
    %c0_74 = arith.constant 0 : index
    %96 = vector.load %arg12[%c256_73, %c0_74] : memref<1152x128xbf16, #tpu.memory_space<vmem>>, vector<128x128xbf16>
    %cst_75 = arith.constant dense<0.000000e+00> : vector<16x128xf32>
    %97 = tpu.matmul %95, %81, %cst_75 {dimension_numbers = #tpu.dot_dimension_numbers<[1], [0], [0], [1], [0, 0, 1, 1], [], []>} : vector<16x16xbf16>, vector<16x128xbf16>, vector<16x128xf32> -> vector<16x128xf32>
    %98 = arith.truncf %97 : vector<16x128xf32> to vector<16x128xbf16>
    %cst_76 = arith.constant dense<0.000000e+00> : vector<16x128xf32>
    %99 = tpu.matmul %98, %96, %cst_76 {dimension_numbers = #tpu.dot_dimension_numbers<[1], [0], [0], [1], [0, 0, 1, 1], [], []>} : vector<16x128xbf16>, vector<128x128xbf16>, vector<16x128xf32> -> vector<16x128xf32>
    %100 = arith.addf %94, %99 : vector<16x128xf32>
    %c48_77 = arith.constant 48 : index
    %c0_78 = arith.constant 0 : index
    %101 = vector.load %arg11[%c48_77, %c0_78] : memref<144x16xbf16, #tpu.memory_space<vmem>>, vector<16x16xbf16>
    %c384_79 = arith.constant 384 : index
    %c0_80 = arith.constant 0 : index
    %102 = vector.load %arg12[%c384_79, %c0_80] : memref<1152x128xbf16, #tpu.memory_space<vmem>>, vector<128x128xbf16>
    %cst_81 = arith.constant dense<0.000000e+00> : vector<16x128xf32>
    %103 = tpu.matmul %101, %81, %cst_81 {dimension_numbers = #tpu.dot_dimension_numbers<[1], [0], [0], [1], [0, 0, 1, 1], [], []>} : vector<16x16xbf16>, vector<16x128xbf16>, vector<16x128xf32> -> vector<16x128xf32>
    %104 = arith.truncf %103 : vector<16x128xf32> to vector<16x128xbf16>
    %cst_82 = arith.constant dense<0.000000e+00> : vector<16x128xf32>
    %105 = tpu.matmul %104, %102, %cst_82 {dimension_numbers = #tpu.dot_dimension_numbers<[1], [0], [0], [1], [0, 0, 1, 1], [], []>} : vector<16x128xbf16>, vector<128x128xbf16>, vector<16x128xf32> -> vector<16x128xf32>
    %106 = arith.addf %100, %105 : vector<16x128xf32>
    %c64_83 = arith.constant 64 : index
    %c0_84 = arith.constant 0 : index
    %107 = vector.load %arg11[%c64_83, %c0_84] : memref<144x16xbf16, #tpu.memory_space<vmem>>, vector<16x16xbf16>
    %c512_85 = arith.constant 512 : index
    %c0_86 = arith.constant 0 : index
    %108 = vector.load %arg12[%c512_85, %c0_86] : memref<1152x128xbf16, #tpu.memory_space<vmem>>, vector<128x128xbf16>
    %cst_87 = arith.constant dense<0.000000e+00> : vector<16x128xf32>
    %109 = tpu.matmul %107, %81, %cst_87 {dimension_numbers = #tpu.dot_dimension_numbers<[1], [0], [0], [1], [0, 0, 1, 1], [], []>} : vector<16x16xbf16>, vector<16x128xbf16>, vector<16x128xf32> -> vector<16x128xf32>
    %110 = arith.truncf %109 : vector<16x128xf32> to vector<16x128xbf16>
    %cst_88 = arith.constant dense<0.000000e+00> : vector<16x128xf32>
    %111 = tpu.matmul %110, %108, %cst_88 {dimension_numbers = #tpu.dot_dimension_numbers<[1], [0], [0], [1], [0, 0, 1, 1], [], []>} : vector<16x128xbf16>, vector<128x128xbf16>, vector<16x128xf32> -> vector<16x128xf32>
    %112 = arith.addf %106, %111 : vector<16x128xf32>
    %c80_89 = arith.constant 80 : index
    %c0_90 = arith.constant 0 : index
    %113 = vector.load %arg11[%c80_89, %c0_90] : memref<144x16xbf16, #tpu.memory_space<vmem>>, vector<16x16xbf16>
    %c640 = arith.constant 640 : index
    %c0_91 = arith.constant 0 : index
    %114 = vector.load %arg12[%c640, %c0_91] : memref<1152x128xbf16, #tpu.memory_space<vmem>>, vector<128x128xbf16>
    %cst_92 = arith.constant dense<0.000000e+00> : vector<16x128xf32>
    %115 = tpu.matmul %113, %81, %cst_92 {dimension_numbers = #tpu.dot_dimension_numbers<[1], [0], [0], [1], [0, 0, 1, 1], [], []>} : vector<16x16xbf16>, vector<16x128xbf16>, vector<16x128xf32> -> vector<16x128xf32>
    %116 = arith.truncf %115 : vector<16x128xf32> to vector<16x128xbf16>
    %cst_93 = arith.constant dense<0.000000e+00> : vector<16x128xf32>
    %117 = tpu.matmul %116, %114, %cst_93 {dimension_numbers = #tpu.dot_dimension_numbers<[1], [0], [0], [1], [0, 0, 1, 1], [], []>} : vector<16x128xbf16>, vector<128x128xbf16>, vector<16x128xf32> -> vector<16x128xf32>
    %118 = arith.addf %112, %117 : vector<16x128xf32>
    %c96_94 = arith.constant 96 : index
    %c0_95 = arith.constant 0 : index
    %119 = vector.load %arg11[%c96_94, %c0_95] : memref<144x16xbf16, #tpu.memory_space<vmem>>, vector<16x16xbf16>
    %c768 = arith.constant 768 : index
    %c0_96 = arith.constant 0 : index
    %120 = vector.load %arg12[%c768, %c0_96] : memref<1152x128xbf16, #tpu.memory_space<vmem>>, vector<128x128xbf16>
    %cst_97 = arith.constant dense<0.000000e+00> : vector<16x128xf32>
    %121 = tpu.matmul %119, %81, %cst_97 {dimension_numbers = #tpu.dot_dimension_numbers<[1], [0], [0], [1], [0, 0, 1, 1], [], []>} : vector<16x16xbf16>, vector<16x128xbf16>, vector<16x128xf32> -> vector<16x128xf32>
    %122 = arith.truncf %121 : vector<16x128xf32> to vector<16x128xbf16>
    %cst_98 = arith.constant dense<0.000000e+00> : vector<16x128xf32>
    %123 = tpu.matmul %122, %120, %cst_98 {dimension_numbers = #tpu.dot_dimension_numbers<[1], [0], [0], [1], [0, 0, 1, 1], [], []>} : vector<16x128xbf16>, vector<128x128xbf16>, vector<16x128xf32> -> vector<16x128xf32>
    %124 = arith.addf %118, %123 : vector<16x128xf32>
    %c112_99 = arith.constant 112 : index
    %c0_100 = arith.constant 0 : index
    %125 = vector.load %arg11[%c112_99, %c0_100] : memref<144x16xbf16, #tpu.memory_space<vmem>>, vector<16x16xbf16>
    %c896 = arith.constant 896 : index
    %c0_101 = arith.constant 0 : index
    %126 = vector.load %arg12[%c896, %c0_101] : memref<1152x128xbf16, #tpu.memory_space<vmem>>, vector<128x128xbf16>
    %cst_102 = arith.constant dense<0.000000e+00> : vector<16x128xf32>
    %127 = tpu.matmul %125, %81, %cst_102 {dimension_numbers = #tpu.dot_dimension_numbers<[1], [0], [0], [1], [0, 0, 1, 1], [], []>} : vector<16x16xbf16>, vector<16x128xbf16>, vector<16x128xf32> -> vector<16x128xf32>
    %128 = arith.truncf %127 : vector<16x128xf32> to vector<16x128xbf16>
    %cst_103 = arith.constant dense<0.000000e+00> : vector<16x128xf32>
    %129 = tpu.matmul %128, %126, %cst_103 {dimension_numbers = #tpu.dot_dimension_numbers<[1], [0], [0], [1], [0, 0, 1, 1], [], []>} : vector<16x128xbf16>, vector<128x128xbf16>, vector<16x128xf32> -> vector<16x128xf32>
    %130 = arith.addf %124, %129 : vector<16x128xf32>
    %c128_104 = arith.constant 128 : index
    %c0_105 = arith.constant 0 : index
    %131 = vector.load %arg11[%c128_104, %c0_105] : memref<144x16xbf16, #tpu.memory_space<vmem>>, vector<16x16xbf16>
    %c1024 = arith.constant 1024 : index
    %c0_106 = arith.constant 0 : index
    %132 = vector.load %arg12[%c1024, %c0_106] : memref<1152x128xbf16, #tpu.memory_space<vmem>>, vector<128x128xbf16>
    %cst_107 = arith.constant dense<0.000000e+00> : vector<16x128xf32>
    %133 = tpu.matmul %131, %81, %cst_107 {dimension_numbers = #tpu.dot_dimension_numbers<[1], [0], [0], [1], [0, 0, 1, 1], [], []>} : vector<16x16xbf16>, vector<16x128xbf16>, vector<16x128xf32> -> vector<16x128xf32>
    %134 = arith.truncf %133 : vector<16x128xf32> to vector<16x128xbf16>
    %cst_108 = arith.constant dense<0.000000e+00> : vector<16x128xf32>
    %135 = tpu.matmul %134, %132, %cst_108 {dimension_numbers = #tpu.dot_dimension_numbers<[1], [0], [0], [1], [0, 0, 1, 1], [], []>} : vector<16x128xbf16>, vector<128x128xbf16>, vector<16x128xf32> -> vector<16x128xf32>
    %136 = arith.addf %130, %135 : vector<16x128xf32>
    %c0_109 = arith.constant 0 : index
    %c0_110 = arith.constant 0 : index
    %137 = vector.load %arg13[%c0_109, %c0_110] : memref<1x128xf32, #tpu.memory_space<vmem>>, vector<1x128xf32>
    %138 = vector.broadcast %137 : vector<1x128xf32> to vector<16x128xf32>
    %139 = arith.addf %136, %138 : vector<16x128xf32>
    %cst_111 = arith.constant 0.000000e+00 : f32
    %140 = vector.broadcast %cst_111 : f32 to vector<16x128xf32>
    %141 = arith.maximumf %139, %140 : vector<16x128xf32>
    %c0_112 = arith.constant 0 : index
    %c0_113 = arith.constant 0 : index
    %142 = vector.load %arg14[%c0_112, %c0_113] : memref<1x128xf32, #tpu.memory_space<vmem>>, vector<1x128xf32>
    %143 = vector.broadcast %142 : vector<1x128xf32> to vector<16x128xf32>
    %144 = arith.mulf %141, %143 : vector<16x128xf32>
    %c0_114 = arith.constant 0 : index
    %c0_115 = arith.constant 0 : index
    %145 = vector.load %arg15[%c0_114, %c0_115] : memref<1x128xf32, #tpu.memory_space<vmem>>, vector<1x128xf32>
    %146 = vector.broadcast %145 : vector<1x128xf32> to vector<16x128xf32>
    %147 = arith.addf %144, %146 : vector<16x128xf32>
    %148 = arith.truncf %147 : vector<16x128xf32> to vector<16x128xbf16>
    %c0_116 = arith.constant 0 : index
    %c0_117 = arith.constant 0 : index
    %149 = vector.load %arg16[%c0_116, %c0_117] : memref<128x384xbf16, #tpu.memory_space<vmem>>, vector<128x384xbf16>
    %cst_118 = arith.constant dense<0.000000e+00> : vector<16x384xf32>
    %150 = tpu.matmul %148, %149, %cst_118 {dimension_numbers = #tpu.dot_dimension_numbers<[1], [0], [0], [1], [0, 0, 1, 1], [], []>} : vector<16x128xbf16>, vector<128x384xbf16>, vector<16x384xf32> -> vector<16x384xf32>
    %c0_119 = arith.constant 0 : index
    %c0_120 = arith.constant 0 : index
    %151 = vector.load %arg18[%c0_119, %c0_120] : memref<1x384xf32, #tpu.memory_space<vmem>>, vector<1x384xf32>
    %152 = vector.broadcast %151 : vector<1x384xf32> to vector<16x384xf32>
    %153 = arith.addf %150, %152 : vector<16x384xf32>
    %c0_121 = arith.constant 0 : index
    %c0_122 = arith.constant 0 : index
    %154 = vector.load %arg19[%c0_121, %c0_122] : memref<1x128xf32, #tpu.memory_space<vmem>>, vector<1x128xf32>
    %cst_123 = arith.constant 0.000000e+00 : f32
    %155 = vector.broadcast %cst_123 : f32 to vector<8x128xf32>
    %156 = vector.extract_strided_slice %153 {offsets = [0, 0], sizes = [8, 384], strides = [1, 1]} : vector<16x384xf32> to vector<8x384xf32>
    %157 = arith.truncf %155 : vector<8x128xf32> to vector<8x128xbf16>
    %c0_124 = arith.constant 0 : index
    %c0_125 = arith.constant 0 : index
    %158 = vector.load %arg17[%c0_124, %c0_125] : memref<128x384xbf16, #tpu.memory_space<vmem>>, vector<128x384xbf16>
    %cst_126 = arith.constant dense<0.000000e+00> : vector<8x384xf32>
    %159 = tpu.matmul %157, %158, %cst_126 {dimension_numbers = #tpu.dot_dimension_numbers<[1], [0], [0], [1], [0, 0, 1, 1], [], []>} : vector<8x128xbf16>, vector<128x384xbf16>, vector<8x384xf32> -> vector<8x384xf32>
    %160 = vector.extract_strided_slice %156 {offsets = [0, 0], sizes = [8, 128], strides = [1, 1]} : vector<8x384xf32> to vector<8x128xf32>
    %161 = vector.extract_strided_slice %159 {offsets = [0, 0], sizes = [8, 128], strides = [1, 1]} : vector<8x384xf32> to vector<8x128xf32>
    %162 = arith.addf %160, %161 : vector<8x128xf32>
    %163 = arith.negf %162 : vector<8x128xf32>
    %164 = math.exp %163 : vector<8x128xf32>
    %cst_127 = arith.constant 1.000000e+00 : f32
    %165 = vector.broadcast %cst_127 : f32 to vector<8x128xf32>
    %166 = arith.addf %165, %164 : vector<8x128xf32>
    %167 = arith.divf %165, %166 : vector<8x128xf32>
    %168 = vector.extract_strided_slice %156 {offsets = [0, 128], sizes = [8, 128], strides = [1, 1]} : vector<8x384xf32> to vector<8x128xf32>
    %169 = vector.extract_strided_slice %159 {offsets = [0, 128], sizes = [8, 128], strides = [1, 1]} : vector<8x384xf32> to vector<8x128xf32>
    %170 = arith.addf %168, %169 : vector<8x128xf32>
    %171 = arith.negf %170 : vector<8x128xf32>
    %172 = math.exp %171 : vector<8x128xf32>
    %cst_128 = arith.constant 1.000000e+00 : f32
    %173 = vector.broadcast %cst_128 : f32 to vector<8x128xf32>
    %174 = arith.addf %173, %172 : vector<8x128xf32>
    %175 = arith.divf %173, %174 : vector<8x128xf32>
    %176 = vector.extract_strided_slice %156 {offsets = [0, 256], sizes = [8, 128], strides = [1, 1]} : vector<8x384xf32> to vector<8x128xf32>
    %177 = vector.extract_strided_slice %159 {offsets = [0, 256], sizes = [8, 128], strides = [1, 1]} : vector<8x384xf32> to vector<8x128xf32>
    %178 = vector.broadcast %154 : vector<1x128xf32> to vector<8x128xf32>
    %179 = arith.addf %177, %178 : vector<8x128xf32>
    %180 = arith.mulf %167, %179 : vector<8x128xf32>
    %181 = arith.addf %176, %180 : vector<8x128xf32>
    %182 = math.tanh %181 : vector<8x128xf32>
    %cst_129 = arith.constant 1.000000e+00 : f32
    %183 = vector.broadcast %cst_129 : f32 to vector<8x128xf32>
    %184 = arith.subf %183, %175 : vector<8x128xf32>
    %185 = arith.mulf %184, %182 : vector<8x128xf32>
    %186 = arith.mulf %175, %155 : vector<8x128xf32>
    %187 = arith.addf %185, %186 : vector<8x128xf32>
    %188 = vector.extract_strided_slice %153 {offsets = [8, 0], sizes = [8, 384], strides = [1, 1]} : vector<16x384xf32> to vector<8x384xf32>
    %189 = arith.truncf %187 : vector<8x128xf32> to vector<8x128xbf16>
    %c0_130 = arith.constant 0 : index
    %c0_131 = arith.constant 0 : index
    %190 = vector.load %arg17[%c0_130, %c0_131] : memref<128x384xbf16, #tpu.memory_space<vmem>>, vector<128x384xbf16>
    %cst_132 = arith.constant dense<0.000000e+00> : vector<8x384xf32>
    %191 = tpu.matmul %189, %190, %cst_132 {dimension_numbers = #tpu.dot_dimension_numbers<[1], [0], [0], [1], [0, 0, 1, 1], [], []>} : vector<8x128xbf16>, vector<128x384xbf16>, vector<8x384xf32> -> vector<8x384xf32>
    %192 = vector.extract_strided_slice %188 {offsets = [0, 0], sizes = [8, 128], strides = [1, 1]} : vector<8x384xf32> to vector<8x128xf32>
    %193 = vector.extract_strided_slice %191 {offsets = [0, 0], sizes = [8, 128], strides = [1, 1]} : vector<8x384xf32> to vector<8x128xf32>
    %194 = arith.addf %192, %193 : vector<8x128xf32>
    %195 = arith.negf %194 : vector<8x128xf32>
    %196 = math.exp %195 : vector<8x128xf32>
    %cst_133 = arith.constant 1.000000e+00 : f32
    %197 = vector.broadcast %cst_133 : f32 to vector<8x128xf32>
    %198 = arith.addf %197, %196 : vector<8x128xf32>
    %199 = arith.divf %197, %198 : vector<8x128xf32>
    %200 = vector.extract_strided_slice %188 {offsets = [0, 128], sizes = [8, 128], strides = [1, 1]} : vector<8x384xf32> to vector<8x128xf32>
    %201 = vector.extract_strided_slice %191 {offsets = [0, 128], sizes = [8, 128], strides = [1, 1]} : vector<8x384xf32> to vector<8x128xf32>
    %202 = arith.addf %200, %201 : vector<8x128xf32>
    %203 = arith.negf %202 : vector<8x128xf32>
    %204 = math.exp %203 : vector<8x128xf32>
    %cst_134 = arith.constant 1.000000e+00 : f32
    %205 = vector.broadcast %cst_134 : f32 to vector<8x128xf32>
    %206 = arith.addf %205, %204 : vector<8x128xf32>
    %207 = arith.divf %205, %206 : vector<8x128xf32>
    %208 = vector.extract_strided_slice %188 {offsets = [0, 256], sizes = [8, 128], strides = [1, 1]} : vector<8x384xf32> to vector<8x128xf32>
    %209 = vector.extract_strided_slice %191 {offsets = [0, 256], sizes = [8, 128], strides = [1, 1]} : vector<8x384xf32> to vector<8x128xf32>
    %210 = vector.broadcast %154 : vector<1x128xf32> to vector<8x128xf32>
    %211 = arith.addf %209, %210 : vector<8x128xf32>
    %212 = arith.mulf %199, %211 : vector<8x128xf32>
    %213 = arith.addf %208, %212 : vector<8x128xf32>
    %214 = math.tanh %213 : vector<8x128xf32>
    %cst_135 = arith.constant 1.000000e+00 : f32
    %215 = vector.broadcast %cst_135 : f32 to vector<8x128xf32>
    %216 = arith.subf %215, %207 : vector<8x128xf32>
    %217 = arith.mulf %216, %214 : vector<8x128xf32>
    %218 = arith.mulf %207, %187 : vector<8x128xf32>
    %219 = arith.addf %217, %218 : vector<8x128xf32>
    %220 = arith.truncf %219 : vector<8x128xf32> to vector<8x128xbf16>
    %c0_136 = arith.constant 0 : index
    %c0_137 = arith.constant 0 : index
    %221 = vector.load %arg20[%c0_136, %c0_137] : memref<128x128xbf16, #tpu.memory_space<vmem>>, vector<128x128xbf16>
    %cst_138 = arith.constant dense<0.000000e+00> : vector<8x128xf32>
    %222 = tpu.matmul %220, %221, %cst_138 {dimension_numbers = #tpu.dot_dimension_numbers<[1], [0], [0], [1], [0, 0, 1, 1], [], []>} : vector<8x128xbf16>, vector<128x128xbf16>, vector<8x128xf32> -> vector<8x128xf32>
    %c0_139 = arith.constant 0 : index
    %c0_140 = arith.constant 0 : index
    %223 = vector.load %arg21[%c0_139, %c0_140] : memref<1x128xf32, #tpu.memory_space<vmem>>, vector<1x128xf32>
    %224 = vector.broadcast %223 : vector<1x128xf32> to vector<8x128xf32>
    %225 = arith.addf %222, %224 : vector<8x128xf32>
    %226 = math.tanh %225 : vector<8x128xf32>
    %c0_141 = arith.constant 0 : index
    %c0_142 = arith.constant 0 : index
    %227 = vector.load %arg22[%c0_141, %c0_142] : memref<8x128xf32, #tpu.memory_space<vmem>>, vector<8x128xf32>
    tpu.vector_store %arg22[%c0_141, %c0_142], %226 {strides = array<i32>} : memref<8x128xf32, #tpu.memory_space<vmem>>, vector<8x128xf32>,
    return
  }
  func.func @transform_0(%arg0: i32) -> (i32, i32) {
    %c0_i32 = arith.constant 0 : i32
    %c0_i32_0 = arith.constant 0 : i32
    %c0_i32_1 = arith.constant 0 : i32
    return %c0_i32, %c0_i32_0 : i32, i32
  }
  func.func @transform_1(%arg0: i32) -> (i32, i32) {
    %c0_i32 = arith.constant 0 : i32
    %c0_i32_0 = arith.constant 0 : i32
    %c0_i32_1 = arith.constant 0 : i32
    return %c0_i32, %c0_i32_0 : i32, i32
  }
  func.func @transform_2(%arg0: i32) -> (i32, i32) {
    %c0_i32 = arith.constant 0 : i32
    %c0_i32_0 = arith.constant 0 : i32
    %c0_i32_1 = arith.constant 0 : i32
    return %c0_i32, %c0_i32_0 : i32, i32
  }
  func.func @transform_3(%arg0: i32) -> (i32, i32) {
    %c0_i32 = arith.constant 0 : i32
    %c0_i32_0 = arith.constant 0 : i32
    %c0_i32_1 = arith.constant 0 : i32
    return %c0_i32, %c0_i32_0 : i32, i32
  }
  func.func @transform_4(%arg0: i32) -> (i32, i32) {
    %c0_i32 = arith.constant 0 : i32
    %c0_i32_0 = arith.constant 0 : i32
    %c0_i32_1 = arith.constant 0 : i32
    return %c0_i32, %c0_i32_0 : i32, i32
  }
  func.func @transform_5(%arg0: i32) -> (i32, i32) {
    %c0_i32 = arith.constant 0 : i32
    %c0_i32_0 = arith.constant 0 : i32
    %c0_i32_1 = arith.constant 0 : i32
    return %c0_i32, %c0_i32_0 : i32, i32
  }
  func.func @transform_6(%arg0: i32) -> (i32, i32) {
    %c0_i32 = arith.constant 0 : i32
    %c0_i32_0 = arith.constant 0 : i32
    %c0_i32_1 = arith.constant 0 : i32
    return %c0_i32, %c0_i32_0 : i32, i32
  }
  func.func @transform_7(%arg0: i32) -> (i32, i32) {
    %c0_i32 = arith.constant 0 : i32
    %c0_i32_0 = arith.constant 0 : i32
    %c0_i32_1 = arith.constant 0 : i32
    return %c0_i32, %c0_i32_0 : i32, i32
  }
  func.func @transform_8(%arg0: i32) -> (i32, i32) {
    %c0_i32 = arith.constant 0 : i32
    %c0_i32_0 = arith.constant 0 : i32
    %c0_i32_1 = arith.constant 0 : i32
    return %c0_i32, %c0_i32_0 : i32, i32
  }
  func.func @transform_9(%arg0: i32) -> (i32, i32) {
    %c0_i32 = arith.constant 0 : i32
    %c0_i32_0 = arith.constant 0 : i32
    %c0_i32_1 = arith.constant 0 : i32
    return %c0_i32, %c0_i32_0 : i32, i32
  }
  func.func @transform_10(%arg0: i32) -> (i32, i32) {
    %c0_i32 = arith.constant 0 : i32
    %c0_i32_0 = arith.constant 0 : i32
    %c0_i32_1 = arith.constant 0 : i32
    return %c0_i32, %c0_i32_0 : i32, i32
  }
  func.func @transform_11(%arg0: i32) -> (i32, i32) {
    %c0_i32 = arith.constant 0 : i32
    %c0_i32_0 = arith.constant 0 : i32
    %c0_i32_1 = arith.constant 0 : i32
    return %c0_i32, %c0_i32_0 : i32, i32
  }
  func.func @transform_12(%arg0: i32) -> (i32, i32) {
    %c0_i32 = arith.constant 0 : i32
    %c0_i32_0 = arith.constant 0 : i32
    %c0_i32_1 = arith.constant 0 : i32
    return %c0_i32, %c0_i32_0 : i32, i32
  }
  func.func @transform_13(%arg0: i32) -> (i32, i32) {
    %c0_i32 = arith.constant 0 : i32
    %c0_i32_0 = arith.constant 0 : i32
    %c0_i32_1 = arith.constant 0 : i32
    return %c0_i32, %c0_i32_0 : i32, i32
  }
  func.func @transform_14(%arg0: i32) -> (i32, i32) {
    %c0_i32 = arith.constant 0 : i32
    %c0_i32_0 = arith.constant 0 : i32
    %c0_i32_1 = arith.constant 0 : i32
    return %c0_i32, %c0_i32_0 : i32, i32
  }
  func.func @transform_15(%arg0: i32) -> (i32, i32) {
    %c0_i32 = arith.constant 0 : i32
    %c0_i32_0 = arith.constant 0 : i32
    %c0_i32_1 = arith.constant 0 : i32
    return %c0_i32, %c0_i32_0 : i32, i32
  }
  func.func @transform_16(%arg0: i32) -> (i32, i32) {
    %c0_i32 = arith.constant 0 : i32
    %c0_i32_0 = arith.constant 0 : i32
    %c0_i32_1 = arith.constant 0 : i32
    return %c0_i32, %c0_i32_0 : i32, i32
  }
  func.func @transform_17(%arg0: i32) -> (i32, i32) {
    %c0_i32 = arith.constant 0 : i32
    %c0_i32_0 = arith.constant 0 : i32
    %c0_i32_1 = arith.constant 0 : i32
    return %c0_i32, %c0_i32_0 : i32, i32
  }
  func.func @transform_18(%arg0: i32) -> (i32, i32) {
    %c0_i32 = arith.constant 0 : i32
    %c0_i32_0 = arith.constant 0 : i32
    %c0_i32_1 = arith.constant 0 : i32
    return %c0_i32, %c0_i32_0 : i32, i32
  }
  func.func @transform_19(%arg0: i32) -> (i32, i32) {
    %c0_i32 = arith.constant 0 : i32
    %c0_i32_0 = arith.constant 0 : i32
    %c0_i32_1 = arith.constant 0 : i32
    return %c0_i32, %c0_i32_0 : i32, i32
  }
  func.func @transform_20(%arg0: i32) -> (i32, i32) {
    %c0_i32 = arith.constant 0 : i32
    %c0_i32_0 = arith.constant 0 : i32
    %c0_i32_1 = arith.constant 0 : i32
    return %c0_i32, %c0_i32_0 : i32, i32
  }
  func.func @transform_21(%arg0: i32) -> (i32, i32) {
    %c0_i32 = arith.constant 0 : i32
    %c0_i32_0 = arith.constant 0 : i32
    %c0_i32_1 = arith.constant 0 : i32
    return %c0_i32, %c0_i32_0 : i32, i32
  }
}

</mosaic_0001>

<bundles_post_ra>
// kernel: prosody_encoder_forward.4
= control target key start
LH: loop header
LB: loop body
LE: loop exit
PB: predicated region body
PF: predicated region fallthrough
CT: control target
= control target key end

     0   :  { %s6540_s18 = smov 0   ;;  %s8129_s0 = inlined_call_operand.vmem [shape: bf16[4096,128], index: 0, kind: input, shape index: {}]   ;;  %s8130_s1 = inlined_call_operand.vmem [shape: bf16[128,128], index: 1, kind: input, shape index: {}]   ;;  %s8131_s2 = inlined_call_operand.vmem [shape: f32[1,128], index: 2, kind: input, shape index: {}]   ;;  %s8132_s3 = inlined_call_operand.vmem [shape: f32[1,128], index: 3, kind: input, shape index: {}]   ;;  %s8133_s4 = inlined_call_operand.vmem [shape: f32[1,128], index: 4, kind: input, shape index: {}]   ;;  %s8134_s5 = inlined_call_operand.vmem [shape: bf16[4096,128], index: 5, kind: output, shape index: {}]  }
   0x1 LB: > { %s4499_s19 = sadd.s32 4294967295, %s6508_s18   ;;  %p4503_p0 = scmp.ge.s32.totalorder %s6508_s18, 1  ;;  %s6508_s18 = sphi %s6540_s18, %s15_s18  }
   0x2   : > { %p188_p1 = scmp.lt.s32.totalorder %s6508_s18, 3 }
   0x4   : > { %p189_p2 = pnand %p4503_p0, %p188_p1 }
   0x5   : > { %s4504_s22 = sshll.u32 (!%p189_p2), %s4499_s19, 8 }
   0x6   : > { %192 = sbr.rel (%p189_p2) target bundleno = 535 (0x217), region = 40  ;;  %p217_p3 = scmp.lt.s32.totalorder (!%p189_p2), %s4504_s22, 511 }
   0xb   : > { %v6360_v0 = vld [vmem:[%s8130_s1 + $0x38] sm:$0xff]   ;;  %v6361_v1 = vld [vmem:[%s8130_s1 + $0x30] sm:$0xff]   ;;  %s8136_s22 = smov (!%p217_p3, %s4504_s22), 511  ;;  %v6362_v2 = vld [vmem:[%s8130_s1 + $0x28] sm:$0xff]  }
   0xc   : > { %6064 = vmatprep.subr.bf16.mxu0 %v6360_v0  ;;  %6336 = vmatprep.subr.bf16.mxu1 %v6360_v0  ;;  %s4505_s27 = sshll.u32 %s8136_s22, 2  ;;  %v6363_v3 = vld [vmem:[%s8130_s1 + $0x20] sm:$0xff]   ;;  %v6364_v6 = vld [vmem:[%s8130_s1 + $0x18] sm:$0xff]   ;;  %v6365_v7 = vld [vmem:[%s8130_s1 + $0x10] sm:$0xff]  }
   0xd   : > { %6065 = vmatpush3.bf16.msra.mxu0 %v6360_v0  ;;  %6344 = vmatpush3.bf16.msra.mxu1 %v6360_v0  ;;  %s6565_s30 = scalar_lea.vmem %s8129_s0, %s4505_s27  ;;  %v6366_v8 = vld [vmem:[%s8130_s1 + $0x8] sm:$0xff]   ;;  %v6367_v9 = vld [vmem:[%s8130_s1] sm:$0xff]   ;;  %s6735_s26 = scalar_lea.vmem %s8134_s5, %s4505_s27 }
   0xe   : > { %6066 = vmatprep.subr.bf16.mxu0 %v6361_v1  ;;  %6337 = vmatprep.subr.bf16.mxu1 %v6361_v1  ;;  %v6368_v4 = vld [vmem:[%s6565_s30] sm:$0xff]   ;;  %v6370_v10 = vld [vmem:[%s6565_s30 + $0x8] sm:$0xff]   ;;  %v6372_v12 = vld [vmem:[%s6565_s30 + $0x10] sm:$0xff]  }
   0xf   : > { %v6369_v5 = vld [vmem:[%s6565_s30 + $0x200] sm:$0xff]   ;;  %6080 = vmatprep.mubr.bf16.mxu0 %v6368_v4  ;;  %v6371_v11 = vld [vmem:[%s6565_s30 + $0x208] sm:$0xff]   ;;  %v6373_v13 = vld [vmem:[%s6565_s30 + $0x210] sm:$0xff]  }
  0x10   : > { %6208 = vmatprep.mubr.bf16.mxu1 %v6369_v5  ;;  %v6374_v14 = vld [vmem:[%s6565_s30 + $0x18] sm:$0xff]   ;;  %v6376_v16 = vld [vmem:[%s6565_s30 + $0x20] sm:$0xff]   ;;  %v6378_v18 = vld [vmem:[%s6565_s30 + $0x28] sm:$0xff]  }
  0x11   : > { %6067 = vmatpush3.bf16.msra.mxu0 %v6361_v1  ;;  %6345 = vmatpush3.bf16.msra.mxu1 %v6361_v1  ;;  %v6375_v15 = vld [vmem:[%s6565_s30 + $0x218] sm:$0xff]   ;;  %v6377_v17 = vld [vmem:[%s6565_s30 + $0x220] sm:$0xff]   ;;  %v6379_v19 = vld [vmem:[%s6565_s30 + $0x228] sm:$0xff]  }
  0x12   : > { %6068 = vmatprep.subr.bf16.mxu0 %v6362_v2  ;;  %6338 = vmatprep.subr.bf16.mxu1 %v6362_v2  ;;  %v6380_v20 = vld [vmem:[%s6565_s30 + $0x30] sm:$0xff]   ;;  %v6382_v22 = vld [vmem:[%s6565_s30 + $0x38] sm:$0xff]   ;;  %v6384_v24 = vld [vmem:[%s6565_s30 + $0x40] sm:$0xff]  }
  0x13   : > { %v6381_v21 = vld [vmem:[%s6565_s30 + $0x230] sm:$0xff]   ;;  %v6383_v23 = vld [vmem:[%s6565_s30 + $0x238] sm:$0xff]   ;;  %v6385_v25 = vld [vmem:[%s6565_s30 + $0x240] sm:$0xff]  }
  0x14   : > { %v6386_v26 = vld [vmem:[%s6565_s30 + $0x48] sm:$0xff]   ;;  %v6388_v28 = vld [vmem:[%s6565_s30 + $0x50] sm:$0xff]   ;;  %v6390_v30 = vld [vmem:[%s6565_s30 + $0x58] sm:$0xff]  }
  0x15   : > { %6069 = vmatpush3.bf16.msra.mxu0 %v6362_v2  ;;  %6346 = vmatpush3.bf16.msra.mxu1 %v6362_v2  ;;  %v6387_v27 = vld [vmem:[%s6565_s30 + $0x248] sm:$0xff]   ;;  %v6389_v29 = vld [vmem:[%s6565_s30 + $0x250] sm:$0xff]   ;;  %v6391_v31 = vld [vmem:[%s6565_s30 + $0x258] sm:$0xff]  }
  0x16   : > { %6070 = vmatprep.subr.bf16.mxu0 %v6363_v3  ;;  %6339 = vmatprep.subr.bf16.mxu1 %v6363_v3  ;;  %v6392_v32 = vld [vmem:[%s6565_s30 + $0x60] sm:$0xff]   ;;  %v6394_v34 = vld [vmem:[%s6565_s30 + $0x68] sm:$0xff]   ;;  %v6396_v36 = vld [vmem:[%s6565_s30 + $0x70] sm:$0xff]  }
  0x17   : > { %v6393_v33 = vld [vmem:[%s6565_s30 + $0x260] sm:$0xff]   ;;  %v6395_v35 = vld [vmem:[%s6565_s30 + $0x268] sm:$0xff]   ;;  %v6397_v37 = vld [vmem:[%s6565_s30 + $0x270] sm:$0xff]  }
  0x18   : > { %v6398_v38 = vld [vmem:[%s6565_s30 + $0x78] sm:$0xff]   ;;  %v6400_v40 = vld [vmem:[%s6565_s30 + $0x80] sm:$0xff]   ;;  %v6402_v42 = vld [vmem:[%s6565_s30 + $0x88] sm:$0xff]  }
  0x19   : > { %6071 = vmatpush3.bf16.msra.mxu0 %v6363_v3  ;;  %6347 = vmatpush3.bf16.msra.mxu1 %v6363_v3  ;;  %v6399_v39 = vld [vmem:[%s6565_s30 + $0x278] sm:$0xff]   ;;  %v6401_v41 = vld [vmem:[%s6565_s30 + $0x280] sm:$0xff]   ;;  %v6403_v43 = vld [vmem:[%s6565_s30 + $0x288] sm:$0xff]  }
  0x1a   : > { %6072 = vmatprep.subr.bf16.mxu0 %v6364_v6  ;;  %6340 = vmatprep.subr.bf16.mxu1 %v6364_v6  ;;  %v6404_v44 = vld [vmem:[%s6565_s30 + $0x90] sm:$0xff]   ;;  %v6406_v46 = vld [vmem:[%s6565_s30 + $0x98] sm:$0xff]   ;;  %v6408_v48 = vld [vmem:[%s6565_s30 + $0xa0] sm:$0xff]  }
  0x1b   : > { %v6405_v45 = vld [vmem:[%s6565_s30 + $0x290] sm:$0xff]   ;;  %v6407_v47 = vld [vmem:[%s6565_s30 + $0x298] sm:$0xff]   ;;  %v6409_v49 = vld [vmem:[%s6565_s30 + $0x2a0] sm:$0xff]  }
  0x1c   : > { %v6410_v50 = vld [vmem:[%s6565_s30 + $0xa8] sm:$0xff]   ;;  %v6412_v52 = vld [vmem:[%s6565_s30 + $0xb0] sm:$0xff]   ;;  %v6414_v54 = vld [vmem:[%s6565_s30 + $0xb8] sm:$0xff]  }
  0x1d   : > { %6073 = vmatpush3.bf16.msra.mxu0 %v6364_v6  ;;  %6348 = vmatpush3.bf16.msra.mxu1 %v6364_v6  ;;  %v6411_v51 = vld [vmem:[%s6565_s30 + $0x2a8] sm:$0xff]   ;;  %v6413_v53 = vld [vmem:[%s6565_s30 + $0x2b0] sm:$0xff]   ;;  %v6415_v55 = vld [vmem:[%s6565_s30 + $0x2b8] sm:$0xff]  }
  0x1e   : > { %6074 = vmatprep.subr.bf16.mxu0 %v6365_v7  ;;  %6341 = vmatprep.subr.bf16.mxu1 %v6365_v7  ;;  %v6416_v56 = vld [vmem:[%s6565_s30 + $0xc0] sm:$0xff]   ;;  %v6418_v58 = vld [vmem:[%s6565_s30 + $0xc8] sm:$0xff]   ;;  %v6420_v60 = vld [vmem:[%s6565_s30 + $0xd0] sm:$0xff]  }
  0x1f   : > { %v6417_v57 = vld [vmem:[%s6565_s30 + $0x2c0] sm:$0xff]   ;;  %v6419_v59 = vld [vmem:[%s6565_s30 + $0x2c8] sm:$0xff]   ;;  %v6421_v61 = vld [vmem:[%s6565_s30 + $0x2d0] sm:$0xff]  }
  0x20   : > { %v6422_v62 = vld [vmem:[%s6565_s30 + $0xd8] sm:$0xff]   ;;  %v6424_v0 = vld [vmem:[%s6565_s30 + $0xe0] sm:$0xff]   ;;  %v6426_v2 = vld [vmem:[%s6565_s30 + $0xe8] sm:$0xff]  }
  0x21   : > { %6075 = vmatpush3.bf16.msra.mxu0 %v6365_v7  ;;  %6349 = vmatpush3.bf16.msra.mxu1 %v6365_v7  ;;  %v6423_v63 = vld [vmem:[%s6565_s30 + $0x2d8] sm:$0xff]   ;;  %v6425_v1 = vld [vmem:[%s6565_s30 + $0x2e0] sm:$0xff]   ;;  %v6427_v3 = vld [vmem:[%s6565_s30 + $0x2e8] sm:$0xff]  }
  0x22   : > { %6076 = vmatprep.subr.bf16.mxu0 %v6366_v8  ;;  %6342 = vmatprep.subr.bf16.mxu1 %v6366_v8  ;;  %v6428_v4 = vld [vmem:[%s6565_s30 + $0xf0] sm:$0xff]   ;;  %v6430_v6 = vld [vmem:[%s6565_s30 + $0xf8] sm:$0xff]  }
  0x23   : > { %v6429_v5 = vld [vmem:[%s6565_s30 + $0x2f0] sm:$0xff]   ;;  %v6431_v7 = vld [vmem:[%s6565_s30 + $0x2f8] sm:$0xff]  }
  0x25   : > { %6077 = vmatpush3.bf16.msra.mxu0 %v6366_v8  ;;  %6350 = vmatpush3.bf16.msra.mxu1 %v6366_v8  ;;  %v6432_v8 = vld [vmem:[%s6565_s30 + $0x100] sm:$0xff]  }
  0x26   : > { %6078 = vmatprep.subr.bf16.mxu0 %v6367_v9  ;;  %6343 = vmatprep.subr.bf16.mxu1 %v6367_v9 }
  0x29   : > { %6079 = vmatpush3.bf16.msra.mxu0 %v6367_v9  ;;  %6351 = vmatpush3.bf16.msra.mxu1 %v6367_v9  ;;  %v6433_v9 = vld [vmem:[%s6565_s30 + $0x300] sm:$0xff]  }
  0x2c   : > { %6081 = vmatmul.mubr.bf16.vlgmr.msra.gmra.mxu0 %v6370_v10  ;;  %6209 = vmatmul.mubr.bf16.vlgmr.msra.gmra.mxu1 %v6371_v11  ;;  %v6434_v10 = vld [vmem:[%s6565_s30 + $0x108] sm:$0xff]  }
  0x2d   : > { %6084 = vmatprep.mubr.bf16.mxu0 %v6372_v12  ;;  %6212 = vmatprep.mubr.bf16.mxu1 %v6373_v13  ;;  %v6435_v11 = vld [vmem:[%s6565_s30 + $0x308] sm:$0xff]   ;;  %v6436_v12 = vld [vmem:[%s6565_s30 + $0x110] sm:$0xff]  }
  0x2e   : > { %v6437_v13 = vld [vmem:[%s6565_s30 + $0x310] sm:$0xff]  }
  0x34   : > { %6085 = vmatmul.mubr.bf16.gmra.mxu0 %v6374_v14  ;;  %6213 = vmatmul.mubr.bf16.gmra.mxu1 %v6375_v15  ;;  %v6438_v14 = vld [vmem:[%s6565_s30 + $0x118] sm:$0xff]  }
  0x35   : > { %6088 = vmatprep.mubr.bf16.mxu0 %v6376_v16  ;;  %6216 = vmatprep.mubr.bf16.mxu1 %v6377_v17  ;;  %v6439_v15 = vld [vmem:[%s6565_s30 + $0x318] sm:$0xff]   ;;  %v6440_v16 = vld [vmem:[%s6565_s30 + $0x120] sm:$0xff]  }
  0x36   : > { %v6441_v17 = vld [vmem:[%s6565_s30 + $0x320] sm:$0xff]  }
  0x3c   : > { %6089 = vmatmul.mubr.bf16.gmra.mxu0 %v6378_v18  ;;  %6217 = vmatmul.mubr.bf16.gmra.mxu1 %v6379_v19  ;;  %v6442_v18 = vld [vmem:[%s6565_s30 + $0x128] sm:$0xff]  }
  0x3d   : > { %6092 = vmatprep.mubr.bf16.mxu0 %v6380_v20  ;;  %6220 = vmatprep.mubr.bf16.mxu1 %v6381_v21  ;;  %v6443_v19 = vld [vmem:[%s6565_s30 + $0x328] sm:$0xff]   ;;  %v6444_v20 = vld [vmem:[%s6565_s30 + $0x130] sm:$0xff]  }
  0x3e   : > { %v6445_v21 = vld [vmem:[%s6565_s30 + $0x330] sm:$0xff]  }
  0x44   : > { %6093 = vmatmul.mubr.bf16.gmra.mxu0 %v6382_v22  ;;  %6221 = vmatmul.mubr.bf16.gmra.mxu1 %v6383_v23  ;;  %v6446_v22 = vld [vmem:[%s6565_s30 + $0x138] sm:$0xff]  }
  0x45   : > { %6096 = vmatprep.mubr.bf16.mxu0 %v6384_v24  ;;  %6224 = vmatprep.mubr.bf16.mxu1 %v6385_v25  ;;  %v6447_v23 = vld [vmem:[%s6565_s30 + $0x338] sm:$0xff]   ;;  %v6448_v24 = vld [vmem:[%s6565_s30 + $0x140] sm:$0xff]  }
  0x46   : > { %v6449_v25 = vld [vmem:[%s6565_s30 + $0x340] sm:$0xff]  }
  0x4c   : > { %6097 = vmatmul.mubr.bf16.gmra.mxu0 %v6386_v26  ;;  %6225 = vmatmul.mubr.bf16.gmra.mxu1 %v6387_v27  ;;  %v6450_v26 = vld [vmem:[%s6565_s30 + $0x148] sm:$0xff]  }
  0x4d   : > { %6100 = vmatprep.mubr.bf16.mxu0 %v6388_v28  ;;  %6228 = vmatprep.mubr.bf16.mxu1 %v6389_v29  ;;  %v6451_v27 = vld [vmem:[%s6565_s30 + $0x348] sm:$0xff]   ;;  %v6452_v28 = vld [vmem:[%s6565_s30 + $0x150] sm:$0xff]  }
  0x4e   : > { %v6453_v29 = vld [vmem:[%s6565_s30 + $0x350] sm:$0xff]  }
  0x54   : > { %6101 = vmatmul.mubr.bf16.gmra.mxu0 %v6390_v30  ;;  %6229 = vmatmul.mubr.bf16.gmra.mxu1 %v6391_v31  ;;  %v6454_v30 = vld [vmem:[%s6565_s30 + $0x158] sm:$0xff]  }
  0x55   : > { %6104 = vmatprep.mubr.bf16.mxu0 %v6392_v32  ;;  %6232 = vmatprep.mubr.bf16.mxu1 %v6393_v33  ;;  %v6455_v31 = vld [vmem:[%s6565_s30 + $0x358] sm:$0xff]   ;;  %v6456_v32 = vld [vmem:[%s6565_s30 + $0x160] sm:$0xff]  }
  0x56   : > { %v6457_v33 = vld [vmem:[%s6565_s30 + $0x360] sm:$0xff]  }
  0x5c   : > { %6105 = vmatmul.mubr.bf16.gmra.mxu0 %v6394_v34  ;;  %6233 = vmatmul.mubr.bf16.gmra.mxu1 %v6395_v35  ;;  %v6458_v34 = vld [vmem:[%s6565_s30 + $0x168] sm:$0xff]  }
  0x5d   : > { %6108 = vmatprep.mubr.bf16.mxu0 %v6396_v36  ;;  %6236 = vmatprep.mubr.bf16.mxu1 %v6397_v37  ;;  %v6459_v35 = vld [vmem:[%s6565_s30 + $0x368] sm:$0xff]   ;;  %v6460_v36 = vld [vmem:[%s6565_s30 + $0x170] sm:$0xff]  }
  0x5e   : > { %v6461_v37 = vld [vmem:[%s6565_s30 + $0x370] sm:$0xff]  }
  0x64   : > { %6109 = vmatmul.mubr.bf16.gmra.mxu0 %v6398_v38  ;;  %6237 = vmatmul.mubr.bf16.gmra.mxu1 %v6399_v39  ;;  %v6462_v38 = vld [vmem:[%s6565_s30 + $0x178] sm:$0xff]  }
  0x65   : > { %6112 = vmatprep.mubr.bf16.mxu0 %v6400_v40  ;;  %6240 = vmatprep.mubr.bf16.mxu1 %v6401_v41  ;;  %v6463_v39 = vld [vmem:[%s6565_s30 + $0x378] sm:$0xff]   ;;  %v6464_v40 = vld [vmem:[%s6565_s30 + $0x180] sm:$0xff]  }
  0x66   : > { %v6465_v41 = vld [vmem:[%s6565_s30 + $0x380] sm:$0xff]  }
  0x6c   : > { %6113 = vmatmul.mubr.bf16.gmra.mxu0 %v6402_v42  ;;  %6241 = vmatmul.mubr.bf16.gmra.mxu1 %v6403_v43  ;;  %v6466_v42 = vld [vmem:[%s6565_s30 + $0x188] sm:$0xff]  }
  0x6d   : > { %6116 = vmatprep.mubr.bf16.mxu0 %v6404_v44  ;;  %6244 = vmatprep.mubr.bf16.mxu1 %v6405_v45  ;;  %v6467_v43 = vld [vmem:[%s6565_s30 + $0x388] sm:$0xff]   ;;  %v6468_v44 = vld [vmem:[%s6565_s30 + $0x190] sm:$0xff]  }
  0x6e   : > { %v6469_v45 = vld [vmem:[%s6565_s30 + $0x390] sm:$0xff]  }
  0x74   : > { %6117 = vmatmul.mubr.bf16.gmra.mxu0 %v6406_v46  ;;  %6245 = vmatmul.mubr.bf16.gmra.mxu1 %v6407_v47  ;;  %v6687_v46 = vld [vmem:[%s8131_s2] ss:$0 sm:$0xff] }
  0x75   : > { %6120 = vmatprep.mubr.bf16.mxu0 %v6408_v48  ;;  %6248 = vmatprep.mubr.bf16.mxu1 %v6409_v49 }
  0x7c   : > { %6121 = vmatmul.mubr.bf16.gmra.mxu0 %v6410_v50  ;;  %6249 = vmatmul.mubr.bf16.gmra.mxu1 %v6411_v51  ;;  %v6694_v51 = vld [vmem:[%s8132_s3] ss:$0 sm:$0xff] }
  0x7d   : > { %6124 = vmatprep.mubr.bf16.mxu0 %v6412_v52  ;;  %6252 = vmatprep.mubr.bf16.mxu1 %v6413_v53 }
  0x84   : > { %6125 = vmatmul.mubr.bf16.gmra.mxu0 %v6414_v54  ;;  %6253 = vmatmul.mubr.bf16.gmra.mxu1 %v6415_v55 }
  0x85   : > { %6128 = vmatprep.mubr.bf16.mxu0 %v6416_v56  ;;  %6256 = vmatprep.mubr.bf16.mxu1 %v6417_v57 }
  0x8c   : > { %6129 = vmatmul.mubr.bf16.gmra.mxu0 %v6418_v58  ;;  %6257 = vmatmul.mubr.bf16.gmra.mxu1 %v6419_v59  ;;  %v6701_v58 = vld [vmem:[%s8133_s4] ss:$0 sm:$0xff] }
  0x8d   : > { %6132 = vmatprep.mubr.bf16.mxu0 %v6420_v60  ;;  %6260 = vmatprep.mubr.bf16.mxu1 %v6421_v61  ;;  %v6470_v61 = vld [vmem:[%s6565_s30 + $0x198] sm:$0xff]  }
  0x94   : > { %6133 = vmatmul.mubr.bf16.gmra.mxu0 %v6422_v62  ;;  %6261 = vmatmul.mubr.bf16.gmra.mxu1 %v6423_v63  ;;  %v6471_v62 = vld [vmem:[%s6565_s30 + $0x398] sm:$0xff]  }
  0x95   : > { %6136 = vmatprep.mubr.bf16.mxu0 %v6424_v0  ;;  %6264 = vmatprep.mubr.bf16.mxu1 %v6425_v1 }
  0x9c   : > { %6137 = vmatmul.mubr.bf16.gmra.mxu0 %v6426_v2  ;;  %6265 = vmatmul.mubr.bf16.gmra.mxu1 %v6427_v3  ;;  %v6472_v3 = vld [vmem:[%s6565_s30 + $0x1a0] sm:$0xff]  }
  0x9d   : > { %6140 = vmatprep.mubr.bf16.mxu0 %v6428_v4  ;;  %6268 = vmatprep.mubr.bf16.mxu1 %v6429_v5 }
  0xa4   : > { %6141 = vmatmul.mubr.bf16.gmra.mxu0 %v6430_v6  ;;  %6269 = vmatmul.mubr.bf16.gmra.mxu1 %v6431_v7 }
  0xa5   : > { %6144 = vmatprep.mubr.bf16.mxu0 %v6432_v8  ;;  %6272 = vmatprep.mubr.bf16.mxu1 %v6433_v9  ;;  %v6473_v8 = vld [vmem:[%s6565_s30 + $0x3a0] sm:$0xff]  }
  0xac   : > { %6145 = vmatmul.mubr.bf16.gmra.mxu0 %v6434_v10  ;;  %6273 = vmatmul.mubr.bf16.gmra.mxu1 %v6435_v11 }
  0xad   : > { %6148 = vmatprep.mubr.bf16.mxu0 %v6436_v12  ;;  %6276 = vmatprep.mubr.bf16.mxu1 %v6437_v13 }
  0xb4   : > { %6149 = vmatmul.mubr.bf16.gmra.mxu0 %v6438_v14  ;;  %6277 = vmatmul.mubr.bf16.gmra.mxu1 %v6439_v15 }
  0xb5   : > { %6152 = vmatprep.mubr.bf16.mxu0 %v6440_v16  ;;  %6280 = vmatprep.mubr.bf16.mxu1 %v6441_v17 }
  0xbc   : > { %6153 = vmatmul.mubr.bf16.gmra.mxu0 %v6442_v18  ;;  %6281 = vmatmul.mubr.bf16.gmra.mxu1 %v6443_v19 }
  0xbd   : > { %6156 = vmatprep.mubr.bf16.mxu0 %v6444_v20  ;;  %6284 = vmatprep.mubr.bf16.mxu1 %v6445_v21 }
  0xc4   : > { %6157 = vmatmul.mubr.bf16.gmra.mxu0 %v6446_v22  ;;  %6285 = vmatmul.mubr.bf16.gmra.mxu1 %v6447_v23 }
  0xc5   : > { %6160 = vmatprep.mubr.bf16.mxu0 %v6448_v24  ;;  %6288 = vmatprep.mubr.bf16.mxu1 %v6449_v25 }
  0xcc   : > { %6161 = vmatmul.mubr.bf16.gmra.mxu0 %v6450_v26  ;;  %6289 = vmatmul.mubr.bf16.gmra.mxu1 %v6451_v27 }
  0xcd   : > { %6164 = vmatprep.mubr.bf16.mxu0 %v6452_v28  ;;  %6292 = vmatprep.mubr.bf16.mxu1 %v6453_v29 }
  0xd4   : > { %6165 = vmatmul.mubr.bf16.gmra.mxu0 %v6454_v30  ;;  %6293 = vmatmul.mubr.bf16.gmra.mxu1 %v6455_v31 }
  0xd5   : > { %6168 = vmatprep.mubr.bf16.mxu0 %v6456_v32  ;;  %6296 = vmatprep.mubr.bf16.mxu1 %v6457_v33 }
  0xdc   : > { %6169 = vmatmul.mubr.bf16.gmra.mxu0 %v6458_v34  ;;  %6297 = vmatmul.mubr.bf16.gmra.mxu1 %v6459_v35 }
  0xdd   : > { %6172 = vmatprep.mubr.bf16.mxu0 %v6460_v36  ;;  %6300 = vmatprep.mubr.bf16.mxu1 %v6461_v37  ;;  %v6474_v37 = vld [vmem:[%s6565_s30 + $0x1a8] sm:$0xff]  }
  0xe4   : > { %6173 = vmatmul.mubr.bf16.gmra.mxu0 %v6462_v38  ;;  %6301 = vmatmul.mubr.bf16.gmra.mxu1 %v6463_v39 }
  0xe5   : > { %6176 = vmatprep.mubr.bf16.mxu0 %v6464_v40  ;;  %6304 = vmatprep.mubr.bf16.mxu1 %v6465_v41 }
  0xec   : > { %v6082_v47 = vpop.f32.mrf.mxu0  ;;  %6177 = vmatmul.mubr.bf16.gmra.mxu0 %v6466_v42  ;;  %v6210_v48 = vpop.f32.mrf.mxu1  ;;  %6305 = vmatmul.mubr.bf16.gmra.mxu1 %v6467_v43  ;;  %v6475_v42 = vld [vmem:[%s6565_s30 + $0x3a8] sm:$0xff]  }
  0xed   : > { %v1367_v49 = vadd.f32 %v6082_v47, %v6687_v46  ;;  %v1879_v50 = vadd.f32 %v6210_v48, %v6687_v46  ;;  %6180 = vmatprep.mubr.bf16.mxu0 %v6468_v44  ;;  %6308 = vmatprep.mubr.bf16.mxu1 %v6469_v45 }
  0xee   : > { %v1358_v52 = vpop.f32.mrf.mxu0  ;;  %v1870_v53 = vpop.f32.mrf.mxu1 }
  0xef   : > { %v2383_v54 = vmax.f32 %v1367_v49, 0.0  ;;  %v2511_v55 = vmax.f32 %v1879_v50, 0.0  ;;  %v1359_v56 = vadd.f32 %v6687_v46, %v1358_v52  ;;  %v1871_v57 = vadd.f32 %v6687_v46, %v1870_v53  ;;  %v6476_v50 = vld [vmem:[%s6565_s30 + $0x1b0] sm:$0xff]  }
  0xf0   : > { %v6083_v59 = vpop.f32.mrf.mxu0  ;;  %v6211_v60 = vpop.f32.mrf.mxu1  ;;  %v6477_v52 = vld [vmem:[%s6565_s30 + $0x3b0] sm:$0xff]  }
  0xf1   : > { %v2646_v63 = vmul.f32 %v6694_v51, %v2383_v54  ;;  %v2774_v0 = vmul.f32 %v6694_v51, %v2511_v55  ;;  %v2381_v1 = vmax.f32 %v1359_v56, 0.0  ;;  %v2509_v2 = vmax.f32 %v1871_v57, 0.0 }
  0xf2   : > { %v1370_v4 = vadd.f32 %v6083_v59, %v6687_v46  ;;  %v1882_v5 = vadd.f32 %v6211_v60, %v6687_v46  ;;  %v1361_v6 = vpop.f32.mrf.mxu0  ;;  %v1873_v7 = vpop.f32.mrf.mxu1 }
  0xf3   : > { %v2909_v9 = vadd.f32 %v6701_v58, %v2646_v63  ;;  %v3037_v10 = vadd.f32 %v6701_v58, %v2774_v0  ;;  %v1362_v13 = vadd.f32 %v6687_v46, %v1361_v6  ;;  %v1874_v14 = vadd.f32 %v6687_v46, %v1873_v7 }
  0xf4   : > { %v2384_v11 = vmax.f32 %v1370_v4, 0.0  ;;  %v2512_v12 = vmax.f32 %v1882_v5, 0.0  ;;  %v6086_v15 = vpop.f32.mrf.mxu0  ;;  %6181 = vmatmul.mubr.bf16.gmra.mxu0 %v6470_v61  ;;  %v6214_v16 = vpop.f32.mrf.mxu1  ;;  %6309 = vmatmul.mubr.bf16.gmra.mxu1 %v6471_v62  ;;  %v2644_v17 = vmul.f32 %v6694_v51, %v2381_v1  ;;  %v2772_v18 = vmul.f32 %v6694_v51, %v2509_v2 }
  0xf5   : > { %v1383_v19 = vadd.f32 %v6086_v15, %v6687_v46  ;;  %v1895_v20 = vadd.f32 %v6214_v16, %v6687_v46  ;;  %6184 = vmatprep.mubr.bf16.mxu0 %v6472_v3  ;;  %v2382_v23 = vmax.f32 %v1362_v13, 0.0  ;;  %v2510_v24 = vmax.f32 %v1874_v14, 0.0  ;;  %6312 = vmatprep.mubr.bf16.mxu1 %v6473_v8 }
  0xf6   : > { %v2647_v21 = vmul.f32 %v6694_v51, %v2384_v11  ;;  %v2775_v22 = vmul.f32 %v6694_v51, %v2512_v12  ;;  %v1374_v25 = vpop.f32.mrf.mxu0  ;;  %v1886_v26 = vpop.f32.mrf.mxu1  ;;  %v2907_v38 = vadd.f32 %v6701_v58, %v2644_v17  ;;  %v3035_v39 = vadd.f32 %v6701_v58, %v2772_v18  ;;  %v6478_v18 = vld [vmem:[%s6565_s30 + $0x1b8] sm:$0xff]  }
  0xf7   : > { %v2387_v27 = vmax.f32 %v1383_v19, 0.0  ;;  %v2515_v28 = vmax.f32 %v1895_v20, 0.0  ;;  %v1375_v29 = vadd.f32 %v6687_v46, %v1374_v25  ;;  %v1887_v30 = vadd.f32 %v6687_v46, %v1886_v26 }
  0xf8   : > { %v2910_v31 = vadd.f32 %v6701_v58, %v2647_v21  ;;  %v3038_v32 = vadd.f32 %v6701_v58, %v2775_v22  ;;  %v2645_v33 = vmul.f32 %v6694_v51, %v2382_v23  ;;  %v2773_v34 = vmul.f32 %v6694_v51, %v2510_v24  ;;  %v6087_v35 = vpop.f32.mrf.mxu0  ;;  %v6215_v36 = vpop.f32.mrf.mxu1  ;;  %v6479_v23 = vld [vmem:[%s6565_s30 + $0x3b8] sm:$0xff]  }
  0xf9   : > { %v2385_v40 = vmax.f32 %v1375_v29, 0.0  ;;  %v2513_v41 = vmax.f32 %v1887_v30, 0.0  ;;  %v2650_v53 = vmul.f32 %v6694_v51, %v2387_v27  ;;  %v2778_v54 = vmul.f32 %v6694_v51, %v2515_v28  ;;  %v6480_v30 = vld [vmem:[%s6565_s30 + $0x1c0] sm:$0xff]  }
  0xfa   : > { %v5169_v43 = vpack.c.bf16 %v2910_v31, %v2909_v9  ;;  %v5489_v44 = vpack.c.bf16 %v3038_v32, %v3037_v10  ;;  %v2908_v45 = vadd.f32 %v6701_v58, %v2645_v33  ;;  %v3036_v47 = vadd.f32 %v6701_v58, %v2773_v34  ;;  %v1377_v48 = vpop.f32.mrf.mxu0  ;;  %v1889_v49 = vpop.f32.mrf.mxu1 }
  0xfb   : > { %v1386_v57 = vadd.f32 %v6087_v35, %v6687_v46  ;;  %v1898_v59 = vadd.f32 %v6215_v36, %v6687_v46  ;;  %v2648_v62 = vmul.f32 %v6694_v51, %v2385_v40  ;;  %v2776_v63 = vmul.f32 %v6694_v51, %v2513_v41  ;;  %v6481_v35 = vld [vmem:[%s6565_s30 + $0x3c0] sm:$0xff]  }
  0xfc   : > { %5801 = vst [vmem:[%s6735_s26 + $0x8] sm:$0xff] %v5169_v43   ;;  %5865 = vst [vmem:[%s6735_s26 + $0x208] sm:$0xff] %v5489_v44   ;;  %v5164_v55 = vpack.c.bf16 %v2908_v45, %v2907_v38  ;;  %v5484_v56 = vpack.c.bf16 %v3036_v47, %v3035_v39  ;;  %v6090_v60 = vpop.f32.mrf.mxu0  ;;  %6185 = vmatmul.mubr.bf16.gmra.mxu0 %v6474_v37  ;;  %v6218_v61 = vpop.f32.mrf.mxu1  ;;  %v1378_v0 = vadd.f32 %v6687_v46, %v1377_v48 }
  0xfd   : > { %v1890_v1 = vadd.f32 %v6687_v46, %v1889_v49  ;;  %6313 = vmatmul.mubr.bf16.gmra.mxu1 %v6475_v42  ;;  %v2388_v2 = vmax.f32 %v1386_v57, 0.0  ;;  %v2516_v3 = vmax.f32 %v1898_v59, 0.0  ;;  %v1399_v4 = vadd.f32 %v6090_v60, %v6687_v46  ;;  %6188 = vmatprep.mubr.bf16.mxu0 %v6476_v50 }
  0xfe   : > { %5165 = vst [vmem:[%s6735_s26] sm:$0xff] %v5164_v55   ;;  %5864 = vst [vmem:[%s6735_s26 + $0x200] sm:$0xff] %v5484_v56   ;;  %v1911_v5 = vadd.f32 %v6218_v61, %v6687_v46  ;;  %v1390_v6 = vpop.f32.mrf.mxu0  ;;  %v1902_v7 = vpop.f32.mrf.mxu1  ;;  %6316 = vmatprep.mubr.bf16.mxu1 %v6477_v52  ;;  %v2386_v8 = vmax.f32 %v1378_v0, 0.0  ;;  %v2913_v24 = vadd.f32 %v6701_v58, %v2650_v53 }
  0xff   : > { %v2514_v9 = vmax.f32 %v1890_v1, 0.0  ;;  %v1391_v10 = vadd.f32 %v6687_v46, %v1390_v6  ;;  %v1903_v11 = vadd.f32 %v6687_v46, %v1902_v7  ;;  %v2651_v12 = vmul.f32 %v6694_v51, %v2388_v2  ;;  %v6482_v1 = vld [vmem:[%s6565_s30 + $0x1c8] sm:$0xff]  }
 0x100   : > { %v2779_v13 = vmul.f32 %v6694_v51, %v2516_v3  ;;  %v2391_v14 = vmax.f32 %v1399_v4, 0.0  ;;  %v2519_v15 = vmax.f32 %v1911_v5, 0.0  ;;  %v6091_v16 = vpop.f32.mrf.mxu0  ;;  %v6219_v17 = vpop.f32.mrf.mxu1  ;;  %v2649_v19 = vmul.f32 %v6694_v51, %v2386_v8  ;;  %v6483_v6 = vld [vmem:[%s6565_s30 + $0x3c8] sm:$0xff]  }
 0x101   : > { %v2777_v20 = vmul.f32 %v6694_v51, %v2514_v9  ;;  %v2389_v21 = vmax.f32 %v1391_v10, 0.0  ;;  %v2517_v22 = vmax.f32 %v1903_v11, 0.0  ;;  %v3041_v25 = vadd.f32 %v6701_v58, %v2778_v54 }
 0x102   : > { %v2914_v26 = vadd.f32 %v6701_v58, %v2651_v12  ;;  %v3042_v27 = vadd.f32 %v6701_v58, %v2779_v13  ;;  %v1393_v28 = vpop.f32.mrf.mxu0  ;;  %v1905_v29 = vpop.f32.mrf.mxu1  ;;  %v2911_v31 = vadd.f32 %v6701_v58, %v2648_v62  ;;  %v3039_v32 = vadd.f32 %v6701_v58, %v2776_v63  ;;  %v6484_v13 = vld [vmem:[%s6565_s30 + $0x1d0] sm:$0xff]  }
 0x103   : > { %v2912_v33 = vadd.f32 %v6701_v58, %v2649_v19  ;;  %v3040_v34 = vadd.f32 %v6701_v58, %v2777_v20  ;;  %v2654_v38 = vmul.f32 %v6694_v51, %v2391_v14  ;;  %v2782_v39 = vmul.f32 %v6694_v51, %v2519_v15 }
 0x104   : > { %v5179_v36 = vpack.c.bf16 %v2914_v26, %v2913_v24  ;;  %v5499_v37 = vpack.c.bf16 %v3042_v27, %v3041_v25  ;;  %v6094_v40 = vpop.f32.mrf.mxu0  ;;  %6189 = vmatmul.mubr.bf16.gmra.mxu0 %v6478_v18  ;;  %v6222_v41 = vpop.f32.mrf.mxu1  ;;  %v2652_v44 = vmul.f32 %v6694_v51, %v2389_v21  ;;  %v2780_v45 = vmul.f32 %v6694_v51, %v2517_v22  ;;  %v6485_v18 = vld [vmem:[%s6565_s30 + $0x3d0] sm:$0xff]  }
 0x105   : > { %v5174_v42 = vpack.c.bf16 %v2912_v33, %v2911_v31  ;;  %v5494_v43 = vpack.c.bf16 %v3040_v34, %v3039_v32  ;;  %6317 = vmatmul.mubr.bf16.gmra.mxu1 %v6479_v23  ;;  %v1402_v47 = vadd.f32 %v6091_v16, %v6687_v46  ;;  %v1914_v48 = vadd.f32 %v6219_v17, %v6687_v46 }
 0x106   : > { %5803 = vst [vmem:[%s6735_s26 + $0x18] sm:$0xff] %v5179_v36   ;;  %5867 = vst [vmem:[%s6735_s26 + $0x218] sm:$0xff] %v5499_v37   ;;  %v1394_v49 = vadd.f32 %v6687_v46, %v1393_v28  ;;  %v1906_v50 = vadd.f32 %v6687_v46, %v1905_v29  ;;  %v1406_v52 = vpop.f32.mrf.mxu0  ;;  %v1918_v53 = vpop.f32.mrf.mxu1  ;;  %6192 = vmatprep.mubr.bf16.mxu0 %v6480_v30  ;;  %v1415_v54 = vadd.f32 %v6094_v40, %v6687_v46 }
 0x107   : > { %5802 = vst [vmem:[%s6735_s26 + $0x10] sm:$0xff] %v5174_v42   ;;  %5866 = vst [vmem:[%s6735_s26 + $0x210] sm:$0xff] %v5494_v43   ;;  %v1927_v55 = vadd.f32 %v6222_v41, %v6687_v46  ;;  %v1407_v56 = vadd.f32 %v6687_v46, %v1406_v52  ;;  %v1919_v57 = vadd.f32 %v6687_v46, %v1918_v53  ;;  %6320 = vmatprep.mubr.bf16.mxu1 %v6481_v35  ;;  %v6487_v52 = vld [vmem:[%s6565_s30 + $0x3d8] sm:$0xff]  }
 0x108   : > { %v2392_v59 = vmax.f32 %v1402_v47, 0.0  ;;  %v2520_v60 = vmax.f32 %v1914_v48, 0.0  ;;  %v2390_v61 = vmax.f32 %v1394_v49, 0.0  ;;  %v2518_v62 = vmax.f32 %v1906_v50, 0.0  ;;  %v6095_v63 = vpop.f32.mrf.mxu0  ;;  %v6223_v0 = vpop.f32.mrf.mxu1 }
 0x109   : > { %v2395_v2 = vmax.f32 %v1415_v54, 0.0  ;;  %v2523_v3 = vmax.f32 %v1927_v55, 0.0  ;;  %v2393_v4 = vmax.f32 %v1407_v56, 0.0  ;;  %v2521_v5 = vmax.f32 %v1919_v57, 0.0 }
 0x10a   : > { %v2655_v7 = vmul.f32 %v6694_v51, %v2392_v59  ;;  %v2783_v8 = vmul.f32 %v6694_v51, %v2520_v60  ;;  %v2653_v9 = vmul.f32 %v6694_v51, %v2390_v61  ;;  %v2781_v10 = vmul.f32 %v6694_v51, %v2518_v62  ;;  %v1409_v11 = vpop.f32.mrf.mxu0  ;;  %v1921_v12 = vpop.f32.mrf.mxu1  ;;  %v6488_v60 = vld [vmem:[%s6565_s30 + $0x1e0] sm:$0xff]  }
 0x10b   : > { %v2917_v14 = vadd.f32 %v6701_v58, %v2654_v38  ;;  %v3045_v15 = vadd.f32 %v6701_v58, %v2782_v39  ;;  %v2915_v16 = vadd.f32 %v6701_v58, %v2652_v44  ;;  %v3043_v17 = vadd.f32 %v6701_v58, %v2780_v45  ;;  %v6486_v45 = vld [vmem:[%s6565_s30 + $0x1d8] sm:$0xff]  }
 0x10c   : > { %v2918_v19 = vadd.f32 %v6701_v58, %v2655_v7  ;;  %v3046_v20 = vadd.f32 %v6701_v58, %v2783_v8  ;;  %v2916_v21 = vadd.f32 %v6701_v58, %v2653_v9  ;;  %v3044_v22 = vadd.f32 %v6701_v58, %v2781_v10  ;;  %v6098_v23 = vpop.f32.mrf.mxu0  ;;  %6193 = vmatmul.mubr.bf16.gmra.mxu0 %v6482_v1  ;;  %v6226_v24 = vpop.f32.mrf.mxu1  ;;  %v6489_v1 = vld [vmem:[%s6565_s30 + $0x3e0] sm:$0xff]  }
 0x10d   : > { %v2658_v25 = vmul.f32 %v6694_v51, %v2395_v2  ;;  %v2786_v26 = vmul.f32 %v6694_v51, %v2523_v3  ;;  %v2656_v27 = vmul.f32 %v6694_v51, %v2393_v4  ;;  %v2784_v28 = vmul.f32 %v6694_v51, %v2521_v5  ;;  %6321 = vmatmul.mubr.bf16.gmra.mxu1 %v6483_v6 }
 0x10e   : > { %v5189_v29 = vpack.c.bf16 %v2918_v19, %v2917_v14  ;;  %v5509_v30 = vpack.c.bf16 %v3046_v20, %v3045_v15  ;;  %v5184_v31 = vpack.c.bf16 %v2916_v21, %v2915_v16  ;;  %v5504_v32 = vpack.c.bf16 %v3044_v22, %v3043_v17  ;;  %v1422_v33 = vpop.f32.mrf.mxu0  ;;  %v1934_v34 = vpop.f32.mrf.mxu1  ;;  %6196 = vmatprep.mubr.bf16.mxu0 %v6484_v13 }
 0x10f   : > { %v1418_v35 = vadd.f32 %v6095_v63, %v6687_v46  ;;  %v1930_v36 = vadd.f32 %v6223_v0, %v6687_v46  ;;  %v1410_v37 = vadd.f32 %v6687_v46, %v1409_v11  ;;  %v1922_v38 = vadd.f32 %v6687_v46, %v1921_v12  ;;  %6324 = vmatprep.mubr.bf16.mxu1 %v6485_v18 }
 0x110   : > { %5805 = vst [vmem:[%s6735_s26 + $0x28] sm:$0xff] %v5189_v29   ;;  %5869 = vst [vmem:[%s6735_s26 + $0x228] sm:$0xff] %v5509_v30   ;;  %v1431_v39 = vadd.f32 %v6098_v23, %v6687_v46  ;;  %v1943_v40 = vadd.f32 %v6226_v24, %v6687_v46  ;;  %v1423_v41 = vadd.f32 %v6687_v46, %v1422_v33  ;;  %v6099_v43 = vpop.f32.mrf.mxu0  ;;  %v6227_v44 = vpop.f32.mrf.mxu1  ;;  %v6491_v33 = vld [vmem:[%s6565_s30 + $0x3e8] sm:$0xff]  }
 0x111   : > { %5804 = vst [vmem:[%s6735_s26 + $0x20] sm:$0xff] %v5184_v31   ;;  %5868 = vst [vmem:[%s6735_s26 + $0x220] sm:$0xff] %v5504_v32   ;;  %v1935_v42 = vadd.f32 %v6687_v46, %v1934_v34  ;;  %v2396_v47 = vmax.f32 %v1418_v35, 0.0  ;;  %v2524_v48 = vmax.f32 %v1930_v36, 0.0  ;;  %v2394_v49 = vmax.f32 %v1410_v37, 0.0 }
 0x112   : > { %v2522_v50 = vmax.f32 %v1922_v38, 0.0  ;;  %v2399_v53 = vmax.f32 %v1431_v39, 0.0  ;;  %v2527_v54 = vmax.f32 %v1943_v40, 0.0  ;;  %v2397_v55 = vmax.f32 %v1423_v41, 0.0  ;;  %v1425_v57 = vpop.f32.mrf.mxu0  ;;  %v1937_v59 = vpop.f32.mrf.mxu1  ;;  %v6492_v40 = vld [vmem:[%s6565_s30 + $0x1f0] sm:$0xff]  }
 0x113   : > { %v2525_v56 = vmax.f32 %v1935_v42, 0.0  ;;  %v2659_v61 = vmul.f32 %v6694_v51, %v2396_v47  ;;  %v2787_v62 = vmul.f32 %v6694_v51, %v2524_v48  ;;  %v2657_v63 = vmul.f32 %v6694_v51, %v2394_v49 }
 0x114   : > { %v2785_v0 = vmul.f32 %v6694_v51, %v2522_v50  ;;  %v2921_v2 = vadd.f32 %v6701_v58, %v2658_v25  ;;  %v3049_v3 = vadd.f32 %v6701_v58, %v2786_v26  ;;  %v2919_v4 = vadd.f32 %v6701_v58, %v2656_v27  ;;  %v6102_v6 = vpop.f32.mrf.mxu0  ;;  %6197 = vmatmul.mubr.bf16.gmra.mxu0 %v6486_v45  ;;  %v6230_v7 = vpop.f32.mrf.mxu1  ;;  %v6493_v45 = vld [vmem:[%s6565_s30 + $0x3f0] sm:$0xff]  }
 0x115   : > { %v3047_v5 = vadd.f32 %v6701_v58, %v2784_v28  ;;  %v2922_v8 = vadd.f32 %v6701_v58, %v2659_v61  ;;  %v3050_v9 = vadd.f32 %v6701_v58, %v2787_v62  ;;  %v2920_v10 = vadd.f32 %v6701_v58, %v2657_v63  ;;  %6325 = vmatmul.mubr.bf16.gmra.mxu1 %v6487_v52  ;;  %v6490_v28 = vld [vmem:[%s6565_s30 + $0x1e8] sm:$0xff]  }
 0x116   : > { %v3048_v11 = vadd.f32 %v6701_v58, %v2785_v0  ;;  %v2662_v12 = vmul.f32 %v6694_v51, %v2399_v53  ;;  %v2790_v13 = vmul.f32 %v6694_v51, %v2527_v54  ;;  %v2660_v14 = vmul.f32 %v6694_v51, %v2397_v55  ;;  %v1438_v16 = vpop.f32.mrf.mxu0  ;;  %v1950_v17 = vpop.f32.mrf.mxu1  ;;  %6200 = vmatprep.mubr.bf16.mxu0 %v6488_v60 }
 0x117   : > { %v2788_v15 = vmul.f32 %v6694_v51, %v2525_v56  ;;  %v5199_v18 = vpack.c.bf16 %v2922_v8, %v2921_v2  ;;  %v5519_v19 = vpack.c.bf16 %v3050_v9, %v3049_v3  ;;  %v5194_v20 = vpack.c.bf16 %v2920_v10, %v2919_v4  ;;  %6328 = vmatprep.mubr.bf16.mxu1 %v6489_v1 }
 0x118   : > { %v5514_v21 = vpack.c.bf16 %v3048_v11, %v3047_v5  ;;  %v1434_v22 = vadd.f32 %v6099_v43, %v6687_v46  ;;  %v1946_v23 = vadd.f32 %v6227_v44, %v6687_v46  ;;  %v1426_v24 = vadd.f32 %v6687_v46, %v1425_v57  ;;  %v6103_v26 = vpop.f32.mrf.mxu0  ;;  %v6231_v27 = vpop.f32.mrf.mxu1  ;;  %v6494_v11 = vld [vmem:[%s6565_s30 + $0x1f8] sm:$0xff]  }
 0x119   : > { %v1938_v25 = vadd.f32 %v6687_v46, %v1937_v59  ;;  %5807 = vst [vmem:[%s6735_s26 + $0x38] sm:$0xff] %v5199_v18   ;;  %5871 = vst [vmem:[%s6735_s26 + $0x238] sm:$0xff] %v5519_v19   ;;  %v1447_v29 = vadd.f32 %v6102_v6, %v6687_v46  ;;  %v1959_v30 = vadd.f32 %v6230_v7, %v6687_v46 }
 0x11a   : > { %5806 = vst [vmem:[%s6735_s26 + $0x30] sm:$0xff] %v5194_v20   ;;  %5870 = vst [vmem:[%s6735_s26 + $0x230] sm:$0xff] %v5514_v21   ;;  %v1439_v31 = vadd.f32 %v6687_v46, %v1438_v16  ;;  %v1951_v32 = vadd.f32 %v6687_v46, %v1950_v17  ;;  %v2400_v34 = vmax.f32 %v1434_v22, 0.0  ;;  %v2528_v35 = vmax.f32 %v1946_v23, 0.0  ;;  %v1441_v38 = vpop.f32.mrf.mxu0  ;;  %v1953_v39 = vpop.f32.mrf.mxu1  ;;  %v6495_v16 = vld [vmem:[%s6565_s30 + $0x3f8] sm:$0xff]  }
 0x11b   : > { %v2398_v36 = vmax.f32 %v1426_v24, 0.0  ;;  %v2526_v37 = vmax.f32 %v1938_v25, 0.0  ;;  %v2403_v41 = vmax.f32 %v1447_v29, 0.0  ;;  %v2531_v42 = vmax.f32 %v1959_v30, 0.0 }
 0x11c   : > { %v2401_v43 = vmax.f32 %v1439_v31, 0.0  ;;  %v2529_v44 = vmax.f32 %v1951_v32, 0.0  ;;  %v2663_v47 = vmul.f32 %v6694_v51, %v2400_v34  ;;  %v2791_v48 = vmul.f32 %v6694_v51, %v2528_v35  ;;  %v6106_v52 = vpop.f32.mrf.mxu0  ;;  %6201 = vmatmul.mubr.bf16.gmra.mxu0 %v6490_v28  ;;  %v6234_v53 = vpop.f32.mrf.mxu1 }
 0x11d   : > { %v2661_v49 = vmul.f32 %v6694_v51, %v2398_v36  ;;  %v2789_v50 = vmul.f32 %v6694_v51, %v2526_v37  ;;  %v2925_v54 = vadd.f32 %v6701_v58, %v2662_v12  ;;  %v3053_v55 = vadd.f32 %v6701_v58, %v2790_v13  ;;  %6329 = vmatmul.mubr.bf16.gmra.mxu1 %v6491_v33 }
 0x11e   : > { %v2923_v56 = vadd.f32 %v6701_v58, %v2660_v14  ;;  %v3051_v57 = vadd.f32 %v6701_v58, %v2788_v15  ;;  %v2926_v59 = vadd.f32 %v6701_v58, %v2663_v47  ;;  %v3054_v60 = vadd.f32 %v6701_v58, %v2791_v48  ;;  %v1454_v63 = vpop.f32.mrf.mxu0  ;;  %v1966_v0 = vpop.f32.mrf.mxu1  ;;  %6204 = vmatprep.mubr.bf16.mxu0 %v6492_v40 }
 0x11f   : > { %v2924_v61 = vadd.f32 %v6701_v58, %v2661_v49  ;;  %v3052_v62 = vadd.f32 %v6701_v58, %v2789_v50  ;;  %v2666_v1 = vmul.f32 %v6694_v51, %v2403_v41  ;;  %v2794_v2 = vmul.f32 %v6694_v51, %v2531_v42  ;;  %6332 = vmatprep.mubr.bf16.mxu1 %v6493_v45 }
 0x120   : > { %v2664_v3 = vmul.f32 %v6694_v51, %v2401_v43  ;;  %v2792_v4 = vmul.f32 %v6694_v51, %v2529_v44  ;;  %v5209_v5 = vpack.c.bf16 %v2926_v59, %v2925_v54  ;;  %v5529_v6 = vpack.c.bf16 %v3054_v60, %v3053_v55  ;;  %v6107_v9 = vpop.f32.mrf.mxu0  ;;  %v6235_v10 = vpop.f32.mrf.mxu1 }
 0x121   : > { %v5204_v7 = vpack.c.bf16 %v2924_v61, %v2923_v56  ;;  %v5524_v8 = vpack.c.bf16 %v3052_v62, %v3051_v57  ;;  %v1450_v12 = vadd.f32 %v6103_v26, %v6687_v46  ;;  %v1962_v13 = vadd.f32 %v6231_v27, %v6687_v46 }
 0x122   : > { %v1442_v14 = vadd.f32 %v6687_v46, %v1441_v38  ;;  %v1954_v15 = vadd.f32 %v6687_v46, %v1953_v39  ;;  %5809 = vst [vmem:[%s6735_s26 + $0x48] sm:$0xff] %v5209_v5   ;;  %5873 = vst [vmem:[%s6735_s26 + $0x248] sm:$0xff] %v5529_v6   ;;  %v1463_v17 = vadd.f32 %v6106_v52, %v6687_v46  ;;  %v1457_v21 = vpop.f32.mrf.mxu0  ;;  %v1969_v22 = vpop.f32.mrf.mxu1 }
 0x123   : > { %5808 = vst [vmem:[%s6735_s26 + $0x40] sm:$0xff] %v5204_v7   ;;  %5872 = vst [vmem:[%s6735_s26 + $0x240] sm:$0xff] %v5524_v8   ;;  %v1975_v18 = vadd.f32 %v6234_v53, %v6687_v46  ;;  %v1455_v19 = vadd.f32 %v6687_v46, %v1454_v63  ;;  %v1967_v20 = vadd.f32 %v6687_v46, %v1966_v0  ;;  %v2404_v23 = vmax.f32 %v1450_v12, 0.0 }
 0x124   : > { %v2532_v24 = vmax.f32 %v1962_v13, 0.0  ;;  %v2402_v25 = vmax.f32 %v1442_v14, 0.0  ;;  %v2530_v26 = vmax.f32 %v1954_v15, 0.0  ;;  %v2407_v27 = vmax.f32 %v1463_v17, 0.0  ;;  %v6110_v31 = vpop.f32.mrf.mxu0  ;;  %6205 = vmatmul.mubr.bf16.gmra.mxu0 %v6494_v11  ;;  %v6238_v32 = vpop.f32.mrf.mxu1 }
 0x125   : > { %v2535_v28 = vmax.f32 %v1975_v18, 0.0  ;;  %v2405_v29 = vmax.f32 %v1455_v19, 0.0  ;;  %v2533_v30 = vmax.f32 %v1967_v20, 0.0  ;;  %v2667_v33 = vmul.f32 %v6694_v51, %v2404_v23  ;;  %6333 = vmatmul.mubr.bf16.gmra.mxu1 %v6495_v16 }
 0x126   : > { %v2795_v34 = vmul.f32 %v6694_v51, %v2532_v24  ;;  %v2665_v35 = vmul.f32 %v6694_v51, %v2402_v25  ;;  %v2793_v36 = vmul.f32 %v6694_v51, %v2530_v26  ;;  %v2929_v37 = vadd.f32 %v6701_v58, %v2666_v1  ;;  %v1470_v41 = vpop.f32.mrf.mxu0  ;;  %v1982_v42 = vpop.f32.mrf.mxu1 }
 0x127   : > { %v3057_v38 = vadd.f32 %v6701_v58, %v2794_v2  ;;  %v2927_v39 = vadd.f32 %v6701_v58, %v2664_v3  ;;  %v3055_v40 = vadd.f32 %v6701_v58, %v2792_v4  ;;  %v2930_v43 = vadd.f32 %v6701_v58, %v2667_v33 }
 0x128   : > { %v3058_v44 = vadd.f32 %v6701_v58, %v2795_v34  ;;  %v2928_v45 = vadd.f32 %v6701_v58, %v2665_v35  ;;  %v3056_v47 = vadd.f32 %v6701_v58, %v2793_v36  ;;  %v2670_v48 = vmul.f32 %v6694_v51, %v2407_v27  ;;  %v6111_v53 = vpop.f32.mrf.mxu0  ;;  %v6239_v54 = vpop.f32.mrf.mxu1 }
 0x129   : > { %v2798_v49 = vmul.f32 %v6694_v51, %v2535_v28  ;;  %v2668_v50 = vmul.f32 %v6694_v51, %v2405_v29  ;;  %v2796_v52 = vmul.f32 %v6694_v51, %v2533_v30  ;;  %v5219_v55 = vpack.c.bf16 %v2930_v43, %v2929_v37 }
 0x12a   : > { %v5539_v56 = vpack.c.bf16 %v3058_v44, %v3057_v38  ;;  %v5214_v57 = vpack.c.bf16 %v2928_v45, %v2927_v39  ;;  %v5534_v59 = vpack.c.bf16 %v3056_v47, %v3055_v40  ;;  %v1466_v60 = vadd.f32 %v6107_v9, %v6687_v46  ;;  %v1473_v0 = vpop.f32.mrf.mxu0  ;;  %v1985_v1 = vpop.f32.mrf.mxu1 }
 0x12b   : > { %v1978_v61 = vadd.f32 %v6235_v10, %v6687_v46  ;;  %v1458_v62 = vadd.f32 %v6687_v46, %v1457_v21  ;;  %v1970_v63 = vadd.f32 %v6687_v46, %v1969_v22  ;;  %5811 = vst [vmem:[%s6735_s26 + $0x58] sm:$0xff] %v5219_v55   ;;  %v1479_v2 = vadd.f32 %v6110_v31, %v6687_v46 }
 0x12c   : > { %5875 = vst [vmem:[%s6735_s26 + $0x258] sm:$0xff] %v5539_v56   ;;  %5810 = vst [vmem:[%s6735_s26 + $0x50] sm:$0xff] %v5214_v57   ;;  %v1991_v3 = vadd.f32 %v6238_v32, %v6687_v46  ;;  %v1471_v4 = vadd.f32 %v6687_v46, %v1470_v41  ;;  %v1983_v5 = vadd.f32 %v6687_v46, %v1982_v42  ;;  %v2408_v6 = vmax.f32 %v1466_v60, 0.0  ;;  %v6114_v10 = vpop.f32.mrf.mxu0  ;;  %v6242_v11 = vpop.f32.mrf.mxu1 }
 0x12d   : > { %5874 = vst [vmem:[%s6735_s26 + $0x250] sm:$0xff] %v5534_v59   ;;  %v2536_v7 = vmax.f32 %v1978_v61, 0.0  ;;  %v2406_v8 = vmax.f32 %v1458_v62, 0.0  ;;  %v2534_v9 = vmax.f32 %v1970_v63, 0.0  ;;  %v2411_v12 = vmax.f32 %v1479_v2, 0.0 }
 0x12e   : > { %v2539_v13 = vmax.f32 %v1991_v3, 0.0  ;;  %v2409_v14 = vmax.f32 %v1471_v4, 0.0  ;;  %v2537_v15 = vmax.f32 %v1983_v5, 0.0  ;;  %v2671_v16 = vmul.f32 %v6694_v51, %v2408_v6  ;;  %v1486_v20 = vpop.f32.mrf.mxu0  ;;  %v1998_v21 = vpop.f32.mrf.mxu1 }
 0x12f   : > { %v2799_v17 = vmul.f32 %v6694_v51, %v2536_v7  ;;  %v2669_v18 = vmul.f32 %v6694_v51, %v2406_v8  ;;  %v2797_v19 = vmul.f32 %v6694_v51, %v2534_v9  ;;  %v2933_v22 = vadd.f32 %v6701_v58, %v2670_v48 }
 0x130   : > { %v3061_v23 = vadd.f32 %v6701_v58, %v2798_v49  ;;  %v2931_v24 = vadd.f32 %v6701_v58, %v2668_v50  ;;  %v3059_v25 = vadd.f32 %v6701_v58, %v2796_v52  ;;  %v2934_v26 = vadd.f32 %v6701_v58, %v2671_v16  ;;  %v6115_v30 = vpop.f32.mrf.mxu0  ;;  %v6243_v31 = vpop.f32.mrf.mxu1 }
 0x131   : > { %v3062_v27 = vadd.f32 %v6701_v58, %v2799_v17  ;;  %v2932_v28 = vadd.f32 %v6701_v58, %v2669_v18  ;;  %v3060_v29 = vadd.f32 %v6701_v58, %v2797_v19  ;;  %v2674_v32 = vmul.f32 %v6694_v51, %v2411_v12 }
 0x132   : > { %v2802_v33 = vmul.f32 %v6694_v51, %v2539_v13  ;;  %v2672_v34 = vmul.f32 %v6694_v51, %v2409_v14  ;;  %v2800_v35 = vmul.f32 %v6694_v51, %v2537_v15  ;;  %v5229_v36 = vpack.c.bf16 %v2934_v26, %v2933_v22  ;;  %v1489_v40 = vpop.f32.mrf.mxu0  ;;  %v2001_v41 = vpop.f32.mrf.mxu1 }
 0x133   : > { %v5549_v37 = vpack.c.bf16 %v3062_v27, %v3061_v23  ;;  %v5224_v38 = vpack.c.bf16 %v2932_v28, %v2931_v24  ;;  %v5544_v39 = vpack.c.bf16 %v3060_v29, %v3059_v25  ;;  %v1482_v42 = vadd.f32 %v6111_v53, %v6687_v46 }
 0x134   : > { %v1994_v43 = vadd.f32 %v6239_v54, %v6687_v46  ;;  %v1474_v44 = vadd.f32 %v6687_v46, %v1473_v0  ;;  %v1986_v45 = vadd.f32 %v6687_v46, %v1985_v1  ;;  %5813 = vst [vmem:[%s6735_s26 + $0x68] sm:$0xff] %v5229_v36   ;;  %v1495_v47 = vadd.f32 %v6114_v10, %v6687_v46  ;;  %v6118_v52 = vpop.f32.mrf.mxu0  ;;  %v6246_v53 = vpop.f32.mrf.mxu1 }
 0x135   : > { %5877 = vst [vmem:[%s6735_s26 + $0x268] sm:$0xff] %v5549_v37   ;;  %5812 = vst [vmem:[%s6735_s26 + $0x60] sm:$0xff] %v5224_v38   ;;  %v2007_v48 = vadd.f32 %v6242_v11, %v6687_v46  ;;  %v1487_v49 = vadd.f32 %v6687_v46, %v1486_v20  ;;  %v1999_v50 = vadd.f32 %v6687_v46, %v1998_v21  ;;  %v2412_v55 = vmax.f32 %v1482_v42, 0.0 }
 0x136   : > { %5876 = vst [vmem:[%s6735_s26 + $0x260] sm:$0xff] %v5544_v39   ;;  %v2540_v54 = vmax.f32 %v1994_v43, 0.0  ;;  %v2410_v56 = vmax.f32 %v1474_v44, 0.0  ;;  %v2538_v57 = vmax.f32 %v1986_v45, 0.0  ;;  %v2415_v59 = vmax.f32 %v1495_v47, 0.0  ;;  %v1502_v63 = vpop.f32.mrf.mxu0  ;;  %v2014_v0 = vpop.f32.mrf.mxu1 }
 0x137   : > { %v2543_v60 = vmax.f32 %v2007_v48, 0.0  ;;  %v2413_v61 = vmax.f32 %v1487_v49, 0.0  ;;  %v2541_v62 = vmax.f32 %v1999_v50, 0.0  ;;  %v2675_v1 = vmul.f32 %v6694_v51, %v2412_v55 }
 0x138   : > { %v2803_v2 = vmul.f32 %v6694_v51, %v2540_v54  ;;  %v2673_v3 = vmul.f32 %v6694_v51, %v2410_v56  ;;  %v2801_v4 = vmul.f32 %v6694_v51, %v2538_v57  ;;  %v2937_v5 = vadd.f32 %v6701_v58, %v2674_v32  ;;  %v6952_v9 = vpop.f32.mrf.mxu0  ;;  %v6954_v10 = vpop.f32.mrf.mxu1 }
 0x139   : > { %v3065_v6 = vadd.f32 %v6701_v58, %v2802_v33  ;;  %v2935_v7 = vadd.f32 %v6701_v58, %v2672_v34  ;;  %v3063_v8 = vadd.f32 %v6701_v58, %v2800_v35  ;;  %v2938_v11 = vadd.f32 %v6701_v58, %v2675_v1 }
 0x13a   : > { %v3066_v12 = vadd.f32 %v6701_v58, %v2803_v2  ;;  %v2936_v13 = vadd.f32 %v6701_v58, %v2673_v3  ;;  %v3064_v14 = vadd.f32 %v6701_v58, %v2801_v4  ;;  %v2678_v15 = vmul.f32 %v6694_v51, %v2415_v59  ;;  %v1505_v19 = vpop.f32.mrf.mxu0  ;;  %v2017_v20 = vpop.f32.mrf.mxu1 }
 0x13b   : > { %v2806_v16 = vmul.f32 %v6694_v51, %v2543_v60  ;;  %v2676_v17 = vmul.f32 %v6694_v51, %v2413_v61  ;;  %v2804_v18 = vmul.f32 %v6694_v51, %v2541_v62  ;;  %v5239_v21 = vpack.c.bf16 %v2938_v11, %v2937_v5 }
 0x13c   : > { %v5559_v22 = vpack.c.bf16 %v3066_v12, %v3065_v6  ;;  %v5234_v23 = vpack.c.bf16 %v2936_v13, %v2935_v7  ;;  %v5554_v24 = vpack.c.bf16 %v3064_v14, %v3063_v8  ;;  %v1498_v25 = vadd.f32 %v6115_v30, %v6687_v46  ;;  %v6122_v29 = vpop.f32.mrf.mxu0  ;;  %v6250_v32 = vpop.f32.mrf.mxu1  ;;  %v7007_v8 = vld [vmem:[%s8131_s2] ss:$0 sm:$0xff] }
 0x13d   : > { %v2010_v26 = vadd.f32 %v6243_v31, %v6687_v46  ;;  %v1490_v27 = vadd.f32 %v6687_v46, %v1489_v40  ;;  %v2002_v28 = vadd.f32 %v6687_v46, %v2001_v41  ;;  %5815 = vst [vmem:[%s6735_s26 + $0x78] sm:$0xff] %v5239_v21   ;;  %v1511_v33 = vadd.f32 %v6118_v52, %v6687_v46 }
 0x13e   : > { %5879 = vst [vmem:[%s6735_s26 + $0x278] sm:$0xff] %v5559_v22   ;;  %5814 = vst [vmem:[%s6735_s26 + $0x70] sm:$0xff] %v5234_v23   ;;  %v2023_v34 = vadd.f32 %v6246_v53, %v6687_v46  ;;  %v1503_v35 = vadd.f32 %v6687_v46, %v1502_v63  ;;  %v2015_v30 = vadd.f32 %v6687_v46, %v2014_v0  ;;  %v2416_v36 = vmax.f32 %v1498_v25, 0.0  ;;  %v1518_v39 = vpop.f32.mrf.mxu0  ;;  %v2030_v40 = vpop.f32.mrf.mxu1 }
 0x13f   : > { %5878 = vst [vmem:[%s6735_s26 + $0x270] sm:$0xff] %v5554_v24   ;;  %v2544_v31 = vmax.f32 %v2010_v26, 0.0  ;;  %v2414_v37 = vmax.f32 %v1490_v27, 0.0  ;;  %v2542_v38 = vmax.f32 %v2002_v28, 0.0  ;;  %v2419_v41 = vmax.f32 %v1511_v33, 0.0 }
 0x140   : > { %v2547_v42 = vmax.f32 %v2023_v34, 0.0  ;;  %v2417_v43 = vmax.f32 %v1503_v35, 0.0  ;;  %v2545_v44 = vmax.f32 %v2015_v30, 0.0  ;;  %v2679_v45 = vmul.f32 %v6694_v51, %v2416_v36  ;;  %v6980_v50 = vpop.f32.mrf.mxu0  ;;  %v6982_v46 = vpop.f32.mrf.mxu1  ;;  %v7030_v28 = vld [vmem:[%s8132_s3] ss:$0 sm:$0xff] }
 0x141   : > { %v2807_v47 = vmul.f32 %v6694_v51, %v2544_v31  ;;  %v2677_v48 = vmul.f32 %v6694_v51, %v2414_v37  ;;  %v2805_v49 = vmul.f32 %v6694_v51, %v2542_v38  ;;  %v2941_v52 = vadd.f32 %v6701_v58, %v2678_v15  ;;  %v7039_v35 = vld [vmem:[%s8133_s4] ss:$0 sm:$0xff] }
 0x142   : > { %v3069_v53 = vadd.f32 %v6701_v58, %v2806_v16  ;;  %v2939_v55 = vadd.f32 %v6701_v58, %v2676_v17  ;;  %v3067_v54 = vadd.f32 %v6701_v58, %v2804_v18  ;;  %v2942_v56 = vadd.f32 %v6701_v58, %v2679_v45  ;;  %v6992_v61 = vpop.f32.mrf.mxu0  ;;  %v6994_v62 = vpop.f32.mrf.mxu1 }
 0x143   : > { %v3070_v57 = vadd.f32 %v6701_v58, %v2807_v47  ;;  %v2940_v59 = vadd.f32 %v6701_v58, %v2677_v48  ;;  %v3068_v60 = vadd.f32 %v6701_v58, %v2805_v49  ;;  %v2682_v63 = vmul.f32 %v6694_v51, %v2419_v41 }
 0x144   : > { %v2810_v0 = vmul.f32 %v6694_v51, %v2547_v42  ;;  %v2680_v1 = vmul.f32 %v6694_v51, %v2417_v43  ;;  %v2808_v2 = vmul.f32 %v6694_v51, %v2545_v44  ;;  %v5249_v3 = vpack.c.bf16 %v2942_v56, %v2941_v52  ;;  %v7000_v6 = vpop.f32.mrf.mxu0  ;;  %v7002_v7 = vpop.f32.mrf.mxu1 }
 0x145   : > { %v5569_v4 = vpack.c.bf16 %v3070_v57, %v3069_v53  ;;  %v5244_v5 = vpack.c.bf16 %v2940_v59, %v2939_v55  ;;  %v5564_v58 = vpack.c.bf16 %v3068_v60, %v3067_v54  ;;  %v1514_v11 = vadd.f32 %v7007_v8, %v6952_v9 }
 0x146   : > { %v2026_v12 = vadd.f32 %v7007_v8, %v6954_v10  ;;  %v1506_v51 = vadd.f32 %v7007_v8, %v1505_v19  ;;  %v2018_v13 = vadd.f32 %v7007_v8, %v2017_v20  ;;  %5817 = vst [vmem:[%s6735_s26 + $0x88] sm:$0xff] %v5249_v3   ;;  %v1527_v14 = vadd.f32 %v7007_v8, %v6122_v29  ;;  %v1534_v9 = vpop.f32.mrf.mxu0  ;;  %v2046_v18 = vpop.f32.mrf.mxu1 }
 0x147   : > { %5881 = vst [vmem:[%s6735_s26 + $0x288] sm:$0xff] %v5569_v4   ;;  %5816 = vst [vmem:[%s6735_s26 + $0x80] sm:$0xff] %v5244_v5   ;;  %v2039_v15 = vadd.f32 %v7007_v8, %v6250_v32  ;;  %v1519_v16 = vadd.f32 %v7007_v8, %v1518_v39  ;;  %v2031_v17 = vadd.f32 %v7007_v8, %v2030_v40  ;;  %v2420_v21 = vmax.f32 %v1514_v11, 0.0 }
 0x148   : > { %5880 = vst [vmem:[%s6735_s26 + $0x280] sm:$0xff] %v5564_v58   ;;  %v2548_v10 = vmax.f32 %v2026_v12, 0.0  ;;  %v2418_v22 = vmax.f32 %v1506_v51, 0.0  ;;  %v2546_v19 = vmax.f32 %v2018_v13, 0.0  ;;  %v2423_v23 = vmax.f32 %v1527_v14, 0.0  ;;  %v7023_v26 = vpop.f32.mrf.mxu0  ;;  %v7025_v27 = vpop.f32.mrf.mxu1 }
 0x149   : > { %v2551_v20 = vmax.f32 %v2039_v15, 0.0  ;;  %v2421_v24 = vmax.f32 %v1519_v16, 0.0  ;;  %v2549_v25 = vmax.f32 %v2031_v17, 0.0  ;;  %v2683_v29 = vmul.f32 %v7030_v28, %v2420_v21 }
 0x14a   : > { %v2811_v32 = vmul.f32 %v7030_v28, %v2548_v10  ;;  %v2681_v33 = vmul.f32 %v7030_v28, %v2418_v22  ;;  %v2809_v34 = vmul.f32 %v7030_v28, %v2546_v19  ;;  %v2945_v30 = vadd.f32 %v7039_v35, %v2682_v63  ;;  %v7045_v38 = vpop.f32.mrf.mxu0  ;;  %v7047_v39 = vpop.f32.mrf.mxu1 }
 0x14b   : > { %v3073_v36 = vadd.f32 %v7039_v35, %v2810_v0  ;;  %v2943_v31 = vadd.f32 %v7039_v35, %v2680_v1  ;;  %v3071_v37 = vadd.f32 %v7039_v35, %v2808_v2  ;;  %v2946_v40 = vadd.f32 %v7039_v35, %v2683_v29 }
 0x14c   : > { %v3074_v41 = vadd.f32 %v7039_v35, %v2811_v32  ;;  %v2944_v42 = vadd.f32 %v7039_v35, %v2681_v33  ;;  %v3072_v43 = vadd.f32 %v7039_v35, %v2809_v34  ;;  %v2686_v44 = vmul.f32 %v7030_v28, %v2423_v23  ;;  %v7057_v49 = vpop.f32.mrf.mxu0  ;;  %v7059_v52 = vpop.f32.mrf.mxu1 }
 0x14d   : > { %v2814_v45 = vmul.f32 %v7030_v28, %v2551_v20  ;;  %v2684_v47 = vmul.f32 %v7030_v28, %v2421_v24  ;;  %v2812_v48 = vmul.f32 %v7030_v28, %v2549_v25  ;;  %v5259_v53 = vpack.c.bf16 %v2946_v40, %v2945_v30 }
 0x14e   : > { %v5579_v55 = vpack.c.bf16 %v3074_v41, %v3073_v36  ;;  %v5254_v54 = vpack.c.bf16 %v2944_v42, %v2943_v31  ;;  %v5574_v56 = vpack.c.bf16 %v3072_v43, %v3071_v37  ;;  %v1530_v57 = vadd.f32 %v7007_v8, %v6980_v50  ;;  %v1550_v0 = vpop.f32.mrf.mxu0  ;;  %v2062_v1 = vpop.f32.mrf.mxu1 }
 0x14f   : > { %v2042_v59 = vadd.f32 %v7007_v8, %v6982_v46  ;;  %v1522_v60 = vadd.f32 %v7007_v8, %v6992_v61  ;;  %v2034_v63 = vadd.f32 %v7007_v8, %v6994_v62  ;;  %5819 = vst [vmem:[%s6735_s26 + $0x98] sm:$0xff] %v5259_v53   ;;  %v1543_v2 = vadd.f32 %v7007_v8, %v7000_v6 }
 0x150   : > { %5883 = vst [vmem:[%s6735_s26 + $0x298] sm:$0xff] %v5579_v55   ;;  %5818 = vst [vmem:[%s6735_s26 + $0x90] sm:$0xff] %v5254_v54   ;;  %v2055_v50 = vadd.f32 %v7007_v8, %v7002_v7  ;;  %v1535_v46 = vadd.f32 %v7007_v8, %v1534_v9  ;;  %v2047_v3 = vadd.f32 %v7007_v8, %v2046_v18  ;;  %v2424_v61 = vmax.f32 %v1530_v57, 0.0  ;;  %v7079_v58 = vpop.f32.mrf.mxu0  ;;  %v7081_v11 = vpop.f32.mrf.mxu1 }
 0x151   : > { %5882 = vst [vmem:[%s6735_s26 + $0x290] sm:$0xff] %v5574_v56   ;;  %v2552_v4 = vmax.f32 %v2042_v59, 0.0  ;;  %v2422_v5 = vmax.f32 %v1522_v60, 0.0  ;;  %v2550_v62 = vmax.f32 %v2034_v63, 0.0  ;;  %v2427_v12 = vmax.f32 %v1543_v2, 0.0 }
 0x152   : > { %v2555_v51 = vmax.f32 %v2055_v50, 0.0  ;;  %v2425_v13 = vmax.f32 %v1535_v46, 0.0  ;;  %v2553_v14 = vmax.f32 %v2047_v3, 0.0  ;;  %v2687_v6 = vmul.f32 %v7030_v28, %v2424_v61  ;;  %v7087_v17 = vpop.f32.mrf.mxu0  ;;  %v7089_v9 = vpop.f32.mrf.mxu1 }
 0x153   : > { %v2815_v7 = vmul.f32 %v7030_v28, %v2552_v4  ;;  %v2685_v15 = vmul.f32 %v7030_v28, %v2422_v5  ;;  %v2813_v16 = vmul.f32 %v7030_v28, %v2550_v62  ;;  %v2949_v18 = vadd.f32 %v7039_v35, %v2686_v44 }
 0x154   : > { %v3077_v21 = vadd.f32 %v7039_v35, %v2814_v45  ;;  %v2947_v10 = vadd.f32 %v7039_v35, %v2684_v47  ;;  %v3075_v22 = vadd.f32 %v7039_v35, %v2812_v48  ;;  %v2950_v19 = vadd.f32 %v7039_v35, %v2687_v6  ;;  %v7099_v25 = vpop.f32.mrf.mxu0  ;;  %v7101_v29 = vpop.f32.mrf.mxu1 }
 0x155   : > { %v3078_v23 = vadd.f32 %v7039_v35, %v2815_v7  ;;  %v2948_v20 = vadd.f32 %v7039_v35, %v2685_v15  ;;  %v3076_v24 = vadd.f32 %v7039_v35, %v2813_v16  ;;  %v2690_v32 = vmul.f32 %v7030_v28, %v2427_v12 }
 0x156   : > { %v2818_v33 = vmul.f32 %v7030_v28, %v2555_v51  ;;  %v2688_v34 = vmul.f32 %v7030_v28, %v2425_v13  ;;  %v2816_v30 = vmul.f32 %v7030_v28, %v2553_v14  ;;  %v5269_v36 = vpack.c.bf16 %v2950_v19, %v2949_v18  ;;  %v1566_v41 = vpop.f32.mrf.mxu0  ;;  %v2078_v42 = vpop.f32.mrf.mxu1 }
 0x157   : > { %v5589_v31 = vpack.c.bf16 %v3078_v23, %v3077_v21  ;;  %v5264_v37 = vpack.c.bf16 %v2948_v20, %v2947_v10  ;;  %v5584_v40 = vpack.c.bf16 %v3076_v24, %v3075_v22  ;;  %v1546_v43 = vadd.f32 %v7007_v8, %v7023_v26 }
 0x158   : > { %v2058_v44 = vadd.f32 %v7007_v8, %v7025_v27  ;;  %v1538_v45 = vadd.f32 %v7007_v8, %v7045_v38  ;;  %v2050_v47 = vadd.f32 %v7007_v8, %v7047_v39  ;;  %5821 = vst [vmem:[%s6735_s26 + $0xa8] sm:$0xff] %v5269_v36   ;;  %v1559_v48 = vadd.f32 %v7007_v8, %v7057_v49  ;;  %v7125_v55 = vpop.f32.mrf.mxu0  ;;  %v7127_v38 = vpop.f32.mrf.mxu1 }
 0x159   : > { %5885 = vst [vmem:[%s6735_s26 + $0x2a8] sm:$0xff] %v5589_v31   ;;  %5820 = vst [vmem:[%s6735_s26 + $0xa0] sm:$0xff] %v5264_v37   ;;  %v2071_v53 = vadd.f32 %v7007_v8, %v7059_v52  ;;  %v1551_v26 = vadd.f32 %v7007_v8, %v1550_v0  ;;  %v2063_v27 = vadd.f32 %v7007_v8, %v2062_v1  ;;  %v2428_v54 = vmax.f32 %v1546_v43, 0.0 }
 0x15a   : > { %5884 = vst [vmem:[%s6735_s26 + $0x2a0] sm:$0xff] %v5584_v40   ;;  %v2556_v39 = vmax.f32 %v2058_v44, 0.0  ;;  %v2426_v56 = vmax.f32 %v1538_v45, 0.0  ;;  %v2554_v57 = vmax.f32 %v2050_v47, 0.0  ;;  %v2431_v59 = vmax.f32 %v1559_v48, 0.0  ;;  %v7129_v49 = vpop.f32.mrf.mxu0  ;;  %v7131_v50 = vpop.f32.mrf.mxu1 }
 0x15b   : > { %v2559_v60 = vmax.f32 %v2071_v53, 0.0  ;;  %v2429_v63 = vmax.f32 %v1551_v26, 0.0  ;;  %v2557_v2 = vmax.f32 %v2063_v27, 0.0  ;;  %v2691_v52 = vmul.f32 %v7030_v28, %v2428_v54 }
 0x15c   : > { %v2819_v0 = vmul.f32 %v7030_v28, %v2556_v39  ;;  %v2689_v1 = vmul.f32 %v7030_v28, %v2426_v56  ;;  %v2817_v46 = vmul.f32 %v7030_v28, %v2554_v57  ;;  %v2953_v3 = vadd.f32 %v7039_v35, %v2690_v32  ;;  %v7141_v62 = vpop.f32.mrf.mxu0  ;;  %v7143_v12 = vpop.f32.mrf.mxu1 }
 0x15d   : > { %v3081_v61 = vadd.f32 %v7039_v35, %v2818_v33  ;;  %v2951_v4 = vadd.f32 %v7039_v35, %v2688_v34  ;;  %v3079_v5 = vadd.f32 %v7039_v35, %v2816_v30  ;;  %v2954_v51 = vadd.f32 %v7039_v35, %v2691_v52 }
 0x15e   : > { %v3082_v13 = vadd.f32 %v7039_v35, %v2819_v0  ;;  %v2952_v14 = vadd.f32 %v7039_v35, %v2689_v1  ;;  %v3080_v6 = vadd.f32 %v7039_v35, %v2817_v46  ;;  %v2694_v7 = vmul.f32 %v7030_v28, %v2431_v59  ;;  %v7153_v21 = vpop.f32.mrf.mxu0  ;;  %v7155_v10 = vpop.f32.mrf.mxu1 }
 0x15f   : > { %v2822_v15 = vmul.f32 %v7030_v28, %v2559_v60  ;;  %v2692_v16 = vmul.f32 %v7030_v28, %v2429_v63  ;;  %v2820_v18 = vmul.f32 %v7030_v28, %v2557_v2  ;;  %v5279_v22 = vpack.c.bf16 %v2954_v51, %v2953_v3 }
 0x160   : > { %v5599_v19 = vpack.c.bf16 %v3082_v13, %v3081_v61  ;;  %v5274_v23 = vpack.c.bf16 %v2952_v14, %v2951_v4  ;;  %v5594_v20 = vpack.c.bf16 %v3080_v6, %v3079_v5  ;;  %v1562_v24 = vadd.f32 %v7007_v8, %v7079_v58  ;;  %v7165_v30 = vpop.f32.mrf.mxu0  ;;  %v7167_v36 = vpop.f32.mrf.mxu1 }
 0x161   : > { %v2074_v32 = vadd.f32 %v7007_v8, %v7081_v11  ;;  %v1554_v33 = vadd.f32 %v7007_v8, %v7087_v17  ;;  %v2066_v34 = vadd.f32 %v7007_v8, %v7089_v9  ;;  %5823 = vst [vmem:[%s6735_s26 + $0xb8] sm:$0xff] %v5279_v22   ;;  %v1575_v58 = vadd.f32 %v7007_v8, %v7099_v25 }
 0x162   : > { %5887 = vst [vmem:[%s6735_s26 + $0x2b8] sm:$0xff] %v5599_v19   ;;  %5822 = vst [vmem:[%s6735_s26 + $0xb0] sm:$0xff] %v5274_v23   ;;  %v2087_v11 = vadd.f32 %v7007_v8, %v7101_v29  ;;  %v1567_v31 = vadd.f32 %v7007_v8, %v1566_v41  ;;  %v2079_v17 = vadd.f32 %v7007_v8, %v2078_v42  ;;  %v2432_v37 = vmax.f32 %v1562_v24, 0.0  ;;  %v7179_v44 = vpop.f32.mrf.mxu0  ;;  %v7181_v45 = vpop.f32.mrf.mxu1 }
 0x163   : > { %5886 = vst [vmem:[%s6735_s26 + $0x2b0] sm:$0xff] %v5594_v20   ;;  %v2560_v9 = vmax.f32 %v2074_v32, 0.0  ;;  %v2430_v40 = vmax.f32 %v1554_v33, 0.0  ;;  %v2558_v43 = vmax.f32 %v2066_v34, 0.0  ;;  %v2435_v47 = vmax.f32 %v1575_v58, 0.0 }
 0x164   : > { %v2563_v48 = vmax.f32 %v2087_v11, 0.0  ;;  %v2433_v53 = vmax.f32 %v1567_v31, 0.0  ;;  %v2561_v26 = vmax.f32 %v2079_v17, 0.0  ;;  %v2695_v25 = vmul.f32 %v7030_v28, %v2432_v37  ;;  %v7187_v27 = vpop.f32.mrf.mxu0  ;;  %v7189_v54 = vpop.f32.mrf.mxu1 }
 0x165   : > { %v2823_v29 = vmul.f32 %v7030_v28, %v2560_v9  ;;  %v2693_v41 = vmul.f32 %v7030_v28, %v2430_v40  ;;  %v2821_v42 = vmul.f32 %v7030_v28, %v2558_v43  ;;  %v2957_v39 = vadd.f32 %v7039_v35, %v2694_v7 }
 0x166   : > { %v3085_v56 = vadd.f32 %v7039_v35, %v2822_v15  ;;  %v2955_v57 = vadd.f32 %v7039_v35, %v2692_v16  ;;  %v3083_v59 = vadd.f32 %v7039_v35, %v2820_v18  ;;  %v2958_v60 = vadd.f32 %v7039_v35, %v2695_v25  ;;  %v7199_v0 = vpop.f32.mrf.mxu0  ;;  %v7201_v1 = vpop.f32.mrf.mxu1 }
 0x167   : > { %v3086_v63 = vadd.f32 %v7039_v35, %v2823_v29  ;;  %v2956_v2 = vadd.f32 %v7039_v35, %v2693_v41  ;;  %v3084_v52 = vadd.f32 %v7039_v35, %v2821_v42  ;;  %v2698_v46 = vmul.f32 %v7030_v28, %v2435_v47 }
 0x168   : > { %v2826_v3 = vmul.f32 %v7030_v28, %v2563_v48  ;;  %v2696_v61 = vmul.f32 %v7030_v28, %v2433_v53  ;;  %v2824_v4 = vmul.f32 %v7030_v28, %v2561_v26  ;;  %v5289_v5 = vpack.c.bf16 %v2958_v60, %v2957_v39  ;;  %v7207_v6 = vpop.f32.mrf.mxu0  ;;  %v7209_v7 = vpop.f32.mrf.mxu1 }
 0x169   : > { %v5609_v51 = vpack.c.bf16 %v3086_v63, %v3085_v56  ;;  %v5284_v13 = vpack.c.bf16 %v2956_v2, %v2955_v57  ;;  %v5604_v14 = vpack.c.bf16 %v3084_v52, %v3083_v59  ;;  %v1578_v15 = vadd.f32 %v7007_v8, %v7125_v55 }
 0x16a   : > { %v2090_v16 = vadd.f32 %v7007_v8, %v7127_v38  ;;  %v1570_v18 = vadd.f32 %v7007_v8, %v7129_v49  ;;  %v2082_v22 = vadd.f32 %v7007_v8, %v7131_v50  ;;  %5825 = vst [vmem:[%s6735_s26 + $0xc8] sm:$0xff] %v5289_v5   ;;  %v1591_v19 = vadd.f32 %v7007_v8, %v7141_v62  ;;  %v7231_v49 = vpop.f32.mrf.mxu0  ;;  %v7233_v20 = vpop.f32.mrf.mxu1 }
 0x16b   : > { %5889 = vst [vmem:[%s6735_s26 + $0x2c8] sm:$0xff] %v5609_v51   ;;  %5824 = vst [vmem:[%s6735_s26 + $0xc0] sm:$0xff] %v5284_v13   ;;  %v2103_v23 = vadd.f32 %v7007_v8, %v7143_v12  ;;  %v1583_v55 = vadd.f32 %v7007_v8, %v7153_v21  ;;  %v2095_v38 = vadd.f32 %v7007_v8, %v7155_v10  ;;  %v2436_v50 = vmax.f32 %v1578_v15, 0.0 }
 0x16c   : > { %5888 = vst [vmem:[%s6735_s26 + $0x2c0] sm:$0xff] %v5604_v14   ;;  %v2564_v24 = vmax.f32 %v2090_v16, 0.0  ;;  %v2434_v32 = vmax.f32 %v1570_v18, 0.0  ;;  %v2562_v33 = vmax.f32 %v2082_v22, 0.0  ;;  %v2439_v34 = vmax.f32 %v1591_v19, 0.0  ;;  %v7235_v31 = vpop.f32.mrf.mxu0  ;;  %v7237_v12 = vpop.f32.mrf.mxu1 }
 0x16d   : > { %v2567_v58 = vmax.f32 %v2103_v23, 0.0  ;;  %v2437_v62 = vmax.f32 %v1583_v55, 0.0  ;;  %v2565_v11 = vmax.f32 %v2095_v38, 0.0  ;;  %v2699_v21 = vmul.f32 %v7030_v28, %v2436_v50 }
 0x16e   : > { %v2827_v10 = vmul.f32 %v7030_v28, %v2564_v24  ;;  %v2697_v17 = vmul.f32 %v7030_v28, %v2434_v32  ;;  %v2825_v37 = vmul.f32 %v7030_v28, %v2562_v33  ;;  %v2961_v9 = vadd.f32 %v7039_v35, %v2698_v46  ;;  %v7247_v48 = vpop.f32.mrf.mxu0  ;;  %v7249_v53 = vpop.f32.mrf.mxu1 }
 0x16f   : > { %v3089_v40 = vadd.f32 %v7039_v35, %v2826_v3  ;;  %v2959_v43 = vadd.f32 %v7039_v35, %v2696_v61  ;;  %v3087_v47 = vadd.f32 %v7039_v35, %v2824_v4  ;;  %v2962_v26 = vadd.f32 %v7039_v35, %v2699_v21 }
 0x170   : > { %v3090_v25 = vadd.f32 %v7039_v35, %v2827_v10  ;;  %v2960_v29 = vadd.f32 %v7039_v35, %v2697_v17  ;;  %v3088_v41 = vadd.f32 %v7039_v35, %v2825_v37  ;;  %v2702_v42 = vmul.f32 %v7030_v28, %v2439_v34  ;;  %v7259_v59 = vpop.f32.mrf.mxu0  ;;  %v7261_v60 = vpop.f32.mrf.mxu1 }
 0x171   : > { %v2830_v39 = vmul.f32 %v7030_v28, %v2567_v58  ;;  %v2700_v56 = vmul.f32 %v7030_v28, %v2437_v62  ;;  %v2828_v57 = vmul.f32 %v7030_v28, %v2565_v11  ;;  %v5299_v63 = vpack.c.bf16 %v2962_v26, %v2961_v9 }
 0x172   : > { %v5619_v2 = vpack.c.bf16 %v3090_v25, %v3089_v40  ;;  %v5294_v52 = vpack.c.bf16 %v2960_v29, %v2959_v43  ;;  %v5614_v46 = vpack.c.bf16 %v3088_v41, %v3087_v47  ;;  %v1594_v3 = vadd.f32 %v7007_v8, %v7165_v30  ;;  %v7271_v51 = vpop.f32.mrf.mxu0  ;;  %v7273_v13 = vpop.f32.mrf.mxu1 }
 0x173   : > { %v2106_v61 = vadd.f32 %v7007_v8, %v7167_v36  ;;  %v1586_v4 = vadd.f32 %v7007_v8, %v7179_v44  ;;  %v2098_v5 = vadd.f32 %v7007_v8, %v7181_v45  ;;  %5827 = vst [vmem:[%s6735_s26 + $0xd8] sm:$0xff] %v5299_v63   ;;  %v1607_v30 = vadd.f32 %v7007_v8, %v7187_v27 }
 0x174   : > { %5891 = vst [vmem:[%s6735_s26 + $0x2d8] sm:$0xff] %v5619_v2   ;;  %5826 = vst [vmem:[%s6735_s26 + $0xd0] sm:$0xff] %v5294_v52   ;;  %v2119_v36 = vadd.f32 %v7007_v8, %v7189_v54  ;;  %v1599_v44 = vadd.f32 %v7007_v8, %v7199_v0  ;;  %v2111_v45 = vadd.f32 %v7007_v8, %v7201_v1  ;;  %v2440_v14 = vmax.f32 %v1594_v3, 0.0  ;;  %v7287_v22 = vpop.f32.mrf.mxu0  ;;  %v7289_v19 = vpop.f32.mrf.mxu1 }
 0x175   : > { %5890 = vst [vmem:[%s6735_s26 + $0x2d0] sm:$0xff] %v5614_v46   ;;  %v2568_v15 = vmax.f32 %v2106_v61, 0.0  ;;  %v2438_v16 = vmax.f32 %v1586_v4, 0.0  ;;  %v2566_v18 = vmax.f32 %v2098_v5, 0.0  ;;  %v2443_v23 = vmax.f32 %v1607_v30, 0.0 }
 0x176   : > { %v2571_v55 = vmax.f32 %v2119_v36, 0.0  ;;  %v2441_v27 = vmax.f32 %v1599_v44, 0.0  ;;  %v2569_v38 = vmax.f32 %v2111_v45, 0.0  ;;  %v2703_v54 = vmul.f32 %v7030_v28, %v2440_v14  ;;  %v7295_v24 = vpop.f32.mrf.mxu0  ;;  %v7297_v32 = vpop.f32.mrf.mxu1 }
 0x177   : > { %v2831_v50 = vmul.f32 %v7030_v28, %v2568_v15  ;;  %v2701_v0 = vmul.f32 %v7030_v28, %v2438_v16  ;;  %v2829_v1 = vmul.f32 %v7030_v28, %v2566_v18  ;;  %v2965_v33 = vadd.f32 %v7039_v35, %v2702_v42 }
 0x178   : > { %v3093_v34 = vadd.f32 %v7039_v35, %v2830_v39  ;;  %v2963_v58 = vadd.f32 %v7039_v35, %v2700_v56  ;;  %v3091_v62 = vadd.f32 %v7039_v35, %v2828_v57  ;;  %v2966_v11 = vadd.f32 %v7039_v35, %v2703_v54  ;;  %v7307_v37 = vpop.f32.mrf.mxu0  ;;  %v7309_v9 = vpop.f32.mrf.mxu1 }
 0x179   : > { %v3094_v21 = vadd.f32 %v7039_v35, %v2831_v50  ;;  %v2964_v10 = vadd.f32 %v7039_v35, %v2701_v0  ;;  %v3092_v17 = vadd.f32 %v7039_v35, %v2829_v1  ;;  %v2706_v40 = vmul.f32 %v7030_v28, %v2443_v23 }
 0x17a   : > { %v2834_v43 = vmul.f32 %v7030_v28, %v2571_v55  ;;  %v2704_v47 = vmul.f32 %v7030_v28, %v2441_v27  ;;  %v2832_v26 = vmul.f32 %v7030_v28, %v2569_v38  ;;  %v5309_v25 = vpack.c.bf16 %v2966_v11, %v2965_v33  ;;  %v7315_v39 = vpop.f32.mrf.mxu0  ;;  %v7317_v56 = vpop.f32.mrf.mxu1 }
 0x17b   : > { %v5629_v29 = vpack.c.bf16 %v3094_v21, %v3093_v34  ;;  %v5304_v41 = vpack.c.bf16 %v2964_v10, %v2963_v58  ;;  %v5624_v42 = vpack.c.bf16 %v3092_v17, %v3091_v62  ;;  %v1610_v57 = vadd.f32 %v7007_v8, %v7207_v6 }
 0x17c   : > { %v2122_v63 = vadd.f32 %v7007_v8, %v7209_v7  ;;  %v1602_v2 = vadd.f32 %v7007_v8, %v7231_v49  ;;  %v2114_v52 = vadd.f32 %v7007_v8, %v7233_v20  ;;  %5829 = vst [vmem:[%s6735_s26 + $0xe8] sm:$0xff] %v5309_v25   ;;  %v1623_v46 = vadd.f32 %v7007_v8, %v7235_v31  ;;  %v7339_v49 = vpop.f32.mrf.mxu0  ;;  %v7341_v61 = vpop.f32.mrf.mxu1 }
 0x17d   : > { %5893 = vst [vmem:[%s6735_s26 + $0x2e8] sm:$0xff] %v5629_v29   ;;  %5828 = vst [vmem:[%s6735_s26 + $0xe0] sm:$0xff] %v5304_v41   ;;  %v2135_v3 = vadd.f32 %v7007_v8, %v7237_v12  ;;  %v1615_v6 = vadd.f32 %v7007_v8, %v7247_v48  ;;  %v2127_v7 = vadd.f32 %v7007_v8, %v7249_v53  ;;  %v2444_v20 = vmax.f32 %v1610_v57, 0.0 }
 0x17e   : > { %5892 = vst [vmem:[%s6735_s26 + $0x2e0] sm:$0xff] %v5624_v42   ;;  %v2572_v4 = vmax.f32 %v2122_v63, 0.0  ;;  %v2442_v5 = vmax.f32 %v1602_v2, 0.0  ;;  %v2570_v30 = vmax.f32 %v2114_v52, 0.0  ;;  %v2447_v36 = vmax.f32 %v1623_v46, 0.0  ;;  %v7343_v14 = vpop.f32.mrf.mxu0  ;;  %v7345_v12 = vpop.f32.mrf.mxu1 }
 0x17f   : > { %v2575_v44 = vmax.f32 %v2135_v3, 0.0  ;;  %v2445_v31 = vmax.f32 %v1615_v6, 0.0  ;;  %v2573_v45 = vmax.f32 %v2127_v7, 0.0  ;;  %v2707_v48 = vmul.f32 %v7030_v28, %v2444_v20 }
 0x180   : > { %v2835_v53 = vmul.f32 %v7030_v28, %v2572_v4  ;;  %v2705_v15 = vmul.f32 %v7030_v28, %v2442_v5  ;;  %v2833_v16 = vmul.f32 %v7030_v28, %v2570_v30  ;;  %v2969_v18 = vadd.f32 %v7039_v35, %v2706_v40  ;;  %v7355_v38 = vpop.f32.mrf.mxu0  ;;  %v7357_v54 = vpop.f32.mrf.mxu1 }
 0x181   : > { %v3097_v23 = vadd.f32 %v7039_v35, %v2834_v43  ;;  %v2967_v55 = vadd.f32 %v7039_v35, %v2704_v47  ;;  %v3095_v27 = vadd.f32 %v7039_v35, %v2832_v26  ;;  %v2970_v50 = vadd.f32 %v7039_v35, %v2707_v48 }
 0x182   : > { %v3098_v0 = vadd.f32 %v7039_v35, %v2835_v53  ;;  %v2968_v1 = vadd.f32 %v7039_v35, %v2705_v15  ;;  %v3096_v33 = vadd.f32 %v7039_v35, %v2833_v16  ;;  %v2710_v34 = vmul.f32 %v7030_v28, %v2447_v36  ;;  %v7367_v21 = vpop.f32.mrf.mxu0  ;;  %v7369_v10 = vpop.f32.mrf.mxu1 }
 0x183   : > { %v2838_v58 = vmul.f32 %v7030_v28, %v2575_v44  ;;  %v2708_v62 = vmul.f32 %v7030_v28, %v2445_v31  ;;  %v2836_v11 = vmul.f32 %v7030_v28, %v2573_v45  ;;  %v5319_v17 = vpack.c.bf16 %v2970_v50, %v2969_v18 }
 0x184   : > { %v5639_v40 = vpack.c.bf16 %v3098_v0, %v3097_v23  ;;  %v5314_v43 = vpack.c.bf16 %v2968_v1, %v2967_v55  ;;  %v5634_v47 = vpack.c.bf16 %v3096_v33, %v3095_v27  ;;  %v1626_v26 = vadd.f32 %v7007_v8, %v7259_v59  ;;  %v7379_v42 = vpop.f32.mrf.mxu0  ;;  %v7381_v57 = vpop.f32.mrf.mxu1 }
 0x185   : > { %v2138_v25 = vadd.f32 %v7007_v8, %v7261_v60  ;;  %v1618_v29 = vadd.f32 %v7007_v8, %v7271_v51  ;;  %v2130_v41 = vadd.f32 %v7007_v8, %v7273_v13  ;;  %5831 = vst [vmem:[%s6735_s26 + $0xf8] sm:$0xff] %v5319_v17   ;;  %v1639_v59 = vadd.f32 %v7007_v8, %v7287_v22 }
 0x186   : > { %5895 = vst [vmem:[%s6735_s26 + $0x2f8] sm:$0xff] %v5639_v40   ;;  %5830 = vst [vmem:[%s6735_s26 + $0xf0] sm:$0xff] %v5314_v43   ;;  %v2151_v60 = vadd.f32 %v7007_v8, %v7289_v19  ;;  %v1631_v51 = vadd.f32 %v7007_v8, %v7295_v24  ;;  %v2143_v13 = vadd.f32 %v7007_v8, %v7297_v32  ;;  %v2448_v63 = vmax.f32 %v1626_v26, 0.0  ;;  %v7395_v3 = vpop.f32.mrf.mxu0  ;;  %v7397_v6 = vpop.f32.mrf.mxu1 }
 0x187   : > { %5894 = vst [vmem:[%s6735_s26 + $0x2f0] sm:$0xff] %v5634_v47   ;;  %v2576_v2 = vmax.f32 %v2138_v25, 0.0  ;;  %v2446_v52 = vmax.f32 %v1618_v29, 0.0  ;;  %v2574_v46 = vmax.f32 %v2130_v41, 0.0  ;;  %v2451_v7 = vmax.f32 %v1639_v59, 0.0 }
 0x188   : > { %v2579_v20 = vmax.f32 %v2151_v60, 0.0  ;;  %v2449_v22 = vmax.f32 %v1631_v51, 0.0  ;;  %v2577_v4 = vmax.f32 %v2143_v13, 0.0  ;;  %v2711_v19 = vmul.f32 %v7030_v28, %v2448_v63  ;;  %v7403_v30 = vpop.f32.mrf.mxu0  ;;  %v7405_v36 = vpop.f32.mrf.mxu1 }
 0x189   : > { %v2839_v5 = vmul.f32 %v7030_v28, %v2576_v2  ;;  %v2709_v24 = vmul.f32 %v7030_v28, %v2446_v52  ;;  %v2837_v32 = vmul.f32 %v7030_v28, %v2574_v46  ;;  %v2973_v44 = vadd.f32 %v7039_v35, %v2710_v34 }
 0x18a   : > { %v3101_v31 = vadd.f32 %v7039_v35, %v2838_v58  ;;  %v2971_v45 = vadd.f32 %v7039_v35, %v2708_v62  ;;  %v3099_v48 = vadd.f32 %v7039_v35, %v2836_v11  ;;  %v2974_v53 = vadd.f32 %v7039_v35, %v2711_v19  ;;  %v7415_v23 = vpop.f32.mrf.mxu0  ;;  %v7417_v55 = vpop.f32.mrf.mxu1 }
 0x18b   : > { %v3102_v15 = vadd.f32 %v7039_v35, %v2839_v5  ;;  %v2972_v16 = vadd.f32 %v7039_v35, %v2709_v24  ;;  %v3100_v18 = vadd.f32 %v7039_v35, %v2837_v32  ;;  %v2714_v27 = vmul.f32 %v7030_v28, %v2451_v7 }
 0x18c   : > { %v2842_v50 = vmul.f32 %v7030_v28, %v2579_v20  ;;  %v2712_v0 = vmul.f32 %v7030_v28, %v2449_v22  ;;  %v2840_v1 = vmul.f32 %v7030_v28, %v2577_v4  ;;  %v5329_v33 = vpack.c.bf16 %v2974_v53, %v2973_v44  ;;  %v7423_v11 = vpop.f32.mrf.mxu0  ;;  %v7425_v17 = vpop.f32.mrf.mxu1 }
 0x18d   : > { %v5649_v34 = vpack.c.bf16 %v3102_v15, %v3101_v31  ;;  %v5324_v58 = vpack.c.bf16 %v2972_v16, %v2971_v45  ;;  %v5644_v62 = vpack.c.bf16 %v3100_v18, %v3099_v48  ;;  %v1642_v40 = vadd.f32 %v7007_v8, %v7307_v37 }
 0x18e   : > { %v2154_v43 = vadd.f32 %v7007_v8, %v7309_v9  ;;  %v1634_v47 = vadd.f32 %v7007_v8, %v7315_v39  ;;  %v2146_v26 = vadd.f32 %v7007_v8, %v7317_v56  ;;  %5833 = vst [vmem:[%s6735_s26 + $0x108] sm:$0xff] %v5329_v33   ;;  %v1655_v25 = vadd.f32 %v7007_v8, %v7339_v49  ;;  %v7447_v39 = vpop.f32.mrf.mxu0  ;;  %v7449_v41 = vpop.f32.mrf.mxu1 }
 0x18f   : > { %5897 = vst [vmem:[%s6735_s26 + $0x308] sm:$0xff] %v5649_v34   ;;  %5832 = vst [vmem:[%s6735_s26 + $0x100] sm:$0xff] %v5324_v58   ;;  %v2167_v29 = vadd.f32 %v7007_v8, %v7341_v61  ;;  %v1647_v37 = vadd.f32 %v7007_v8, %v7343_v14  ;;  %v2159_v9 = vadd.f32 %v7007_v8, %v7345_v12  ;;  %v2452_v56 = vmax.f32 %v1642_v40, 0.0 }
 0x190   : > { %5896 = vst [vmem:[%s6735_s26 + $0x300] sm:$0xff] %v5644_v62   ;;  %v2580_v59 = vmax.f32 %v2154_v43, 0.0  ;;  %v2450_v60 = vmax.f32 %v1634_v47, 0.0  ;;  %v2578_v51 = vmax.f32 %v2146_v26, 0.0  ;;  %v2455_v13 = vmax.f32 %v1655_v25, 0.0  ;;  %v7451_v52 = vpop.f32.mrf.mxu0  ;;  %v7453_v61 = vpop.f32.mrf.mxu1 }
 0x191   : > { %v2583_v63 = vmax.f32 %v2167_v29, 0.0  ;;  %v2453_v49 = vmax.f32 %v1647_v37, 0.0  ;;  %v2581_v2 = vmax.f32 %v2159_v9, 0.0  ;;  %v2715_v14 = vmul.f32 %v7030_v28, %v2452_v56 }
 0x192   : > { %v2843_v12 = vmul.f32 %v7030_v28, %v2580_v59  ;;  %v2713_v46 = vmul.f32 %v7030_v28, %v2450_v60  ;;  %v2841_v7 = vmul.f32 %v7030_v28, %v2578_v51  ;;  %v2977_v20 = vadd.f32 %v7039_v35, %v2714_v27  ;;  %v7463_v5 = vpop.f32.mrf.mxu0  ;;  %v7465_v24 = vpop.f32.mrf.mxu1 }
 0x193   : > { %v3105_v22 = vadd.f32 %v7039_v35, %v2842_v50  ;;  %v2975_v4 = vadd.f32 %v7039_v35, %v2712_v0  ;;  %v3103_v19 = vadd.f32 %v7039_v35, %v2840_v1  ;;  %v2978_v32 = vadd.f32 %v7039_v35, %v2715_v14 }
 0x194   : > { %v3106_v44 = vadd.f32 %v7039_v35, %v2843_v12  ;;  %v2976_v31 = vadd.f32 %v7039_v35, %v2713_v46  ;;  %v3104_v45 = vadd.f32 %v7039_v35, %v2841_v7  ;;  %v2718_v48 = vmul.f32 %v7030_v28, %v2455_v13  ;;  %v7475_v18 = vpop.f32.mrf.mxu0  ;;  %v7477_v27 = vpop.f32.mrf.mxu1 }
 0x195   : > { %v2846_v53 = vmul.f32 %v7030_v28, %v2583_v63  ;;  %v2716_v15 = vmul.f32 %v7030_v28, %v2453_v49  ;;  %v2844_v16 = vmul.f32 %v7030_v28, %v2581_v2  ;;  %v5339_v50 = vpack.c.bf16 %v2978_v32, %v2977_v20 }
 0x196   : > { %v5659_v0 = vpack.c.bf16 %v3106_v44, %v3105_v22  ;;  %v5334_v1 = vpack.c.bf16 %v2976_v31, %v2975_v4  ;;  %v5654_v33 = vpack.c.bf16 %v3104_v45, %v3103_v19  ;;  %v1658_v34 = vadd.f32 %v7007_v8, %v7355_v38  ;;  %v7487_v43 = vpop.f32.mrf.mxu0  ;;  %v7489_v47 = vpop.f32.mrf.mxu1 }
 0x197   : > { %v2170_v58 = vadd.f32 %v7007_v8, %v7357_v54  ;;  %v1650_v62 = vadd.f32 %v7007_v8, %v7367_v21  ;;  %v2162_v40 = vadd.f32 %v7007_v8, %v7369_v10  ;;  %5835 = vst [vmem:[%s6735_s26 + $0x118] sm:$0xff] %v5339_v50   ;;  %v1671_v38 = vadd.f32 %v7007_v8, %v7379_v42 }
 0x198   : > { %5899 = vst [vmem:[%s6735_s26 + $0x318] sm:$0xff] %v5659_v0   ;;  %5834 = vst [vmem:[%s6735_s26 + $0x110] sm:$0xff] %v5334_v1   ;;  %v2183_v54 = vadd.f32 %v7007_v8, %v7381_v57  ;;  %v1663_v21 = vadd.f32 %v7007_v8, %v7395_v3  ;;  %v2175_v10 = vadd.f32 %v7007_v8, %v7397_v6  ;;  %v2456_v26 = vmax.f32 %v1658_v34, 0.0  ;;  %v7503_v9 = vpop.f32.mrf.mxu0  ;;  %v7505_v56 = vpop.f32.mrf.mxu1 }
 0x199   : > { %5898 = vst [vmem:[%s6735_s26 + $0x310] sm:$0xff] %v5654_v33   ;;  %v2584_v25 = vmax.f32 %v2170_v58, 0.0  ;;  %v2454_v29 = vmax.f32 %v1650_v62, 0.0  ;;  %v2582_v37 = vmax.f32 %v2162_v40, 0.0  ;;  %v2459_v59 = vmax.f32 %v1671_v38, 0.0 }
 0x19a   : > { %v2587_v60 = vmax.f32 %v2183_v54, 0.0  ;;  %v2457_v42 = vmax.f32 %v1663_v21, 0.0  ;;  %v2585_v51 = vmax.f32 %v2175_v10, 0.0  ;;  %v2719_v57 = vmul.f32 %v7030_v28, %v2456_v26  ;;  %v7511_v63 = vpop.f32.mrf.mxu0  ;;  %v7513_v49 = vpop.f32.mrf.mxu1 }
 0x19b   : > { %v2847_v13 = vmul.f32 %v7030_v28, %v2584_v25  ;;  %v2717_v3 = vmul.f32 %v7030_v28, %v2454_v29  ;;  %v2845_v6 = vmul.f32 %v7030_v28, %v2582_v37  ;;  %v2981_v2 = vadd.f32 %v7039_v35, %v2718_v48 }
 0x19c   : > { %v3109_v14 = vadd.f32 %v7039_v35, %v2846_v53  ;;  %v2979_v12 = vadd.f32 %v7039_v35, %v2716_v15  ;;  %v3107_v46 = vadd.f32 %v7039_v35, %v2844_v16  ;;  %v2982_v7 = vadd.f32 %v7039_v35, %v2719_v57  ;;  %v7523_v19 = vpop.f32.mrf.mxu0  ;;  %v7525_v32 = vpop.f32.mrf.mxu1 }
 0x19d   : > { %v3110_v20 = vadd.f32 %v7039_v35, %v2847_v13  ;;  %v2980_v22 = vadd.f32 %v7039_v35, %v2717_v3  ;;  %v3108_v4 = vadd.f32 %v7039_v35, %v2845_v6  ;;  %v2722_v44 = vmul.f32 %v7030_v28, %v2459_v59 }
 0x19e   : > { %v2850_v31 = vmul.f32 %v7030_v28, %v2587_v60  ;;  %v2720_v45 = vmul.f32 %v7030_v28, %v2457_v42  ;;  %v2848_v48 = vmul.f32 %v7030_v28, %v2585_v51  ;;  %v5349_v53 = vpack.c.bf16 %v2982_v7, %v2981_v2  ;;  %v7531_v0 = vpop.f32.mrf.mxu0  ;;  %v7533_v1 = vpop.f32.mrf.mxu1 }
 0x19f   : > { %v5669_v15 = vpack.c.bf16 %v3110_v20, %v3109_v14  ;;  %v5344_v16 = vpack.c.bf16 %v2980_v22, %v2979_v12  ;;  %v5664_v50 = vpack.c.bf16 %v3108_v4, %v3107_v46  ;;  %v1674_v33 = vadd.f32 %v7007_v8, %v7403_v30 }
 0x1a0   : > { %v2186_v34 = vadd.f32 %v7007_v8, %v7405_v36  ;;  %v1666_v58 = vadd.f32 %v7007_v8, %v7415_v23  ;;  %v2178_v62 = vadd.f32 %v7007_v8, %v7417_v55  ;;  %5837 = vst [vmem:[%s6735_s26 + $0x128] sm:$0xff] %v5349_v53   ;;  %v1687_v40 = vadd.f32 %v7007_v8, %v7423_v11  ;;  %v7555_v23 = vpop.f32.mrf.mxu0  ;;  %v7557_v54 = vpop.f32.mrf.mxu1 }
 0x1a1   : > { %5901 = vst [vmem:[%s6735_s26 + $0x328] sm:$0xff] %v5669_v15   ;;  %5836 = vst [vmem:[%s6735_s26 + $0x120] sm:$0xff] %v5344_v16   ;;  %v2199_v38 = vadd.f32 %v7007_v8, %v7425_v17  ;;  %v1679_v30 = vadd.f32 %v7007_v8, %v7447_v39  ;;  %v2191_v36 = vadd.f32 %v7007_v8, %v7449_v41  ;;  %v2460_v55 = vmax.f32 %v1674_v33, 0.0  ;;  %v7590_v15 = vld [vmem:[%s8131_s2] ss:$0 sm:$0xff] }
 0x1a2   : > { %5900 = vst [vmem:[%s6735_s26 + $0x320] sm:$0xff] %v5664_v50   ;;  %v2588_v21 = vmax.f32 %v2186_v34, 0.0  ;;  %v2458_v10 = vmax.f32 %v1666_v58, 0.0  ;;  %v2586_v26 = vmax.f32 %v2178_v62, 0.0  ;;  %v2463_v25 = vmax.f32 %v1687_v40, 0.0  ;;  %v7559_v59 = vpop.f32.mrf.mxu0  ;;  %v7561_v17 = vpop.f32.mrf.mxu1 }
 0x1a3   : > { %v2591_v29 = vmax.f32 %v2199_v38, 0.0  ;;  %v2461_v11 = vmax.f32 %v1679_v30, 0.0  ;;  %v2589_v37 = vmax.f32 %v2191_v36, 0.0  ;;  %v2723_v39 = vmul.f32 %v7030_v28, %v2460_v55 }
 0x1a4   : > { %v2851_v8 = vmul.f32 %v7030_v28, %v2588_v21  ;;  %v2721_v41 = vmul.f32 %v7030_v28, %v2458_v10  ;;  %v2849_v60 = vmul.f32 %v7030_v28, %v2586_v26  ;;  %v2985_v42 = vadd.f32 %v7039_v35, %v2722_v44  ;;  %v7571_v3 = vpop.f32.mrf.mxu0  ;;  %v7573_v6 = vpop.f32.mrf.mxu1 }
 0x1a5   : > { %v3113_v51 = vadd.f32 %v7039_v35, %v2850_v31  ;;  %v2983_v57 = vadd.f32 %v7039_v35, %v2720_v45  ;;  %v3111_v13 = vadd.f32 %v7039_v35, %v2848_v48  ;;  %v2986_v2 = vadd.f32 %v7039_v35, %v2723_v39  ;;  %v7636_v39 = vld [vmem:[%s8133_s4] ss:$0 sm:$0xff] }
 0x1a6   : > { %v3114_v14 = vadd.f32 %v7039_v35, %v2851_v8  ;;  %v2984_v12 = vadd.f32 %v7039_v35, %v2721_v41  ;;  %v3112_v46 = vadd.f32 %v7039_v35, %v2849_v60  ;;  %v2726_v7 = vmul.f32 %v7030_v28, %v2463_v25  ;;  %v7583_v44 = vpop.f32.mrf.mxu0  ;;  %v7585_v31 = vpop.f32.mrf.mxu1 }
 0x1a7   : > { %v2854_v20 = vmul.f32 %v7030_v28, %v2591_v29  ;;  %v2724_v22 = vmul.f32 %v7030_v28, %v2461_v11  ;;  %v2852_v4 = vmul.f32 %v7030_v28, %v2589_v37  ;;  %v5359_v45 = vpack.c.bf16 %v2986_v2, %v2985_v42 }
 0x1a8   : > { %v5679_v48 = vpack.c.bf16 %v3114_v14, %v3113_v51  ;;  %v5354_v53 = vpack.c.bf16 %v2984_v12, %v2983_v57  ;;  %v5674_v35 = vpack.c.bf16 %v3112_v46, %v3111_v13  ;;  %v1690_v16 = vadd.f32 %v7590_v15, %v7451_v52  ;;  %v7600_v34 = vpop.f32.mrf.mxu0  ;;  %v7602_v58 = vpop.f32.mrf.mxu1 }
 0x1a9   : > { %v2202_v28 = vadd.f32 %v7590_v15, %v7453_v61  ;;  %v1682_v50 = vadd.f32 %v7590_v15, %v7463_v5  ;;  %v2194_v33 = vadd.f32 %v7590_v15, %v7465_v24  ;;  %5839 = vst [vmem:[%s6735_s26 + $0x138] sm:$0xff] %v5359_v45   ;;  %v1703_v52 = vadd.f32 %v7590_v15, %v7475_v18 }
 0x1aa   : > { %5903 = vst [vmem:[%s6735_s26 + $0x338] sm:$0xff] %v5679_v48   ;;  %5838 = vst [vmem:[%s6735_s26 + $0x130] sm:$0xff] %v5354_v53   ;;  %v2215_v61 = vadd.f32 %v7590_v15, %v7477_v27  ;;  %v1695_v5 = vadd.f32 %v7590_v15, %v7487_v43  ;;  %v2207_v24 = vadd.f32 %v7590_v15, %v7489_v47  ;;  %v2464_v62 = vmax.f32 %v1690_v16, 0.0  ;;  %v7616_v36 = vpop.f32.mrf.mxu0  ;;  %v7618_v55 = vpop.f32.mrf.mxu1  ;;  %v7623_v27 = vld [vmem:[%s8132_s3] ss:$0 sm:$0xff] }
 0x1ab   : > { %5902 = vst [vmem:[%s6735_s26 + $0x330] sm:$0xff] %v5674_v35   ;;  %v2592_v40 = vmax.f32 %v2202_v28, 0.0  ;;  %v2462_v38 = vmax.f32 %v1682_v50, 0.0  ;;  %v2590_v30 = vmax.f32 %v2194_v33, 0.0  ;;  %v2467_v21 = vmax.f32 %v1703_v52, 0.0 }
 0x1ac   : > { %v2595_v10 = vmax.f32 %v2215_v61, 0.0  ;;  %v2465_v18 = vmax.f32 %v1695_v5, 0.0  ;;  %v2593_v26 = vmax.f32 %v2207_v24, 0.0  ;;  %v2727_v43 = vmul.f32 %v7623_v27, %v2464_v62  ;;  %v7629_v11 = vpop.f32.mrf.mxu0  ;;  %v7631_v37 = vpop.f32.mrf.mxu1 }
 0x1ad   : > { %v2855_v47 = vmul.f32 %v7623_v27, %v2592_v40  ;;  %v2725_v25 = vmul.f32 %v7623_v27, %v2462_v38  ;;  %v2853_v29 = vmul.f32 %v7623_v27, %v2590_v30  ;;  %v2989_v8 = vadd.f32 %v7636_v39, %v2726_v7 }
 0x1ae   : > { %v3117_v41 = vadd.f32 %v7636_v39, %v2854_v20  ;;  %v2987_v60 = vadd.f32 %v7636_v39, %v2724_v22  ;;  %v3115_v42 = vadd.f32 %v7636_v39, %v2852_v4  ;;  %v2990_v51 = vadd.f32 %v7636_v39, %v2727_v43  ;;  %v7646_v14 = vpop.f32.mrf.mxu0  ;;  %v7648_v12 = vpop.f32.mrf.mxu1 }
 0x1af   : > { %v3118_v57 = vadd.f32 %v7636_v39, %v2855_v47  ;;  %v2988_v13 = vadd.f32 %v7636_v39, %v2725_v25  ;;  %v3116_v2 = vadd.f32 %v7636_v39, %v2853_v29  ;;  %v2730_v46 = vmul.f32 %v7623_v27, %v2467_v21 }
 0x1b0   : > { %v2858_v7 = vmul.f32 %v7623_v27, %v2595_v10  ;;  %v2728_v20 = vmul.f32 %v7623_v27, %v2465_v18  ;;  %v2856_v22 = vmul.f32 %v7623_v27, %v2593_v26  ;;  %v5369_v4 = vpack.c.bf16 %v2990_v51, %v2989_v8  ;;  %v7654_v35 = vpop.f32.mrf.mxu0  ;;  %v7656_v16 = vpop.f32.mrf.mxu1 }
 0x1b1   : > { %v5689_v45 = vpack.c.bf16 %v3118_v57, %v3117_v41  ;;  %v5364_v48 = vpack.c.bf16 %v2988_v13, %v2987_v60  ;;  %v5684_v53 = vpack.c.bf16 %v3116_v2, %v3115_v42  ;;  %v1706_v28 = vadd.f32 %v7590_v15, %v7503_v9 }
 0x1b2   : > { %v2218_v50 = vadd.f32 %v7590_v15, %v7505_v56  ;;  %v1698_v33 = vadd.f32 %v7590_v15, %v7511_v63  ;;  %v2210_v52 = vadd.f32 %v7590_v15, %v7513_v49  ;;  %5841 = vst [vmem:[%s6735_s26 + $0x148] sm:$0xff] %v5369_v4   ;;  %v1719_v61 = vadd.f32 %v7590_v15, %v7523_v19  ;;  %v7678_v63 = vpop.f32.mrf.mxu0  ;;  %v7680_v24 = vpop.f32.mrf.mxu1 }
 0x1b3   : > { %5905 = vst [vmem:[%s6735_s26 + $0x348] sm:$0xff] %v5689_v45   ;;  %5840 = vst [vmem:[%s6735_s26 + $0x140] sm:$0xff] %v5364_v48   ;;  %v2231_v5 = vadd.f32 %v7590_v15, %v7525_v32  ;;  %v1711_v9 = vadd.f32 %v7590_v15, %v7531_v0  ;;  %v2223_v56 = vadd.f32 %v7590_v15, %v7533_v1  ;;  %v2468_v49 = vmax.f32 %v1706_v28, 0.0 }
 0x1b4   : > { %5904 = vst [vmem:[%s6735_s26 + $0x340] sm:$0xff] %v5684_v53   ;;  %v2596_v62 = vmax.f32 %v2218_v50, 0.0  ;;  %v2466_v40 = vmax.f32 %v1698_v33, 0.0  ;;  %v2594_v38 = vmax.f32 %v2210_v52, 0.0  ;;  %v2471_v30 = vmax.f32 %v1719_v61, 0.0  ;;  %v7682_v18 = vpop.f32.mrf.mxu0  ;;  %v7684_v32 = vpop.f32.mrf.mxu1 }
 0x1b5   : > { %v2599_v21 = vmax.f32 %v2231_v5, 0.0  ;;  %v2469_v19 = vmax.f32 %v1711_v9, 0.0  ;;  %v2597_v10 = vmax.f32 %v2223_v56, 0.0  ;;  %v2731_v0 = vmul.f32 %v7623_v27, %v2468_v49 }
 0x1b6   : > { %v2859_v1 = vmul.f32 %v7623_v27, %v2596_v62  ;;  %v2729_v26 = vmul.f32 %v7623_v27, %v2466_v40  ;;  %v2857_v43 = vmul.f32 %v7623_v27, %v2594_v38  ;;  %v2993_v47 = vadd.f32 %v7636_v39, %v2730_v46  ;;  %v7694_v41 = vpop.f32.mrf.mxu0  ;;  %v7696_v60 = vpop.f32.mrf.mxu1 }
 0x1b7   : > { %v3121_v25 = vadd.f32 %v7636_v39, %v2858_v7  ;;  %v2991_v29 = vadd.f32 %v7636_v39, %v2728_v20  ;;  %v3119_v8 = vadd.f32 %v7636_v39, %v2856_v22  ;;  %v2994_v42 = vadd.f32 %v7636_v39, %v2731_v0 }
 0x1b8   : > { %v3122_v51 = vadd.f32 %v7636_v39, %v2859_v1  ;;  %v2992_v57 = vadd.f32 %v7636_v39, %v2729_v26  ;;  %v3120_v13 = vadd.f32 %v7636_v39, %v2857_v43  ;;  %v2734_v2 = vmul.f32 %v7623_v27, %v2471_v30  ;;  %v7706_v22 = vpop.f32.mrf.mxu0  ;;  %v7708_v4 = vpop.f32.mrf.mxu1 }
 0x1b9   : > { %v2862_v46 = vmul.f32 %v7623_v27, %v2599_v21  ;;  %v2732_v7 = vmul.f32 %v7623_v27, %v2469_v19  ;;  %v2860_v20 = vmul.f32 %v7623_v27, %v2597_v10  ;;  %v5379_v45 = vpack.c.bf16 %v2994_v42, %v2993_v47 }
 0x1ba   : > { %v5699_v48 = vpack.c.bf16 %v3122_v51, %v3121_v25  ;;  %v5374_v53 = vpack.c.bf16 %v2992_v57, %v2991_v29  ;;  %v5694_v28 = vpack.c.bf16 %v3120_v13, %v3119_v8  ;;  %v1722_v50 = vadd.f32 %v7590_v15, %v7555_v23  ;;  %v7718_v5 = vpop.f32.mrf.mxu0  ;;  %v7720_v9 = vpop.f32.mrf.mxu1 }
 0x1bb   : > { %v2234_v33 = vadd.f32 %v7590_v15, %v7557_v54  ;;  %v1714_v52 = vadd.f32 %v7590_v15, %v7559_v59  ;;  %v2226_v61 = vadd.f32 %v7590_v15, %v7561_v17  ;;  %5843 = vst [vmem:[%s6735_s26 + $0x158] sm:$0xff] %v5379_v45   ;;  %v1735_v23 = vadd.f32 %v7590_v15, %v7571_v3 }
 0x1bc   : > { %5907 = vst [vmem:[%s6735_s26 + $0x358] sm:$0xff] %v5699_v48   ;;  %5842 = vst [vmem:[%s6735_s26 + $0x150] sm:$0xff] %v5374_v53   ;;  %v2247_v54 = vadd.f32 %v7590_v15, %v7573_v6  ;;  %v1727_v59 = vadd.f32 %v7590_v15, %v7583_v44  ;;  %v2239_v17 = vadd.f32 %v7590_v15, %v7585_v31  ;;  %v2472_v56 = vmax.f32 %v1722_v50, 0.0  ;;  %v7734_v38 = vpop.f32.mrf.mxu0 }
 0x1bd   : > { %5906 = vst [vmem:[%s6735_s26 + $0x350] sm:$0xff] %v5694_v28   ;;  %v2600_v49 = vmax.f32 %v2234_v33, 0.0  ;;  %v2470_v62 = vmax.f32 %v1714_v52, 0.0  ;;  %v2598_v40 = vmax.f32 %v2226_v61, 0.0  ;;  %v2475_v30 = vmax.f32 %v1735_v23, 0.0  ;;  %v7736_v3 = vpop.f32.mrf.mxu1 }
 0x1be   : > { %v2603_v21 = vmax.f32 %v2247_v54, 0.0  ;;  %v2473_v19 = vmax.f32 %v1727_v59, 0.0  ;;  %v2601_v10 = vmax.f32 %v2239_v17, 0.0  ;;  %v2735_v6 = vmul.f32 %v7623_v27, %v2472_v56  ;;  %v7742_v1 = vpop.f32.mrf.mxu0 }
 0x1bf   : > { %v2863_v0 = vmul.f32 %v7623_v27, %v2600_v49  ;;  %v2733_v44 = vmul.f32 %v7623_v27, %v2470_v62  ;;  %v2861_v31 = vmul.f32 %v7623_v27, %v2598_v40  ;;  %v2997_v26 = vadd.f32 %v7636_v39, %v2734_v2  ;;  %v7748_v29 = vpop.f32.mrf.mxu1 }
 0x1c0   : > { %v3125_v43 = vadd.f32 %v7636_v39, %v2862_v46  ;;  %v2995_v47 = vadd.f32 %v7636_v39, %v2732_v7  ;;  %v3123_v25 = vadd.f32 %v7636_v39, %v2860_v20  ;;  %v2998_v8 = vadd.f32 %v7636_v39, %v2735_v6  ;;  %v7754_v13 = vpop.f32.mrf.mxu0 }
 0x1c1   : > { %v3126_v42 = vadd.f32 %v7636_v39, %v2863_v0  ;;  %v2996_v51 = vadd.f32 %v7636_v39, %v2733_v44  ;;  %v3124_v57 = vadd.f32 %v7636_v39, %v2861_v31  ;;  %v2738_v2 = vmul.f32 %v7623_v27, %v2475_v30  ;;  %v7760_v45 = vpop.f32.mrf.mxu1 }
 0x1c2   : > { %v2866_v46 = vmul.f32 %v7623_v27, %v2603_v21  ;;  %v2736_v7 = vmul.f32 %v7623_v27, %v2473_v19  ;;  %v2864_v20 = vmul.f32 %v7623_v27, %v2601_v10  ;;  %v5389_v48 = vpack.c.bf16 %v2998_v8, %v2997_v26  ;;  %v7762_v33 = vpop.f32.mrf.mxu0 }
 0x1c3   : > { %v5709_v53 = vpack.c.bf16 %v3126_v42, %v3125_v43  ;;  %v5384_v28 = vpack.c.bf16 %v2996_v51, %v2995_v47  ;;  %v5704_v50 = vpack.c.bf16 %v3124_v57, %v3123_v25  ;;  %v1738_v52 = vadd.f32 %v7590_v15, %v7600_v34  ;;  %v7772_v59 = vpop.f32.mrf.mxu1 }
 0x1c4   : > { %v2250_v61 = vadd.f32 %v7590_v15, %v7602_v58  ;;  %v1730_v23 = vadd.f32 %v7590_v15, %v7616_v36  ;;  %v2242_v54 = vadd.f32 %v7590_v15, %v7618_v55  ;;  %5845 = vst [vmem:[%s6735_s26 + $0x168] sm:$0xff] %v5389_v48   ;;  %v1751_v17 = vadd.f32 %v7590_v15, %v7629_v11  ;;  %v7786_v56 = vpop.f32.mrf.mxu0 }
 0x1c5   : > { %5909 = vst [vmem:[%s6735_s26 + $0x368] sm:$0xff] %v5709_v53   ;;  %5844 = vst [vmem:[%s6735_s26 + $0x160] sm:$0xff] %v5384_v28   ;;  %v2263_v34 = vadd.f32 %v7590_v15, %v7631_v37  ;;  %v1743_v58 = vadd.f32 %v7590_v15, %v7646_v14  ;;  %v2255_v36 = vadd.f32 %v7590_v15, %v7648_v12  ;;  %v2476_v55 = vmax.f32 %v1738_v52, 0.0  ;;  %v7788_v30 = vpop.f32.mrf.mxu1 }
 0x1c6   : > { %5908 = vst [vmem:[%s6735_s26 + $0x360] sm:$0xff] %v5704_v50   ;;  %v2604_v49 = vmax.f32 %v2250_v61, 0.0  ;;  %v2474_v62 = vmax.f32 %v1730_v23, 0.0  ;;  %v2602_v40 = vmax.f32 %v2242_v54, 0.0  ;;  %v2479_v21 = vmax.f32 %v1751_v17, 0.0  ;;  %v7790_v6 = vpop.f32.mrf.mxu0 }
 0x1c7   : > { %v2607_v19 = vmax.f32 %v2263_v34, 0.0  ;;  %v2477_v11 = vmax.f32 %v1743_v58, 0.0  ;;  %v2605_v10 = vmax.f32 %v2255_v36, 0.0  ;;  %v2739_v37 = vmul.f32 %v7623_v27, %v2476_v55  ;;  %v7796_v44 = vpop.f32.mrf.mxu1 }
 0x1c8   : > { %v2867_v14 = vmul.f32 %v7623_v27, %v2604_v49  ;;  %v2737_v12 = vmul.f32 %v7623_v27, %v2474_v62  ;;  %v2865_v0 = vmul.f32 %v7623_v27, %v2602_v40  ;;  %v3001_v31 = vadd.f32 %v7636_v39, %v2738_v2  ;;  %v7802_v25 = vpop.f32.mrf.mxu0 }
 0x1c9   : > { %v3129_v26 = vadd.f32 %v7636_v39, %v2866_v46  ;;  %v2999_v43 = vadd.f32 %v7636_v39, %v2736_v7  ;;  %v3127_v47 = vadd.f32 %v7636_v39, %v2864_v20  ;;  %v3002_v8 = vadd.f32 %v7636_v39, %v2739_v37  ;;  %v7808_v48 = vpop.f32.mrf.mxu1 }
 0x1ca   : > { %v3130_v42 = vadd.f32 %v7636_v39, %v2867_v14  ;;  %v3000_v51 = vadd.f32 %v7636_v39, %v2737_v12  ;;  %v3128_v57 = vadd.f32 %v7636_v39, %v2865_v0  ;;  %v2742_v2 = vmul.f32 %v7623_v27, %v2479_v21  ;;  %v7814_v53 = vpop.f32.mrf.mxu0 }
 0x1cb   : > { %v2870_v46 = vmul.f32 %v7623_v27, %v2607_v19  ;;  %v2740_v7 = vmul.f32 %v7623_v27, %v2477_v11  ;;  %v2868_v20 = vmul.f32 %v7623_v27, %v2605_v10  ;;  %v5399_v28 = vpack.c.bf16 %v3002_v8, %v3001_v31  ;;  %v7816_v23 = vpop.f32.mrf.mxu1 }
 0x1cc   : > { %v5719_v50 = vpack.c.bf16 %v3130_v42, %v3129_v26  ;;  %v5394_v52 = vpack.c.bf16 %v3000_v51, %v2999_v43  ;;  %v5714_v61 = vpack.c.bf16 %v3128_v57, %v3127_v47  ;;  %v1754_v54 = vadd.f32 %v7590_v15, %v7654_v35  ;;  %v7826_v36 = vpop.f32.mrf.mxu0 }
 0x1cd   : > { %v2266_v17 = vadd.f32 %v7590_v15, %v7656_v16  ;;  %v1746_v34 = vadd.f32 %v7590_v15, %v7678_v63  ;;  %v2258_v58 = vadd.f32 %v7590_v15, %v7680_v24  ;;  %5847 = vst [vmem:[%s6735_s26 + $0x178] sm:$0xff] %v5399_v28   ;;  %v1767_v55 = vadd.f32 %v7590_v15, %v7682_v18  ;;  %v7840_v49 = vpop.f32.mrf.mxu1 }
 0x1ce   : > { %5911 = vst [vmem:[%s6735_s26 + $0x378] sm:$0xff] %v5719_v50   ;;  %5846 = vst [vmem:[%s6735_s26 + $0x170] sm:$0xff] %v5394_v52   ;;  %v2279_v35 = vadd.f32 %v7590_v15, %v7684_v32  ;;  %v1759_v16 = vadd.f32 %v7590_v15, %v7694_v41  ;;  %v2271_v63 = vadd.f32 %v7590_v15, %v7696_v60  ;;  %v2480_v24 = vmax.f32 %v1754_v54, 0.0  ;;  %v7846_v12 = vpop.f32.mrf.mxu0 }
 0x1cf   : > { %5910 = vst [vmem:[%s6735_s26 + $0x370] sm:$0xff] %v5714_v61   ;;  %v2608_v62 = vmax.f32 %v2266_v17, 0.0  ;;  %v2478_v40 = vmax.f32 %v1746_v34, 0.0  ;;  %v2606_v21 = vmax.f32 %v2258_v58, 0.0  ;;  %v2483_v19 = vmax.f32 %v1767_v55, 0.0  ;;  %v7848_v60 = vpop.f32.mrf.mxu1 }
 0x1d0   : > { %v2611_v11 = vmax.f32 %v2279_v35, 0.0  ;;  %v2481_v10 = vmax.f32 %v1759_v16, 0.0  ;;  %v2609_v37 = vmax.f32 %v2271_v63, 0.0  ;;  %v2743_v18 = vmul.f32 %v7623_v27, %v2480_v24  ;;  %v7862_v61 = vpop.f32.mrf.mxu0 }
 0x1d1   : > { %v2871_v32 = vmul.f32 %v7623_v27, %v2608_v62  ;;  %v2741_v14 = vmul.f32 %v7623_v27, %v2478_v40  ;;  %v2869_v41 = vmul.f32 %v7623_v27, %v2606_v21  ;;  %v3005_v0 = vadd.f32 %v7636_v39, %v2742_v2  ;;  %v7864_v54 = vpop.f32.mrf.mxu1 }
 0x1d2   : > { %v3133_v31 = vadd.f32 %v7636_v39, %v2870_v46  ;;  %v3003_v26 = vadd.f32 %v7636_v39, %v2740_v7  ;;  %v3131_v43 = vadd.f32 %v7636_v39, %v2868_v20  ;;  %v3006_v47 = vadd.f32 %v7636_v39, %v2743_v18 }
 0x1d3   : > { %v3134_v8 = vadd.f32 %v7636_v39, %v2871_v32  ;;  %v3004_v42 = vadd.f32 %v7636_v39, %v2741_v14  ;;  %v3132_v51 = vadd.f32 %v7636_v39, %v2869_v41  ;;  %v2746_v57 = vmul.f32 %v7623_v27, %v2483_v19 }
 0x1d4   : > { %v2874_v2 = vmul.f32 %v7623_v27, %v2611_v11  ;;  %v2744_v46 = vmul.f32 %v7623_v27, %v2481_v10  ;;  %v2872_v7 = vmul.f32 %v7623_v27, %v2609_v37  ;;  %v5409_v20 = vpack.c.bf16 %v3006_v47, %v3005_v0  ;;  %v7886_v11 = vpop.f32.mrf.mxu0 }
 0x1d5   : > { %v5729_v28 = vpack.c.bf16 %v3134_v8, %v3133_v31  ;;  %v5404_v50 = vpack.c.bf16 %v3004_v42, %v3003_v26  ;;  %v5724_v52 = vpack.c.bf16 %v3132_v51, %v3131_v43  ;;  %v1770_v17 = vadd.f32 %v7590_v15, %v7706_v22 }
 0x1d6   : > { %v2282_v34 = vadd.f32 %v7590_v15, %v7708_v4  ;;  %v1762_v58 = vadd.f32 %v7590_v15, %v7718_v5  ;;  %v2274_v55 = vadd.f32 %v7590_v15, %v7720_v9  ;;  %5849 = vst [vmem:[%s6735_s26 + $0x188] sm:$0xff] %v5409_v20   ;;  %v1783_v35 = vadd.f32 %v7590_v15, %v7734_v38  ;;  %v7888_v38 = vpop.f32.mrf.mxu1  ;;  %v7906_v51 = vpop.f32.mrf.mxu0 }
 0x1d7   : > { %5913 = vst [vmem:[%s6735_s26 + $0x388] sm:$0xff] %v5729_v28   ;;  %5848 = vst [vmem:[%s6735_s26 + $0x180] sm:$0xff] %v5404_v50   ;;  %v2295_v16 = vadd.f32 %v7590_v15, %v7736_v3  ;;  %v1775_v22 = vadd.f32 %v7590_v15, %v7742_v1  ;;  %v2287_v4 = vadd.f32 %v7590_v15, %v7748_v29  ;;  %v2484_v5 = vmax.f32 %v1770_v17, 0.0 }
 0x1d8   : > { %5912 = vst [vmem:[%s6735_s26 + $0x380] sm:$0xff] %v5724_v52   ;;  %v2612_v63 = vmax.f32 %v2282_v34, 0.0  ;;  %v2482_v24 = vmax.f32 %v1762_v58, 0.0  ;;  %v2610_v9 = vmax.f32 %v2274_v55, 0.0  ;;  %v2487_v62 = vmax.f32 %v1783_v35, 0.0 }
 0x1d9   : > { %v2615_v40 = vmax.f32 %v2295_v16, 0.0  ;;  %v2485_v21 = vmax.f32 %v1775_v22, 0.0  ;;  %v2613_v19 = vmax.f32 %v2287_v4, 0.0  ;;  %v2747_v3 = vmul.f32 %v7623_v27, %v2484_v5  ;;  %v7930_v16 = vpop.f32.mrf.mxu0 }
 0x1da   : > { %v2875_v10 = vmul.f32 %v7623_v27, %v2612_v63  ;;  %v2745_v1 = vmul.f32 %v7623_v27, %v2482_v24  ;;  %v2873_v29 = vmul.f32 %v7623_v27, %v2610_v9  ;;  %v3009_v37 = vadd.f32 %v7636_v39, %v2746_v57  ;;  %v7908_v57 = vpop.f32.mrf.mxu1 }
 0x1db   : > { %v3137_v18 = vadd.f32 %v7636_v39, %v2874_v2  ;;  %v3007_v32 = vadd.f32 %v7636_v39, %v2744_v46  ;;  %v3135_v14 = vadd.f32 %v7636_v39, %v2872_v7  ;;  %v3010_v41 = vadd.f32 %v7636_v39, %v2747_v3 }
 0x1dc   : > { %v3138_v0 = vadd.f32 %v7636_v39, %v2875_v10  ;;  %v3008_v31 = vadd.f32 %v7636_v39, %v2745_v1  ;;  %v3136_v26 = vadd.f32 %v7636_v39, %v2873_v29  ;;  %v2750_v43 = vmul.f32 %v7623_v27, %v2487_v62  ;;  %v7932_v22 = vpop.f32.mrf.mxu1  ;;  %v7946_v29 = vpop.f32.mrf.mxu0 }
 0x1dd   : > { %v2878_v47 = vmul.f32 %v7623_v27, %v2615_v40  ;;  %v2748_v8 = vmul.f32 %v7623_v27, %v2485_v21  ;;  %v2876_v42 = vmul.f32 %v7623_v27, %v2613_v19  ;;  %v5419_v2 = vpack.c.bf16 %v3010_v41, %v3009_v37 }
 0x1de   : > { %v5739_v46 = vpack.c.bf16 %v3138_v0, %v3137_v18  ;;  %v5414_v7 = vpack.c.bf16 %v3008_v31, %v3007_v32  ;;  %v5734_v20 = vpack.c.bf16 %v3136_v26, %v3135_v14  ;;  %v1786_v28 = vadd.f32 %v7590_v15, %v7754_v13  ;;  %v7948_v37 = vpop.f32.mrf.mxu1 }
 0x1df   : > { %v2298_v50 = vadd.f32 %v7590_v15, %v7760_v45  ;;  %v1778_v52 = vadd.f32 %v7590_v15, %v7762_v33  ;;  %v2290_v17 = vadd.f32 %v7590_v15, %v7772_v59  ;;  %5851 = vst [vmem:[%s6735_s26 + $0x198] sm:$0xff] %v5419_v2   ;;  %v1799_v34 = vadd.f32 %v7590_v15, %v7786_v56 }
 0x1e0   : > { %5915 = vst [vmem:[%s6735_s26 + $0x398] sm:$0xff] %v5739_v46   ;;  %5850 = vst [vmem:[%s6735_s26 + $0x190] sm:$0xff] %v5414_v7   ;;  %v2311_v58 = vadd.f32 %v7590_v15, %v7788_v30  ;;  %v1791_v13 = vadd.f32 %v7590_v15, %v7790_v6  ;;  %v2303_v45 = vadd.f32 %v7590_v15, %v7796_v44  ;;  %v2488_v33 = vmax.f32 %v1786_v28, 0.0 }
 0x1e1   : > { %5914 = vst [vmem:[%s6735_s26 + $0x390] sm:$0xff] %v5734_v20   ;;  %v2616_v55 = vmax.f32 %v2298_v50, 0.0  ;;  %v2486_v35 = vmax.f32 %v1778_v52, 0.0  ;;  %v2614_v59 = vmax.f32 %v2290_v17, 0.0  ;;  %v2491_v4 = vmax.f32 %v1799_v34, 0.0  ;;  %v7976_v20 = vpop.f32.mrf.mxu1 }
 0x1e2   : > { %v2619_v5 = vmax.f32 %v2311_v58, 0.0  ;;  %v2489_v56 = vmax.f32 %v1791_v13, 0.0  ;;  %v2617_v63 = vmax.f32 %v2303_v45, 0.0  ;;  %v2751_v30 = vmul.f32 %v7623_v27, %v2488_v33 }
 0x1e3   : > { %v2879_v24 = vmul.f32 %v7623_v27, %v2616_v55  ;;  %v2749_v6 = vmul.f32 %v7623_v27, %v2486_v35  ;;  %v2877_v44 = vmul.f32 %v7623_v27, %v2614_v59  ;;  %v3013_v9 = vadd.f32 %v7636_v39, %v2750_v43 }
 0x1e4   : > { %v3141_v62 = vadd.f32 %v7636_v39, %v2878_v47  ;;  %v3011_v40 = vadd.f32 %v7636_v39, %v2748_v8  ;;  %v3139_v21 = vadd.f32 %v7636_v39, %v2876_v42  ;;  %v3014_v19 = vadd.f32 %v7636_v39, %v2751_v30 }
 0x1e5   : > { %v3142_v3 = vadd.f32 %v7636_v39, %v2879_v24  ;;  %v3012_v10 = vadd.f32 %v7636_v39, %v2749_v6  ;;  %v3140_v1 = vadd.f32 %v7636_v39, %v2877_v44  ;;  %v2754_v18 = vmul.f32 %v7623_v27, %v2491_v4  ;;  %v7988_v4 = vpop.f32.mrf.mxu1 }
 0x1e6   : > { %v2882_v32 = vmul.f32 %v7623_v27, %v2619_v5  ;;  %v2752_v14 = vmul.f32 %v7623_v27, %v2489_v56  ;;  %v2880_v41 = vmul.f32 %v7623_v27, %v2617_v63  ;;  %v5429_v0 = vpack.c.bf16 %v3014_v19, %v3013_v9 }
 0x1e7   : > { %v5749_v31 = vpack.c.bf16 %v3142_v3, %v3141_v62  ;;  %v5424_v26 = vpack.c.bf16 %v3012_v10, %v3011_v40  ;;  %v5744_v43 = vpack.c.bf16 %v3140_v1, %v3139_v21  ;;  %v1802_v47 = vadd.f32 %v7590_v15, %v7802_v25 }
 0x1e8   : > { %v2314_v8 = vadd.f32 %v7590_v15, %v7808_v48  ;;  %v1794_v42 = vadd.f32 %v7590_v15, %v7814_v53  ;;  %v2306_v2 = vadd.f32 %v7590_v15, %v7816_v23  ;;  %5853 = vst [vmem:[%s6735_s26 + $0x1a8] sm:$0xff] %v5429_v0   ;;  %v1815_v46 = vadd.f32 %v7590_v15, %v7826_v36  ;;  %v7974_v53 = vpop.f32.mrf.mxu0 }
 0x1e9   : > { %5917 = vst [vmem:[%s6735_s26 + $0x3a8] sm:$0xff] %v5749_v31   ;;  %5852 = vst [vmem:[%s6735_s26 + $0x1a0] sm:$0xff] %v5424_v26   ;;  %v2327_v7 = vadd.f32 %v7590_v15, %v7840_v49  ;;  %v1807_v25 = vadd.f32 %v7590_v15, %v7846_v12  ;;  %v2319_v48 = vadd.f32 %v7590_v15, %v7848_v60  ;;  %v2492_v23 = vmax.f32 %v1802_v47, 0.0 }
 0x1ea   : > { %5916 = vst [vmem:[%s6735_s26 + $0x3a0] sm:$0xff] %v5744_v43   ;;  %v2620_v28 = vmax.f32 %v2314_v8, 0.0  ;;  %v2490_v50 = vmax.f32 %v1794_v42, 0.0  ;;  %v2618_v52 = vmax.f32 %v2306_v2, 0.0  ;;  %v2495_v17 = vmax.f32 %v1815_v46, 0.0  ;;  %v7986_v59 = vpop.f32.mrf.mxu0 }
 0x1eb   : > { %v2623_v34 = vmax.f32 %v2327_v7, 0.0  ;;  %v2493_v36 = vmax.f32 %v1807_v25, 0.0  ;;  %v2621_v58 = vmax.f32 %v2319_v48, 0.0  ;;  %v2755_v49 = vmul.f32 %v7623_v27, %v2492_v23 }
 0x1ec   : > { %v2883_v13 = vmul.f32 %v7623_v27, %v2620_v28  ;;  %v2753_v12 = vmul.f32 %v7623_v27, %v2490_v50  ;;  %v2881_v60 = vmul.f32 %v7623_v27, %v2618_v52  ;;  %v3017_v45 = vadd.f32 %v7636_v39, %v2754_v18 }
 0x1ed   : > { %v3145_v33 = vadd.f32 %v7636_v39, %v2882_v32  ;;  %v3015_v55 = vadd.f32 %v7636_v39, %v2752_v14  ;;  %v3143_v35 = vadd.f32 %v7636_v39, %v2880_v41  ;;  %v3018_v5 = vadd.f32 %v7636_v39, %v2755_v49  ;;  %v1838_v32 = vpop.f32.mrf.mxu0  ;;  %v2350_v14 = vpop.f32.mrf.mxu1 }
 0x1ee   : > { %v3146_v56 = vadd.f32 %v7636_v39, %v2883_v13  ;;  %v3016_v63 = vadd.f32 %v7636_v39, %v2753_v12  ;;  %v3144_v30 = vadd.f32 %v7636_v39, %v2881_v60  ;;  %v2758_v24 = vmul.f32 %v7623_v27, %v2495_v17 }
 0x1ef   : > { %v2886_v6 = vmul.f32 %v7623_v27, %v2623_v34  ;;  %v2756_v44 = vmul.f32 %v7623_v27, %v2493_v36  ;;  %v2884_v9 = vmul.f32 %v7623_v27, %v2621_v58  ;;  %v5439_v62 = vpack.c.bf16 %v3018_v5, %v3017_v45  ;;  %v8024_v7 = vpop.f32.mrf.mxu1 }
 0x1f0   : > { %v5759_v40 = vpack.c.bf16 %v3146_v56, %v3145_v33  ;;  %v5434_v21 = vpack.c.bf16 %v3016_v63, %v3015_v55  ;;  %v5754_v19 = vpack.c.bf16 %v3144_v30, %v3143_v35  ;;  %v1818_v3 = vadd.f32 %v7590_v15, %v7862_v61 }
 0x1f1   : > { %v2330_v10 = vadd.f32 %v7590_v15, %v7864_v54  ;;  %v1810_v1 = vadd.f32 %v7590_v15, %v7886_v11  ;;  %v2322_v18 = vadd.f32 %v7590_v15, %v7888_v38  ;;  %5855 = vst [vmem:[%s6735_s26 + $0x1b8] sm:$0xff] %v5439_v62   ;;  %v1831_v41 = vadd.f32 %v7590_v15, %v7906_v51  ;;  %v2353_v55 = vpop.f32.mrf.mxu1 }
 0x1f2   : > { %5919 = vst [vmem:[%s6735_s26 + $0x3b8] sm:$0xff] %v5759_v40   ;;  %5854 = vst [vmem:[%s6735_s26 + $0x1b0] sm:$0xff] %v5434_v21   ;;  %v2343_v61 = vadd.f32 %v7590_v15, %v7908_v57  ;;  %v1823_v54 = vadd.f32 %v7590_v15, %v7930_v16  ;;  %v2335_v11 = vadd.f32 %v7590_v15, %v7932_v22  ;;  %v2496_v0 = vmax.f32 %v1818_v3, 0.0  ;;  %v8022_v16 = vpop.f32.mrf.mxu0 }
 0x1f3   : > { %5918 = vst [vmem:[%s6735_s26 + $0x3b0] sm:$0xff] %v5754_v19   ;;  %v2624_v38 = vmax.f32 %v2330_v10, 0.0  ;;  %v2494_v31 = vmax.f32 %v1810_v1, 0.0  ;;  %v2622_v26 = vmax.f32 %v2322_v18, 0.0  ;;  %v2499_v43 = vmax.f32 %v1831_v41, 0.0  ;;  %v6334_v3 = vpop.f32.mrf.mxu1 }
 0x1f4   : > { %v2627_v47 = vmax.f32 %v2343_v61, 0.0  ;;  %v2497_v8 = vmax.f32 %v1823_v54, 0.0  ;;  %v2625_v42 = vmax.f32 %v2335_v11, 0.0  ;;  %v2759_v2 = vmul.f32 %v7623_v27, %v2496_v0  ;;  %v1841_v33 = vpop.f32.mrf.mxu0 }
 0x1f5   : > { %v2887_v51 = vmul.f32 %v7623_v27, %v2624_v38  ;;  %v2757_v57 = vmul.f32 %v7623_v27, %v2494_v31  ;;  %v2885_v46 = vmul.f32 %v7623_v27, %v2622_v26  ;;  %v3021_v22 = vadd.f32 %v7636_v39, %v2758_v24 }
 0x1f6   : > { %v3149_v25 = vadd.f32 %v7636_v39, %v2886_v6  ;;  %v3019_v48 = vadd.f32 %v7636_v39, %v2756_v44  ;;  %v3147_v23 = vadd.f32 %v7636_v39, %v2884_v9  ;;  %v3022_v28 = vadd.f32 %v7636_v39, %v2759_v2  ;;  %v6206_v19 = vpop.f32.mrf.mxu0 }
 0x1f7   : > { %v3150_v50 = vadd.f32 %v7636_v39, %v2887_v51  ;;  %v3020_v52 = vadd.f32 %v7636_v39, %v2757_v57  ;;  %v3148_v17 = vadd.f32 %v7636_v39, %v2885_v46  ;;  %v2762_v34 = vmul.f32 %v7623_v27, %v2499_v43 }
 0x1f8   : > { %v2890_v36 = vmul.f32 %v7623_v27, %v2627_v47  ;;  %v2760_v58 = vmul.f32 %v7623_v27, %v2497_v8  ;;  %v2888_v49 = vmul.f32 %v7623_v27, %v2625_v42  ;;  %v5449_v13 = vpack.c.bf16 %v3022_v28, %v3021_v22  ;;  %v1854_v47 = vpop.f32.mrf.mxu0  ;;  %v2366_v8 = vpop.f32.mrf.mxu1 }
 0x1f9   : > { %v5769_v12 = vpack.c.bf16 %v3150_v50, %v3149_v25  ;;  %v5444_v60 = vpack.c.bf16 %v3020_v52, %v3019_v48  ;;  %v5764_v45 = vpack.c.bf16 %v3148_v17, %v3147_v23  ;;  %v1834_v35 = vadd.f32 %v7590_v15, %v7946_v29 }
 0x1fa   : > { %v2346_v5 = vadd.f32 %v7590_v15, %v7948_v37  ;;  %v1826_v56 = vadd.f32 %v7590_v15, %v7974_v53  ;;  %v2338_v63 = vadd.f32 %v7590_v15, %v7976_v20  ;;  %5857 = vst [vmem:[%s6735_s26 + $0x1c8] sm:$0xff] %v5449_v13   ;;  %v1847_v30 = vadd.f32 %v7590_v15, %v7986_v59 }
 0x1fb   : > { %5921 = vst [vmem:[%s6735_s26 + $0x3c8] sm:$0xff] %v5769_v12   ;;  %5856 = vst [vmem:[%s6735_s26 + $0x1c0] sm:$0xff] %v5444_v60   ;;  %v2359_v24 = vadd.f32 %v7590_v15, %v7988_v4  ;;  %v1839_v29 = vadd.f32 %v7590_v15, %v1838_v32  ;;  %v2351_v37 = vadd.f32 %v7590_v15, %v2350_v14  ;;  %v2500_v6 = vmax.f32 %v1834_v35, 0.0 }
 0x1fc   : > { %5920 = vst [vmem:[%s6735_s26 + $0x3c0] sm:$0xff] %v5764_v45   ;;  %v2628_v44 = vmax.f32 %v2346_v5, 0.0  ;;  %v2498_v53 = vmax.f32 %v1826_v56, 0.0  ;;  %v2626_v9 = vmax.f32 %v2338_v63, 0.0  ;;  %v2503_v62 = vmax.f32 %v1847_v30, 0.0 }
 0x1fd   : > { %v2631_v20 = vmax.f32 %v2359_v24, 0.0  ;;  %v2501_v40 = vmax.f32 %v1839_v29, 0.0  ;;  %v2629_v21 = vmax.f32 %v2351_v37, 0.0  ;;  %v2763_v10 = vmul.f32 %v7623_v27, %v2500_v6 }
 0x1fe   : > { %v2891_v59 = vmul.f32 %v7623_v27, %v2628_v44  ;;  %v2761_v4 = vmul.f32 %v7623_v27, %v2498_v53  ;;  %v2889_v1 = vmul.f32 %v7623_v27, %v2626_v9  ;;  %v3025_v18 = vadd.f32 %v7636_v39, %v2762_v34 }
 0x1ff   : > { %v3153_v32 = vadd.f32 %v7636_v39, %v2890_v36  ;;  %v3023_v14 = vadd.f32 %v7636_v39, %v2760_v58  ;;  %v3151_v41 = vadd.f32 %v7636_v39, %v2888_v49  ;;  %v3026_v61 = vadd.f32 %v7636_v39, %v2763_v10  ;;  %v6207_v36 = vpop.f32.mrf.mxu0  ;;  %v6335_v58 = vpop.f32.mrf.mxu1 }
 0x200   : > { %v3154_v54 = vadd.f32 %v7636_v39, %v2891_v59  ;;  %v3024_v11 = vadd.f32 %v7636_v39, %v2761_v4  ;;  %v3152_v0 = vadd.f32 %v7636_v39, %v2889_v1  ;;  %v2766_v38 = vmul.f32 %v7623_v27, %v2503_v62 }
 0x201   : > { %v2894_v31 = vmul.f32 %v7623_v27, %v2631_v20  ;;  %v2764_v26 = vmul.f32 %v7623_v27, %v2501_v40  ;;  %v2892_v43 = vmul.f32 %v7623_v27, %v2629_v21  ;;  %v5459_v42 = vpack.c.bf16 %v3026_v61, %v3025_v18  ;;  %v1857_v44 = vpop.f32.mrf.mxu0  ;;  %v2369_v53 = vpop.f32.mrf.mxu1 }
 0x202   : > { %v5779_v2 = vpack.c.bf16 %v3154_v54, %v3153_v32  ;;  %v5454_v51 = vpack.c.bf16 %v3024_v11, %v3023_v14  ;;  %v5774_v57 = vpack.c.bf16 %v3152_v0, %v3151_v41  ;;  %v1850_v46 = vadd.f32 %v7590_v15, %v8022_v16 }
 0x203   : > { %v2362_v22 = vadd.f32 %v7590_v15, %v8024_v7  ;;  %v1842_v25 = vadd.f32 %v7590_v15, %v1841_v33  ;;  %v2354_v48 = vadd.f32 %v7590_v15, %v2353_v55  ;;  %5859 = vst [vmem:[%s6735_s26 + $0x1d8] sm:$0xff] %v5459_v42   ;;  %v1863_v23 = vadd.f32 %v7590_v15, %v6206_v19 }
 0x204   : > { %5923 = vst [vmem:[%s6735_s26 + $0x3d8] sm:$0xff] %v5779_v2   ;;  %5858 = vst [vmem:[%s6735_s26 + $0x1d0] sm:$0xff] %v5454_v51   ;;  %v2375_v28 = vadd.f32 %v7590_v15, %v6334_v3  ;;  %v1855_v50 = vadd.f32 %v7590_v15, %v1854_v47  ;;  %v2367_v52 = vadd.f32 %v7590_v15, %v2366_v8  ;;  %v2504_v16 = vmax.f32 %v1850_v46, 0.0 }
 0x205   : > { %5922 = vst [vmem:[%s6735_s26 + $0x3d0] sm:$0xff] %v5774_v57   ;;  %v2632_v17 = vmax.f32 %v2362_v22, 0.0  ;;  %v2502_v34 = vmax.f32 %v1842_v25, 0.0  ;;  %v2630_v7 = vmax.f32 %v2354_v48, 0.0  ;;  %v3029_v49 = vadd.f32 %v7636_v39, %v2766_v38 }
 0x206   : > { %v3157_v13 = vadd.f32 %v7636_v39, %v2894_v31  ;;  %v3027_v12 = vadd.f32 %v7636_v39, %v2764_v26  ;;  %v3155_v60 = vadd.f32 %v7636_v39, %v2892_v43  ;;  %v2767_v45 = vmul.f32 %v7623_v27, %v2504_v16 }
 0x207   : > { %v2895_v33 = vmul.f32 %v7623_v27, %v2632_v17  ;;  %v2765_v55 = vmul.f32 %v7623_v27, %v2502_v34  ;;  %v2893_v35 = vmul.f32 %v7623_v27, %v2630_v7  ;;  %v2507_v5 = vmax.f32 %v1863_v23, 0.0 }
 0x208   : > { %v2635_v56 = vmax.f32 %v2375_v28, 0.0  ;;  %v2505_v63 = vmax.f32 %v1855_v50, 0.0  ;;  %v2633_v30 = vmax.f32 %v2367_v52, 0.0  ;;  %v3030_v24 = vadd.f32 %v7636_v39, %v2767_v45 }
 0x209   : > { %v3158_v29 = vadd.f32 %v7636_v39, %v2895_v33  ;;  %v3028_v37 = vadd.f32 %v7636_v39, %v2765_v55  ;;  %v3156_v6 = vadd.f32 %v7636_v39, %v2893_v35  ;;  %v1866_v21 = vadd.f32 %v7590_v15, %v6207_v36 }
 0x20a   : > { %v5469_v9 = vpack.c.bf16 %v3030_v24, %v3029_v49  ;;  %v2378_v19 = vadd.f32 %v7590_v15, %v6335_v58  ;;  %v1858_v3 = vadd.f32 %v7590_v15, %v1857_v44  ;;  %v2370_v10 = vadd.f32 %v7590_v15, %v2369_v53 }
 0x20b   : > { %v5789_v62 = vpack.c.bf16 %v3158_v29, %v3157_v13  ;;  %v5464_v20 = vpack.c.bf16 %v3028_v37, %v3027_v12  ;;  %v5784_v40 = vpack.c.bf16 %v3156_v6, %v3155_v60  ;;  %v2770_v59 = vmul.f32 %v7623_v27, %v2507_v5 }
 0x20c   : > { %5861 = vst [vmem:[%s6735_s26 + $0x1e8] sm:$0xff] %v5469_v9   ;;  %v2898_v4 = vmul.f32 %v7623_v27, %v2635_v56  ;;  %v2768_v1 = vmul.f32 %v7623_v27, %v2505_v63  ;;  %v2896_v18 = vmul.f32 %v7623_v27, %v2633_v30  ;;  %v2508_v32 = vmax.f32 %v1866_v21, 0.0 }
 0x20d   : > { %5925 = vst [vmem:[%s6735_s26 + $0x3e8] sm:$0xff] %v5789_v62   ;;  %5860 = vst [vmem:[%s6735_s26 + $0x1e0] sm:$0xff] %v5464_v20   ;;  %v2636_v14 = vmax.f32 %v2378_v19, 0.0  ;;  %v2506_v41 = vmax.f32 %v1858_v3, 0.0  ;;  %v2634_v61 = vmax.f32 %v2370_v10, 0.0  ;;  %v3033_v38 = vadd.f32 %v7636_v39, %v2770_v59 }
 0x20e   : > { %5924 = vst [vmem:[%s6735_s26 + $0x3e0] sm:$0xff] %v5784_v40   ;;  %v2771_v54 = vmul.f32 %v7623_v27, %v2508_v32  ;;  %v3161_v31 = vadd.f32 %v7636_v39, %v2898_v4  ;;  %v3031_v26 = vadd.f32 %v7636_v39, %v2768_v1  ;;  %v3159_v43 = vadd.f32 %v7636_v39, %v2896_v18 }
 0x20f   : > { %v2899_v15 = vmul.f32 %v7623_v27, %v2636_v14  ;;  %v2769_v11 = vmul.f32 %v7623_v27, %v2506_v41  ;;  %v2897_v0 = vmul.f32 %v7623_v27, %v2634_v61 }
 0x210   : > { %v3034_v47 = vadd.f32 %v7636_v39, %v2771_v54 }
 0x211   : > { %v3162_v8 = vadd.f32 %v7636_v39, %v2899_v15  ;;  %v3032_v42 = vadd.f32 %v7636_v39, %v2769_v11  ;;  %v3160_v2 = vadd.f32 %v7636_v39, %v2897_v0 }
 0x212   : > { %v5479_v51 = vpack.c.bf16 %v3034_v47, %v3033_v38 }
 0x213   : > { %v5799_v57 = vpack.c.bf16 %v3162_v8, %v3161_v31  ;;  %v5474_v27 = vpack.c.bf16 %v3032_v42, %v3031_v26  ;;  %v5794_v46 = vpack.c.bf16 %v3160_v2, %v3159_v43 }
 0x214   : > { %5863 = vst [vmem:[%s6735_s26 + $0x1f8] sm:$0xff] %v5479_v51  }
 0x215   : > { %5927 = vst [vmem:[%s6735_s26 + $0x3f8] sm:$0xff] %v5799_v57   ;;  %5862 = vst [vmem:[%s6735_s26 + $0x1f0] sm:$0xff] %v5474_v27  }
 0x216   : > { %5926 = vst [vmem:[%s6735_s26 + $0x3f0] sm:$0xff] %v5794_v46  }
 0x217 PF: > { %s15_s18 = sadd.s32 1, %s6508_s18  }
 0x218   : > { %p12_p4 = scmp.ge.s32.totalorder %s15_s18, 4  }
 0x21a   :  { %14 = sbr.rel (!%p12_p4) target bundleno = 1 (0x1), region = 70 }

// kernel: prosody_encoder_forward.5
= control target key start
LH: loop header
LB: loop body
LE: loop exit
PB: predicated region body
PF: predicated region fallthrough
CT: control target
= control target key end

     0   :  { %s3056_s18 = smov 0   ;;  %s3666_s0 = inlined_call_operand.vmem [shape: bf16[1024,288], index: 0, kind: input, shape index: {}]   ;;  %s3667_s1 = inlined_call_operand.vmem [shape: bf16[288,128], index: 1, kind: input, shape index: {}]   ;;  %s3668_s2 = inlined_call_operand.vmem [shape: f32[1,128], index: 2, kind: input, shape index: {}]   ;;  %s3669_s3 = inlined_call_operand.vmem [shape: f32[1,128], index: 3, kind: input, shape index: {}]   ;;  %s3670_s4 = inlined_call_operand.vmem [shape: f32[1,128], index: 4, kind: input, shape index: {}]   ;;  %s3671_s5 = inlined_call_operand.vmem [shape: bf16[1024,128], index: 5, kind: output, shape index: {}]  }
   0x1 LB: > { %s2248_s19 = sadd.s32 4294967295, %s3023_s18   ;;  %p2252_p0 = scmp.ge.s32.totalorder %s3023_s18, 1  ;;  %s3023_s18 = sphi %s3056_s18, %s15_s18  }
   0x2   : > { %p189_p1 = scmp.lt.s32.totalorder %s3023_s18, 3 }
   0x4   : > { %p190_p2 = pnand %p2252_p0, %p189_p1 }
   0x5   : > { %s2253_s22 = sshll.u32 (!%p190_p2), %s2248_s19, 6 }
   0x6   : > { %193 = sbr.rel (%p190_p2) target bundleno = 470 (0x1d6), region = 40  ;;  %p219_p3 = scmp.lt.s32.totalorder (!%p190_p2), %s2253_s22, 127 }
   0xb   : > { %v2871_v0 = vld [vmem:[%s3667_s1 + $0x38] sm:$0xff]   ;;  %v3025_v1 = vmov 0   ;;  %v2872_v2 = vld [vmem:[%s3667_s1 + $0x30] sm:$0xff]   ;;  %v2873_v3 = vld [vmem:[%s3667_s1 + $0x28] sm:$0xff]   ;;  %s3673_s22 = smov (!%p219_p3, %s2253_s22), 127  ;;  %vm991_vm0 = vcmask 261120  }
   0xc   : > { %1088 = vmatprep.subr.bf16.mxu0 %v3025_v1  ;;  %2829 = vmatprep.subr.bf16.mxu1 %v3025_v1  ;;  %v2874_v4 = vld [vmem:[%s3667_s1 + $0x20] sm:$0xff]   ;;  %s2861_s29 = smul.u32 12, %s3673_s22  ;;  %v2875_v5 = vld [vmem:[%s3667_s1 + $0x18] sm:$0xff]   ;;  %v2876_v7 = vld [vmem:[%s3667_s1 + $0x10] sm:$0xff]   ;;  %s2256_s20 = sshll.u32 %s3673_s22, 2 }
   0xd   : > { %1089 = vmatpush1.bf16.msra.mxu0 %v2871_v0  ;;  %2845 = vmatpush1.bf16.msra.mxu1 %v2871_v0  ;;  %v2877_v9 = vld [vmem:[%s3667_s1 + $0x8] sm:$0xff]   ;;  %v2878_v10 = vld [vmem:[%s3667_s1] sm:$0xff]   ;;  %v2879_v11 = vld [vmem:[%s3667_s1 + $0x78] sm:$0xff]   ;;  %s3388_s23 = scalar_lea.vmem %s3671_s5, %s2256_s20 }
   0xe   : > { %1090 = vmatprep.subr.bf16.mxu0 %v3025_v1  ;;  %2830 = vmatprep.subr.bf16.mxu1 %v3025_v1  ;;  %s3093_s9 = scalar_lea.vmem %s3666_s0, %s2861_s29  ;;  %v2880_v12 = vld [vmem:[%s3667_s1 + $0x70] sm:$0xff]   ;;  %v2881_v13 = vld [vmem:[%s3667_s1 + $0x68] sm:$0xff]   ;;  %v2882_v14 = vld [vmem:[%s3667_s1 + $0x60] sm:$0xff]  }
   0xf   : > { %v2889_v6 = vld [vmem:[%s3093_s9 + $0x4] ss:$12 sps:$4 sm:$0xff]   ;;  %v2883_v15 = vld [vmem:[%s3667_s1 + $0x58] sm:$0xff]   ;;  %v2885_v17 = vld [vmem:[%s3667_s1 + $0x48] sm:$0xff]  }
  0x10   : > { %v2892_v8 = vld [vmem:[%s3093_s9 + $0x244] ss:$12 sps:$4 sm:$0xff]   ;;  %1120 = vmatprep.mubr.bf16.mxu0 %v2889_v6  ;;  %v2893_v19 = vld [vmem:[%s3667_s1 + $0x88] sm:$0xff]   ;;  %v2900_v27 = vld [vmem:[%s3093_s9 + $0x34] ss:$12 sps:$4 sm:$0xff]  }
  0x11   : > { %1091 = vmatpush1.bf16.msra.mxu0 %v2872_v2  ;;  %2846 = vmatpush1.bf16.msra.mxu1 %v2872_v2  ;;  %v2884_v16 = vld [vmem:[%s3667_s1 + $0x50] sm:$0xff]   ;;  %v2886_v18 = vld [vmem:[%s3667_s1 + $0x40] sm:$0xff]   ;;  %v2894_v22 = vld [vmem:[%s3093_s9 + $0x1c] ss:$12 sps:$4 sm:$0xff]  }
  0x12   : > { %1092 = vmatprep.subr.bf16.mxu0 %v3025_v1  ;;  %2831 = vmatprep.subr.bf16.mxu1 %v3025_v1  ;;  %v2887_v20 = vld [vmem:[%s3093_s9] ss:$12 sps:$4 sm:$0xff]   ;;  %v2896_v23 = vld [vmem:[%s3093_s9 + $0x25c] ss:$12 sps:$4 sm:$0xff]   ;;  %v2898_v25 = vld [vmem:[%s3093_s9 + $0x18] ss:$12 sps:$4 sm:$0xff]  }
  0x13   : > { %1312 = vmatprep.mubr.bf16.mxu1 %v2892_v8  ;;  %v2890_v21 = vld [vmem:[%s3093_s9 + $0x240] ss:$12 sps:$4 sm:$0xff]   ;;  %v2899_v26 = vld [vmem:[%s3093_s9 + $0x258] ss:$12 sps:$4 sm:$0xff]   ;;  %v2904_v29 = vld [vmem:[%s3093_s9 + $0x30] ss:$12 sps:$4 sm:$0xff]  }
  0x14   : > { %v2918_v24 = vld [vmem:[%s3667_s1 + $0x80] sm:$0xff]   ;;  %v2905_v30 = vld [vmem:[%s3093_s9 + $0x270] ss:$12 sps:$4 sm:$0xff]   ;;  %v2906_v31 = vld [vmem:[%s3093_s9 + $0x4c] ss:$12 sps:$4 sm:$0xff]  }
  0x15   : > { %1093 = vmatpush1.bf16.msra.mxu0 %v2873_v3  ;;  %2847 = vmatpush1.bf16.msra.mxu1 %v2873_v3  ;;  %v2902_v28 = vld [vmem:[%s3093_s9 + $0x274] ss:$12 sps:$4 sm:$0xff]   ;;  %v2908_v32 = vld [vmem:[%s3093_s9 + $0x28c] ss:$12 sps:$4 sm:$0xff]   ;;  %v2912_v35 = vld [vmem:[%s3093_s9 + $0x64] ss:$12 sps:$4 sm:$0xff]  }
  0x16   : > { %1094 = vmatprep.subr.bf16.mxu0 %v3025_v1  ;;  %2832 = vmatprep.subr.bf16.mxu1 %v3025_v1  ;;  %v2910_v33 = vld [vmem:[%s3093_s9 + $0x48] ss:$12 sps:$4 sm:$0xff]   ;;  %v2914_v36 = vld [vmem:[%s3093_s9 + $0x2a4] ss:$12 sps:$4 sm:$0xff]   ;;  %v2916_v37 = vld [vmem:[%s3093_s9 + $0x60] ss:$12 sps:$4 sm:$0xff]  }
  0x17   : > { %v2911_v34 = vld [vmem:[%s3093_s9 + $0x288] ss:$12 sps:$4 sm:$0xff]   ;;  %v2917_v38 = vld [vmem:[%s3093_s9 + $0x2a0] ss:$12 sps:$4 sm:$0xff]   ;;  %v2923_v41 = vld [vmem:[%s3093_s9 + $0x78] ss:$12 sps:$4 sm:$0xff]  }
  0x18   : > { %v2919_v39 = vld [vmem:[%s3093_s9 + $0x7c] ss:$12 sps:$4 sm:$0xff]   ;;  %v2924_v42 = vld [vmem:[%s3093_s9 + $0x2b8] ss:$12 sps:$4 sm:$0xff]   ;;  %v2925_v43 = vld [vmem:[%s3093_s9 + $0x94] ss:$12 sps:$4 sm:$0xff]  }
  0x19   : > { %1095 = vmatpush1.bf16.msra.mxu0 %v2874_v4  ;;  %2848 = vmatpush1.bf16.msra.mxu1 %v2874_v4  ;;  %v2921_v40 = vld [vmem:[%s3093_s9 + $0x2bc] ss:$12 sps:$4 sm:$0xff]   ;;  %v2927_v44 = vld [vmem:[%s3093_s9 + $0x2d4] ss:$12 sps:$4 sm:$0xff]   ;;  %v2931_v47 = vld [vmem:[%s3093_s9 + $0xac] ss:$12 sps:$4 sm:$0xff]  }
  0x1a   : > { %1096 = vmatprep.subr.bf16.mxu0 %v3025_v1  ;;  %2833 = vmatprep.subr.bf16.mxu1 %v3025_v1  ;;  %v2929_v45 = vld [vmem:[%s3093_s9 + $0x90] ss:$12 sps:$4 sm:$0xff]   ;;  %v2933_v48 = vld [vmem:[%s3093_s9 + $0x2ec] ss:$12 sps:$4 sm:$0xff]   ;;  %v2935_v49 = vld [vmem:[%s3093_s9 + $0xa8] ss:$12 sps:$4 sm:$0xff]  }
  0x1b   : > { %v2930_v46 = vld [vmem:[%s3093_s9 + $0x2d0] ss:$12 sps:$4 sm:$0xff]   ;;  %v2936_v50 = vld [vmem:[%s3093_s9 + $0x2e8] ss:$12 sps:$4 sm:$0xff]   ;;  %v2940_v53 = vld [vmem:[%s3093_s9 + $0xc0] ss:$12 sps:$4 sm:$0xff]  }
  0x1c   : > { %v2937_v51 = vld [vmem:[%s3093_s9 + $0xc4] ss:$12 sps:$4 sm:$0xff]   ;;  %v2939_v52 = vld [vmem:[%s3093_s9 + $0x8] ss:$12 sps:$4 sm:$0xff]   ;;  %v2941_v54 = vld [vmem:[%s3093_s9 + $0x20] ss:$12 sps:$4 sm:$0xff]  }
  0x1d   : > { %1097 = vmatpush1.bf16.msra.mxu0 %v2875_v5  ;;  %2849 = vmatpush1.bf16.msra.mxu1 %v2875_v5  ;;  %v2942_v55 = vld [vmem:[%s3093_s9 + $0xdc] ss:$12 sps:$4 sm:$0xff]   ;;  %v2944_v56 = vld [vmem:[%s3093_s9 + $0x38] ss:$12 sps:$4 sm:$0xff]   ;;  %v2947_v59 = vld [vmem:[%s3093_s9 + $0xf4] ss:$12 sps:$4 sm:$0xff]  }
  0x1e   : > { %1098 = vmatprep.subr.bf16.mxu0 %v3025_v1  ;;  %2834 = vmatprep.subr.bf16.mxu1 %v3025_v1  ;;  %v2945_v57 = vld [vmem:[%s3093_s9 + $0xd8] ss:$12 sps:$4 sm:$0xff]   ;;  %v2946_v58 = vld [vmem:[%s3093_s9 + $0x50] ss:$12 sps:$4 sm:$0xff]   ;;  %v2949_v60 = vld [vmem:[%s3093_s9 + $0x68] ss:$12 sps:$4 sm:$0xff]  }
  0x1f   : > { %v2950_v61 = vld [vmem:[%s3093_s9 + $0xf0] ss:$12 sps:$4 sm:$0xff]   ;;  %v2951_v62 = vld [vmem:[%s3093_s9 + $0x80] ss:$12 sps:$4 sm:$0xff]   ;;  %v2954_v0 = vld [vmem:[%s3093_s9 + $0x98] ss:$12 sps:$4 sm:$0xff]  }
  0x20   : > { %v2952_v63 = vld [vmem:[%s3093_s9 + $0x10c] ss:$12 sps:$4 sm:$0xff]   ;;  %v2956_v2 = vld [vmem:[%s3093_s9 + $0xb0] ss:$12 sps:$4 sm:$0xff]   ;;  %v2959_v4 = vld [vmem:[%s3093_s9 + $0xc8] ss:$12 sps:$4 sm:$0xff]  }
  0x21   : > { %1099 = vmatpush1.bf16.msra.mxu0 %v2876_v7  ;;  %2850 = vmatpush1.bf16.msra.mxu1 %v2876_v7  ;;  %v2957_v3 = vld [vmem:[%s3093_s9 + $0x124] ss:$12 sps:$4 sm:$0xff]   ;;  %v2960_v5 = vld [vmem:[%s3093_s9 + $0x120] ss:$12 sps:$4 sm:$0xff]   ;;  %v2962_v7 = vld [vmem:[%s3093_s9 + $0x13c] ss:$12 sps:$4 sm:$0xff]  }
  0x22   : > { %1100 = vmatprep.subr.bf16.mxu0 %v3025_v1  ;;  %2835 = vmatprep.subr.bf16.mxu1 %v3025_v1  ;;  %v2961_v6 = vld [vmem:[%s3093_s9 + $0xe0] ss:$12 sps:$4 sm:$0xff]   ;;  %v2964_v8 = vld [vmem:[%s3093_s9 + $0xf8] ss:$12 sps:$4 sm:$0xff]  }
  0x25   : > { %1101 = vmatpush1.bf16.msra.mxu0 %v2877_v9  ;;  %2851 = vmatpush1.bf16.msra.mxu1 %v2877_v9  ;;  %v2965_v9 = vld [vmem:[%s3093_s9 + $0x138] ss:$12 sps:$4 sm:$0xff]  }
  0x26   : > { %1102 = vmatprep.subr.bf16.mxu0 %v3025_v1  ;;  %2836 = vmatprep.subr.bf16.mxu1 %v3025_v1 }
  0x29   : > { %1103 = vmatpush1.bf16.msra.mxu0 %v2878_v10  ;;  %2852 = vmatpush1.bf16.msra.mxu1 %v2878_v10  ;;  %v2966_v10 = vld [vmem:[%s3093_s9 + $0x110] ss:$12 sps:$4 sm:$0xff]  }
  0x2a   : > { %1104 = vmatprep.subr.bf16.mxu0 %v3025_v1  ;;  %2837 = vmatprep.subr.bf16.mxu1 %v3025_v1 }
  0x2d   : > { %1105 = vmatpush2.bf16.msra.mxu0 %v2879_v11  ;;  %2853 = vmatpush2.bf16.msra.mxu1 %v2879_v11  ;;  %v2967_v11 = vld [vmem:[%s3093_s9 + $0x154] ss:$12 sps:$4 sm:$0xff]  }
  0x2e   : > { %1106 = vmatprep.subr.bf16.mxu0 %v3025_v1  ;;  %2838 = vmatprep.subr.bf16.mxu1 %v3025_v1 }
  0x31   : > { %1107 = vmatpush2.bf16.msra.mxu0 %v2880_v12  ;;  %2854 = vmatpush2.bf16.msra.mxu1 %v2880_v12  ;;  %v2969_v12 = vld [vmem:[%s3093_s9 + $0x128] ss:$12 sps:$4 sm:$0xff]  }
  0x32   : > { %1108 = vmatprep.subr.bf16.mxu0 %v3025_v1  ;;  %2839 = vmatprep.subr.bf16.mxu1 %v3025_v1 }
  0x35   : > { %1109 = vmatpush2.bf16.msra.mxu0 %v2881_v13  ;;  %2855 = vmatpush2.bf16.msra.mxu1 %v2881_v13  ;;  %v2970_v13 = vld [vmem:[%s3093_s9 + $0x150] ss:$12 sps:$4 sm:$0xff]  }
  0x36   : > { %1110 = vmatprep.subr.bf16.mxu0 %v3025_v1  ;;  %2840 = vmatprep.subr.bf16.mxu1 %v3025_v1 }
  0x39   : > { %1111 = vmatpush2.bf16.msra.mxu0 %v2882_v14  ;;  %2856 = vmatpush2.bf16.msra.mxu1 %v2882_v14  ;;  %v2971_v14 = vld [vmem:[%s3093_s9 + $0x140] ss:$12 sps:$4 sm:$0xff]  }
  0x3a   : > { %1112 = vmatprep.subr.bf16.mxu0 %v3025_v1  ;;  %2841 = vmatprep.subr.bf16.mxu1 %v3025_v1 }
  0x3d   : > { %1113 = vmatpush2.bf16.msra.mxu0 %v2883_v15  ;;  %2857 = vmatpush2.bf16.msra.mxu1 %v2883_v15  ;;  %v2972_v15 = vld [vmem:[%s3093_s9 + $0x16c] ss:$12 sps:$4 sm:$0xff]  }
  0x3e   : > { %1114 = vmatprep.subr.bf16.mxu0 %v3025_v1  ;;  %2842 = vmatprep.subr.bf16.mxu1 %v3025_v1 }
  0x41   : > { %1115 = vmatpush2.bf16.msra.mxu0 %v2884_v16  ;;  %2858 = vmatpush2.bf16.msra.mxu1 %v2884_v16  ;;  %v2974_v16 = vld [vmem:[%s3093_s9 + $0x158] ss:$12 sps:$4 sm:$0xff]  }
  0x42   : > { %1116 = vmatprep.subr.bf16.mxu0 %v3025_v1  ;;  %2843 = vmatprep.subr.bf16.mxu1 %v3025_v1 }
  0x45   : > { %1117 = vmatpush2.bf16.msra.mxu0 %v2885_v17  ;;  %2859 = vmatpush2.bf16.msra.mxu1 %v2885_v17  ;;  %v2975_v17 = vld [vmem:[%s3093_s9 + $0x168] ss:$12 sps:$4 sm:$0xff]  }
  0x46   : > { %1118 = vmatprep.subr.bf16.mxu0 %v3025_v1  ;;  %2844 = vmatprep.subr.bf16.mxu1 %v3025_v1  ;;  %v2955_v1 = vld [vmem:[%s3093_s9 + $0x108] ss:$12 sps:$4 sm:$0xff]  }
  0x49   : > { %1119 = vmatpush2.bf16.msra.mxu0 %v2886_v18  ;;  %2860 = vmatpush2.bf16.msra.mxu1 %v2886_v18  ;;  %v2976_v18 = vld [vmem:[%s3093_s9 + $0x170] ss:$12 sps:$4 sm:$0xff]  }
  0x4a   : > { %2761 = vmatprep.subr.bf16.mxu1 %v2893_v19 }
  0x4c   : > { %1121 = vmatmul.mubr.bf16.vlgmr.msra.gmra.mxu0 %v2887_v20  ;;  %1313 = vmatmul.mubr.bf16.vlgmr.msra.gmra.mxu1 %v2890_v21  ;;  %v2979_v20 = vld [vmem:[%s3093_s9 + $0x188] ss:$12 sps:$4 sm:$0xff]   ;;  %v2980_v21 = vld [vmem:[%s3093_s9 + $0x180] ss:$12 sps:$4 sm:$0xff]  }
  0x4d   : > { %2762 = vmatpush3.bf16.msra.mxu1 %v2893_v19  ;;  %1128 = vmatprep.mubr.bf16.mxu0 %v2894_v22  ;;  %v2977_v19 = vld [vmem:[%s3093_s9 + $0x184] ss:$12 sps:$4 sm:$0xff]   ;;  %v2981_v22 = vld [vmem:[%s3093_s9 + $0x1a0] ss:$12 sps:$4 sm:$0xff]  }
  0x4e   : > { %1320 = vmatprep.mubr.bf16.mxu1 %v2896_v23  ;;  %2763 = vmatprep.subr.bf16.mxu1 %v2918_v24  ;;  %v2982_v23 = vld [vmem:[%s3093_s9 + $0x19c] ss:$12 sps:$4 sm:$0xff]  }
  0x51   : > { %2764 = vmatpush3.bf16.msra.mxu1 %v2918_v24  ;;  %v2984_v24 = vld [vmem:[%s3093_s9 + $0x1b8] ss:$12 sps:$4 sm:$0xff]  }
  0x54   : > { %1129 = vmatmul.mubr.bf16.gmra.mxu0 %v2898_v25  ;;  %1321 = vmatmul.mubr.bf16.gmra.mxu1 %v2899_v26  ;;  %v2985_v25 = vld [vmem:[%s3093_s9 + $0x198] ss:$12 sps:$4 sm:$0xff]   ;;  %v2986_v26 = vld [vmem:[%s3093_s9 + $0x1d0] ss:$12 sps:$4 sm:$0xff]  }
  0x55   : > { %1136 = vmatprep.mubr.bf16.mxu0 %v2900_v27  ;;  %1328 = vmatprep.mubr.bf16.mxu1 %v2902_v28  ;;  %v2987_v27 = vld [vmem:[%s3093_s9 + $0x1b4] ss:$12 sps:$4 sm:$0xff]  }
  0x56   : > { %v2989_v28 = vld [vmem:[%s3093_s9 + $0x1e8] ss:$12 sps:$4 sm:$0xff]  }
  0x5c   : > { %1137 = vmatmul.mubr.bf16.gmra.mxu0 %v2904_v29  ;;  %1329 = vmatmul.mubr.bf16.gmra.mxu1 %v2905_v30  ;;  %v2990_v29 = vld [vmem:[%s3093_s9 + $0x1b0] ss:$12 sps:$4 sm:$0xff]   ;;  %v2991_v30 = vld [vmem:[%s3093_s9 + $0x200] ss:$12 sps:$4 sm:$0xff]  }
  0x5d   : > { %1144 = vmatprep.mubr.bf16.mxu0 %v2906_v31  ;;  %1336 = vmatprep.mubr.bf16.mxu1 %v2908_v32  ;;  %v2992_v31 = vld [vmem:[%s3093_s9 + $0x1cc] ss:$12 sps:$4 sm:$0xff]  }
  0x5e   : > { %v2994_v32 = vld [vmem:[%s3093_s9 + $0x218] ss:$12 sps:$4 sm:$0xff]  }
  0x64   : > { %1145 = vmatmul.mubr.bf16.gmra.mxu0 %v2910_v33  ;;  %1337 = vmatmul.mubr.bf16.gmra.mxu1 %v2911_v34  ;;  %v2995_v33 = vld [vmem:[%s3093_s9 + $0x1c8] ss:$12 sps:$4 sm:$0xff]   ;;  %v2996_v34 = vld [vmem:[%s3093_s9 + $0x230] ss:$12 sps:$4 sm:$0xff]  }
  0x65   : > { %1152 = vmatprep.mubr.bf16.mxu0 %v2912_v35  ;;  %1344 = vmatprep.mubr.bf16.mxu1 %v2914_v36  ;;  %v2997_v35 = vld [vmem:[%s3093_s9 + $0x1e4] ss:$12 sps:$4 sm:$0xff]   ;;  %v2999_v36 = vld [vmem:[%s3093_s9 + $0x248] ss:$12 sps:$4 sm:$0xff]  }
  0x6c   : > { %1153 = vmatmul.mubr.bf16.gmra.mxu0 %v2916_v37  ;;  %1345 = vmatmul.mubr.bf16.gmra.mxu1 %v2917_v38  ;;  %v3000_v37 = vld [vmem:[%s3093_s9 + $0x1e0] ss:$12 sps:$4 sm:$0xff]  }
  0x6d   : > { %1160 = vmatprep.mubr.bf16.mxu0 %v2919_v39  ;;  %1352 = vmatprep.mubr.bf16.mxu1 %v2921_v40  ;;  %v3001_v38 = vld [vmem:[%s3093_s9 + $0x260] ss:$12 sps:$4 sm:$0xff]   ;;  %v3002_v39 = vld [vmem:[%s3093_s9 + $0x1fc] ss:$12 sps:$4 sm:$0xff]   ;;  %v3004_v40 = vld [vmem:[%s3093_s9 + $0x278] ss:$12 sps:$4 sm:$0xff]  }
  0x74   : > { %1161 = vmatmul.mubr.bf16.gmra.mxu0 %v2923_v41  ;;  %1353 = vmatmul.mubr.bf16.gmra.mxu1 %v2924_v42  ;;  %v3005_v41 = vld [vmem:[%s3093_s9 + $0x1f8] ss:$12 sps:$4 sm:$0xff]   ;;  %v3006_v42 = vld [vmem:[%s3093_s9 + $0x290] ss:$12 sps:$4 sm:$0xff]  }
  0x75   : > { %1168 = vmatprep.mubr.bf16.mxu0 %v2925_v43  ;;  %1360 = vmatprep.mubr.bf16.mxu1 %v2927_v44  ;;  %v3007_v43 = vld [vmem:[%s3093_s9 + $0x214] ss:$12 sps:$4 sm:$0xff]  }
  0x76   : > { %v3009_v44 = vld [vmem:[%s3093_s9 + $0x2a8] ss:$12 sps:$4 sm:$0xff]  }
  0x7c   : > { %1169 = vmatmul.mubr.bf16.gmra.mxu0 %v2929_v45  ;;  %1361 = vmatmul.mubr.bf16.gmra.mxu1 %v2930_v46  ;;  %v3010_v45 = vld [vmem:[%s3093_s9 + $0x210] ss:$12 sps:$4 sm:$0xff]   ;;  %v3011_v46 = vld [vmem:[%s3093_s9 + $0x2c0] ss:$12 sps:$4 sm:$0xff]  }
  0x7d   : > { %1176 = vmatprep.mubr.bf16.mxu0 %v2931_v47  ;;  %1368 = vmatprep.mubr.bf16.mxu1 %v2933_v48  ;;  %v3012_v47 = vld [vmem:[%s3093_s9 + $0x22c] ss:$12 sps:$4 sm:$0xff]  }
  0x7e   : > { %v3014_v48 = vld [vmem:[%s3093_s9 + $0x2d8] ss:$12 sps:$4 sm:$0xff]  }
  0x84   : > { %1177 = vmatmul.mubr.bf16.gmra.mxu0 %v2935_v49  ;;  %1369 = vmatmul.mubr.bf16.gmra.mxu1 %v2936_v50  ;;  %v3015_v49 = vld [vmem:[%s3093_s9 + $0x228] ss:$12 sps:$4 sm:$0xff]   ;;  %v3016_v50 = vld [vmem:[%s3093_s9 + $0x2f0] ss:$12 sps:$4 sm:$0xff]  }
  0x85   : > { %1184 = vmatprep.mubr.bf16.mxu0 %v2937_v51  ;;  %2765 = vmatprep.mubr.msk.bf16.mxu1 %vm991_vm0, %v2939_v52 }
  0x8c   : > { %1185 = vmatmul.mubr.bf16.gmra.mxu0 %v2940_v53  ;;  %2766 = vmatmul.mubr.msk.bf16.vlgmr.msra.gmra.mxu1 %vm991_vm0, %v2941_v54 }
  0x8d   : > { %1192 = vmatprep.mubr.bf16.mxu0 %v2942_v55  ;;  %2769 = vmatprep.mubr.msk.bf16.mxu1 %vm991_vm0, %v2944_v56 }
  0x94   : > { %1193 = vmatmul.mubr.bf16.gmra.mxu0 %v2945_v57  ;;  %2770 = vmatmul.mubr.msk.bf16.gmra.mxu1 %vm991_vm0, %v2946_v58 }
  0x95   : > { %1200 = vmatprep.mubr.bf16.mxu0 %v2947_v59  ;;  %2773 = vmatprep.mubr.msk.bf16.mxu1 %vm991_vm0, %v2949_v60 }
  0x9c   : > { %1201 = vmatmul.mubr.bf16.gmra.mxu0 %v2950_v61  ;;  %2774 = vmatmul.mubr.msk.bf16.gmra.mxu1 %vm991_vm0, %v2951_v62 }
  0x9d   : > { %1208 = vmatprep.mubr.bf16.mxu0 %v2952_v63  ;;  %2777 = vmatprep.mubr.msk.bf16.mxu1 %vm991_vm0, %v2954_v0 }
  0xa4   : > { %1209 = vmatmul.mubr.bf16.gmra.mxu0 %v2955_v1  ;;  %2778 = vmatmul.mubr.msk.bf16.gmra.mxu1 %vm991_vm0, %v2956_v2 }
  0xa5   : > { %1216 = vmatprep.mubr.bf16.mxu0 %v2957_v3  ;;  %2781 = vmatprep.mubr.msk.bf16.mxu1 %vm991_vm0, %v2959_v4 }
  0xac   : > { %1217 = vmatmul.mubr.bf16.gmra.mxu0 %v2960_v5  ;;  %2782 = vmatmul.mubr.msk.bf16.gmra.mxu1 %vm991_vm0, %v2961_v6 }
  0xad   : > { %1224 = vmatprep.mubr.bf16.mxu0 %v2962_v7  ;;  %2785 = vmatprep.mubr.msk.bf16.mxu1 %vm991_vm0, %v2964_v8 }
  0xb4   : > { %1225 = vmatmul.mubr.bf16.gmra.mxu0 %v2965_v9  ;;  %2786 = vmatmul.mubr.msk.bf16.gmra.mxu1 %vm991_vm0, %v2966_v10 }
  0xb5   : > { %1232 = vmatprep.mubr.bf16.mxu0 %v2967_v11  ;;  %2789 = vmatprep.mubr.msk.bf16.mxu1 %vm991_vm0, %v2969_v12 }
  0xbc   : > { %1233 = vmatmul.mubr.bf16.gmra.mxu0 %v2970_v13  ;;  %2790 = vmatmul.mubr.msk.bf16.gmra.mxu1 %vm991_vm0, %v2971_v14 }
  0xbd   : > { %1240 = vmatprep.mubr.bf16.mxu0 %v2972_v15  ;;  %2793 = vmatprep.mubr.msk.bf16.mxu1 %vm991_vm0, %v2974_v16 }
  0xc4   : > { %1241 = vmatmul.mubr.bf16.gmra.mxu0 %v2975_v17  ;;  %2794 = vmatmul.mubr.msk.bf16.gmra.mxu1 %vm991_vm0, %v2976_v18 }
  0xc5   : > { %1248 = vmatprep.mubr.bf16.mxu0 %v2977_v19  ;;  %2797 = vmatprep.mubr.msk.bf16.mxu1 %vm991_vm0, %v2979_v20 }
  0xcc   : > { %1249 = vmatmul.mubr.bf16.gmra.mxu0 %v2980_v21  ;;  %2798 = vmatmul.mubr.msk.bf16.gmra.mxu1 %vm991_vm0, %v2981_v22 }
  0xcd   : > { %1256 = vmatprep.mubr.bf16.mxu0 %v2982_v23  ;;  %2801 = vmatprep.mubr.msk.bf16.mxu1 %vm991_vm0, %v2984_v24 }
  0xd4   : > { %1257 = vmatmul.mubr.bf16.gmra.mxu0 %v2985_v25  ;;  %2802 = vmatmul.mubr.msk.bf16.gmra.mxu1 %vm991_vm0, %v2986_v26 }
  0xd5   : > { %1264 = vmatprep.mubr.bf16.mxu0 %v2987_v27  ;;  %2805 = vmatprep.mubr.msk.bf16.mxu1 %vm991_vm0, %v2989_v28 }
  0xdc   : > { %1265 = vmatmul.mubr.bf16.gmra.mxu0 %v2990_v29  ;;  %2806 = vmatmul.mubr.msk.bf16.gmra.mxu1 %vm991_vm0, %v2991_v30 }
  0xdd   : > { %1272 = vmatprep.mubr.bf16.mxu0 %v2992_v31  ;;  %2809 = vmatprep.mubr.msk.bf16.mxu1 %vm991_vm0, %v2994_v32 }
  0xe4   : > { %1273 = vmatmul.mubr.bf16.gmra.mxu0 %v2995_v33  ;;  %2810 = vmatmul.mubr.msk.bf16.gmra.mxu1 %vm991_vm0, %v2996_v34 }
  0xe5   : > { %1280 = vmatprep.mubr.bf16.mxu0 %v2997_v35  ;;  %2813 = vmatprep.mubr.msk.bf16.mxu1 %vm991_vm0, %v2999_v36 }
  0xec   : > { %1281 = vmatmul.mubr.bf16.gmra.mxu0 %v3000_v37  ;;  %2814 = vmatmul.mubr.msk.bf16.gmra.mxu1 %vm991_vm0, %v3001_v38 }
  0xed   : > { %1288 = vmatprep.mubr.bf16.mxu0 %v3002_v39  ;;  %2817 = vmatprep.mubr.msk.bf16.mxu1 %vm991_vm0, %v3004_v40 }
  0xf4   : > { %1289 = vmatmul.mubr.bf16.gmra.mxu0 %v3005_v41  ;;  %2818 = vmatmul.mubr.msk.bf16.gmra.mxu1 %vm991_vm0, %v3006_v42 }
  0xf5   : > { %1296 = vmatprep.mubr.bf16.mxu0 %v3007_v43  ;;  %2821 = vmatprep.mubr.msk.bf16.mxu1 %vm991_vm0, %v3009_v44 }
  0xfc   : > { %1297 = vmatmul.mubr.bf16.gmra.mxu0 %v3010_v45  ;;  %2822 = vmatmul.mubr.msk.bf16.gmra.mxu1 %vm991_vm0, %v3011_v46 }
  0xfd   : > { %1304 = vmatprep.mubr.bf16.mxu0 %v3012_v47  ;;  %2825 = vmatprep.mubr.msk.bf16.mxu1 %vm991_vm0, %v3014_v48 }
 0x104   : > { %1305 = vmatmul.mubr.bf16.gmra.mxu0 %v3015_v49  ;;  %2826 = vmatmul.mubr.msk.bf16.gmra.mxu1 %vm991_vm0, %v3016_v50  ;;  %v3347_v49 = vld [vmem:[%s3668_s2] ss:$0 sm:$0xff] }
 0x10c   : > { %v3286_v51 = vpop.f32.mrf.mxu0  ;;  %v3288_v52 = vpop.f32.mrf.mxu1 }
 0x10e   : > { %v1124_v53 = vpop.f32.mrf.mxu0  ;;  %v1316_v54 = vpop.f32.mrf.mxu1 }
 0x110   : > { %v3290_v55 = vpop.f32.mrf.mxu0  ;;  %v3292_v56 = vpop.f32.mrf.mxu1 }
 0x112   : > { %v1127_v57 = vpop.f32.mrf.mxu0  ;;  %v1319_v58 = vpop.f32.mrf.mxu1 }
 0x114   : > { %v1130_v59 = vpop.f32.mrf.mxu0  ;;  %v3294_v60 = vpop.f32.mrf.mxu1 }
 0x115   : > { %v1131_v54 = vadd.f32 %v3347_v49, %v1130_v59 }
 0x116   : > { %v1132_v61 = vpop.f32.mrf.mxu0  ;;  %v1324_v62 = vpop.f32.mrf.mxu1 }
 0x117   : > { %v1123_v61 = vadd.f32 %v3347_v49, %v3286_v51 }
 0x118   : > { %v1133_v63 = vpop.f32.mrf.mxu0  ;;  %v3296_v0 = vpop.f32.mrf.mxu1 }
 0x11a   : > { %v1135_v1 = vpop.f32.mrf.mxu0  ;;  %v1327_v2 = vpop.f32.mrf.mxu1 }
 0x11c   : > { %v3298_v3 = vpop.f32.mrf.mxu0  ;;  %v3300_v4 = vpop.f32.mrf.mxu1 }
 0x11e   : > { %v1140_v5 = vpop.f32.mrf.mxu0  ;;  %v1332_v6 = vpop.f32.mrf.mxu1 }
 0x11f   : > { %v1134_v5 = vadd.f32 %v3347_v49, %v1133_v63 }
 0x120   : > { %v3302_v7 = vpop.f32.mrf.mxu0  ;;  %v3304_v8 = vpop.f32.mrf.mxu1 }
 0x122   : > { %v1143_v9 = vpop.f32.mrf.mxu0  ;;  %v1335_v10 = vpop.f32.mrf.mxu1 }
 0x123   : > { %v3358_v10 = vld [vmem:[%s3669_s3] ss:$0 sm:$0xff] }
 0x124   : > { %v1146_v11 = vpop.f32.mrf.mxu0  ;;  %v3306_v12 = vpop.f32.mrf.mxu1 }
 0x126   : > { %v1148_v13 = vpop.f32.mrf.mxu0  ;;  %v1340_v14 = vpop.f32.mrf.mxu1 }
 0x127   : > { %v1126_v14 = vadd.f32 %v3347_v49, %v3290_v55  ;;  %v1139_v55 = vadd.f32 %v3347_v49, %v3298_v3 }
 0x128   : > { %v3308_v15 = vpop.f32.mrf.mxu0  ;;  %v3310_v16 = vpop.f32.mrf.mxu1 }
 0x129   : > { %v1150_v3 = vadd.f32 %v3347_v49, %v3308_v15 }
 0x12a   : > { %v1151_v17 = vpop.f32.mrf.mxu0  ;;  %v1343_v18 = vpop.f32.mrf.mxu1 }
 0x12c   : > { %v3312_v19 = vpop.f32.mrf.mxu0  ;;  %v3314_v20 = vpop.f32.mrf.mxu1 }
 0x12e   : > { %v1156_v21 = vpop.f32.mrf.mxu0  ;;  %v1348_v22 = vpop.f32.mrf.mxu1 }
 0x130   : > { %v3316_v23 = vpop.f32.mrf.mxu0  ;;  %v3318_v24 = vpop.f32.mrf.mxu1 }
 0x132   : > { %v1159_v25 = vpop.f32.mrf.mxu0  ;;  %v1351_v26 = vpop.f32.mrf.mxu1 }
 0x133   : > { %v1147_v26 = vadd.f32 %v3347_v49, %v1146_v11 }
 0x134   : > { %v3320_v27 = vpop.f32.mrf.mxu0  ;;  %v3322_v28 = vpop.f32.mrf.mxu1 }
 0x136   : > { %v1164_v29 = vpop.f32.mrf.mxu0  ;;  %v1356_v30 = vpop.f32.mrf.mxu1 }
 0x137   : > { %v3369_v29 = vld [vmem:[%s3670_s4] ss:$0 sm:$0xff] }
 0x138   : > { %v3324_v31 = vpop.f32.mrf.mxu0  ;;  %v3326_v32 = vpop.f32.mrf.mxu1 }
 0x13a   : > { %v1167_v33 = vpop.f32.mrf.mxu0  ;;  %v1359_v34 = vpop.f32.mrf.mxu1 }
 0x13c   : > { %v3328_v35 = vpop.f32.mrf.mxu0  ;;  %v3330_v36 = vpop.f32.mrf.mxu1 }
 0x13e   : > { %v1172_v37 = vpop.f32.mrf.mxu0  ;;  %v1364_v38 = vpop.f32.mrf.mxu1 }
 0x140   : > { %v3332_v39 = vpop.f32.mrf.mxu0  ;;  %v3334_v40 = vpop.f32.mrf.mxu1 }
 0x142   : > { %v1175_v41 = vpop.f32.mrf.mxu0  ;;  %v1367_v42 = vpop.f32.mrf.mxu1 }
 0x144   : > { %v3336_v43 = vpop.f32.mrf.mxu0  ;;  %v3338_v44 = vpop.f32.mrf.mxu1 }
 0x146   : > { %v1180_v45 = vpop.f32.mrf.mxu0  ;;  %v1372_v46 = vpop.f32.mrf.mxu1 }
 0x148   : > { %v3340_v47 = vpop.f32.mrf.mxu0  ;;  %v3342_v48 = vpop.f32.mrf.mxu1 }
 0x14a   : > { %v1183_v50 = vpop.f32.mrf.mxu0  ;;  %v1375_v53 = vpop.f32.mrf.mxu1 }
 0x14c   : > { %v3350_v57 = vpop.f32.mrf.mxu0  ;;  %v2767_v58 = vpop.f32.mrf.mxu1 }
 0x14d   : > { %v1420_v62 = vadd.f32 %v2767_v58, %v1131_v54  ;;  %v1142_v54 = vadd.f32 %v3347_v49, %v3302_v7 }
 0x14e   : > { %v1188_v1 = vpop.f32.mrf.mxu0  ;;  %v1411_v2 = vpop.f32.mrf.mxu1 }
 0x14f   : > { %v1668_v6 = vmax.f32 %v1420_v62, 0.0  ;;  %v1412_v9 = vadd.f32 %v1411_v2, %v1123_v61 }
 0x150   : > { %v3360_v13 = vpop.f32.mrf.mxu0  ;;  %v2768_v59 = vpop.f32.mrf.mxu1 }
 0x151   : > { %v1666_v51 = vmax.f32 %v1412_v9, 0.0  ;;  %v1423_v17 = vadd.f32 %v2768_v59, %v1134_v5  ;;  %v1739_v63 = vmul.f32 %v3358_v10, %v1668_v6  ;;  %v1163_v59 = vadd.f32 %v3347_v49, %v3320_v27 }
 0x152   : > { %v1191_v18 = vpop.f32.mrf.mxu0  ;;  %v1414_v21 = vpop.f32.mrf.mxu1 }
 0x153   : > { %v1669_v22 = vmax.f32 %v1423_v17, 0.0  ;;  %v1415_v25 = vadd.f32 %v1414_v21, %v1126_v14  ;;  %v1737_v34 = vmul.f32 %v3358_v10, %v1666_v51  ;;  %v1810_v45 = vadd.f32 %v3369_v29, %v1739_v63 }
 0x154   : > { %v3371_v30 = vpop.f32.mrf.mxu0  ;;  %v2771_v33 = vpop.f32.mrf.mxu1 }
 0x155   : > { %v1740_v37 = vmul.f32 %v3358_v10, %v1669_v22  ;;  %v1667_v38 = vmax.f32 %v1415_v25, 0.0  ;;  %v1436_v41 = vadd.f32 %v2771_v33, %v1147_v26  ;;  %v1808_v1 = vadd.f32 %v3369_v29, %v1737_v34 }
 0x156   : > { %v1196_v42 = vpop.f32.mrf.mxu0  ;;  %v1427_v11 = vpop.f32.mrf.mxu1  ;;  %v1155_v22 = vadd.f32 %v3347_v49, %v3312_v19 }
 0x157   : > { %v1811_v46 = vadd.f32 %v3369_v29, %v1740_v37  ;;  %v1738_v50 = vmul.f32 %v3358_v10, %v1667_v38  ;;  %v1428_v53 = vadd.f32 %v1427_v11, %v1139_v55  ;;  %v1672_v58 = vmax.f32 %v1436_v41, 0.0 }
 0x158   : > { %v3390_v61 = vpop.f32.mrf.mxu0  ;;  %v2772_v62 = vpop.f32.mrf.mxu1  ;;  %v1166_v41 = vadd.f32 %v3347_v49, %v3324_v31 }
 0x159   : > { %v2544_v2 = vpack.c.bf16 %v1811_v46, %v1810_v45  ;;  %v1809_v5 = vadd.f32 %v3369_v29, %v1738_v50  ;;  %v1670_v7 = vmax.f32 %v1428_v53, 0.0  ;;  %v1439_v6 = vadd.f32 %v2772_v62, %v1150_v3 }
 0x15a   : > { %v1199_v9 = vpop.f32.mrf.mxu0  ;;  %v1430_v15 = vpop.f32.mrf.mxu1  ;;  %v1743_v17 = vmul.f32 %v3358_v10, %v1672_v58  ;;  %v1158_v50 = vadd.f32 %v3347_v49, %v3316_v23 }
 0x15b   : > { %2696 = vst [vmem:[%s3388_s23 + $0x8] sm:$0xff] %v2544_v2   ;;  %v2539_v14 = vpack.c.bf16 %v1809_v5, %v1808_v1  ;;  %v1431_v51 = vadd.f32 %v1430_v15, %v1142_v54  ;;  %v1673_v18 = vmax.f32 %v1439_v6, 0.0  ;;  %v1741_v25 = vmul.f32 %v3358_v10, %v1670_v7 }
 0x15c   : > { %v3398_v21 = vpop.f32.mrf.mxu0  ;;  %v2775_v63 = vpop.f32.mrf.mxu1  ;;  %v1814_v42 = vadd.f32 %v3369_v29, %v1743_v17  ;;  %v1179_v2 = vadd.f32 %v3347_v49, %v3336_v43 }
 0x15d   : > { %2540 = vst [vmem:[%s3388_s23] sm:$0xff] %v2539_v14   ;;  %v1671_v26 = vmax.f32 %v1431_v51, 0.0  ;;  %v1452_v33 = vadd.f32 %v2775_v63, %v1163_v59  ;;  %v1744_v55 = vmul.f32 %v3358_v10, %v1673_v18  ;;  %v1812_v53 = vadd.f32 %v3369_v29, %v1741_v25 }
 0x15e   : > { %v1204_v27 = vpop.f32.mrf.mxu0  ;;  %v1443_v34 = vpop.f32.mrf.mxu1  ;;  %v1171_v59 = vadd.f32 %v3347_v49, %v3328_v35 }
 0x15f   : > { %v1742_v37 = vmul.f32 %v3358_v10, %v1671_v26  ;;  %v1444_v38 = vadd.f32 %v1443_v34, %v1155_v22  ;;  %v1815_v19 = vadd.f32 %v3369_v29, %v1744_v55  ;;  %v1676_v11 = vmax.f32 %v1452_v33, 0.0 }
 0x160   : > { %v3410_v45 = vpop.f32.mrf.mxu0  ;;  %v2776_v46 = vpop.f32.mrf.mxu1  ;;  %v1182_v26 = vadd.f32 %v3347_v49, %v3340_v47 }
 0x161   : > { %v1813_v54 = vadd.f32 %v3369_v29, %v1742_v37  ;;  %v1674_v3 = vmax.f32 %v1444_v38, 0.0  ;;  %v2554_v58 = vpack.c.bf16 %v1815_v19, %v1814_v42  ;;  %v1455_v31 = vadd.f32 %v2776_v46, %v1166_v41 }
 0x162   : > { %v1207_v62 = vpop.f32.mrf.mxu0  ;;  %v1446_v1 = vpop.f32.mrf.mxu1  ;;  %v1747_v6 = vmul.f32 %v3358_v10, %v1676_v11  ;;  %v1174_v37 = vadd.f32 %v3347_v49, %v3332_v39 }
 0x163   : > { %v2549_v5 = vpack.c.bf16 %v1813_v54, %v1812_v53  ;;  %v1447_v7 = vadd.f32 %v1446_v1, %v1158_v50  ;;  %2698 = vst [vmem:[%s3388_s23 + $0x18] sm:$0xff] %v2554_v58   ;;  %v1677_v9 = vmax.f32 %v1455_v31, 0.0  ;;  %v1745_v14 = vmul.f32 %v3358_v10, %v1674_v3 }
 0x164   : > { %v1210_v23 = vpop.f32.mrf.mxu0  ;;  %v2779_v15 = vpop.f32.mrf.mxu1  ;;  %v1818_v33 = vadd.f32 %v3369_v29, %v1747_v6  ;;  %v1195_v50 = vadd.f32 %v3347_v49, %v3371_v30  ;;  %v1187_v62 = vadd.f32 %v3347_v49, %v3350_v57 }
 0x165   : > { %2697 = vst [vmem:[%s3388_s23 + $0x10] sm:$0xff] %v2549_v5   ;;  %v1675_v51 = vmax.f32 %v1447_v7, 0.0  ;;  %v1468_v17 = vadd.f32 %v2779_v15, %v1179_v2  ;;  %v1748_v18 = vmul.f32 %v3358_v10, %v1677_v9  ;;  %v1816_v38 = vadd.f32 %v3369_v29, %v1745_v14 }
 0x166   : > { %v1212_v63 = vpop.f32.mrf.mxu0  ;;  %v1459_v43 = vpop.f32.mrf.mxu1 }
 0x167   : > { %v1746_v22 = vmul.f32 %v3358_v10, %v1675_v51  ;;  %v1460_v25 = vadd.f32 %v1459_v43, %v1171_v59  ;;  %v1819_v35 = vadd.f32 %v3369_v29, %v1748_v18  ;;  %v1680_v55 = vmax.f32 %v1468_v17, 0.0 }
 0x168   : > { %v1213_v27 = vpop.f32.mrf.mxu0  ;;  %v2780_v34 = vpop.f32.mrf.mxu1  ;;  %v1198_v59 = vadd.f32 %v3347_v49, %v3390_v61  ;;  %v1190_v63 = vadd.f32 %v3347_v49, %v3360_v13 }
 0x169   : > { %v1817_v41 = vadd.f32 %v3369_v29, %v1746_v22  ;;  %v1678_v42 = vmax.f32 %v1460_v25, 0.0  ;;  %v2564_v19 = vpack.c.bf16 %v1819_v35, %v1818_v33  ;;  %v1471_v11 = vadd.f32 %v2780_v34, %v1182_v26 }
 0x16a   : > { %v1215_v47 = vpop.f32.mrf.mxu0  ;;  %v1462_v46 = vpop.f32.mrf.mxu1  ;;  %v1751_v3 = vmul.f32 %v3358_v10, %v1680_v55  ;;  %v1211_v55 = vadd.f32 %v3347_v49, %v1210_v23 }
 0x16b   : > { %v2559_v53 = vpack.c.bf16 %v1817_v41, %v1816_v38  ;;  %v1463_v54 = vadd.f32 %v1462_v46, %v1174_v37  ;;  %2700 = vst [vmem:[%s3388_s23 + $0x28] sm:$0xff] %v2564_v19   ;;  %v1681_v58 = vmax.f32 %v1471_v11, 0.0  ;;  %v1749_v1 = vmul.f32 %v3358_v10, %v1678_v42 }
 0x16c   : > { %v3438_v39 = vpop.f32.mrf.mxu0  ;;  %v2783_v31 = vpop.f32.mrf.mxu1  ;;  %v1822_v14 = vadd.f32 %v3369_v29, %v1751_v3  ;;  %v1203_v19 = vadd.f32 %v3347_v49, %v3398_v21 }
 0x16d   : > { %2699 = vst [vmem:[%s3388_s23 + $0x20] sm:$0xff] %v2559_v53   ;;  %v1679_v2 = vmax.f32 %v1463_v54, 0.0  ;;  %v1484_v5 = vadd.f32 %v2783_v31, %v1195_v50  ;;  %v1752_v7 = vmul.f32 %v3358_v10, %v1681_v58  ;;  %v1820_v43 = vadd.f32 %v3369_v29, %v1749_v1 }
 0x16e   : > { %v1220_v30 = vpop.f32.mrf.mxu0  ;;  %v1475_v6 = vpop.f32.mrf.mxu1  ;;  %v1214_v58 = vadd.f32 %v3347_v49, %v1213_v27 }
 0x16f   : > { %v1750_v9 = vmul.f32 %v3358_v10, %v1679_v2  ;;  %v1476_v15 = vadd.f32 %v1475_v6, %v1187_v62  ;;  %v1823_v57 = vadd.f32 %v3369_v29, %v1752_v7  ;;  %v1684_v51 = vmax.f32 %v1484_v5, 0.0 }
 0x170   : > { %v3450_v17 = vpop.f32.mrf.mxu0  ;;  %v2784_v18 = vpop.f32.mrf.mxu1  ;;  %v1206_v5 = vadd.f32 %v3347_v49, %v3410_v45 }
 0x171   : > { %v1821_v22 = vadd.f32 %v3369_v29, %v1750_v9  ;;  %v1682_v25 = vmax.f32 %v1476_v15, 0.0  ;;  %v2574_v26 = vpack.c.bf16 %v1823_v57, %v1822_v14  ;;  %v1487_v61 = vadd.f32 %v2784_v18, %v1198_v59 }
 0x172   : > { %v1223_v33 = vpop.f32.mrf.mxu0  ;;  %v1478_v35 = vpop.f32.mrf.mxu1  ;;  %v1755_v38 = vmul.f32 %v3358_v10, %v1684_v51 }
 0x173   : > { %v2569_v34 = vpack.c.bf16 %v1821_v22, %v1820_v43  ;;  %v1479_v37 = vadd.f32 %v1478_v35, %v1190_v63  ;;  %2702 = vst [vmem:[%s3388_s23 + $0x38] sm:$0xff] %v2574_v26   ;;  %v1685_v41 = vmax.f32 %v1487_v61, 0.0  ;;  %v1753_v11 = vmul.f32 %v3358_v10, %v1682_v25 }
 0x174   : > { %v1226_v42 = vpop.f32.mrf.mxu0  ;;  %v2787_v13 = vpop.f32.mrf.mxu1  ;;  %v1826_v31 = vadd.f32 %v3369_v29, %v1755_v38  ;;  %v1219_v22 = vadd.f32 %v3347_v49, %v3438_v39 }
 0x175   : > { %2701 = vst [vmem:[%s3388_s23 + $0x30] sm:$0xff] %v2569_v34   ;;  %v1683_v47 = vmax.f32 %v1479_v37, 0.0  ;;  %v1500_v46 = vadd.f32 %v2787_v13, %v1211_v55  ;;  %v1756_v50 = vmul.f32 %v3358_v10, %v1685_v41  ;;  %v1824_v7 = vadd.f32 %v3369_v29, %v1753_v11 }
 0x176   : > { %v1228_v53 = vpop.f32.mrf.mxu0  ;;  %v1491_v23 = vpop.f32.mrf.mxu1  ;;  %v1227_v57 = vadd.f32 %v3347_v49, %v1226_v42  ;;  %v1222_v11 = vadd.f32 %v3347_v49, %v3450_v17 }
 0x177   : > { %v1754_v54 = vmul.f32 %v3358_v10, %v1683_v47  ;;  %v1492_v3 = vadd.f32 %v1491_v23, %v1203_v19  ;;  %v1827_v62 = vadd.f32 %v3369_v29, %v1756_v50  ;;  %v1688_v21 = vmax.f32 %v1500_v46, 0.0 }
 0x178   : > { %v1229_v1 = vpop.f32.mrf.mxu0  ;;  %v2788_v2 = vpop.f32.mrf.mxu1 }
 0x179   : > { %v1825_v30 = vadd.f32 %v3369_v29, %v1754_v54  ;;  %v1686_v6 = vmax.f32 %v1492_v3, 0.0  ;;  %v2584_v9 = vpack.c.bf16 %v1827_v62, %v1826_v31  ;;  %v1503_v15 = vadd.f32 %v2788_v2, %v1214_v58 }
 0x17a   : > { %v1231_v27 = vpop.f32.mrf.mxu0  ;;  %v1494_v59 = vpop.f32.mrf.mxu1  ;;  %v1759_v18 = vmul.f32 %v3358_v10, %v1688_v21  ;;  %v1230_v41 = vadd.f32 %v3347_v49, %v1229_v1 }
 0x17b   : > { %v2579_v14 = vpack.c.bf16 %v1825_v30, %v1824_v7  ;;  %v1495_v51 = vadd.f32 %v1494_v59, %v1206_v5  ;;  %2704 = vst [vmem:[%s3388_s23 + $0x48] sm:$0xff] %v2584_v9   ;;  %v1689_v63 = vmax.f32 %v1503_v15, 0.0  ;;  %v1757_v25 = vmul.f32 %v3358_v10, %v1686_v6 }
 0x17c   : > { %v1234_v43 = vpop.f32.mrf.mxu0  ;;  %v2791_v45 = vpop.f32.mrf.mxu1  ;;  %v1830_v38 = vadd.f32 %v3369_v29, %v1759_v18 }
 0x17d   : > { %2703 = vst [vmem:[%s3388_s23 + $0x40] sm:$0xff] %v2579_v14   ;;  %v1687_v26 = vmax.f32 %v1495_v51, 0.0  ;;  %v1516_v61 = vadd.f32 %v2791_v45, %v1227_v57  ;;  %v1760_v33 = vmul.f32 %v3358_v10, %v1689_v63  ;;  %v1828_v47 = vadd.f32 %v3369_v29, %v1757_v25 }
 0x17e   : > { %v1236_v35 = vpop.f32.mrf.mxu0  ;;  %v1507_v55 = vpop.f32.mrf.mxu1  ;;  %v1235_v17 = vadd.f32 %v3347_v49, %v1234_v43 }
 0x17f   : > { %v1758_v34 = vmul.f32 %v3358_v10, %v1687_v26  ;;  %v1508_v37 = vadd.f32 %v1507_v55, %v1219_v22  ;;  %v1831_v42 = vadd.f32 %v3369_v29, %v1760_v33  ;;  %v1692_v39 = vmax.f32 %v1516_v61, 0.0 }
 0x180   : > { %v1237_v13 = vpop.f32.mrf.mxu0  ;;  %v2792_v19 = vpop.f32.mrf.mxu1 }
 0x181   : > { %v1829_v46 = vadd.f32 %v3369_v29, %v1758_v34  ;;  %v1690_v50 = vmax.f32 %v1508_v37, 0.0  ;;  %v2594_v53 = vpack.c.bf16 %v1831_v42, %v1830_v38  ;;  %v1519_v23 = vadd.f32 %v2792_v19, %v1230_v41 }
 0x182   : > { %v1239_v54 = vpop.f32.mrf.mxu0  ;;  %v1510_v3 = vpop.f32.mrf.mxu1  ;;  %v1763_v62 = vmul.f32 %v3358_v10, %v1692_v39  ;;  %v1238_v26 = vadd.f32 %v3347_v49, %v1237_v13 }
 0x183   : > { %v2589_v58 = vpack.c.bf16 %v1829_v46, %v1828_v47  ;;  %v1511_v31 = vadd.f32 %v1510_v3, %v1222_v11  ;;  %2706 = vst [vmem:[%s3388_s23 + $0x58] sm:$0xff] %v2594_v53   ;;  %v1693_v21 = vmax.f32 %v1519_v23, 0.0  ;;  %v1761_v5 = vmul.f32 %v3358_v10, %v1690_v50 }
 0x184   : > { %v1242_v1 = vpop.f32.mrf.mxu0  ;;  %v2795_v2 = vpop.f32.mrf.mxu1  ;;  %v1834_v57 = vadd.f32 %v3369_v29, %v1763_v62 }
 0x185   : > { %2705 = vst [vmem:[%s3388_s23 + $0x50] sm:$0xff] %v2589_v58   ;;  %v1691_v7 = vmax.f32 %v1511_v31, 0.0  ;;  %v1243_v30 = vadd.f32 %v3347_v49, %v1242_v1  ;;  %v1764_v6 = vmul.f32 %v3358_v10, %v1693_v21  ;;  %v1832_v43 = vadd.f32 %v3369_v29, %v1761_v5 }
 0x186   : > { %v1244_v9 = vpop.f32.mrf.mxu0  ;;  %v1523_v15 = vpop.f32.mrf.mxu1 }
 0x187   : > { %v1762_v27 = vmul.f32 %v3358_v10, %v1691_v7  ;;  %v1532_v59 = vadd.f32 %v2795_v2, %v1243_v30  ;;  %v1524_v14 = vadd.f32 %v1523_v15, %v1235_v17  ;;  %v1835_v51 = vadd.f32 %v3369_v29, %v1764_v6 }
 0x188   : > { %v1245_v18 = vpop.f32.mrf.mxu0  ;;  %v2796_v63 = vpop.f32.mrf.mxu1 }
 0x189   : > { %v1833_v45 = vadd.f32 %v3369_v29, %v1762_v27  ;;  %v1696_v22 = vmax.f32 %v1532_v59, 0.0  ;;  %v1246_v25 = vadd.f32 %v3347_v49, %v1245_v18  ;;  %v2604_v61 = vpack.c.bf16 %v1835_v51, %v1834_v57 }
 0x18a   : > { %v1694_v33 = vmax.f32 %v1524_v14, 0.0  ;;  %v1247_v35 = vpop.f32.mrf.mxu0  ;;  %v1526_v55 = vpop.f32.mrf.mxu1 }
 0x18b   : > { %v2599_v34 = vpack.c.bf16 %v1833_v45, %v1832_v43  ;;  %v1535_v37 = vadd.f32 %v2796_v63, %v1246_v25  ;;  %2708 = vst [vmem:[%s3388_s23 + $0x68] sm:$0xff] %v2604_v61   ;;  %v1527_v38 = vadd.f32 %v1526_v55, %v1238_v26  ;;  %v1767_v39 = vmul.f32 %v3358_v10, %v1696_v22 }
 0x18c   : > { %v1250_v41 = vpop.f32.mrf.mxu0  ;;  %v2799_v42 = vpop.f32.mrf.mxu1  ;;  %v1765_v47 = vmul.f32 %v3358_v10, %v1694_v33 }
 0x18d   : > { %2707 = vst [vmem:[%s3388_s23 + $0x60] sm:$0xff] %v2599_v34   ;;  %v1697_v19 = vmax.f32 %v1535_v37, 0.0  ;;  %v1251_v11 = vadd.f32 %v3347_v49, %v1250_v41  ;;  %v1695_v46 = vmax.f32 %v1527_v38, 0.0  ;;  %v1838_v31 = vadd.f32 %v3369_v29, %v1767_v39 }
 0x18e   : > { %v1252_v13 = vpop.f32.mrf.mxu0  ;;  %v1539_v50 = vpop.f32.mrf.mxu1  ;;  %v1836_v2 = vadd.f32 %v3369_v29, %v1765_v47 }
 0x18f   : > { %v1768_v53 = vmul.f32 %v3358_v10, %v1697_v19  ;;  %v1540_v23 = vadd.f32 %v1539_v50, %v1251_v11  ;;  %v1766_v54 = vmul.f32 %v3358_v10, %v1695_v46 }
 0x190   : > { %v1253_v3 = vpop.f32.mrf.mxu0  ;;  %v2800_v58 = vpop.f32.mrf.mxu1 }
 0x191   : > { %v1839_v62 = vadd.f32 %v3369_v29, %v1768_v53  ;;  %v1698_v21 = vmax.f32 %v1540_v23, 0.0  ;;  %v1254_v1 = vadd.f32 %v3347_v49, %v1253_v3  ;;  %v1837_v17 = vadd.f32 %v3369_v29, %v1766_v54 }
 0x192   : > { %v1255_v5 = vpop.f32.mrf.mxu0  ;;  %v1542_v7 = vpop.f32.mrf.mxu1 }
 0x193   : > { %v2614_v30 = vpack.c.bf16 %v1839_v62, %v1838_v31  ;;  %v1543_v6 = vadd.f32 %v1542_v7, %v1254_v1  ;;  %v2609_v9 = vpack.c.bf16 %v1837_v17, %v1836_v2  ;;  %v1769_v59 = vmul.f32 %v3358_v10, %v1698_v21 }
 0x194   : > { %v1258_v15 = vpop.f32.mrf.mxu0  ;;  %v2803_v27 = vpop.f32.mrf.mxu1 }
 0x195   : > { %2710 = vst [vmem:[%s3388_s23 + $0x78] sm:$0xff] %v2614_v30   ;;  %v1699_v14 = vmax.f32 %v1543_v6, 0.0  ;;  %v1259_v57 = vadd.f32 %v3347_v49, %v1258_v15  ;;  %2709 = vst [vmem:[%s3388_s23 + $0x70] sm:$0xff] %v2609_v9   ;;  %v1840_v25 = vadd.f32 %v3369_v29, %v1769_v59 }
 0x196   : > { %v1260_v51 = vpop.f32.mrf.mxu0  ;;  %v1555_v18 = vpop.f32.mrf.mxu1 }
 0x197   : > { %v1770_v63 = vmul.f32 %v3358_v10, %v1699_v14  ;;  %v1548_v43 = vadd.f32 %v2799_v42, %v1259_v57 }
 0x198   : > { %v1261_v45 = vpop.f32.mrf.mxu0  ;;  %v2804_v22 = vpop.f32.mrf.mxu1 }
 0x199   : > { %v1841_v26 = vadd.f32 %v3369_v29, %v1770_v63  ;;  %v1700_v61 = vmax.f32 %v1548_v43, 0.0  ;;  %v1262_v33 = vadd.f32 %v3347_v49, %v1261_v45 }
 0x19a   : > { %v1263_v35 = vpop.f32.mrf.mxu0  ;;  %v1558_v55 = vpop.f32.mrf.mxu1 }
 0x19b   : > { %v2619_v34 = vpack.c.bf16 %v1841_v26, %v1840_v25  ;;  %v1551_v37 = vadd.f32 %v2800_v58, %v1262_v33  ;;  %v1771_v39 = vmul.f32 %v3358_v10, %v1700_v61  ;;  %v1323_v26 = vadd.f32 %v3347_v49, %v3294_v60 }
 0x19c   : > { %v1266_v38 = vpop.f32.mrf.mxu0  ;;  %v3522_v41 = vpop.f32.mrf.mxu1 }
 0x19d   : > { %2711 = vst [vmem:[%s3388_s23 + $0x80] sm:$0xff] %v2619_v34   ;;  %v1701_v42 = vmax.f32 %v1551_v37, 0.0  ;;  %v1267_v19 = vadd.f32 %v3347_v49, %v1266_v38  ;;  %v1842_v23 = vadd.f32 %v3369_v29, %v1771_v39 }
 0x19e   : > { %v1268_v11 = vpop.f32.mrf.mxu0  ;;  %v1571_v47 = vpop.f32.mrf.mxu1 }
 0x19f   : > { %v1772_v46 = vmul.f32 %v3358_v10, %v1701_v42  ;;  %v1556_v13 = vadd.f32 %v1555_v18, %v1267_v19 }
 0x1a0   : > { %v1269_v50 = vpop.f32.mrf.mxu0  ;;  %v3528_v53 = vpop.f32.mrf.mxu1 }
 0x1a1   : > { %v1843_v54 = vadd.f32 %v3369_v29, %v1772_v46  ;;  %v1702_v3 = vmax.f32 %v1556_v13, 0.0  ;;  %v1270_v58 = vadd.f32 %v3347_v49, %v1269_v50 }
 0x1a2   : > { %v1271_v31 = vpop.f32.mrf.mxu0  ;;  %v1574_v62 = vpop.f32.mrf.mxu1 }
 0x1a3   : > { %v2624_v21 = vpack.c.bf16 %v1843_v54, %v1842_v23  ;;  %v1559_v1 = vadd.f32 %v1558_v55, %v1270_v58  ;;  %v1773_v5 = vmul.f32 %v3358_v10, %v1702_v3 }
 0x1a4   : > { %v1274_v2 = vpop.f32.mrf.mxu0  ;;  %v3533_v17 = vpop.f32.mrf.mxu1 }
 0x1a5   : > { %2712 = vst [vmem:[%s3388_s23 + $0x88] sm:$0xff] %v2624_v21   ;;  %v1703_v7 = vmax.f32 %v1559_v1, 0.0  ;;  %v1275_v30 = vadd.f32 %v3347_v49, %v1274_v2  ;;  %v1844_v51 = vadd.f32 %v3369_v29, %v1773_v5  ;;  %v1331_v21 = vadd.f32 %v3347_v49, %v3300_v4 }
 0x1a6   : > { %v1276_v6 = vpop.f32.mrf.mxu0  ;;  %v3538_v9 = vpop.f32.mrf.mxu1  ;;  %v1339_v5 = vadd.f32 %v3347_v49, %v3306_v12 }
 0x1a7   : > { %v1774_v15 = vmul.f32 %v3358_v10, %v1703_v7  ;;  %v1564_v59 = vadd.f32 %v2803_v27, %v1275_v30  ;;  %v1315_v27 = vadd.f32 %v3347_v49, %v3288_v52  ;;  %v1326_v52 = vadd.f32 %v3347_v49, %v3296_v0 }
 0x1a8   : > { %v1277_v14 = vpop.f32.mrf.mxu0  ;;  %v3541_v57 = vpop.f32.mrf.mxu1  ;;  %v1342_v7 = vadd.f32 %v3347_v49, %v3310_v16  ;;  %v3580_v16 = vadd.f32 %v3347_v49, %v3318_v24 }
 0x1a9   : > { %v1845_v18 = vadd.f32 %v3369_v29, %v1774_v15  ;;  %v1704_v63 = vmax.f32 %v1564_v59, 0.0  ;;  %v1278_v43 = vadd.f32 %v3347_v49, %v1277_v14 }
 0x1aa   : > { %v1279_v45 = vpop.f32.mrf.mxu0  ;;  %v3546_v25 = vpop.f32.mrf.mxu1 }
 0x1ab   : > { %v2629_v61 = vpack.c.bf16 %v1845_v18, %v1844_v51  ;;  %v1567_v33 = vadd.f32 %v2804_v22, %v1278_v43  ;;  %v1775_v34 = vmul.f32 %v3358_v10, %v1704_v63  ;;  %v1318_v22 = vadd.f32 %v3347_v49, %v3292_v56 }
 0x1ac   : > { %v1282_v35 = vpop.f32.mrf.mxu0  ;;  %v2815_v55 = vpop.f32.mrf.mxu1  ;;  %v1347_v18 = vadd.f32 %v3347_v49, %v3314_v20 }
 0x1ad   : > { %2713 = vst [vmem:[%s3388_s23 + $0x90] sm:$0xff] %v2629_v61   ;;  %v1705_v37 = vmax.f32 %v1567_v33, 0.0  ;;  %v1283_v38 = vadd.f32 %v3347_v49, %v1282_v35  ;;  %v1612_v39 = vadd.f32 %v2815_v55, %v1323_v26  ;;  %v1846_v54 = vadd.f32 %v3369_v29, %v1775_v34 }
 0x1ae   : > { %v1284_v42 = vpop.f32.mrf.mxu0  ;;  %v1603_v19 = vpop.f32.mrf.mxu1 }
 0x1af   : > { %v1776_v11 = vmul.f32 %v3358_v10, %v1705_v37  ;;  %v1572_v46 = vadd.f32 %v1571_v47, %v1283_v38  ;;  %v1716_v60 = vmax.f32 %v1612_v39, 0.0  ;;  %v1604_v13 = vadd.f32 %v1603_v19, %v1315_v27 }
 0x1b0   : > { %v1285_v50 = vpop.f32.mrf.mxu0  ;;  %v2816_v23 = vpop.f32.mrf.mxu1  ;;  %v1334_v47 = vadd.f32 %v3347_v49, %v3304_v8 }
 0x1b1   : > { %v1847_v3 = vadd.f32 %v3369_v29, %v1776_v11  ;;  %v1706_v58 = vmax.f32 %v1572_v46, 0.0  ;;  %v1714_v31 = vmax.f32 %v1604_v13, 0.0  ;;  %v1286_v56 = vadd.f32 %v3347_v49, %v1285_v50 }
 0x1b2   : > { %v1615_v1 = vadd.f32 %v2816_v23, %v1326_v52  ;;  %v1287_v2 = vpop.f32.mrf.mxu0  ;;  %v1606_v0 = vpop.f32.mrf.mxu1  ;;  %v1787_v6 = vmul.f32 %v3358_v10, %v1716_v60 }
 0x1b3   : > { %v2634_v30 = vpack.c.bf16 %v1847_v3, %v1846_v54  ;;  %v1777_v4 = vmul.f32 %v3358_v10, %v1706_v58  ;;  %v1575_v15 = vadd.f32 %v1574_v62, %v1286_v56  ;;  %v1607_v8 = vadd.f32 %v1606_v0, %v1318_v22 }
 0x1b4   : > { %v1717_v59 = vmax.f32 %v1615_v1, 0.0  ;;  %v1290_v14 = vpop.f32.mrf.mxu0  ;;  %v2819_v51 = vpop.f32.mrf.mxu1  ;;  %v1785_v63 = vmul.f32 %v3358_v10, %v1714_v31  ;;  %v1858_v27 = vadd.f32 %v3369_v29, %v1787_v6  ;;  %v1355_v54 = vadd.f32 %v3347_v49, %v3322_v28 }
 0x1b5   : > { %2714 = vst [vmem:[%s3388_s23 + $0x98] sm:$0xff] %v2634_v30   ;;  %v1291_v12 = vadd.f32 %v3347_v49, %v1290_v14  ;;  %v1628_v43 = vadd.f32 %v2819_v51, %v1339_v5  ;;  %v1707_v45 = vmax.f32 %v1575_v15, 0.0  ;;  %v1715_v26 = vmax.f32 %v1607_v8, 0.0 }
 0x1b6   : > { %v1788_v62 = vmul.f32 %v3358_v10, %v1717_v59  ;;  %v1292_v61 = vpop.f32.mrf.mxu0  ;;  %v1619_v33 = vpop.f32.mrf.mxu1  ;;  %v1848_v34 = vadd.f32 %v3369_v29, %v1777_v4  ;;  %v1856_v19 = vadd.f32 %v3369_v29, %v1785_v63  ;;  %v1363_v28 = vadd.f32 %v3347_v49, %v3330_v36 }
 0x1b7   : > { %v1580_v20 = vadd.f32 %v3522_v41, %v1291_v12  ;;  %v1720_v35 = vmax.f32 %v1628_v43, 0.0  ;;  %v1620_v55 = vadd.f32 %v1619_v33, %v1331_v21  ;;  %v1778_v37 = vmul.f32 %v3358_v10, %v1707_v45 }
 0x1b8   : > { %v1859_v38 = vadd.f32 %v3369_v29, %v1788_v62  ;;  %v1786_v24 = vmul.f32 %v3358_v10, %v1715_v26  ;;  %v1293_v39 = vpop.f32.mrf.mxu0  ;;  %v2820_v42 = vpop.f32.mrf.mxu1 }
 0x1b9   : > { %v1708_v11 = vmax.f32 %v1580_v20, 0.0  ;;  %v1718_v46 = vmax.f32 %v1620_v55, 0.0  ;;  %v1294_v60 = vadd.f32 %v3347_v49, %v1293_v39  ;;  %v1849_v41 = vadd.f32 %v3369_v29, %v1778_v37 }
 0x1ba   : > { %v2664_v13 = vpack.c.bf16 %v1859_v38, %v1858_v27  ;;  %v1857_v22 = vadd.f32 %v3369_v29, %v1786_v24  ;;  %v1631_v52 = vadd.f32 %v2820_v42, %v1342_v7  ;;  %v1295_v50 = vpop.f32.mrf.mxu0  ;;  %v1622_v23 = vpop.f32.mrf.mxu1  ;;  %v1791_v58 = vmul.f32 %v3358_v10, %v1720_v35 }
 0x1bb   : > { %v1779_v3 = vmul.f32 %v3358_v10, %v1708_v11  ;;  %v1583_v31 = vadd.f32 %v3528_v53, %v1294_v60  ;;  %v2639_v21 = vpack.c.bf16 %v1849_v41, %v1848_v34  ;;  %v1623_v2 = vadd.f32 %v1622_v23, %v1334_v47 }
 0x1bc   : > { %2720 = vst [vmem:[%s3388_s23 + $0xc8] sm:$0xff] %v2664_v13   ;;  %v2659_v56 = vpack.c.bf16 %v1857_v22, %v1856_v19  ;;  %v1721_v1 = vmax.f32 %v1631_v52, 0.0  ;;  %v1298_v0 = vpop.f32.mrf.mxu0  ;;  %v2823_v5 = vpop.f32.mrf.mxu1  ;;  %v1358_v7 = vadd.f32 %v3347_v49, %v3326_v32  ;;  %v1789_v53 = vmul.f32 %v3358_v10, %v1718_v46 }
 0x1bd   : > { %v1709_v30 = vmax.f32 %v1583_v31, 0.0  ;;  %v1299_v6 = vadd.f32 %v3347_v49, %v1298_v0  ;;  %2715 = vst [vmem:[%s3388_s23 + $0xa0] sm:$0xff] %v2639_v21   ;;  %v1719_v15 = vmax.f32 %v1623_v2, 0.0  ;;  %v1644_v59 = vadd.f32 %v2823_v5, %v1355_v54 }
 0x1be   : > { %2719 = vst [vmem:[%s3388_s23 + $0xc0] sm:$0xff] %v2659_v56   ;;  %v1792_v4 = vmul.f32 %v3358_v10, %v1721_v1  ;;  %v1300_v47 = vpop.f32.mrf.mxu0  ;;  %v1635_v8 = vpop.f32.mrf.mxu1  ;;  %v1862_v14 = vadd.f32 %v3369_v29, %v1791_v58  ;;  %v1850_v63 = vadd.f32 %v3369_v29, %v1779_v3  ;;  %v1860_v35 = vadd.f32 %v3369_v29, %v1789_v53 }
 0x1bf   : > { %v1780_v32 = vmul.f32 %v3358_v10, %v1709_v30  ;;  %v1588_v51 = vadd.f32 %v3538_v9, %v1299_v6  ;;  %v1636_v36 = vadd.f32 %v1635_v8, %v1347_v18  ;;  %v1790_v43 = vmul.f32 %v3358_v10, %v1719_v15 }
 0x1c0   : > { %v1863_v12 = vadd.f32 %v3369_v29, %v1792_v4  ;;  %v1724_v45 = vmax.f32 %v1644_v59, 0.0  ;;  %v1301_v62 = vpop.f32.mrf.mxu0  ;;  %v2824_v26 = vpop.f32.mrf.mxu1  ;;  %v1371_v38 = vadd.f32 %v3347_v49, %v3338_v44  ;;  %v1366_v22 = vadd.f32 %v3347_v49, %v3334_v40 }
 0x1c1   : > { %v1851_v61 = vadd.f32 %v3369_v29, %v1780_v32  ;;  %v1710_v33 = vmax.f32 %v1588_v51, 0.0  ;;  %v1722_v27 = vmax.f32 %v1636_v36, 0.0  ;;  %v1302_v20 = vadd.f32 %v3347_v49, %v1301_v62 }
 0x1c2   : > { %v2674_v9 = vpack.c.bf16 %v1863_v12, %v1862_v14  ;;  %v1861_v18 = vadd.f32 %v3369_v29, %v1790_v43  ;;  %v1647_v55 = vadd.f32 %v2824_v26, %v1358_v7  ;;  %v1303_v34 = vpop.f32.mrf.mxu0  ;;  %v1638_v37 = vpop.f32.mrf.mxu1  ;;  %v1795_v39 = vmul.f32 %v3358_v10, %v1724_v45 }
 0x1c3   : > { %v2644_v24 = vpack.c.bf16 %v1851_v61, %v1850_v63  ;;  %v1591_v42 = vadd.f32 %v3546_v25, %v1302_v20  ;;  %v1781_v11 = vmul.f32 %v3358_v10, %v1710_v33  ;;  %v1639_v60 = vadd.f32 %v1638_v37, %v3580_v16 }
 0x1c4   : > { %2722 = vst [vmem:[%s3388_s23 + $0xd8] sm:$0xff] %v2674_v9   ;;  %v2669_v19 = vpack.c.bf16 %v1861_v18, %v1860_v35  ;;  %v1725_v46 = vmax.f32 %v1647_v55, 0.0  ;;  %v1306_v41 = vpop.f32.mrf.mxu0  ;;  %v2827_v13 = vpop.f32.mrf.mxu1  ;;  %v1793_v44 = vmul.f32 %v3358_v10, %v1722_v27  ;;  %v1374_v25 = vadd.f32 %v3347_v49, %v3342_v48 }
 0x1c5   : > { %2716 = vst [vmem:[%s3388_s23 + $0xa8] sm:$0xff] %v2644_v24   ;;  %v1711_v52 = vmax.f32 %v1591_v42, 0.0  ;;  %v1307_v50 = vadd.f32 %v3347_v49, %v1306_v41  ;;  %v1723_v54 = vmax.f32 %v1639_v60, 0.0  ;;  %v1660_v3 = vadd.f32 %v2827_v13, %v1371_v38 }
 0x1c6   : > { %2721 = vst [vmem:[%s3388_s23 + $0xd0] sm:$0xff] %v2669_v19   ;;  %v1796_v23 = vmul.f32 %v3358_v10, %v1725_v46  ;;  %v1308_v16 = vpop.f32.mrf.mxu0  ;;  %v1651_v58 = vpop.f32.mrf.mxu1  ;;  %v1866_v31 = vadd.f32 %v3369_v29, %v1795_v39  ;;  %v1852_v1 = vadd.f32 %v3369_v29, %v1781_v11  ;;  %v1864_v30 = vadd.f32 %v3369_v29, %v1793_v44 }
 0x1c7   : > { %v1782_v40 = vmul.f32 %v3358_v10, %v1711_v52  ;;  %v1596_v21 = vadd.f32 %v3533_v17, %v1307_v50  ;;  %v1652_v56 = vadd.f32 %v1651_v58, %v1363_v28  ;;  %v1794_v48 = vmul.f32 %v3358_v10, %v1723_v54 }
 0x1c8   : > { %v1867_v2 = vadd.f32 %v3369_v29, %v1796_v23  ;;  %v1728_v0 = vmax.f32 %v1660_v3, 0.0  ;;  %v1309_v5 = vpop.f32.mrf.mxu0  ;;  %v2828_v7 = vpop.f32.mrf.mxu1 }
 0x1c9   : > { %v1853_v6 = vadd.f32 %v3369_v29, %v1782_v40  ;;  %v1712_v53 = vmax.f32 %v1596_v21, 0.0  ;;  %v1310_v4 = vadd.f32 %v3347_v49, %v1309_v5  ;;  %v1865_v28 = vadd.f32 %v3369_v29, %v1794_v48 }
 0x1ca   : > { %v2684_v17 = vpack.c.bf16 %v1867_v2, %v1866_v31  ;;  %v1726_v15 = vmax.f32 %v1652_v56, 0.0  ;;  %v1663_v59 = vadd.f32 %v2828_v7, %v1374_v25  ;;  %v1311_v47 = vpop.f32.mrf.mxu0  ;;  %v1654_v8 = vpop.f32.mrf.mxu1  ;;  %v1799_v36 = vmul.f32 %v3358_v10, %v1728_v0 }
 0x1cb   : > { %v2649_v14 = vpack.c.bf16 %v1853_v6, %v1852_v1  ;;  %v1599_v32 = vadd.f32 %v3541_v57, %v1310_v4  ;;  %v2679_v51 = vpack.c.bf16 %v1865_v28, %v1864_v30  ;;  %v1655_v12 = vadd.f32 %v1654_v8, %v1366_v22 }
 0x1cc   : > { %2724 = vst [vmem:[%s3388_s23 + $0xe8] sm:$0xff] %v2684_v17   ;;  %v1729_v63 = vmax.f32 %v1663_v59, 0.0  ;;  %v1783_v49 = vmul.f32 %v3358_v10, %v1712_v53  ;;  %v1797_v45 = vmul.f32 %v3358_v10, %v1726_v15  ;;  %v1870_v61 = vadd.f32 %v3369_v29, %v1799_v36 }
 0x1cd   : > { %2717 = vst [vmem:[%s3388_s23 + $0xb0] sm:$0xff] %v2649_v14   ;;  %v1713_v43 = vmax.f32 %v1599_v32, 0.0  ;;  %2723 = vst [vmem:[%s3388_s23 + $0xe0] sm:$0xff] %v2679_v51   ;;  %v1727_v26 = vmax.f32 %v1655_v12, 0.0 }
 0x1ce   : > { %v1800_v62 = vmul.f32 %v3358_v10, %v1729_v63  ;;  %v1854_v20 = vadd.f32 %v3369_v29, %v1783_v49  ;;  %v1868_v9 = vadd.f32 %v3369_v29, %v1797_v45 }
 0x1cf   : > { %v1784_v57 = vmul.f32 %v3358_v10, %v1713_v43  ;;  %v1798_v27 = vmul.f32 %v3358_v10, %v1727_v26 }
 0x1d0   : > { %v1871_v33 = vadd.f32 %v3369_v29, %v1800_v62 }
 0x1d1   : > { %v1855_v35 = vadd.f32 %v3369_v29, %v1784_v57  ;;  %v1869_v55 = vadd.f32 %v3369_v29, %v1798_v27 }
 0x1d2   : > { %v2694_v18 = vpack.c.bf16 %v1871_v33, %v1870_v61 }
 0x1d3   : > { %v2654_v34 = vpack.c.bf16 %v1855_v35, %v1854_v20  ;;  %v2689_v37 = vpack.c.bf16 %v1869_v55, %v1868_v9 }
 0x1d4   : > { %2726 = vst [vmem:[%s3388_s23 + $0xf8] sm:$0xff] %v2694_v18  }
 0x1d5   : > { %2718 = vst [vmem:[%s3388_s23 + $0xb8] sm:$0xff] %v2654_v34   ;;  %2725 = vst [vmem:[%s3388_s23 + $0xf0] sm:$0xff] %v2689_v37  }
 0x1d6 PF: > { %s15_s18 = sadd.s32 1, %s3023_s18  }
 0x1d7   : > { %p12_p4 = scmp.ge.s32.totalorder %s15_s18, 4  }
 0x1d9   :  { %14 = sbr.rel (!%p12_p4) target bundleno = 1 (0x1), region = 70 }

// kernel: prosody_encoder_forward.6
= control target key start
LH: loop header
LB: loop body
LE: loop exit
PB: predicated region body
PF: predicated region fallthrough
CT: control target
= control target key end

     0   :  { %vm476_vm0 = vcmask 261120   ;;  %s2068_s1 = inlined_call_operand.vmem [shape: bf16[288,128], index: 1, kind: input, shape index: {}]   ;;  %s2069_s0 = inlined_call_operand.vmem [shape: bf16[256,288], index: 0, kind: input, shape index: {}]   ;;  %s2070_s2 = inlined_call_operand.vmem [shape: f32[1,128], index: 2, kind: input, shape index: {}]   ;;  %s2071_s3 = inlined_call_operand.vmem [shape: f32[1,128], index: 3, kind: input, shape index: {}]   ;;  %s2072_s4 = inlined_call_operand.vmem [shape: f32[1,128], index: 4, kind: input, shape index: {}]   ;;  %s2073_s5 = inlined_call_operand.vmem [shape: bf16[256,128], index: 5, kind: output, shape index: {}]  }
   0x1   :  { %v1547_v0 = vld [vmem:[%s2068_s1 + $0x78] sm:$0xff]   ;;  %v1549_v2 = vld [vmem:[%s2068_s1 + $0x70] sm:$0xff]   ;;  %v1551_v4 = vld [vmem:[%s2068_s1 + $0x68] sm:$0xff]  }
   0x2   :  { %v1548_v1 = vld [vmem:[%s2068_s1 + $0x38] sm:$0xff]   ;;  %1365 = vmatprep.subr.bf16.mxu0 %v1547_v0  ;;  %1531 = vmatprep.subr.bf16.mxu1 %v1547_v0  ;;  %v1550_v3 = vld [vmem:[%s2068_s1 + $0x30] sm:$0xff]   ;;  %v1552_v5 = vld [vmem:[%s2068_s1 + $0x28] sm:$0xff]  }
   0x3   :  { %1366 = vmatpush3.bf16.msra.mxu0 %v1548_v1  ;;  %1539 = vmatpush3.bf16.msra.mxu1 %v1548_v1  ;;  %v1553_v6 = vld [vmem:[%s2068_s1 + $0x60] sm:$0xff]   ;;  %v1555_v8 = vld [vmem:[%s2068_s1 + $0x58] sm:$0xff]   ;;  %v1557_v10 = vld [vmem:[%s2068_s1 + $0x50] sm:$0xff]  }
   0x4   :  { %1367 = vmatprep.subr.bf16.mxu0 %v1549_v2  ;;  %1532 = vmatprep.subr.bf16.mxu1 %v1549_v2  ;;  %v1554_v7 = vld [vmem:[%s2068_s1 + $0x20] sm:$0xff]   ;;  %v1556_v9 = vld [vmem:[%s2068_s1 + $0x18] sm:$0xff]   ;;  %v1558_v13 = vld [vmem:[%s2068_s1 + $0x10] sm:$0xff]  }
   0x5   :  { %v1565_v11 = vld [vmem:[%s2069_s0 + $0x4] ss:$12 sps:$4 sm:$0xff]   ;;  %v1559_v14 = vld [vmem:[%s2068_s1 + $0x48] sm:$0xff]   ;;  %v1576_v26 = vld [vmem:[%s2069_s0 + $0x34] ss:$12 sps:$4 sm:$0xff]  }
   0x6   :  { %v1568_v12 = vld [vmem:[%s2069_s0 + $0x124] ss:$12 sps:$4 sm:$0xff]   ;;  %557 = vmatprep.mubr.bf16.mxu0 %v1565_v11  ;;  %v1560_v15 = vld [vmem:[%s2068_s1 + $0x8] sm:$0xff]   ;;  %v1578_v27 = vld [vmem:[%s2069_s0 + $0x154] ss:$12 sps:$4 sm:$0xff]  }
   0x7   :  { %1368 = vmatpush3.bf16.msra.mxu0 %v1550_v3  ;;  %1540 = vmatpush3.bf16.msra.mxu1 %v1550_v3  ;;  %v1561_v16 = vld [vmem:[%s2068_s1 + $0x40] sm:$0xff]   ;;  %v1569_v18 = vld [vmem:[%s2068_s1 + $0x88] sm:$0xff]   ;;  %v1580_v28 = vld [vmem:[%s2069_s0 + $0x30] ss:$12 sps:$4 sm:$0xff]  }
   0x8   :  { %1369 = vmatprep.subr.bf16.mxu0 %v1551_v4  ;;  %1533 = vmatprep.subr.bf16.mxu1 %v1551_v4  ;;  %v1562_v17 = vld [vmem:[%s2068_s1] sm:$0xff]   ;;  %v1570_v21 = vld [vmem:[%s2069_s0 + $0x1c] ss:$12 sps:$4 sm:$0xff]   ;;  %v1583_v30 = vld [vmem:[%s2069_s0 + $0x4c] ss:$12 sps:$4 sm:$0xff]  }
   0x9   :  { %653 = vmatprep.mubr.bf16.mxu1 %v1568_v12  ;;  %v1563_v19 = vld [vmem:[%s2069_s0] ss:$12 sps:$4 sm:$0xff]   ;;  %v1572_v22 = vld [vmem:[%s2069_s0 + $0x13c] ss:$12 sps:$4 sm:$0xff]   ;;  %v1574_v24 = vld [vmem:[%s2069_s0 + $0x18] ss:$12 sps:$4 sm:$0xff]  }
   0xa   :  { %v1566_v20 = vld [vmem:[%s2069_s0 + $0x120] ss:$12 sps:$4 sm:$0xff]   ;;  %v1575_v25 = vld [vmem:[%s2069_s0 + $0x138] ss:$12 sps:$4 sm:$0xff]   ;;  %v1581_v29 = vld [vmem:[%s2069_s0 + $0x150] ss:$12 sps:$4 sm:$0xff]  }
   0xb   :  { %1370 = vmatpush3.bf16.msra.mxu0 %v1552_v5  ;;  %1541 = vmatpush3.bf16.msra.mxu1 %v1552_v5  ;;  %v1582_v23 = vld [vmem:[%s2068_s1 + $0x80] sm:$0xff]   ;;  %v1585_v31 = vld [vmem:[%s2069_s0 + $0x16c] ss:$12 sps:$4 sm:$0xff]   ;;  %v1587_v32 = vld [vmem:[%s2069_s0 + $0x48] ss:$12 sps:$4 sm:$0xff]  }
   0xc   :  { %1371 = vmatprep.subr.bf16.mxu0 %v1553_v6  ;;  %1534 = vmatprep.subr.bf16.mxu1 %v1553_v6  ;;  %v1588_v33 = vld [vmem:[%s2069_s0 + $0x168] ss:$12 sps:$4 sm:$0xff]   ;;  %v1589_v34 = vld [vmem:[%s2069_s0 + $0x64] ss:$12 sps:$4 sm:$0xff]   ;;  %v1592_v36 = vld [vmem:[%s2069_s0 + $0x60] ss:$12 sps:$4 sm:$0xff]  }
   0xd   :  { %v1591_v35 = vld [vmem:[%s2069_s0 + $0x8] ss:$12 sps:$4 sm:$0xff]   ;;  %v1593_v37 = vld [vmem:[%s2069_s0 + $0x20] ss:$12 sps:$4 sm:$0xff]   ;;  %v1596_v39 = vld [vmem:[%s2069_s0 + $0x38] ss:$12 sps:$4 sm:$0xff]  }
   0xe   :  { %v1594_v38 = vld [vmem:[%s2069_s0 + $0x7c] ss:$12 sps:$4 sm:$0xff]   ;;  %v1597_v40 = vld [vmem:[%s2069_s0 + $0x78] ss:$12 sps:$4 sm:$0xff]   ;;  %v1599_v42 = vld [vmem:[%s2069_s0 + $0x94] ss:$12 sps:$4 sm:$0xff]  }
   0xf   :  { %1372 = vmatpush3.bf16.msra.mxu0 %v1554_v7  ;;  %1542 = vmatpush3.bf16.msra.mxu1 %v1554_v7  ;;  %v1598_v41 = vld [vmem:[%s2069_s0 + $0x50] ss:$12 sps:$4 sm:$0xff]   ;;  %v1601_v43 = vld [vmem:[%s2069_s0 + $0x68] ss:$12 sps:$4 sm:$0xff]   ;;  %v1603_v45 = vld [vmem:[%s2069_s0 + $0x80] ss:$12 sps:$4 sm:$0xff]  }
  0x10   :  { %1373 = vmatprep.subr.bf16.mxu0 %v1555_v8  ;;  %1535 = vmatprep.subr.bf16.mxu1 %v1555_v8  ;;  %v1602_v44 = vld [vmem:[%s2069_s0 + $0x90] ss:$12 sps:$4 sm:$0xff]   ;;  %v1604_v46 = vld [vmem:[%s2069_s0 + $0xac] ss:$12 sps:$4 sm:$0xff]   ;;  %v1607_v48 = vld [vmem:[%s2069_s0 + $0xa8] ss:$12 sps:$4 sm:$0xff]  }
  0x11   :  { %v1606_v47 = vld [vmem:[%s2069_s0 + $0x98] ss:$12 sps:$4 sm:$0xff]   ;;  %v1608_v49 = vld [vmem:[%s2069_s0 + $0xb0] ss:$12 sps:$4 sm:$0xff]   ;;  %v1611_v51 = vld [vmem:[%s2069_s0 + $0xc8] ss:$12 sps:$4 sm:$0xff]  }
  0x12   :  { %v1609_v50 = vld [vmem:[%s2069_s0 + $0xc4] ss:$12 sps:$4 sm:$0xff]   ;;  %v1612_v52 = vld [vmem:[%s2069_s0 + $0xc0] ss:$12 sps:$4 sm:$0xff]   ;;  %v1614_v54 = vld [vmem:[%s2069_s0 + $0xdc] ss:$12 sps:$4 sm:$0xff]  }
  0x13   :  { %1374 = vmatpush3.bf16.msra.mxu0 %v1556_v9  ;;  %1543 = vmatpush3.bf16.msra.mxu1 %v1556_v9  ;;  %v1613_v53 = vld [vmem:[%s2069_s0 + $0xe0] ss:$12 sps:$4 sm:$0xff]   ;;  %v1616_v55 = vld [vmem:[%s2069_s0 + $0xf8] ss:$12 sps:$4 sm:$0xff]   ;;  %v1618_v57 = vld [vmem:[%s2069_s0 + $0x110] ss:$12 sps:$4 sm:$0xff]  }
  0x14   :  { %1375 = vmatprep.subr.bf16.mxu0 %v1557_v10  ;;  %1536 = vmatprep.subr.bf16.mxu1 %v1557_v10  ;;  %v1617_v56 = vld [vmem:[%s2069_s0 + $0xd8] ss:$12 sps:$4 sm:$0xff]   ;;  %v1619_v58 = vld [vmem:[%s2069_s0 + $0xf4] ss:$12 sps:$4 sm:$0xff]   ;;  %v1622_v60 = vld [vmem:[%s2069_s0 + $0xf0] ss:$12 sps:$4 sm:$0xff]  }
  0x15   :  { %v1621_v59 = vld [vmem:[%s2069_s0 + $0x128] ss:$12 sps:$4 sm:$0xff]   ;;  %v1623_v61 = vld [vmem:[%s2069_s0 + $0x140] ss:$12 sps:$4 sm:$0xff]   ;;  %v1626_v63 = vld [vmem:[%s2069_s0 + $0x158] ss:$12 sps:$4 sm:$0xff]  }
  0x16   :  { %v1624_v62 = vld [vmem:[%s2069_s0 + $0x10c] ss:$12 sps:$4 sm:$0xff]   ;;  %v1627_v0 = vld [vmem:[%s2069_s0 + $0x108] ss:$12 sps:$4 sm:$0xff]   ;;  %v1628_v1 = vld [vmem:[%s2069_s0 + $0x170] ss:$12 sps:$4 sm:$0xff]  }
  0x17   :  { %1376 = vmatpush3.bf16.msra.mxu0 %v1558_v13  ;;  %1544 = vmatpush3.bf16.msra.mxu1 %v1558_v13 }
  0x18   :  { %1377 = vmatprep.subr.bf16.mxu0 %v1559_v14  ;;  %1537 = vmatprep.subr.bf16.mxu1 %v1559_v14 }
  0x1b   :  { %1378 = vmatpush3.bf16.msra.mxu0 %v1560_v15  ;;  %1545 = vmatpush3.bf16.msra.mxu1 %v1560_v15 }
  0x1c   :  { %1379 = vmatprep.subr.bf16.mxu0 %v1561_v16  ;;  %1538 = vmatprep.subr.bf16.mxu1 %v1561_v16 }
  0x1f   :  { %1380 = vmatpush3.bf16.msra.mxu0 %v1562_v17  ;;  %1546 = vmatpush3.bf16.msra.mxu1 %v1562_v17 }
  0x20   :  { %1495 = vmatprep.subr.bf16.mxu1 %v1569_v18 }
  0x22   :  { %558 = vmatmul.mubr.bf16.vlgmr.msra.gmra.mxu0 %v1563_v19  ;;  %654 = vmatmul.mubr.bf16.vlgmr.msra.gmra.mxu1 %v1566_v20 }
  0x23   :  { %1496 = vmatpush3.bf16.msra.mxu1 %v1569_v18  ;;  %565 = vmatprep.mubr.bf16.mxu0 %v1570_v21 }
  0x24   :  { %661 = vmatprep.mubr.bf16.mxu1 %v1572_v22  ;;  %1497 = vmatprep.subr.bf16.mxu1 %v1582_v23 }
  0x27   :  { %1498 = vmatpush3.bf16.msra.mxu1 %v1582_v23 }
  0x2a   :  { %566 = vmatmul.mubr.bf16.gmra.mxu0 %v1574_v24  ;;  %662 = vmatmul.mubr.bf16.gmra.mxu1 %v1575_v25 }
  0x2b   :  { %573 = vmatprep.mubr.bf16.mxu0 %v1576_v26  ;;  %669 = vmatprep.mubr.bf16.mxu1 %v1578_v27 }
  0x32   :  { %574 = vmatmul.mubr.bf16.gmra.mxu0 %v1580_v28  ;;  %670 = vmatmul.mubr.bf16.gmra.mxu1 %v1581_v29 }
  0x33   :  { %581 = vmatprep.mubr.bf16.mxu0 %v1583_v30  ;;  %677 = vmatprep.mubr.bf16.mxu1 %v1585_v31 }
  0x3a   :  { %582 = vmatmul.mubr.bf16.gmra.mxu0 %v1587_v32  ;;  %678 = vmatmul.mubr.bf16.gmra.mxu1 %v1588_v33 }
  0x3b   :  { %589 = vmatprep.mubr.bf16.mxu0 %v1589_v34  ;;  %1499 = vmatprep.mubr.msk.bf16.mxu1 %vm476_vm0, %v1591_v35 }
  0x42   :  { %590 = vmatmul.mubr.bf16.gmra.mxu0 %v1592_v36  ;;  %1500 = vmatmul.mubr.msk.bf16.vlgmr.msra.gmra.mxu1 %vm476_vm0, %v1593_v37 }
  0x43   :  { %597 = vmatprep.mubr.bf16.mxu0 %v1594_v38  ;;  %1503 = vmatprep.mubr.msk.bf16.mxu1 %vm476_vm0, %v1596_v39 }
  0x4a   :  { %598 = vmatmul.mubr.bf16.gmra.mxu0 %v1597_v40  ;;  %1504 = vmatmul.mubr.msk.bf16.gmra.mxu1 %vm476_vm0, %v1598_v41 }
  0x4b   :  { %605 = vmatprep.mubr.bf16.mxu0 %v1599_v42  ;;  %1507 = vmatprep.mubr.msk.bf16.mxu1 %vm476_vm0, %v1601_v43  ;;  %v1896_v42 = vld [vmem:[%s2070_s2] ss:$0 sm:$0xff] }
  0x52   :  { %606 = vmatmul.mubr.bf16.gmra.mxu0 %v1602_v44  ;;  %1508 = vmatmul.mubr.msk.bf16.gmra.mxu1 %vm476_vm0, %v1603_v45 }
  0x53   :  { %613 = vmatprep.mubr.bf16.mxu0 %v1604_v46  ;;  %1511 = vmatprep.mubr.msk.bf16.mxu1 %vm476_vm0, %v1606_v47 }
  0x5a   :  { %614 = vmatmul.mubr.bf16.gmra.mxu0 %v1607_v48  ;;  %1512 = vmatmul.mubr.msk.bf16.gmra.mxu1 %vm476_vm0, %v1608_v49 }
  0x5b   :  { %621 = vmatprep.mubr.bf16.mxu0 %v1609_v50  ;;  %1515 = vmatprep.mubr.msk.bf16.mxu1 %vm476_vm0, %v1611_v51 }
  0x62   :  { %622 = vmatmul.mubr.bf16.gmra.mxu0 %v1612_v52  ;;  %1516 = vmatmul.mubr.msk.bf16.gmra.mxu1 %vm476_vm0, %v1613_v53 }
  0x63   :  { %629 = vmatprep.mubr.bf16.mxu0 %v1614_v54  ;;  %1519 = vmatprep.mubr.msk.bf16.mxu1 %vm476_vm0, %v1616_v55  ;;  %v1903_v54 = vld [vmem:[%s2071_s3] ss:$0 sm:$0xff] }
  0x6a   :  { %630 = vmatmul.mubr.bf16.gmra.mxu0 %v1617_v56  ;;  %1520 = vmatmul.mubr.msk.bf16.gmra.mxu1 %vm476_vm0, %v1618_v57 }
  0x6b   :  { %637 = vmatprep.mubr.bf16.mxu0 %v1619_v58  ;;  %1523 = vmatprep.mubr.msk.bf16.mxu1 %vm476_vm0, %v1621_v59 }
  0x72   :  { %638 = vmatmul.mubr.bf16.gmra.mxu0 %v1622_v60  ;;  %1524 = vmatmul.mubr.msk.bf16.gmra.mxu1 %vm476_vm0, %v1623_v61 }
  0x73   :  { %645 = vmatprep.mubr.bf16.mxu0 %v1624_v62  ;;  %1527 = vmatprep.mubr.msk.bf16.mxu1 %vm476_vm0, %v1626_v63 }
  0x7a   :  { %646 = vmatmul.mubr.bf16.gmra.mxu0 %v1627_v0  ;;  %1528 = vmatmul.mubr.msk.bf16.gmra.mxu1 %vm476_vm0, %v1628_v1 }
  0xe2   :  { %v1381_v2 = vpop.f32.mrf.mxu0  ;;  %v1453_v3 = vpop.f32.mrf.mxu1 }
  0xe4   :  { %v1382_v4 = vpop.f32.mrf.mxu0  ;;  %v1454_v5 = vpop.f32.mrf.mxu1 }
  0xe5   :  { %v1873_v6 = vadd.f32 %v1454_v5, %v1453_v3  ;;  %v1383_v39 = vadd.f32 %v1382_v4, %v1381_v2  ;;  %v1911_v3 = vld [vmem:[%s2072_s4] ss:$0 sm:$0xff] }
  0xe6   :  { %v1384_v7 = vpop.f32.mrf.mxu0  ;;  %v1456_v8 = vpop.f32.mrf.mxu1 }
  0xe7   :  { %v560_v48 = vadd.f32 %v1383_v39, %v1896_v42 }
  0xe8   :  { %v1385_v9 = vpop.f32.mrf.mxu0  ;;  %v1457_v10 = vpop.f32.mrf.mxu1 }
  0xe9   :  { %v1875_v11 = vadd.f32 %v1457_v10, %v1456_v8  ;;  %v1386_v49 = vadd.f32 %v1385_v9, %v1384_v7 }
  0xea   :  { %v1387_v12 = vpop.f32.mrf.mxu0  ;;  %v1459_v13 = vpop.f32.mrf.mxu1 }
  0xeb   :  { %v563_v1 = vadd.f32 %v1386_v49, %v1896_v42 }
  0xec   :  { %v1388_v14 = vpop.f32.mrf.mxu0  ;;  %v1460_v15 = vpop.f32.mrf.mxu1 }
  0xed   :  { %v1877_v16 = vadd.f32 %v1460_v15, %v1459_v13  ;;  %v1389_v36 = vadd.f32 %v1388_v14, %v1387_v12 }
  0xee   :  { %v1390_v17 = vpop.f32.mrf.mxu0  ;;  %v1462_v18 = vpop.f32.mrf.mxu1 }
  0xef   :  { %v568_v44 = vadd.f32 %v1389_v36, %v1896_v42 }
  0xf0   :  { %v1391_v19 = vpop.f32.mrf.mxu0  ;;  %v1463_v20 = vpop.f32.mrf.mxu1 }
  0xf1   :  { %v1879_v21 = vadd.f32 %v1463_v20, %v1462_v18  ;;  %v1392_v43 = vadd.f32 %v1391_v19, %v1390_v17 }
  0xf2   :  { %v1393_v22 = vpop.f32.mrf.mxu0  ;;  %v1465_v23 = vpop.f32.mrf.mxu1 }
  0xf3   :  { %v571_v56 = vadd.f32 %v1392_v43, %v1896_v42 }
  0xf4   :  { %v1394_v24 = vpop.f32.mrf.mxu0  ;;  %v1466_v25 = vpop.f32.mrf.mxu1 }
  0xf5   :  { %v1881_v26 = vadd.f32 %v1466_v25, %v1465_v23  ;;  %v1395_v59 = vadd.f32 %v1394_v24, %v1393_v22 }
  0xf6   :  { %v1396_v27 = vpop.f32.mrf.mxu0  ;;  %v1468_v28 = vpop.f32.mrf.mxu1 }
  0xf7   :  { %v576_v14 = vadd.f32 %v1395_v59, %v1896_v42 }
  0xf8   :  { %v1397_v29 = vpop.f32.mrf.mxu0  ;;  %v1469_v30 = vpop.f32.mrf.mxu1 }
  0xf9   :  { %v1883_v31 = vadd.f32 %v1469_v30, %v1468_v28  ;;  %v1398_v10 = vadd.f32 %v1397_v29, %v1396_v27 }
  0xfa   :  { %v1399_v32 = vpop.f32.mrf.mxu0  ;;  %v1885_v33 = vpop.f32.mrf.mxu1 }
  0xfc   :  { %v1400_v34 = vpop.f32.mrf.mxu0  ;;  %v1887_v35 = vpop.f32.mrf.mxu1 }
  0xfd   :  { %v1401_v52 = vadd.f32 %v1400_v34, %v1399_v32 }
  0xfe   :  { %v1402_v37 = vpop.f32.mrf.mxu0  ;;  %v1889_v38 = vpop.f32.mrf.mxu1 }
  0xff   :  { %v584_v5 = vadd.f32 %v1401_v52, %v1896_v42 }
 0x100   :  { %v1403_v40 = vpop.f32.mrf.mxu0  ;;  %v1891_v41 = vpop.f32.mrf.mxu1 }
 0x101   :  { %v1404_v61 = vadd.f32 %v1403_v40, %v1402_v37  ;;  %v579_v37 = vadd.f32 %v1398_v10, %v1896_v42 }
 0x102   :  { %v1405_v45 = vpop.f32.mrf.mxu0  ;;  %v1501_v46 = vpop.f32.mrf.mxu1 }
 0x103   :  { %v729_v47 = vadd.f32 %v1501_v46, %v568_v44  ;;  %v587_v22 = vadd.f32 %v1404_v61, %v1896_v42 }
 0x104   :  { %v1406_v50 = vpop.f32.mrf.mxu0  ;;  %v720_v51 = vpop.f32.mrf.mxu1 }
 0x105   :  { %v849_v53 = vmax.f32 %v729_v47, 0.0  ;;  %v721_v55 = vadd.f32 %v720_v51, %v560_v48  ;;  %v1407_v32 = vadd.f32 %v1406_v50, %v1405_v45 }
 0x106   :  { %v1408_v57 = vpop.f32.mrf.mxu0  ;;  %v1502_v58 = vpop.f32.mrf.mxu1 }
 0x107   :  { %v732_v60 = vadd.f32 %v1502_v58, %v571_v56  ;;  %v888_v62 = vmul.f32 %v1903_v54, %v849_v53  ;;  %v847_v63 = vmax.f32 %v721_v55, 0.0  ;;  %v592_v58 = vadd.f32 %v1407_v32, %v1896_v42 }
 0x108   :  { %v1409_v0 = vpop.f32.mrf.mxu0  ;;  %v723_v2 = vpop.f32.mrf.mxu1 }
 0x109   :  { %v850_v4 = vmax.f32 %v732_v60, 0.0  ;;  %v724_v7 = vadd.f32 %v723_v2, %v563_v1  ;;  %v927_v15 = vadd.f32 %v1911_v3, %v888_v62  ;;  %v886_v17 = vmul.f32 %v1903_v54, %v847_v63 }
 0x10a   :  { %v1411_v8 = vpop.f32.mrf.mxu0  ;;  %v1505_v9 = vpop.f32.mrf.mxu1  ;;  %v1410_v59 = vadd.f32 %v1409_v0, %v1408_v57 }
 0x10b   :  { %v889_v12 = vmul.f32 %v1903_v54, %v850_v4  ;;  %v745_v13 = vadd.f32 %v1505_v9, %v584_v5  ;;  %v848_v18 = vmax.f32 %v724_v7, 0.0  ;;  %v925_v39 = vadd.f32 %v1911_v3, %v886_v17 }
 0x10c   :  { %v1412_v19 = vpop.f32.mrf.mxu0  ;;  %v736_v20 = vpop.f32.mrf.mxu1 }
 0x10d   :  { %v928_v23 = vadd.f32 %v1911_v3, %v889_v12  ;;  %v853_v24 = vmax.f32 %v745_v13, 0.0  ;;  %v1413_v25 = vadd.f32 %v1412_v19, %v1411_v8  ;;  %v737_v28 = vadd.f32 %v736_v20, %v576_v14 }
 0x10e   :  { %v887_v27 = vmul.f32 %v1903_v54, %v848_v18  ;;  %v1414_v29 = vpop.f32.mrf.mxu0  ;;  %v1506_v30 = vpop.f32.mrf.mxu1  ;;  %v595_v18 = vadd.f32 %v1410_v59, %v1896_v42 }
 0x10f   :  { %v1278_v34 = vpack.c.bf16 %v928_v23, %v927_v15  ;;  %v748_v36 = vadd.f32 %v1506_v30, %v587_v22  ;;  %v892_v43 = vmul.f32 %v1903_v54, %v853_v24  ;;  %v851_v44 = vmax.f32 %v737_v28, 0.0 }
 0x110   :  { %v926_v40 = vadd.f32 %v1911_v3, %v887_v27  ;;  %v1415_v46 = vpop.f32.mrf.mxu0  ;;  %v739_v47 = vpop.f32.mrf.mxu1  ;;  %v600_v45 = vadd.f32 %v1413_v25, %v1896_v42 }
 0x111   :  { %1350 = vst [vmem:[%s2073_s5 + $0x8] sm:$0xff] %v1278_v34   ;;  %v854_v48 = vmax.f32 %v748_v36, 0.0  ;;  %v1416_v49 = vadd.f32 %v1415_v46, %v1414_v29  ;;  %v740_v51 = vadd.f32 %v739_v47, %v579_v37  ;;  %v931_v60 = vadd.f32 %v1911_v3, %v892_v43 }
 0x112   :  { %v1273_v50 = vpack.c.bf16 %v926_v40, %v925_v39  ;;  %v1417_v52 = vpop.f32.mrf.mxu0  ;;  %v1509_v53 = vpop.f32.mrf.mxu1  ;;  %v890_v61 = vmul.f32 %v1903_v54, %v851_v44 }
 0x113   :  { %v893_v55 = vmul.f32 %v1903_v54, %v854_v48  ;;  %v761_v56 = vadd.f32 %v1509_v53, %v600_v45  ;;  %v852_v62 = vmax.f32 %v740_v51, 0.0  ;;  %v603_v7 = vadd.f32 %v1416_v49, %v1896_v42 }
 0x114   :  { %1274 = vst [vmem:[%s2073_s5] sm:$0xff] %v1273_v50   ;;  %v1418_v63 = vpop.f32.mrf.mxu0  ;;  %v752_v1 = vpop.f32.mrf.mxu1  ;;  %v929_v13 = vadd.f32 %v1911_v3, %v890_v61 }
 0x115   :  { %v932_v2 = vadd.f32 %v1911_v3, %v893_v55  ;;  %v857_v4 = vmax.f32 %v761_v56, 0.0  ;;  %v753_v5 = vadd.f32 %v752_v1, %v592_v58  ;;  %v891_v8 = vmul.f32 %v1903_v54, %v852_v62 }
 0x116   :  { %v1420_v57 = vpop.f32.mrf.mxu0  ;;  %v1510_v0 = vpop.f32.mrf.mxu1  ;;  %v1419_v10 = vadd.f32 %v1418_v63, %v1417_v52 }
 0x117   :  { %v1288_v9 = vpack.c.bf16 %v932_v2, %v931_v60  ;;  %v764_v12 = vadd.f32 %v1510_v0, %v603_v7  ;;  %v930_v14 = vadd.f32 %v1911_v3, %v891_v8  ;;  %v855_v15 = vmax.f32 %v753_v5, 0.0 }
 0x118   :  { %v1421_v17 = vpop.f32.mrf.mxu0  ;;  %v755_v19 = vpop.f32.mrf.mxu1  ;;  %v896_v20 = vmul.f32 %v1903_v54, %v857_v4  ;;  %v608_v30 = vadd.f32 %v1419_v10, %v1896_v42 }
 0x119   :  { %1352 = vst [vmem:[%s2073_s5 + $0x18] sm:$0xff] %v1288_v9   ;;  %v858_v22 = vmax.f32 %v764_v12, 0.0  ;;  %v1283_v23 = vpack.c.bf16 %v930_v14, %v929_v13  ;;  %v756_v24 = vadd.f32 %v755_v19, %v595_v18  ;;  %v1422_v29 = vadd.f32 %v1421_v17, %v1420_v57 }
 0x11a   :  { %v1423_v25 = vpop.f32.mrf.mxu0  ;;  %v1513_v28 = vpop.f32.mrf.mxu1  ;;  %v894_v32 = vmul.f32 %v1903_v54, %v855_v15  ;;  %v935_v39 = vadd.f32 %v1911_v3, %v896_v20 }
 0x11b   :  { %v897_v27 = vmul.f32 %v1903_v54, %v858_v22  ;;  %1351 = vst [vmem:[%s2073_s5 + $0x10] sm:$0xff] %v1283_v23   ;;  %v856_v34 = vmax.f32 %v756_v24, 0.0  ;;  %v611_v51 = vadd.f32 %v1422_v29, %v1896_v42 }
 0x11c   :  { %v1424_v36 = vpop.f32.mrf.mxu0  ;;  %v768_v37 = vpop.f32.mrf.mxu1  ;;  %v933_v52 = vadd.f32 %v1911_v3, %v894_v32 }
 0x11d   :  { %v936_v40 = vadd.f32 %v1911_v3, %v897_v27  ;;  %v1425_v43 = vadd.f32 %v1424_v36, %v1423_v25  ;;  %v769_v44 = vadd.f32 %v768_v37, %v608_v30  ;;  %v895_v46 = vmul.f32 %v1903_v54, %v856_v34 }
 0x11e   :  { %v1426_v47 = vpop.f32.mrf.mxu0  ;;  %v1514_v48 = vpop.f32.mrf.mxu1 }
 0x11f   :  { %v1298_v49 = vpack.c.bf16 %v936_v40, %v935_v39  ;;  %v616_v45 = vadd.f32 %v1425_v43, %v1896_v42  ;;  %v859_v50 = vmax.f32 %v769_v44, 0.0  ;;  %v934_v53 = vadd.f32 %v1911_v3, %v895_v46 }
 0x120   :  { %v1427_v55 = vpop.f32.mrf.mxu0  ;;  %v771_v56 = vpop.f32.mrf.mxu1 }
 0x121   :  { %1354 = vst [vmem:[%s2073_s5 + $0x28] sm:$0xff] %v1298_v49   ;;  %v777_v58 = vadd.f32 %v1513_v28, %v616_v45  ;;  %v1428_v59 = vadd.f32 %v1427_v55, %v1426_v47  ;;  %v772_v60 = vadd.f32 %v771_v56, %v611_v51  ;;  %v1293_v61 = vpack.c.bf16 %v934_v53, %v933_v52 }
 0x122   :  { %v898_v62 = vmul.f32 %v1903_v54, %v859_v50  ;;  %v1429_v63 = vpop.f32.mrf.mxu0  ;;  %v1517_v1 = vpop.f32.mrf.mxu1  ;;  %v664_v55 = vadd.f32 %v1877_v16, %v1896_v42  ;;  %v1473_v16 = vadd.f32 %v1887_v35, %v1885_v33  ;;  %v659_v33 = vadd.f32 %v1875_v11, %v1896_v42 }
 0x123   :  { %v861_v2 = vmax.f32 %v777_v58, 0.0  ;;  %v619_v4 = vadd.f32 %v1428_v59, %v1896_v42  ;;  %v860_v5 = vmax.f32 %v772_v60, 0.0  ;;  %1353 = vst [vmem:[%s2073_s5 + $0x20] sm:$0xff] %v1293_v61  }
 0x124   :  { %v1430_v7 = vpop.f32.mrf.mxu0  ;;  %v784_v8 = vpop.f32.mrf.mxu1  ;;  %v937_v10 = vadd.f32 %v1911_v3, %v898_v62 }
 0x125   :  { %v780_v57 = vadd.f32 %v1514_v48, %v619_v4  ;;  %v899_v0 = vmul.f32 %v1903_v54, %v860_v5  ;;  %v1431_v9 = vadd.f32 %v1430_v7, %v1429_v63  ;;  %v900_v14 = vmul.f32 %v1903_v54, %v861_v2 }
 0x126   :  { %v1432_v12 = vpop.f32.mrf.mxu0  ;;  %v1518_v13 = vpop.f32.mrf.mxu1  ;;  %v656_v4 = vadd.f32 %v1873_v6, %v1896_v42 }
 0x127   :  { %v862_v15 = vmax.f32 %v780_v57, 0.0  ;;  %v938_v17 = vadd.f32 %v1911_v3, %v899_v0  ;;  %v624_v18 = vadd.f32 %v1431_v9, %v1896_v42  ;;  %v939_v29 = vadd.f32 %v1911_v3, %v900_v14 }
 0x128   :  { %v1433_v19 = vpop.f32.mrf.mxu0  ;;  %v787_v20 = vpop.f32.mrf.mxu1  ;;  %v1476_v0 = vadd.f32 %v1891_v41, %v1889_v38 }
 0x129   :  { %v901_v22 = vmul.f32 %v1903_v54, %v862_v15  ;;  %v1303_v23 = vpack.c.bf16 %v938_v17, %v937_v10  ;;  %v785_v24 = vadd.f32 %v784_v8, %v624_v18  ;;  %v1434_v25 = vadd.f32 %v1433_v19, %v1432_v12 }
 0x12a   :  { %v1435_v28 = vpop.f32.mrf.mxu0  ;;  %v1973_v27 = vpop.f32.mrf.mxu1  ;;  %v672_v18 = vadd.f32 %v1881_v26, %v1896_v42 }
 0x12b   :  { %v940_v30 = vadd.f32 %v1911_v3, %v901_v22  ;;  %1355 = vst [vmem:[%s2073_s5 + $0x30] sm:$0xff] %v1303_v23   ;;  %v863_v32 = vmax.f32 %v785_v24, 0.0  ;;  %v627_v34 = vadd.f32 %v1434_v25, %v1896_v42  ;;  %v680_v23 = vadd.f32 %v1473_v16, %v1896_v42 }
 0x12c   :  { %v1436_v36 = vpop.f32.mrf.mxu0  ;;  %v800_v37 = vpop.f32.mrf.mxu1 }
 0x12d   :  { %v1308_v39 = vpack.c.bf16 %v940_v30, %v939_v29  ;;  %v788_v40 = vadd.f32 %v787_v20, %v627_v34  ;;  %v1437_v43 = vadd.f32 %v1436_v36, %v1435_v28  ;;  %v902_v44 = vmul.f32 %v1903_v54, %v863_v32 }
 0x12e   :  { %v1438_v46 = vpop.f32.mrf.mxu0  ;;  %v1982_v47 = vpop.f32.mrf.mxu1  ;;  %v683_v30 = vadd.f32 %v1476_v0, %v1896_v42 }
 0x12f   :  { %1356 = vst [vmem:[%s2073_s5 + $0x38] sm:$0xff] %v1308_v39   ;;  %v864_v48 = vmax.f32 %v788_v40, 0.0  ;;  %v632_v49 = vadd.f32 %v1437_v43, %v1896_v42  ;;  %v941_v56 = vadd.f32 %v1911_v3, %v902_v44 }
 0x130   :  { %v1439_v45 = vpop.f32.mrf.mxu0  ;;  %v803_v50 = vpop.f32.mrf.mxu1 }
 0x131   :  { %v903_v51 = vmul.f32 %v1903_v54, %v864_v48  ;;  %v793_v52 = vadd.f32 %v1517_v1, %v632_v49  ;;  %v1440_v53 = vadd.f32 %v1439_v45, %v1438_v46  ;;  %v667_v1 = vadd.f32 %v1879_v21, %v1896_v42 }
 0x132   :  { %v1441_v58 = vpop.f32.mrf.mxu0  ;;  %v1525_v59 = vpop.f32.mrf.mxu1 }
 0x133   :  { %v942_v60 = vadd.f32 %v1911_v3, %v903_v51  ;;  %v865_v61 = vmax.f32 %v793_v52, 0.0  ;;  %v635_v62 = vadd.f32 %v1440_v53, %v1896_v42  ;;  %v825_v63 = vadd.f32 %v1525_v59, %v664_v55 }
 0x134   :  { %v1442_v2 = vpop.f32.mrf.mxu0  ;;  %v816_v5 = vpop.f32.mrf.mxu1  ;;  %v675_v59 = vadd.f32 %v1883_v31, %v1896_v42 }
 0x135   :  { %v1313_v7 = vpack.c.bf16 %v942_v60, %v941_v56  ;;  %v796_v8 = vadd.f32 %v1518_v13, %v635_v62  ;;  %v873_v57 = vmax.f32 %v825_v63, 0.0  ;;  %v904_v9 = vmul.f32 %v1903_v54, %v865_v61 }
 0x136   :  { %v1443_v10 = vadd.f32 %v1442_v2, %v1441_v58  ;;  %v817_v12 = vadd.f32 %v816_v5, %v656_v4  ;;  %v1444_v14 = vpop.f32.mrf.mxu0  ;;  %v1526_v15 = vpop.f32.mrf.mxu1 }
 0x137   :  { %1357 = vst [vmem:[%s2073_s5 + $0x40] sm:$0xff] %v1313_v7   ;;  %v866_v6 = vmax.f32 %v796_v8, 0.0  ;;  %v828_v21 = vadd.f32 %v1526_v15, %v667_v1  ;;  %v912_v35 = vmul.f32 %v1903_v54, %v873_v57  ;;  %v943_v24 = vadd.f32 %v1911_v3, %v904_v9 }
 0x138   :  { %v640_v13 = vadd.f32 %v1443_v10, %v1896_v42  ;;  %v871_v38 = vmax.f32 %v817_v12, 0.0  ;;  %v1445_v41 = vpop.f32.mrf.mxu0  ;;  %v819_v17 = vpop.f32.mrf.mxu1 }
 0x139   :  { %v905_v19 = vmul.f32 %v1903_v54, %v866_v6  ;;  %v874_v20 = vmax.f32 %v828_v21, 0.0  ;;  %v1446_v22 = vadd.f32 %v1445_v41, %v1444_v14  ;;  %v820_v11 = vadd.f32 %v819_v17, %v659_v33 }
 0x13a   :  { %v801_v25 = vadd.f32 %v800_v37, %v640_v13  ;;  %v1447_v28 = vpop.f32.mrf.mxu0  ;;  %v1529_v29 = vpop.f32.mrf.mxu1  ;;  %v951_v39 = vadd.f32 %v1911_v3, %v912_v35  ;;  %v910_v43 = vmul.f32 %v1903_v54, %v871_v38 }
 0x13b   :  { %v944_v32 = vadd.f32 %v1911_v3, %v905_v19  ;;  %v913_v34 = vmul.f32 %v1903_v54, %v874_v20  ;;  %v643_v26 = vadd.f32 %v1446_v22, %v1896_v42  ;;  %v841_v36 = vadd.f32 %v1529_v29, %v680_v23 }
 0x13c   :  { %v867_v40 = vmax.f32 %v801_v25, 0.0  ;;  %v872_v44 = vmax.f32 %v820_v11, 0.0  ;;  %v1448_v46 = vpop.f32.mrf.mxu0  ;;  %v832_v37 = vpop.f32.mrf.mxu1 }
 0x13d   :  { %v1318_v48 = vpack.c.bf16 %v944_v32, %v943_v24  ;;  %v952_v49 = vadd.f32 %v1911_v3, %v913_v34  ;;  %v804_v45 = vadd.f32 %v803_v50, %v643_v26  ;;  %v877_v51 = vmax.f32 %v841_v36, 0.0 }
 0x13e   :  { %v911_v52 = vmul.f32 %v1903_v54, %v872_v44  ;;  %v1449_v53 = vadd.f32 %v1448_v46, %v1447_v28  ;;  %v833_v55 = vadd.f32 %v832_v37, %v672_v18  ;;  %v1450_v56 = vpop.f32.mrf.mxu0  ;;  %v1530_v58 = vpop.f32.mrf.mxu1  ;;  %v906_v60 = vmul.f32 %v1903_v54, %v867_v40 }
 0x13f   :  { %1358 = vst [vmem:[%s2073_s5 + $0x48] sm:$0xff] %v1318_v48   ;;  %v1338_v61 = vpack.c.bf16 %v952_v49, %v951_v39  ;;  %v868_v62 = vmax.f32 %v804_v45, 0.0  ;;  %v844_v63 = vadd.f32 %v1530_v58, %v683_v30  ;;  %v949_v50 = vadd.f32 %v1911_v3, %v910_v43 }
 0x140   :  { %v950_v2 = vadd.f32 %v1911_v3, %v911_v52  ;;  %v648_v4 = vadd.f32 %v1449_v53, %v1896_v42  ;;  %v875_v5 = vmax.f32 %v833_v55, 0.0  ;;  %v1451_v1 = vpop.f32.mrf.mxu0  ;;  %v835_v16 = vpop.f32.mrf.mxu1  ;;  %v916_v7 = vmul.f32 %v1903_v54, %v877_v51 }
 0x141   :  { %1362 = vst [vmem:[%s2073_s5 + $0x68] sm:$0xff] %v1338_v61   ;;  %v907_v31 = vmul.f32 %v1903_v54, %v868_v62  ;;  %v878_v8 = vmax.f32 %v844_v63, 0.0  ;;  %v1452_v57 = vadd.f32 %v1451_v1, %v1450_v56  ;;  %v836_v10 = vadd.f32 %v835_v16, %v675_v59 }
 0x142   :  { %v1333_v0 = vpack.c.bf16 %v950_v2, %v949_v50  ;;  %v809_v9 = vadd.f32 %v1973_v27, %v648_v4  ;;  %v945_v12 = vadd.f32 %v1911_v3, %v906_v60  ;;  %v914_v33 = vmul.f32 %v1903_v54, %v875_v5 }
 0x143   :  { %v946_v14 = vadd.f32 %v1911_v3, %v907_v31  ;;  %v917_v15 = vmul.f32 %v1903_v54, %v878_v8  ;;  %v651_v6 = vadd.f32 %v1452_v57, %v1896_v42  ;;  %v876_v35 = vmax.f32 %v836_v10, 0.0 }
 0x144   :  { %1361 = vst [vmem:[%s2073_s5 + $0x60] sm:$0xff] %v1333_v0   ;;  %v869_v21 = vmax.f32 %v809_v9, 0.0  ;;  %v955_v27 = vadd.f32 %v1911_v3, %v916_v7  ;;  %v953_v20 = vadd.f32 %v1911_v3, %v914_v33 }
 0x145   :  { %v1323_v13 = vpack.c.bf16 %v946_v14, %v945_v12  ;;  %v956_v38 = vadd.f32 %v1911_v3, %v917_v15  ;;  %v812_v41 = vadd.f32 %v1982_v47, %v651_v6  ;;  %v915_v17 = vmul.f32 %v1903_v54, %v876_v35 }
 0x146   :  { %v908_v42 = vmul.f32 %v1903_v54, %v869_v21 }
 0x147   :  { %1359 = vst [vmem:[%s2073_s5 + $0x50] sm:$0xff] %v1323_v13   ;;  %v1348_v18 = vpack.c.bf16 %v956_v38, %v955_v27  ;;  %v870_v19 = vmax.f32 %v812_v41, 0.0  ;;  %v954_v22 = vadd.f32 %v1911_v3, %v915_v17 }
 0x148   :  { %v947_v24 = vadd.f32 %v1911_v3, %v908_v42 }
 0x149   :  { %1364 = vst [vmem:[%s2073_s5 + $0x78] sm:$0xff] %v1348_v18   ;;  %v909_v47 = vmul.f32 %v1903_v54, %v870_v19  ;;  %v1343_v23 = vpack.c.bf16 %v954_v22, %v953_v20 }
 0x14b   :  { %v948_v25 = vadd.f32 %v1911_v3, %v909_v47  ;;  %1363 = vst [vmem:[%s2073_s5 + $0x70] sm:$0xff] %v1343_v23  }
 0x14d   :  { %v1328_v11 = vpack.c.bf16 %v948_v25, %v947_v24 }
 0x14f   :  { %1360 = vst [vmem:[%s2073_s5 + $0x58] sm:$0xff] %v1328_v11  }

// kernel: prosody_encoder_forward.7
= control target key start
LH: loop header
LB: loop body
LE: loop exit
PB: predicated region body
PF: predicated region fallthrough
CT: control target
= control target key end

     0   :  { %vm488_vm0 = vcmask 523264   ;;  %v5575_v56 = vmov 0.0   ;;  %vm5576_vm1 = vmmov 0   ;;  %vm1957_vm2 = vcmask 130048   ;;  %s6837_s1 = inlined_call_operand.vmem [shape: bf16[576,64], index: 1, kind: input, shape index: {}]   ;;  %s6838_s0 = inlined_call_operand.vmem [shape: bf16[64,576], index: 0, kind: input, shape index: {}]   ;;  %s6839_s5 = inlined_call_operand.vmem [shape: bf16[144,64], index: 5, kind: input, shape index: {}]   ;;  %s6840_s6 = inlined_call_operand.vmem [shape: bf16[576,128], index: 6, kind: input, shape index: {}]   ;;  %s6841_s2 = inlined_call_operand.vmem [shape: f32[1,64], index: 2, kind: input, shape index: {}]   ;;  %s6842_s3 = inlined_call_operand.vmem [shape: f32[1,64], index: 3, kind: input, shape index: {}]   ;;  %s6843_s4 = inlined_call_operand.vmem [shape: f32[1,64], index: 4, kind: input, shape index: {}]   ;;  %s6844_s10 = inlined_call_operand.vmem [shape: bf16[144,16], index: 10, kind: input, shape index: {}]   ;;  %s6845_s11 = inlined_call_operand.vmem [shape: bf16[1152,128], index: 11, kind: input, shape index: {}]   ;;  %s6846_s7 = inlined_call_operand.vmem [shape: f32[1,128], index: 7, kind: input, shape index: {}]   ;;  %s6847_s8 = inlined_call_operand.vmem [shape: f32[1,128], index: 8, kind: input, shape index: {}]   ;;  %s6848_s9 = inlined_call_operand.vmem [shape: f32[1,128], index: 9, kind: input, shape index: {}]   ;;  %s6849_s15 = inlined_call_operand.vmem [shape: bf16[128,384], index: 15, kind: input, shape index: {}]   ;;  %s6850_s16 = inlined_call_operand.vmem [shape: bf16[128,384], index: 16, kind: input, shape index: {}]   ;;  %s6851_s12 = inlined_call_operand.vmem [shape: f32[1,128], index: 12, kind: input, shape index: {}]   ;;  %s6852_s13 = inlined_call_operand.vmem [shape: f32[1,128], index: 13, kind: input, shape index: {}]   ;;  %s6853_s14 = inlined_call_operand.vmem [shape: f32[1,128], index: 14, kind: input, shape index: {}]   ;;  %s6854_s17 = inlined_call_operand.vmem [shape: f32[1,384], index: 17, kind: input, shape index: {}]   ;;  %s6855_s18 = inlined_call_operand.vmem [shape: f32[1,128], index: 18, kind: input, shape index: {}]   ;;  %s6856_s19 = inlined_call_operand.vmem [shape: bf16[128,128], index: 19, kind: input, shape index: {}]   ;;  %s6857_s20 = inlined_call_operand.vmem [shape: f32[1,128], index: 20, kind: input, shape index: {}]   ;;  %s6858_s21 = inlined_call_operand.vmem [shape: f32[8,128], index: 21, kind: output, shape index: {}]  }
   0x1   :  { %6863 = sst [smem:[#allocation2_spill]] %s6837_s1 }
   0x2   :  { %6864 = sst [smem:[#allocation3_spill]] %s6838_s0 }
   0x3   :  { %6865 = sst [smem:[#allocation4_spill]] %s6839_s5 }
   0x4   :  { %6866 = sst [smem:[#allocation5_spill]] %s6840_s6 }
   0x5   :  { %6867 = sst [smem:[#allocation6_spill]] %s6841_s2 }
   0x6   :  { %6868 = sst [smem:[#allocation7_spill]] %s6842_s3 }
   0x7   :  { %s6869_s26 = sld [smem:[#allocation2_spill]] }
   0x8   :  { %s6870_s30 = sld [smem:[#allocation3_spill]] }
   0x9   :  { %s6871_s28 = sld [smem:[#allocation6_spill]] }
   0xa   :  { %s6872_s1 = sld [smem:[#allocation7_spill]] }
   0xb   :  { %s6873_s23 = sld [smem:[#allocation4_spill]] }
   0xc   :  { %s6874_s27 = sld [smem:[#allocation5_spill]] }
   0xd   :  { %v5291_v0 = vld [vmem:[%s6869_s26 + $0x78] sm:$0xff]   ;;  %v5295_v4 = vld [vmem:[%s6869_s26 + $0x70] sm:$0xff]   ;;  %v5299_v8 = vld [vmem:[%s6869_s26 + $0x68] sm:$0xff]  }
   0xe   :  { %v5292_v1 = vld [vmem:[%s6869_s26 + $0x38] sm:$0xff]   ;;  %4429 = vmatprep.subr.bf16.mxu0 %v5291_v0  ;;  %v5296_v5 = vld [vmem:[%s6869_s26 + $0x30] sm:$0xff]   ;;  %v5300_v9 = vld [vmem:[%s6869_s26 + $0x28] sm:$0xff]  }
   0xf   :  { %v5293_v2 = vld [vmem:[%s6869_s26 + $0xf8] sm:$0xff]   ;;  %4430 = vmatpush3.bf16.msra.mxu0 %v5292_v1  ;;  %v5297_v6 = vld [vmem:[%s6869_s26 + $0xf0] sm:$0xff]   ;;  %v5301_v10 = vld [vmem:[%s6869_s26 + $0xe8] sm:$0xff]  }
  0x10   :  { %v5294_v3 = vld [vmem:[%s6869_s26 + $0xb8] sm:$0xff]   ;;  %4469 = vmatprep.subr.bf16.mxu1 %v5293_v2  ;;  %4431 = vmatprep.subr.bf16.mxu0 %v5295_v4  ;;  %v5298_v7 = vld [vmem:[%s6869_s26 + $0xb0] sm:$0xff]   ;;  %v5302_v11 = vld [vmem:[%s6869_s26 + $0xa8] sm:$0xff]  }
  0x11   :  { %4470 = vmatpush3.bf16.msra.mxu1 %v5294_v3  ;;  %v5303_v12 = vld [vmem:[%s6869_s26 + $0x60] sm:$0xff]   ;;  %v5307_v16 = vld [vmem:[%s6869_s26 + $0x58] sm:$0xff]   ;;  %v5311_v20 = vld [vmem:[%s6869_s26 + $0x50] sm:$0xff]  }
  0x12   :  { %4471 = vmatprep.subr.bf16.mxu1 %v5297_v6  ;;  %v5304_v13 = vld [vmem:[%s6869_s26 + $0x20] sm:$0xff]   ;;  %v5308_v17 = vld [vmem:[%s6869_s26 + $0x18] sm:$0xff]   ;;  %v5312_v21 = vld [vmem:[%s6869_s26 + $0x10] sm:$0xff]  }
  0x13   :  { %4432 = vmatpush3.bf16.msra.mxu0 %v5296_v5  ;;  %v5305_v14 = vld [vmem:[%s6869_s26 + $0xe0] sm:$0xff]   ;;  %v5309_v18 = vld [vmem:[%s6869_s26 + $0xd8] sm:$0xff]   ;;  %v5313_v22 = vld [vmem:[%s6869_s26 + $0xd0] sm:$0xff]  }
  0x14   :  { %4433 = vmatprep.subr.bf16.mxu0 %v5299_v8  ;;  %v5306_v15 = vld [vmem:[%s6869_s26 + $0xa0] sm:$0xff]   ;;  %v5310_v19 = vld [vmem:[%s6869_s26 + $0x98] sm:$0xff]   ;;  %v5314_v23 = vld [vmem:[%s6869_s26 + $0x90] sm:$0xff]  }
  0x15   :  { %4472 = vmatpush3.bf16.msra.mxu1 %v5298_v7  ;;  %v5315_v24 = vld [vmem:[%s6869_s26 + $0x48] sm:$0xff]   ;;  %v5319_v28 = vld [vmem:[%s6869_s26 + $0x40] sm:$0xff]   ;;  %v5329_v36 = vld [vmem:[%s6869_s26 + $0x118] sm:$0xff]  }
  0x16   :  { %4473 = vmatprep.subr.bf16.mxu1 %v5301_v10  ;;  %v5316_v25 = vld [vmem:[%s6869_s26 + $0x8] sm:$0xff]   ;;  %v5320_v29 = vld [vmem:[%s6869_s26] sm:$0xff]   ;;  %v5336_v40 = vld [vmem:[%s6869_s26 + $0x110] sm:$0xff]  }
  0x17   :  { %4434 = vmatpush3.bf16.msra.mxu0 %v5300_v9  ;;  %v5317_v26 = vld [vmem:[%s6869_s26 + $0xc8] sm:$0xff]   ;;  %v5321_v30 = vld [vmem:[%s6869_s26 + $0xc0] sm:$0xff]   ;;  %v5340_v44 = vld [vmem:[%s6870_s30 + $0x5c] ss:$20 sps:$4 sm:$0xff]  }
  0x18   :  { %4435 = vmatprep.subr.bf16.mxu0 %v5303_v12  ;;  %v5318_v27 = vld [vmem:[%s6869_s26 + $0x88] sm:$0xff]   ;;  %v5322_v31 = vld [vmem:[%s6870_s30] ss:$20 sps:$4 sm:$0xff]   ;;  %v5324_v32 = vld [vmem:[%s6870_s30 + $0x4] ss:$20 sps:$4 sm:$0xff]  }
  0x19   :  { %4474 = vmatpush3.bf16.msra.mxu1 %v5302_v11  ;;  %v5325_v33 = vld [vmem:[%s6869_s26 + $0x80] sm:$0xff]   ;;  %533 = vmatprep.mubr.bf16.mxu0 %v5324_v32  ;;  %v5326_v34 = vld [vmem:[%s6870_s30 + $0x8] ss:$20 sps:$4 sm:$0xff]   ;;  %v5342_v48 = vld [vmem:[%s6870_s30 + $0x58] ss:$20 sps:$4 sm:$0xff]  }
  0x1a   :  { %4475 = vmatprep.subr.bf16.mxu1 %v5305_v14  ;;  %v5328_v35 = vld [vmem:[%s6870_s30 + $0xc] ss:$20 sps:$4 sm:$0xff]   ;;  %v5333_v38 = vld [vmem:[%s6870_s30 + $0x34] ss:$20 sps:$4 sm:$0xff]   ;;  %v5335_v42 = vld [vmem:[%s6870_s30 + $0x30] ss:$20 sps:$4 sm:$0xff]  }
  0x1b   :  { %4436 = vmatpush3.bf16.msra.mxu0 %v5304_v13  ;;  %598 = vmatprep.mubr.bf16.mxu1 %v5328_v35  ;;  %v5330_v37 = vld [vmem:[%s6870_s30 + $0x2c] ss:$20 sps:$4 sm:$0xff]   ;;  %v5332_v39 = vld [vmem:[%s6870_s30 + $0x28] ss:$20 sps:$4 sm:$0xff]   ;;  %v5339_v46 = vld [vmem:[%s6870_s30 + $0x50] ss:$20 sps:$4 sm:$0xff]  }
  0x1c   :  { %4437 = vmatprep.subr.bf16.mxu0 %v5307_v16  ;;  %v5337_v41 = vld [vmem:[%s6870_s30 + $0x54] ss:$20 sps:$4 sm:$0xff]   ;;  %v5350_v45 = vld [vmem:[%s6869_s26 + $0x100] sm:$0xff]   ;;  %v5344_v47 = vld [vmem:[%s6870_s30 + $0x7c] ss:$20 sps:$4 sm:$0xff]  }
  0x1d   :  { %4476 = vmatpush3.bf16.msra.mxu1 %v5306_v15  ;;  %v5343_v43 = vld [vmem:[%s6869_s26 + $0x108] sm:$0xff]   ;;  %v5347_v49 = vld [vmem:[%s6870_s30 + $0x84] ss:$20 sps:$4 sm:$0xff]   ;;  %v5349_v52 = vld [vmem:[%s6870_s30 + $0x80] ss:$20 sps:$4 sm:$0xff]  }
  0x1e   :  { %4477 = vmatprep.subr.bf16.mxu1 %v5309_v18  ;;  %v5346_v50 = vld [vmem:[%s6870_s30 + $0x78] ss:$20 sps:$4 sm:$0xff]   ;;  %v5351_v51 = vld [vmem:[%s6870_s30 + $0x10] ss:$20 sps:$4 sm:$0xff]   ;;  %v5353_v54 = vld [vmem:[%s6870_s30 + $0x60] ss:$20 sps:$4 sm:$0xff]  }
  0x1f   :  { %4438 = vmatpush3.bf16.msra.mxu0 %v5308_v17  ;;  %v5352_v53 = vld [vmem:[%s6870_s30 + $0x38] ss:$20 sps:$4 sm:$0xff]   ;;  %v5354_v55 = vld [vmem:[%s6870_s30 + $0x88] ss:$20 sps:$4 sm:$0xff]  }
  0x20   :  { %4439 = vmatprep.subr.bf16.mxu0 %v5311_v20 }
  0x21   :  { %4478 = vmatpush3.bf16.msra.mxu1 %v5310_v19 }
  0x22   :  { %4479 = vmatprep.subr.bf16.mxu1 %v5313_v22 }
  0x23   :  { %4440 = vmatpush3.bf16.msra.mxu0 %v5312_v21 }
  0x24   :  { %4441 = vmatprep.subr.bf16.mxu0 %v5315_v24 }
  0x25   :  { %4480 = vmatpush3.bf16.msra.mxu1 %v5314_v23 }
  0x26   :  { %4481 = vmatprep.subr.bf16.mxu1 %v5317_v26  ;;  %v4145_v26 = vld [vmem:[%s6871_s28] ss:$0 sm:$0xff] }
  0x27   :  { %4442 = vmatpush3.bf16.msra.mxu0 %v5316_v25 }
  0x28   :  { %4443 = vmatprep.subr.bf16.mxu0 %v5319_v28 }
  0x29   :  { %4482 = vmatpush3.bf16.msra.mxu1 %v5318_v27 }
  0x2a   :  { %4483 = vmatprep.subr.bf16.mxu1 %v5321_v30 }
  0x2b   :  { %4444 = vmatpush3.bf16.msra.mxu0 %v5320_v29 }
  0x2c   :  { %4742 = vmatprep.subr.bf16.mxu0 %v5329_v36 }
  0x2d   :  { %4484 = vmatpush3.bf16.msra.mxu1 %v5325_v33 }
  0x2e   :  { %534 = vmatmul.mubr.bf16.vlgmr.msra.gmra.mxu0 %v5322_v31  ;;  %4758 = vmatprep.subr.bf16.mxu1 %v5575_v56 }
  0x2f   :  { %4743 = vmatpush3.bf16.msra.mxu0 %v5329_v36  ;;  %541 = vmatprep.mubr.bf16.mxu0 %v5330_v37 }
  0x30   :  { %599 = vmatmul.mubr.bf16.vlgmr.msra.gmra.mxu1 %v5326_v34  ;;  %4744 = vmatprep.subr.bf16.mxu0 %v5336_v40 }
  0x31   :  { %606 = vmatprep.mubr.bf16.mxu1 %v5333_v38 }
  0x33   :  { %4745 = vmatpush3.bf16.msra.mxu0 %v5336_v40 }
  0x34   :  { %4746 = vmatprep.subr.bf16.mxu0 %v5343_v43 }
  0x36   :  { %542 = vmatmul.mubr.bf16.gmra.mxu0 %v5332_v39 }
  0x37   :  { %549 = vmatprep.mubr.bf16.mxu0 %v5337_v41  ;;  %4747 = vmatpush3.bf16.msra.mxu0 %v5343_v43 }
  0x38   :  { %607 = vmatmul.mubr.bf16.gmra.mxu1 %v5335_v42  ;;  %4748 = vmatprep.subr.bf16.mxu0 %v5350_v45 }
  0x39   :  { %614 = vmatprep.mubr.bf16.mxu1 %v5340_v44 }
  0x3b   :  { %4749 = vmatpush3.bf16.msra.mxu0 %v5350_v45 }
  0x3c   :  { %4770 = vmatprep.subr.bf16.mxu0 %v5575_v56 }
  0x3e   :  { %550 = vmatmul.mubr.bf16.gmra.mxu0 %v5339_v46 }
  0x3f   :  { %557 = vmatprep.mubr.bf16.mxu0 %v5344_v47 }
  0x40   :  { %615 = vmatmul.mubr.bf16.gmra.mxu1 %v5342_v48 }
  0x41   :  { %622 = vmatprep.mubr.bf16.mxu1 %v5347_v49 }
  0x46   :  { %558 = vmatmul.mubr.bf16.gmra.mxu0 %v5346_v50 }
  0x47   :  { %4750 = vmatprep.mubr.msk.bf16.mxu0 %vm488_vm0, %v5351_v51 }
  0x48   :  { %623 = vmatmul.mubr.bf16.gmra.mxu1 %v5349_v52 }
  0x49   :  { %4766 = vmatprep.mubr.msk.bf16.mxu1 %vm5576_vm1, %v5575_v56 }
  0x4e   :  { %4751 = vmatmul.mubr.msk.bf16.vlgmr.msra.gmra.mxu0 %vm488_vm0, %v5352_v53 }
  0x4f   :  { %4754 = vmatprep.mubr.msk.bf16.mxu0 %vm488_vm0, %v5353_v54 }
  0x56   :  { %4755 = vmatmul.mubr.msk.bf16.gmra.mxu0 %vm488_vm0, %v5354_v55 }
  0x57   :  { %4778 = vmatprep.mubr.msk.bf16.mxu0 %vm5576_vm1, %v5575_v56 }
  0xee   :  { %v4445_v57 = vpop.f32.mrf.mxu0 }
  0xf0   :  { %v4446_v58 = vpop.f32.mrf.mxu0  ;;  %v5866_v59 = vpop.f32.mrf.mxu1 }
  0xf1   :  { %v4447_v52 = vadd.f32 %v4446_v58, %v4445_v57  ;;  %v4206_v57 = vld [vmem:[%s6872_s1] ss:$0 sm:$0xff] }
  0xf2   :  { %v4448_v60 = vpop.f32.mrf.mxu0  ;;  %v5868_v61 = vpop.f32.mrf.mxu1 }
  0xf4   :  { %v4449_v62 = vpop.f32.mrf.mxu0  ;;  %v4488_v63 = vpop.f32.mrf.mxu1 }
  0xf5   :  { %v4450_v40 = vadd.f32 %v4449_v62, %v4448_v60 }
  0xf6   :  { %v4451_v0 = vpop.f32.mrf.mxu0  ;;  %v4489_v1 = vpop.f32.mrf.mxu1 }
  0xf7   :  { %v539_v55 = vadd.f32 %v4450_v40, %v4145_v26 }
  0xf8   :  { %v4452_v2 = vpop.f32.mrf.mxu0  ;;  %v4491_v3 = vpop.f32.mrf.mxu1 }
  0xf9   :  { %v4453_v29 = vadd.f32 %v4452_v2, %v4451_v0  ;;  %v4490_v0 = vadd.f32 %v4489_v1, %v4488_v63 }
  0xfa   :  { %v4454_v4 = vpop.f32.mrf.mxu0  ;;  %v4492_v5 = vpop.f32.mrf.mxu1 }
  0xfb   :  { %v544_v41 = vadd.f32 %v4453_v29, %v4145_v26  ;;  %v4493_v48 = vadd.f32 %v4492_v5, %v4491_v3  ;;  %v604_v63 = vadd.f32 %v4490_v0, %v539_v55 }
  0xfc   :  { %v4455_v6 = vpop.f32.mrf.mxu0  ;;  %v4494_v7 = vpop.f32.mrf.mxu1 }
  0xfd   :  { %v4456_v32 = vadd.f32 %v4455_v6, %v4454_v4 }
  0xfe   :  { %v4457_v8 = vpop.f32.mrf.mxu0  ;;  %v4495_v9 = vpop.f32.mrf.mxu1 }
  0xff   :  { %v547_v43 = vadd.f32 %v4456_v32, %v4145_v26  ;;  %v4496_v44 = vadd.f32 %v4495_v9, %v4494_v7  ;;  %v536_v7 = vadd.f32 %v4447_v52, %v4145_v26  ;;  %v4487_v9 = vadd.f32 %v5868_v61, %v5866_v59  ;;  %v4207_v59 = vld [vmem:[%s6843_s4] ss:$0 sm:$0xff] }
 0x100   :  { %v4458_v10 = vpop.f32.mrf.mxu0  ;;  %v4497_v11 = vpop.f32.mrf.mxu1 }
 0x101   :  { %v4459_v27 = vadd.f32 %v4458_v10, %v4457_v8  ;;  %v612_v2 = vadd.f32 %v4496_v44, %v547_v43  ;;  %v609_v8 = vadd.f32 %v4493_v48, %v544_v41  ;;  %v5355_v41 = vld [vmem:[%s6873_s23] sm:$0xff]   ;;  %v5357_v43 = vld [vmem:[%s6874_s27 + $0x38] sm:$0xff]   ;;  %v5362_v48 = vld [vmem:[%s6874_s27 + $0x8] sm:$0xff]  }
 0x102   :  { %v4460_v12 = vpop.f32.mrf.mxu0  ;;  %v4498_v13 = vpop.f32.mrf.mxu1  ;;  %v5358_v44 = vld [vmem:[%s6874_s27 + $0x18] sm:$0xff]  }
 0x103   :  { %v552_v37 = vadd.f32 %v4459_v27, %v4145_v26  ;;  %v4499_v38 = vadd.f32 %v4498_v13, %v4497_v11 }
 0x104   :  { %v4461_v14 = vpop.f32.mrf.mxu0  ;;  %v4500_v15 = vpop.f32.mrf.mxu1 }
 0x105   :  { %v4462_v35 = vadd.f32 %v4461_v14, %v4460_v12  ;;  %v617_v53 = vadd.f32 %v4499_v38, %v552_v37 }
 0x106   :  { %v4463_v16 = vpop.f32.mrf.mxu0  ;;  %v4501_v17 = vpop.f32.mrf.mxu1 }
 0x107   :  { %v555_v49 = vadd.f32 %v4462_v35, %v4145_v26  ;;  %v4502_v50 = vadd.f32 %v4501_v17, %v4500_v15 }
 0x108   :  { %v4464_v18 = vpop.f32.mrf.mxu0  ;;  %v4503_v19 = vpop.f32.mrf.mxu1 }
 0x109   :  { %v4465_v23 = vadd.f32 %v4464_v18, %v4463_v16  ;;  %v620_v10 = vadd.f32 %v4502_v50, %v555_v49  ;;  %v601_v16 = vadd.f32 %v4487_v9, %v536_v7  ;;  %v5363_v49 = vld [vmem:[%s6874_s27 + $0x20] sm:$0xff]   ;;  %v5368_v7 = vld [vmem:[%s6873_s23 + $0x28] sm:$0xff]   ;;  %v5372_v9 = vld [vmem:[%s6874_s27 + $0x58] sm:$0xff]  }
 0x10a   :  { %v4466_v20 = vpop.f32.mrf.mxu0  ;;  %v4504_v21 = vpop.f32.mrf.mxu1  ;;  %v5364_v50 = vld [vmem:[%s6874_s27] sm:$0xff]  }
 0x10b   :  { %v560_v30 = vadd.f32 %v4465_v23, %v4145_v26  ;;  %v4505_v31 = vadd.f32 %v4504_v21, %v4503_v19 }
 0x10c   :  { %v4467_v22 = vpop.f32.mrf.mxu0  ;;  %v4506_v25 = vpop.f32.mrf.mxu1 }
 0x10d   :  { %v4468_v33 = vadd.f32 %v4467_v22, %v4466_v20  ;;  %v625_v42 = vadd.f32 %v4505_v31, %v560_v30 }
 0x10e   :  { %v4752_v24 = vpop.f32.mrf.mxu0  ;;  %v4507_v36 = vpop.f32.mrf.mxu1 }
 0x10f   :  { %v563_v45 = vadd.f32 %v4468_v33, %v4145_v26  ;;  %v4508_v46 = vadd.f32 %v4507_v36, %v4506_v25  ;;  %v674_v12 = vadd.f32 %v4752_v24, %v609_v8  ;;  %v5366_v8 = vld [vmem:[%s6873_s23 + $0x18] sm:$0xff]  }
 0x110   :  { %v665_v28 = vpop.f32.mrf.mxu0 }
 0x111   :  { %v628_v60 = vadd.f32 %v4508_v46, %v563_v45  ;;  %v698_v20 = vmax.f32 %v674_v12, 0.0  ;;  %v666_v21 = vadd.f32 %v665_v28, %v601_v16  ;;  %v5359_v45 = vld [vmem:[%s6874_s27 + $0x30] sm:$0xff]   ;;  %v5375_v12 = vld [vmem:[%s6874_s27 + $0x40] sm:$0xff]  }
 0x112   :  { %v4753_v34 = vpop.f32.mrf.mxu0  ;;  %v5360_v46 = vld [vmem:[%s6874_s27 + $0x10] sm:$0xff]  }
 0x113   :  { %v677_v3 = vadd.f32 %v4753_v34, %v612_v2  ;;  %v713_v30 = vmul.f32 %v4206_v57, %v698_v20  ;;  %v696_v31 = vmax.f32 %v666_v21, 0.0 }
 0x114   :  { %v668_v39 = vpop.f32.mrf.mxu0 }
 0x115   :  { %v699_v17 = vmax.f32 %v677_v3, 0.0  ;;  %v669_v18 = vadd.f32 %v668_v39, %v604_v63  ;;  %v728_v35 = vadd.f32 %v4207_v59, %v713_v30  ;;  %v711_v36 = vmul.f32 %v4206_v57, %v696_v31  ;;  %v5373_v3 = vld [vmem:[%s6874_s27 + $0x50] sm:$0xff]  }
 0x116   :  { %v4756_v47 = vpop.f32.mrf.mxu0 }
 0x117   :  { %v690_v51 = vadd.f32 %v4756_v47, %v625_v42  ;;  %v714_v25 = vmul.f32 %v4206_v57, %v699_v17  ;;  %v697_v26 = vmax.f32 %v669_v18, 0.0  ;;  %v726_v39 = vadd.f32 %v4207_v59, %v711_v36  ;;  %v5356_v42 = vld [vmem:[%s6873_s23 + $0x8] sm:$0xff]  }
 0x118   :  { %v681_v54 = vpop.f32.mrf.mxu0  ;;  %v5361_v47 = vld [vmem:[%s6874_s27 + $0x28] sm:$0xff]  }
 0x119   :  { %v702_v4 = vmax.f32 %v690_v51, 0.0  ;;  %v682_v6 = vadd.f32 %v681_v54, %v617_v53  ;;  %v729_v28 = vadd.f32 %v4207_v59, %v714_v25  ;;  %v712_v33 = vmul.f32 %v4206_v57, %v697_v26  ;;  %v5377_v25 = vld [vmem:[%s6874_s27 + $0x70] sm:$0xff]   ;;  %v5378_v26 = vld [vmem:[%s6874_s27 + $0x68] sm:$0xff]  }
 0x11a   :  { %v4757_v62 = vpop.f32.mrf.mxu0 }
 0x11b   :  { %v693_v5 = vadd.f32 %v4757_v62, %v628_v60  ;;  %v717_v1 = vmul.f32 %v4206_v57, %v702_v4  ;;  %v700_v13 = vmax.f32 %v682_v6, 0.0  ;;  %v5893_v37 = vpack.c.bf16 %v729_v28, %v728_v35  ;;  %v5365_v62 = vld [vmem:[%s6873_s23 + $0x10] sm:$0xff]   ;;  %v5382_v35 = vld [vmem:[%s6874_s27 + $0x88] sm:$0xff]  }
 0x11c   :  { %v684_v11 = vpop.f32.mrf.mxu0  ;;  %v727_v38 = vadd.f32 %v4207_v59, %v712_v33 }
 0x11d   :  { %v685_v58 = vadd.f32 %v684_v11, %v620_v10  ;;  %v703_v14 = vmax.f32 %v693_v5, 0.0  ;;  %v732_v22 = vadd.f32 %v4207_v59, %v717_v1  ;;  %v715_v23 = vmul.f32 %v4206_v57, %v700_v13  ;;  %v5367_v10 = vld [vmem:[%s6873_s23 + $0x20] sm:$0xff]   ;;  %v5369_v5 = vld [vmem:[%s6873_s23 + $0x30] sm:$0xff]   ;;  %v5374_v11 = vld [vmem:[%s6874_s27 + $0x48] sm:$0xff]  }
 0x11e   :  { %v5899_v40 = vpack.c.bf16 %v727_v38, %v726_v39 }
 0x11f   :  { %v701_v15 = vmax.f32 %v685_v58, 0.0  ;;  %v718_v19 = vmul.f32 %v4206_v57, %v703_v14  ;;  %v730_v32 = vadd.f32 %v4207_v59, %v715_v23  ;;  %v5371_v58 = vld [vmem:[%s6873_s23 + $0x40] sm:$0xff]  }
 0x121   :  { %v716_v61 = vmul.f32 %v4206_v57, %v701_v15  ;;  %v733_v24 = vadd.f32 %v4207_v59, %v718_v19  ;;  %v5370_v57 = vld [vmem:[%s6873_s23 + $0x38] sm:$0xff]  }
 0x123   :  { %v5881_v27 = vpack.c.bf16 %v733_v24, %v732_v22  ;;  %v731_v29 = vadd.f32 %v4207_v59, %v716_v61  ;;  %v5376_v22 = vld [vmem:[%s6874_s27 + $0x78] sm:$0xff]  }
 0x125   :  { %4759 = vmatpush3.bf16.msra.mxu1 %v5881_v27  ;;  %4771 = vmatpush3.bf16.msra.mxu0 %v5881_v27  ;;  %v5887_v34 = vpack.c.bf16 %v731_v29, %v730_v32  ;;  %v5379_v29 = vld [vmem:[%s6874_s27 + $0x60] sm:$0xff]   ;;  %v5380_v32 = vld [vmem:[%s6874_s27 + $0x98] sm:$0xff]  }
 0x126   :  { %4760 = vmatprep.subr.bf16.mxu1 %v5575_v56  ;;  %4772 = vmatprep.subr.bf16.mxu0 %v5575_v56 }
 0x129   :  { %4761 = vmatpush3.bf16.msra.mxu1 %v5887_v34  ;;  %4773 = vmatpush3.bf16.msra.mxu0 %v5887_v34 }
 0x12a   :  { %4762 = vmatprep.subr.bf16.mxu1 %v5575_v56  ;;  %4774 = vmatprep.subr.bf16.mxu0 %v5575_v56 }
 0x12d   :  { %4763 = vmatpush3.bf16.msra.mxu1 %v5893_v37  ;;  %4775 = vmatpush3.bf16.msra.mxu0 %v5893_v37 }
 0x12e   :  { %4764 = vmatprep.subr.bf16.mxu1 %v5575_v56  ;;  %4776 = vmatprep.subr.bf16.mxu0 %v5575_v56 }
 0x131   :  { %4765 = vmatpush3.bf16.msra.mxu1 %v5899_v40  ;;  %4777 = vmatpush3.bf16.msra.mxu0 %v5899_v40 }
 0x132   :  { %4782 = vmatprep.subr.bf16.mxu1 %v5575_v56  ;;  %4794 = vmatprep.subr.bf16.mxu0 %v5575_v56 }
 0x134   :  { %4767 = vmatmul.mubr.msk.bf16.vlgmr.msra.gmra.mxu1 %vm488_vm0, %v5355_v41  ;;  %4779 = vmatmul.mubr.msk.bf16.vlgmr.msra.gmra.mxu0 %vm488_vm0, %v5356_v42 }
 0x135   :  { %4783 = vmatpush3.bf16.msra.mxu1 %v5357_v43  ;;  %4795 = vmatpush3.bf16.msra.mxu0 %v5358_v44  ;;  %v5385_v43 = vld [vmem:[%s6874_s27 + $0xb0] sm:$0xff]   ;;  %v5386_v44 = vld [vmem:[%s6874_s27 + $0xa8] sm:$0xff]  }
 0x136   :  { %4784 = vmatprep.subr.bf16.mxu1 %v5575_v56  ;;  %4796 = vmatprep.subr.bf16.mxu0 %v5575_v56 }
 0x137   :  { %4790 = vmatprep.mubr.msk.bf16.mxu1 %vm5576_vm1, %v5575_v56  ;;  %4802 = vmatprep.mubr.msk.bf16.mxu0 %vm5576_vm1, %v5575_v56 }
 0x139   :  { %4785 = vmatpush3.bf16.msra.mxu1 %v5359_v45  ;;  %4797 = vmatpush3.bf16.msra.mxu0 %v5360_v46  ;;  %v5387_v46 = vld [vmem:[%s6874_s27 + $0xa0] sm:$0xff]  }
 0x13a   :  { %4786 = vmatprep.subr.bf16.mxu1 %v5575_v56  ;;  %4798 = vmatprep.subr.bf16.mxu0 %v5575_v56 }
 0x13d   :  { %4787 = vmatpush3.bf16.msra.mxu1 %v5361_v47  ;;  %4799 = vmatpush3.bf16.msra.mxu0 %v5362_v48 }
 0x13e   :  { %4788 = vmatprep.subr.bf16.mxu1 %v5575_v56  ;;  %4800 = vmatprep.subr.bf16.mxu0 %v5575_v56 }
 0x141   :  { %4789 = vmatpush3.bf16.msra.mxu1 %v5363_v49  ;;  %4801 = vmatpush3.bf16.msra.mxu0 %v5364_v50  ;;  %v5388_v49 = vld [vmem:[%s6874_s27 + $0xd8] sm:$0xff]  }
 0x142   :  { %4806 = vmatprep.subr.bf16.mxu1 %v5575_v56  ;;  %4818 = vmatprep.subr.bf16.mxu0 %v5575_v56 }
 0x1f4   :  { %v790_v51 = vpop.f32.mrf.mxu1  ;;  %v850_v52 = vpop.f32.mrf.mxu0 }
 0x1f6   :  { %v4768_v53 = vpop.f32.mrf.mxu1  ;;  %v4780_v54 = vpop.f32.mrf.mxu0 }
 0x1f7   :  { %v5390_v53 = vld [vmem:[%s6874_s27 + $0xc8] sm:$0xff]  }
 0x1f8   :  { %v793_v55 = vpop.f32.mrf.mxu1  ;;  %v853_v0 = vpop.f32.mrf.mxu0 }
 0x1f9   :  { %v797_v2 = vpack.c.bf16 %v793_v55, %v790_v51  ;;  %v857_v4 = vpack.c.bf16 %v853_v0, %v850_v52  ;;  %v5389_v52 = vld [vmem:[%s6874_s27 + $0xd0] sm:$0xff]   ;;  %v5391_v55 = vld [vmem:[%s6874_s27 + $0xc0] sm:$0xff]  }
 0x1fa   :  { %v4781_v6 = vpop.f32.mrf.mxu0  ;;  %v4769_v60 = vpop.f32.mrf.mxu1 }
 0x1fb   :  { %4791 = vmatmul.mubr.msk.bf16.vlgmr.msra.gmra.mxu1 %vm488_vm0, %v857_v4  ;;  %4803 = vmatmul.mubr.msk.bf16.vlgmr.msra.gmra.mxu0 %vm488_vm0, %v797_v2  ;;  %v5392_v4 = vld [vmem:[%s6874_s27 + $0xf8] sm:$0xff]  }
 0x1fc   :  { %4807 = vmatpush3.bf16.msra.mxu1 %v5881_v27  ;;  %4814 = vmatprep.mubr.msk.bf16.mxu1 %vm5576_vm1, %v5575_v56 }
 0x1fd   :  { %4808 = vmatprep.subr.bf16.mxu1 %v5575_v56  ;;  %4826 = vmatprep.mubr.msk.bf16.mxu0 %vm5576_vm1, %v5575_v56 }
 0x1fe   :  { %4819 = vmatpush3.bf16.msra.mxu0 %v5372_v9 }
 0x1ff   :  { %4820 = vmatprep.subr.bf16.mxu0 %v5575_v56 }
 0x200   :  { %4809 = vmatpush3.bf16.msra.mxu1 %v5887_v34 }
 0x201   :  { %4810 = vmatprep.subr.bf16.mxu1 %v5575_v56 }
 0x202   :  { %4821 = vmatpush3.bf16.msra.mxu0 %v5373_v3 }
 0x203   :  { %4822 = vmatprep.subr.bf16.mxu0 %v5575_v56 }
 0x204   :  { %4811 = vmatpush3.bf16.msra.mxu1 %v5893_v37 }
 0x205   :  { %4812 = vmatprep.subr.bf16.mxu1 %v5575_v56 }
 0x206   :  { %4823 = vmatpush3.bf16.msra.mxu0 %v5374_v11 }
 0x207   :  { %4824 = vmatprep.subr.bf16.mxu0 %v5575_v56 }
 0x208   :  { %4813 = vmatpush3.bf16.msra.mxu1 %v5899_v40 }
 0x209   :  { %4830 = vmatprep.subr.bf16.mxu1 %v5575_v56 }
 0x20a   :  { %4825 = vmatpush3.bf16.msra.mxu0 %v5375_v12 }
 0x20b   :  { %4815 = vmatmul.mubr.msk.bf16.vlgmr.msra.gmra.mxu1 %vm488_vm0, %v5365_v62  ;;  %4842 = vmatprep.subr.bf16.mxu0 %v5575_v56  ;;  %v5393_v62 = vld [vmem:[%s6874_s27 + $0xf0] sm:$0xff]  }
 0x20c   :  { %4831 = vmatpush3.bf16.msra.mxu1 %v5881_v27  ;;  %4838 = vmatprep.mubr.msk.bf16.mxu1 %vm5576_vm1, %v5575_v56 }
 0x20d   :  { %4832 = vmatprep.subr.bf16.mxu1 %v5575_v56 }
 0x210   :  { %4833 = vmatpush3.bf16.msra.mxu1 %v5887_v34 }
 0x211   :  { %4834 = vmatprep.subr.bf16.mxu1 %v5575_v56 }
 0x214   :  { %4835 = vmatpush3.bf16.msra.mxu1 %v5893_v37 }
 0x215   :  { %4836 = vmatprep.subr.bf16.mxu1 %v5575_v56 }
 0x218   :  { %4837 = vmatpush3.bf16.msra.mxu1 %v5899_v40 }
 0x219   :  { %4854 = vmatprep.subr.bf16.mxu1 %v5575_v56 }
 0x21b   :  { %4839 = vmatmul.mubr.msk.bf16.vlgmr.msra.gmra.mxu1 %vm488_vm0, %v5366_v8  ;;  %v5394_v8 = vld [vmem:[%s6874_s27 + $0xe8] sm:$0xff]  }
 0x21c   :  { %4855 = vmatpush3.bf16.msra.mxu1 %v5881_v27  ;;  %4862 = vmatprep.mubr.msk.bf16.mxu1 %vm5576_vm1, %v5575_v56 }
 0x21d   :  { %4856 = vmatprep.subr.bf16.mxu1 %v5575_v56 }
 0x220   :  { %4857 = vmatpush3.bf16.msra.mxu1 %v5887_v34 }
 0x221   :  { %4858 = vmatprep.subr.bf16.mxu1 %v5575_v56 }
 0x224   :  { %4859 = vmatpush3.bf16.msra.mxu1 %v5893_v37 }
 0x225   :  { %4860 = vmatprep.subr.bf16.mxu1 %v5575_v56 }
 0x228   :  { %4861 = vmatpush3.bf16.msra.mxu1 %v5899_v40 }
 0x229   :  { %4878 = vmatprep.subr.bf16.mxu1 %v5575_v56 }
 0x22b   :  { %4863 = vmatmul.mubr.msk.bf16.vlgmr.msra.gmra.mxu1 %vm488_vm0, %v5367_v10 }
 0x22c   :  { %4879 = vmatpush3.bf16.msra.mxu1 %v5881_v27  ;;  %4886 = vmatprep.mubr.msk.bf16.mxu1 %vm5576_vm1, %v5575_v56 }
 0x22d   :  { %4880 = vmatprep.subr.bf16.mxu1 %v5575_v56 }
 0x230   :  { %4881 = vmatpush3.bf16.msra.mxu1 %v5887_v34 }
 0x231   :  { %4882 = vmatprep.subr.bf16.mxu1 %v5575_v56 }
 0x234   :  { %4883 = vmatpush3.bf16.msra.mxu1 %v5893_v37 }
 0x235   :  { %4884 = vmatprep.subr.bf16.mxu1 %v5575_v56 }
 0x238   :  { %4885 = vmatpush3.bf16.msra.mxu1 %v5899_v40 }
 0x239   :  { %4902 = vmatprep.subr.bf16.mxu1 %v5575_v56 }
 0x23b   :  { %4887 = vmatmul.mubr.msk.bf16.vlgmr.msra.gmra.mxu1 %vm488_vm0, %v5368_v7  ;;  %v5395_v7 = vld [vmem:[%s6874_s27 + $0xe0] sm:$0xff]  }
 0x23c   :  { %4903 = vmatpush3.bf16.msra.mxu1 %v5881_v27  ;;  %4910 = vmatprep.mubr.msk.bf16.mxu1 %vm5576_vm1, %v5575_v56 }
 0x23d   :  { %4904 = vmatprep.subr.bf16.mxu1 %v5575_v56 }
 0x240   :  { %4905 = vmatpush3.bf16.msra.mxu1 %v5887_v34 }
 0x241   :  { %4906 = vmatprep.subr.bf16.mxu1 %v5575_v56 }
 0x244   :  { %4907 = vmatpush3.bf16.msra.mxu1 %v5893_v37 }
 0x245   :  { %4908 = vmatprep.subr.bf16.mxu1 %v5575_v56 }
 0x248   :  { %4909 = vmatpush3.bf16.msra.mxu1 %v5899_v40 }
 0x249   :  { %4926 = vmatprep.subr.bf16.mxu1 %v5575_v56 }
 0x24b   :  { %4911 = vmatmul.mubr.msk.bf16.vlgmr.msra.gmra.mxu1 %vm488_vm0, %v5369_v5  ;;  %v5396_v5 = vld [vmem:[%s6874_s27 + $0x118] sm:$0xff]  }
 0x24c   :  { %4927 = vmatpush3.bf16.msra.mxu1 %v5881_v27  ;;  %4934 = vmatprep.mubr.msk.bf16.mxu1 %vm5576_vm1, %v5575_v56 }
 0x24d   :  { %4928 = vmatprep.subr.bf16.mxu1 %v5575_v56 }
 0x250   :  { %4929 = vmatpush3.bf16.msra.mxu1 %v5887_v34 }
 0x251   :  { %4930 = vmatprep.subr.bf16.mxu1 %v5575_v56 }
 0x254   :  { %4931 = vmatpush3.bf16.msra.mxu1 %v5893_v37 }
 0x255   :  { %4932 = vmatprep.subr.bf16.mxu1 %v5575_v56 }
 0x258   :  { %4933 = vmatpush3.bf16.msra.mxu1 %v5899_v40 }
 0x259   :  { %4950 = vmatprep.subr.bf16.mxu1 %v5575_v56 }
 0x25b   :  { %4935 = vmatmul.mubr.msk.bf16.vlgmr.msra.gmra.mxu1 %vm488_vm0, %v5370_v57  ;;  %v5397_v57 = vld [vmem:[%s6874_s27 + $0x110] sm:$0xff]  }
 0x25c   :  { %4951 = vmatpush3.bf16.msra.mxu1 %v5881_v27  ;;  %4958 = vmatprep.mubr.msk.bf16.mxu1 %vm5576_vm1, %v5575_v56 }
 0x25d   :  { %4952 = vmatprep.subr.bf16.mxu1 %v5575_v56 }
 0x260   :  { %4953 = vmatpush3.bf16.msra.mxu1 %v5887_v34  ;;  %v5381_v34 = vld [vmem:[%s6874_s27 + $0x90] sm:$0xff]  }
 0x261   :  { %4954 = vmatprep.subr.bf16.mxu1 %v5575_v56 }
 0x264   :  { %4955 = vmatpush3.bf16.msra.mxu1 %v5893_v37  ;;  %v5383_v37 = vld [vmem:[%s6874_s27 + $0x80] sm:$0xff]  }
 0x265   :  { %4956 = vmatprep.subr.bf16.mxu1 %v5575_v56 }
 0x268   :  { %4957 = vmatpush3.bf16.msra.mxu1 %v5899_v40  ;;  %v5384_v40 = vld [vmem:[%s6874_s27 + $0xb8] sm:$0xff]  }
 0x269   :  { %4974 = vmatprep.subr.bf16.mxu1 %v5575_v56 }
 0x26b   :  { %4959 = vmatmul.mubr.msk.bf16.vlgmr.msra.gmra.mxu1 %vm488_vm0, %v5371_v58  ;;  %v5398_v58 = vld [vmem:[%s6874_s27 + $0x108] sm:$0xff]  }
 0x26c   :  { %4976 = vmatprep.mubr.msk.bf16.mxu1 %vm5576_vm1, %v5575_v56 }
 0x2bb   :  { %v919_v63 = vpop.f32.mrf.mxu1  ;;  %v987_v1 = vpop.f32.mrf.mxu0 }
 0x2bc   :  { %v6069_v13 = vadd.f32 %v987_v1, %v919_v63  ;;  %v5399_v1 = vld [vmem:[%s6874_s27 + $0x100] sm:$0xff]  }
 0x2bd   :  { %v4792_v14 = vpop.f32.mrf.mxu1  ;;  %v4804_v15 = vpop.f32.mrf.mxu0 }
 0x2bf   :  { %v922_v16 = vpop.f32.mrf.mxu1  ;;  %v990_v17 = vpop.f32.mrf.mxu0 }
 0x2c0   :  { %v6071_v18 = vadd.f32 %v990_v17, %v922_v16 }
 0x2c1   :  { %v4793_v19 = vpop.f32.mrf.mxu1  ;;  %v4805_v20 = vpop.f32.mrf.mxu0 }
 0x2cb   :  { %v1046_v59 = vpop.f32.mrf.mxu1 }
 0x2cd   :  { %v4816_v61 = vpop.f32.mrf.mxu1 }
 0x2cf   :  { %v1049_v21 = vpop.f32.mrf.mxu1 }
 0x2d0   :  { %v1053_v23 = vpack.c.bf16 %v1049_v21, %v1046_v59  ;;  %v5404_v59 = vld [vmem:[%s6845_s11 + $0x78] sm:$0xff]  }
 0x2d1   :  { %v4817_v24 = vpop.f32.mrf.mxu1 }
 0x2d2   :  { %4827 = vmatmul.mubr.msk.bf16.vlgmr.msra.gmra.mxu0 %vm488_vm0, %v1053_v23  ;;  %v5406_v23 = vld [vmem:[%s6845_s11 + $0x70] sm:$0xff]  }
 0x2d3   :  { %4843 = vmatpush3.bf16.msra.mxu0 %v5376_v22  ;;  %4850 = vmatprep.mubr.msk.bf16.mxu0 %vm5576_vm1, %v5575_v56 }
 0x2d4   :  { %4844 = vmatprep.subr.bf16.mxu0 %v5575_v56 }
 0x2d7   :  { %4845 = vmatpush3.bf16.msra.mxu0 %v5377_v25  ;;  %v5410_v25 = vld [vmem:[%s6845_s11 + $0x60] sm:$0xff]  }
 0x2d8   :  { %4846 = vmatprep.subr.bf16.mxu0 %v5575_v56 }
 0x2db   :  { %v1176_v27 = vpop.f32.mrf.mxu1  ;;  %4847 = vmatpush3.bf16.msra.mxu0 %v5378_v26 }
 0x2dc   :  { %4848 = vmatprep.subr.bf16.mxu0 %v5575_v56 }
 0x2dd   :  { %v4840_v30 = vpop.f32.mrf.mxu1 }
 0x2df   :  { %v1179_v31 = vpop.f32.mrf.mxu1  ;;  %4849 = vmatpush3.bf16.msra.mxu0 %v5379_v29 }
 0x2e0   :  { %v1183_v28 = vpack.c.bf16 %v1179_v31, %v1176_v27  ;;  %4866 = vmatprep.subr.bf16.mxu0 %v5575_v56  ;;  %v5412_v27 = vld [vmem:[%s6845_s11 + $0x58] sm:$0xff]  }
 0x2e1   :  { %v4841_v33 = vpop.f32.mrf.mxu1 }
 0x2e2   :  { %4851 = vmatmul.mubr.msk.bf16.vlgmr.msra.gmra.mxu0 %vm488_vm0, %v1183_v28 }
 0x2e3   :  { %4867 = vmatpush3.bf16.msra.mxu0 %v5380_v32  ;;  %4874 = vmatprep.mubr.msk.bf16.mxu0 %vm5576_vm1, %v5575_v56 }
 0x2e4   :  { %4868 = vmatprep.subr.bf16.mxu0 %v5575_v56 }
 0x2e7   :  { %4869 = vmatpush3.bf16.msra.mxu0 %v5381_v34 }
 0x2e8   :  { %4870 = vmatprep.subr.bf16.mxu0 %v5575_v56 }
 0x2eb   :  { %v1306_v36 = vpop.f32.mrf.mxu1  ;;  %4871 = vmatpush3.bf16.msra.mxu0 %v5382_v35 }
 0x2ec   :  { %4872 = vmatprep.subr.bf16.mxu0 %v5575_v56 }
 0x2ed   :  { %v4864_v38 = vpop.f32.mrf.mxu1 }
 0x2ef   :  { %v1309_v39 = vpop.f32.mrf.mxu1  ;;  %4873 = vmatpush3.bf16.msra.mxu0 %v5383_v37 }
 0x2f0   :  { %v1313_v41 = vpack.c.bf16 %v1309_v39, %v1306_v36  ;;  %4890 = vmatprep.subr.bf16.mxu0 %v5575_v56 }
 0x2f1   :  { %v4865_v42 = vpop.f32.mrf.mxu1 }
 0x2f2   :  { %4875 = vmatmul.mubr.msk.bf16.vlgmr.msra.gmra.mxu0 %vm488_vm0, %v1313_v41 }
 0x2f3   :  { %4891 = vmatpush3.bf16.msra.mxu0 %v5384_v40  ;;  %4898 = vmatprep.mubr.msk.bf16.mxu0 %vm5576_vm1, %v5575_v56 }
 0x2f4   :  { %4892 = vmatprep.subr.bf16.mxu0 %v5575_v56 }
 0x2f7   :  { %4893 = vmatpush3.bf16.msra.mxu0 %v5385_v43 }
 0x2f8   :  { %4894 = vmatprep.subr.bf16.mxu0 %v5575_v56 }
 0x2fb   :  { %v1436_v45 = vpop.f32.mrf.mxu1  ;;  %4895 = vmatpush3.bf16.msra.mxu0 %v5386_v44 }
 0x2fc   :  { %4896 = vmatprep.subr.bf16.mxu0 %v5575_v56 }
 0x2fd   :  { %v4888_v47 = vpop.f32.mrf.mxu1 }
 0x2ff   :  { %v1439_v48 = vpop.f32.mrf.mxu1  ;;  %4897 = vmatpush3.bf16.msra.mxu0 %v5387_v46 }
 0x300   :  { %v1443_v50 = vpack.c.bf16 %v1439_v48, %v1436_v45  ;;  %4914 = vmatprep.subr.bf16.mxu0 %v5575_v56 }
 0x301   :  { %v4889_v51 = vpop.f32.mrf.mxu1 }
 0x302   :  { %4899 = vmatmul.mubr.msk.bf16.vlgmr.msra.gmra.mxu0 %vm488_vm0, %v1443_v50 }
 0x303   :  { %4915 = vmatpush3.bf16.msra.mxu0 %v5388_v49  ;;  %4922 = vmatprep.mubr.msk.bf16.mxu0 %vm5576_vm1, %v5575_v56 }
 0x304   :  { %4916 = vmatprep.subr.bf16.mxu0 %v5575_v56 }
 0x307   :  { %4917 = vmatpush3.bf16.msra.mxu0 %v5389_v52 }
 0x308   :  { %4918 = vmatprep.subr.bf16.mxu0 %v5575_v56 }
 0x30b   :  { %v1566_v54 = vpop.f32.mrf.mxu1  ;;  %4919 = vmatpush3.bf16.msra.mxu0 %v5390_v53 }
 0x30c   :  { %4920 = vmatprep.subr.bf16.mxu0 %v5575_v56 }
 0x30d   :  { %v4912_v0 = vpop.f32.mrf.mxu1 }
 0x30f   :  { %v1569_v2 = vpop.f32.mrf.mxu1  ;;  %4921 = vmatpush3.bf16.msra.mxu0 %v5391_v55  ;;  %v4271_v55 = vld [vmem:[%s6846_s7] ss:$0 sm:$0xff] }
 0x310   :  { %v1573_v6 = vpack.c.bf16 %v1569_v2, %v1566_v54  ;;  %4938 = vmatprep.subr.bf16.mxu0 %v5575_v56 }
 0x311   :  { %v4913_v60 = vpop.f32.mrf.mxu1 }
 0x312   :  { %4923 = vmatmul.mubr.msk.bf16.vlgmr.msra.gmra.mxu0 %vm488_vm0, %v1573_v6 }
 0x313   :  { %4939 = vmatpush3.bf16.msra.mxu0 %v5392_v4  ;;  %4946 = vmatprep.mubr.msk.bf16.mxu0 %vm5576_vm1, %v5575_v56 }
 0x314   :  { %4940 = vmatprep.subr.bf16.mxu0 %v5575_v56 }
 0x317   :  { %4941 = vmatpush3.bf16.msra.mxu0 %v5393_v62 }
 0x318   :  { %4942 = vmatprep.subr.bf16.mxu0 %v5575_v56 }
 0x31b   :  { %v1696_v10 = vpop.f32.mrf.mxu1  ;;  %4943 = vmatpush3.bf16.msra.mxu0 %v5394_v8 }
 0x31c   :  { %4944 = vmatprep.subr.bf16.mxu0 %v5575_v56 }
 0x31d   :  { %v4936_v9 = vpop.f32.mrf.mxu1 }
 0x31f   :  { %v1699_v3 = vpop.f32.mrf.mxu1  ;;  %4945 = vmatpush3.bf16.msra.mxu0 %v5395_v7  ;;  %v4272_v7 = vld [vmem:[%s6847_s8] ss:$0 sm:$0xff] }
 0x320   :  { %v1703_v11 = vpack.c.bf16 %v1699_v3, %v1696_v10  ;;  %4962 = vmatprep.subr.bf16.mxu0 %v5575_v56 }
 0x321   :  { %v4937_v12 = vpop.f32.mrf.mxu1 }
 0x322   :  { %4947 = vmatmul.mubr.msk.bf16.vlgmr.msra.gmra.mxu0 %vm488_vm0, %v1703_v11  ;;  %v4273_v12 = vld [vmem:[%s6848_s9] ss:$0 sm:$0xff] }
 0x323   :  { %4963 = vmatpush3.bf16.msra.mxu0 %v5396_v5  ;;  %4970 = vmatprep.mubr.msk.bf16.mxu0 %vm5576_vm1, %v5575_v56 }
 0x324   :  { %4964 = vmatprep.subr.bf16.mxu0 %v5575_v56 }
 0x327   :  { %4965 = vmatpush3.bf16.msra.mxu0 %v5397_v57 }
 0x328   :  { %4966 = vmatprep.subr.bf16.mxu0 %v5575_v56 }
 0x32b   :  { %v1826_v63 = vpop.f32.mrf.mxu1  ;;  %4967 = vmatpush3.bf16.msra.mxu0 %v5398_v58 }
 0x32c   :  { %4968 = vmatprep.subr.bf16.mxu0 %v5575_v56 }
 0x32d   :  { %v4960_v14 = vpop.f32.mrf.mxu1 }
 0x32e   :  { %v5400_v14 = vld [vmem:[%s6844_s10] sm:$0xff]  }
 0x32f   :  { %v1829_v15 = vpop.f32.mrf.mxu1  ;;  %4969 = vmatpush3.bf16.msra.mxu0 %v5399_v1 }
 0x330   :  { %v1833_v16 = vpack.c.bf16 %v1829_v15, %v1826_v63  ;;  %4986 = vmatprep.subr.bf16.mxu0 %v5575_v56  ;;  %v5401_v15 = vld [vmem:[%s6844_s10 + $0x8] sm:$0xff]  }
 0x331   :  { %v4961_v17 = vpop.f32.mrf.mxu1 }
 0x332   :  { %4971 = vmatmul.mubr.msk.bf16.vlgmr.msra.gmra.mxu0 %vm488_vm0, %v1833_v16  ;;  %v5402_v16 = vld [vmem:[%s6845_s11 + $0x38] sm:$0xff]   ;;  %v5403_v17 = vld [vmem:[%s6845_s11 + $0x30] sm:$0xff]  }
 0x333   :  { %5002 = vmatprep.mubr.msk.bf16.mxu0 %vm5576_vm1, %v5575_v56  ;;  %4987 = vmatpush3.bf16.msra.mxu0 %v5404_v59  ;;  %v5409_v59 = vld [vmem:[%s6845_s11 + $0x18] sm:$0xff]  }
 0x334   :  { %4988 = vmatprep.subr.bf16.mxu0 %v5575_v56 }
 0x337   :  { %4989 = vmatpush3.bf16.msra.mxu0 %v5406_v23  ;;  %v5415_v23 = vld [vmem:[%s6845_s11] sm:$0xff]  }
 0x338   :  { %4990 = vmatprep.subr.bf16.mxu0 %v5575_v56 }
 0x392   :  { %v1115_v19 = vpop.f32.mrf.mxu0 }
 0x393   :  { %v1122_v20 = vadd.f32 %v1115_v19, %v6069_v13  ;;  %v5408_v13 = vld [vmem:[%s6845_s11 + $0x68] sm:$0xff]  }
 0x394   :  { %v4828_v61 = vpop.f32.mrf.mxu0  ;;  %4991 = vmatpush3.bf16.msra.mxu0 %v5408_v13  ;;  %v5405_v19 = vld [vmem:[%s6845_s11 + $0x28] sm:$0xff]   ;;  %v5417_v13 = vld [vmem:[%s6845_s11 + $0x40] sm:$0xff]  }
 0x395   :  { %4992 = vmatprep.subr.bf16.mxu0 %v5575_v56  ;;  %v5411_v61 = vld [vmem:[%s6845_s11 + $0x10] sm:$0xff]  }
 0x396   :  { %v1118_v21 = vpop.f32.mrf.mxu0 }
 0x397   :  { %v1123_v22 = vadd.f32 %v1118_v21, %v6071_v18  ;;  %v5413_v21 = vld [vmem:[%s6845_s11 + $0x8] sm:$0xff]  }
 0x398   :  { %v4829_v24 = vpop.f32.mrf.mxu0  ;;  %4993 = vmatpush3.bf16.msra.mxu0 %v5410_v25 }
 0x399   :  { %4994 = vmatprep.subr.bf16.mxu0 %v5575_v56  ;;  %v5416_v24 = vld [vmem:[%s6845_s11 + $0x48] sm:$0xff]  }
 0x39c   :  { %4995 = vmatpush3.bf16.msra.mxu0 %v5412_v27  ;;  %v5420_v27 = vld [vmem:[%s6845_s11 + $0xb8] sm:$0xff]  }
 0x39d   :  { %4996 = vmatprep.subr.bf16.mxu0 %v5575_v56 }
 0x3a2   :  { %v1245_v18 = vpop.f32.mrf.mxu0 }
 0x3a3   :  { %v1252_v26 = vadd.f32 %v1245_v18, %v1122_v20  ;;  %v5407_v20 = vld [vmem:[%s6845_s11 + $0x20] sm:$0xff]  }
 0x3a4   :  { %v4852_v29 = vpop.f32.mrf.mxu0 }
 0x3a6   :  { %v1248_v30 = vpop.f32.mrf.mxu0 }
 0x3a7   :  { %v1253_v31 = vadd.f32 %v1248_v30, %v1123_v22  ;;  %v5414_v22 = vld [vmem:[%s6845_s11 + $0x50] sm:$0xff]  }
 0x3a8   :  { %v4853_v32 = vpop.f32.mrf.mxu0  ;;  %4997 = vmatpush3.bf16.msra.mxu0 %v5414_v22  ;;  %v5446_v22 = vld [vmem:[%s6845_s11 + $0x110] sm:$0xff]  }
 0x3a9   :  { %4998 = vmatprep.subr.bf16.mxu0 %v5575_v56  ;;  %v5421_v32 = vld [vmem:[%s6845_s11 + $0xb0] sm:$0xff]  }
 0x3ac   :  { %4999 = vmatpush3.bf16.msra.mxu0 %v5416_v24  ;;  %v5448_v24 = vld [vmem:[%s6845_s11 + $0x108] sm:$0xff]  }
 0x3ad   :  { %5000 = vmatprep.subr.bf16.mxu0 %v5575_v56 }
 0x3b0   :  { %5001 = vmatpush3.bf16.msra.mxu0 %v5417_v13  ;;  %v5449_v13 = vld [vmem:[%s6845_s11 + $0x158] sm:$0xff]  }
 0x3b1   :  { %5026 = vmatprep.subr.bf16.mxu0 %v5575_v56 }
 0x3b2   :  { %v1375_v28 = vpop.f32.mrf.mxu0 }
 0x3b3   :  { %v1382_v48 = vadd.f32 %v1375_v28, %v1252_v26 }
 0x3b4   :  { %v4876_v33 = vpop.f32.mrf.mxu0 }
 0x3b6   :  { %v1378_v34 = vpop.f32.mrf.mxu0 }
 0x3b7   :  { %v1383_v50 = vadd.f32 %v1378_v34, %v1253_v31 }
 0x3b8   :  { %v4877_v35 = vpop.f32.mrf.mxu0 }
 0x3b9   :  { %v5422_v35 = vld [vmem:[%s6845_s11 + $0xa8] sm:$0xff]  }
 0x3c2   :  { %v1505_v36 = vpop.f32.mrf.mxu0 }
 0x3c3   :  { %v1512_v49 = vadd.f32 %v1505_v36, %v1382_v48  ;;  %v5432_v48 = vld [vmem:[%s6845_s11 + $0x80] sm:$0xff]  }
 0x3c4   :  { %v4900_v37 = vpop.f32.mrf.mxu0 }
 0x3c5   :  { %v5418_v37 = vld [vmem:[%s6844_s10 + $0x10] sm:$0xff]  }
 0x3c6   :  { %v1508_v38 = vpop.f32.mrf.mxu0 }
 0x3c7   :  { %v1513_v52 = vadd.f32 %v1508_v38, %v1383_v50  ;;  %v5419_v38 = vld [vmem:[%s6844_s10 + $0x18] sm:$0xff]   ;;  %v5434_v50 = vld [vmem:[%s6845_s11 + $0xc8] sm:$0xff]  }
 0x3c8   :  { %v4901_v39 = vpop.f32.mrf.mxu0 }
 0x3c9   :  { %v5423_v39 = vld [vmem:[%s6845_s11 + $0xf8] sm:$0xff]  }
 0x3d2   :  { %v1635_v40 = vpop.f32.mrf.mxu0 }
 0x3d3   :  { %v1642_v51 = vadd.f32 %v1635_v40, %v1512_v49  ;;  %v5424_v40 = vld [vmem:[%s6845_s11 + $0xa0] sm:$0xff]   ;;  %v5433_v49 = vld [vmem:[%s6845_s11 + $0xd0] sm:$0xff]  }
 0x3d4   :  { %v4924_v41 = vpop.f32.mrf.mxu0 }
 0x3d5   :  { %v5425_v41 = vld [vmem:[%s6845_s11 + $0xf0] sm:$0xff]  }
 0x3d6   :  { %v1638_v42 = vpop.f32.mrf.mxu0 }
 0x3d7   :  { %v1643_v0 = vadd.f32 %v1638_v42, %v1513_v52  ;;  %v5426_v42 = vld [vmem:[%s6845_s11 + $0x98] sm:$0xff]  }
 0x3d8   :  { %v4925_v43 = vpop.f32.mrf.mxu0 }
 0x3d9   :  { %v5427_v43 = vld [vmem:[%s6845_s11 + $0xe8] sm:$0xff]  }
 0x3e2   :  { %v1765_v44 = vpop.f32.mrf.mxu0 }
 0x3e3   :  { %v1772_v53 = vadd.f32 %v1765_v44, %v1642_v51  ;;  %v5428_v44 = vld [vmem:[%s6845_s11 + $0x90] sm:$0xff]   ;;  %v5435_v51 = vld [vmem:[%s6845_s11 + $0xc0] sm:$0xff]  }
 0x3e4   :  { %v4948_v45 = vpop.f32.mrf.mxu0 }
 0x3e5   :  { %v5429_v45 = vld [vmem:[%s6845_s11 + $0xe0] sm:$0xff]  }
 0x3e6   :  { %v1768_v46 = vpop.f32.mrf.mxu0 }
 0x3e7   :  { %v1773_v6 = vadd.f32 %v1768_v46, %v1643_v0  ;;  %v5430_v46 = vld [vmem:[%s6845_s11 + $0x88] sm:$0xff]  }
 0x3e8   :  { %v4949_v47 = vpop.f32.mrf.mxu0 }
 0x3e9   :  { %v5431_v47 = vld [vmem:[%s6845_s11 + $0xd8] sm:$0xff]  }
 0x3f2   :  { %v1895_v54 = vpop.f32.mrf.mxu0 }
 0x3f3   :  { %v1902_v2 = vadd.f32 %v1895_v54, %v1772_v53 }
 0x3f4   :  { %v4972_v4 = vpop.f32.mrf.mxu0 }
 0x3f5   :  { %v1911_v60 = vadd.f32 %v4271_v55, %v1902_v2 }
 0x3f6   :  { %v1898_v62 = vpop.f32.mrf.mxu0 }
 0x3f7   :  { %v1913_v8 = vmax.f32 %v1911_v60, 0.0  ;;  %v1903_v10 = vadd.f32 %v1898_v62, %v1773_v6 }
 0x3f8   :  { %v4973_v9 = vpop.f32.mrf.mxu0 }
 0x3f9   :  { %v1912_v3 = vadd.f32 %v4271_v55, %v1903_v10  ;;  %v1922_v5 = vmul.f32 %v4272_v7, %v1913_v8 }
 0x3fb   :  { %v1914_v11 = vmax.f32 %v1912_v3, 0.0  ;;  %v1931_v58 = vadd.f32 %v4273_v12, %v1922_v5 }
 0x3fd   :  { %v1923_v57 = vmul.f32 %v4272_v7, %v1914_v11 }
 0x3ff   :  { %v1932_v63 = vadd.f32 %v4273_v12, %v1923_v57  ;;  %v5436_v12 = vld [vmem:[%s6844_s10 + $0x20] sm:$0xff]  }
 0x401   :  { %v6221_v1 = vpack.c.bf16 %v1932_v63, %v1931_v58  ;;  %v5438_v63 = vld [vmem:[%s6845_s11 + $0x138] sm:$0xff]  }
 0x403   :  { %4975 = vmatpush3.bf16.msra.mxu1 %v6221_v1 }
 0x404   :  { %4980 = vmatprep.subr.bf16.mxu1 %v5575_v56 }
 0x406   :  { %4977 = vmatmul.mubr.msk.bf16.vlgmr.msra.gmra.mxu1 %vm1957_vm2, %v5400_v14 }
 0x407   :  { %4981 = vmatpush3.bf16.msra.mxu1 %v6221_v1  ;;  %4982 = vmatprep.mubr.msk.bf16.mxu1 %vm5576_vm1, %v5575_v56 }
 0x408   :  { %5006 = vmatprep.subr.bf16.mxu1 %v5575_v56 }
 0x40e   :  { %4983 = vmatmul.mubr.msk.bf16.vlgmr.msra.gmra.mxu1 %vm1957_vm2, %v5401_v15  ;;  %v5439_v15 = vld [vmem:[%s6845_s11 + $0x130] sm:$0xff]  }
 0x40f   :  { %5007 = vmatpush3.bf16.msra.mxu1 %v5402_v16  ;;  %5022 = vmatprep.mubr.msk.bf16.mxu1 %vm5576_vm1, %v5575_v56  ;;  %v5437_v16 = vld [vmem:[%s6844_s10 + $0x28] sm:$0xff]  }
 0x410   :  { %5008 = vmatprep.subr.bf16.mxu1 %v5575_v56 }
 0x413   :  { %5009 = vmatpush3.bf16.msra.mxu1 %v5403_v17  ;;  %v5441_v17 = vld [vmem:[%s6845_s11 + $0x178] sm:$0xff]  }
 0x414   :  { %5010 = vmatprep.subr.bf16.mxu1 %v5575_v56 }
 0x417   :  { %5011 = vmatpush3.bf16.msra.mxu1 %v5405_v19  ;;  %v5440_v19 = vld [vmem:[%s6845_s11 + $0x128] sm:$0xff]  }
 0x418   :  { %5012 = vmatprep.subr.bf16.mxu1 %v5575_v56 }
 0x41b   :  { %5013 = vmatpush3.bf16.msra.mxu1 %v5407_v20  ;;  %v5443_v20 = vld [vmem:[%s6845_s11 + $0x170] sm:$0xff]  }
 0x41c   :  { %5014 = vmatprep.subr.bf16.mxu1 %v5575_v56 }
 0x41f   :  { %5015 = vmatpush3.bf16.msra.mxu1 %v5409_v59  ;;  %v5442_v59 = vld [vmem:[%s6845_s11 + $0x120] sm:$0xff]  }
 0x420   :  { %5016 = vmatprep.subr.bf16.mxu1 %v5575_v56 }
 0x423   :  { %5017 = vmatpush3.bf16.msra.mxu1 %v5411_v61  ;;  %v5445_v61 = vld [vmem:[%s6845_s11 + $0x168] sm:$0xff]  }
 0x424   :  { %5018 = vmatprep.subr.bf16.mxu1 %v5575_v56 }
 0x427   :  { %5019 = vmatpush3.bf16.msra.mxu1 %v5413_v21  ;;  %v5444_v21 = vld [vmem:[%s6845_s11 + $0x118] sm:$0xff]  }
 0x428   :  { %5020 = vmatprep.subr.bf16.mxu1 %v5575_v56 }
 0x42b   :  { %5021 = vmatpush3.bf16.msra.mxu1 %v5415_v23  ;;  %v5447_v23 = vld [vmem:[%s6845_s11 + $0x160] sm:$0xff]  }
 0x42c   :  { %5032 = vmatprep.subr.bf16.mxu1 %v5575_v56 }
 0x4c6   :  { %v1995_v25 = vpop.f32.mrf.mxu1 }
 0x4c8   :  { %v4978_v18 = vpop.f32.mrf.mxu1 }
 0x4c9   :  { %v5451_v18 = vld [vmem:[%s6845_s11 + $0x150] sm:$0xff]  }
 0x4ca   :  { %v1998_v26 = vpop.f32.mrf.mxu1 }
 0x4cb   :  { %v2002_v29 = vpack.c.bf16 %v1998_v26, %v1995_v25  ;;  %v5450_v25 = vld [vmem:[%s6845_s11 + $0x100] sm:$0xff]   ;;  %v5452_v26 = vld [vmem:[%s6845_s11 + $0x148] sm:$0xff]  }
 0x4cc   :  { %v4979_v30 = vpop.f32.mrf.mxu1 }
 0x4cd   :  { %5023 = vmatmul.mubr.bf16.vlgmr.msra.gmra.mxu1 %v2002_v29 }
 0x4ce   :  { %v2063_v31 = vpop.f32.mrf.mxu1  ;;  %5033 = vmatpush3.bf16.msra.mxu1 %v5420_v27  ;;  %5048 = vmatprep.mubr.msk.bf16.mxu1 %vm5576_vm1, %v5575_v56  ;;  %v5453_v27 = vld [vmem:[%s6845_s11 + $0x140] sm:$0xff]  }
 0x4cf   :  { %5034 = vmatprep.subr.bf16.mxu1 %v5575_v56 }
 0x4d0   :  { %v4984_v28 = vpop.f32.mrf.mxu1 }
 0x4d2   :  { %v2066_v33 = vpop.f32.mrf.mxu1  ;;  %5035 = vmatpush3.bf16.msra.mxu1 %v5421_v32 }
 0x4d3   :  { %v2070_v34 = vpack.c.bf16 %v2066_v33, %v2063_v31  ;;  %5036 = vmatprep.subr.bf16.mxu1 %v5575_v56 }
 0x4d4   :  { %v4985_v36 = vpop.f32.mrf.mxu1 }
 0x4d5   :  { %5003 = vmatmul.mubr.bf16.vlgmr.msra.gmra.mxu0 %v2070_v34 }
 0x4d6   :  { %5027 = vmatpush3.bf16.msra.mxu0 %v6221_v1  ;;  %5028 = vmatprep.mubr.msk.bf16.mxu0 %vm5576_vm1, %v5575_v56 }
 0x4d7   :  { %5052 = vmatprep.subr.bf16.mxu0 %v5575_v56  ;;  %5037 = vmatpush3.bf16.msra.mxu1 %v5422_v35 }
 0x4d8   :  { %5038 = vmatprep.subr.bf16.mxu1 %v5575_v56 }
 0x4db   :  { %5039 = vmatpush3.bf16.msra.mxu1 %v5424_v40 }
 0x4dc   :  { %5040 = vmatprep.subr.bf16.mxu1 %v5575_v56 }
 0x4dd   :  { %5029 = vmatmul.mubr.msk.bf16.vlgmr.msra.gmra.mxu0 %vm1957_vm2, %v5418_v37 }
 0x4de   :  { %5053 = vmatpush3.bf16.msra.mxu0 %v6221_v1  ;;  %5054 = vmatprep.mubr.msk.bf16.mxu0 %vm5576_vm1, %v5575_v56 }
 0x4df   :  { %5058 = vmatprep.subr.bf16.mxu0 %v5575_v56  ;;  %5041 = vmatpush3.bf16.msra.mxu1 %v5426_v42 }
 0x4e0   :  { %5042 = vmatprep.subr.bf16.mxu1 %v5575_v56 }
 0x4e3   :  { %5043 = vmatpush3.bf16.msra.mxu1 %v5428_v44 }
 0x4e4   :  { %5044 = vmatprep.subr.bf16.mxu1 %v5575_v56 }
 0x4e5   :  { %5055 = vmatmul.mubr.msk.bf16.vlgmr.msra.gmra.mxu0 %vm1957_vm2, %v5419_v38 }
 0x4e6   :  { %5059 = vmatpush3.bf16.msra.mxu0 %v5423_v39  ;;  %5074 = vmatprep.mubr.msk.bf16.mxu0 %vm5576_vm1, %v5575_v56 }
 0x4e7   :  { %5060 = vmatprep.subr.bf16.mxu0 %v5575_v56  ;;  %5045 = vmatpush3.bf16.msra.mxu1 %v5430_v46 }
 0x4e8   :  { %5046 = vmatprep.subr.bf16.mxu1 %v5575_v56 }
 0x4ea   :  { %5061 = vmatpush3.bf16.msra.mxu0 %v5425_v41 }
 0x4eb   :  { %5062 = vmatprep.subr.bf16.mxu0 %v5575_v56  ;;  %5047 = vmatpush3.bf16.msra.mxu1 %v5432_v48 }
 0x4ec   :  { %5078 = vmatprep.subr.bf16.mxu1 %v5575_v56 }
 0x4ee   :  { %5063 = vmatpush3.bf16.msra.mxu0 %v5427_v43 }
 0x4ef   :  { %5064 = vmatprep.subr.bf16.mxu0 %v5575_v56 }
 0x4f2   :  { %5065 = vmatpush3.bf16.msra.mxu0 %v5429_v45 }
 0x4f3   :  { %5066 = vmatprep.subr.bf16.mxu0 %v5575_v56 }
 0x4f6   :  { %5067 = vmatpush3.bf16.msra.mxu0 %v5431_v47  ;;  %v5454_v47 = vld [vmem:[%s6844_s10 + $0x30] sm:$0xff]  }
 0x4f7   :  { %5068 = vmatprep.subr.bf16.mxu0 %v5575_v56 }
 0x4fa   :  { %5069 = vmatpush3.bf16.msra.mxu0 %v5433_v49 }
 0x4fb   :  { %5070 = vmatprep.subr.bf16.mxu0 %v5575_v56 }
 0x4fe   :  { %5071 = vmatpush3.bf16.msra.mxu0 %v5434_v50  ;;  %v5456_v50 = vld [vmem:[%s6845_s11 + $0x1b8] sm:$0xff]  }
 0x4ff   :  { %5072 = vmatprep.subr.bf16.mxu0 %v5575_v56 }
 0x502   :  { %5073 = vmatpush3.bf16.msra.mxu0 %v5435_v51 }
 0x503   :  { %5104 = vmatprep.subr.bf16.mxu0 %v5575_v56 }
 0x58d   :  { %v2242_v52 = vpop.f32.mrf.mxu1 }
 0x58f   :  { %v5024_v53 = vpop.f32.mrf.mxu1 }
 0x590   :  { %v5455_v53 = vld [vmem:[%s6844_s10 + $0x38] sm:$0xff]  }
 0x591   :  { %v2245_v54 = vpop.f32.mrf.mxu1 }
 0x593   :  { %v5025_v55 = vpop.f32.mrf.mxu1 }
 0x594   :  { %v5458_v55 = vld [vmem:[%s6845_s11 + $0x1a8] sm:$0xff]  }
 0x595   :  { %v2153_v0 = vpop.f32.mrf.mxu0 }
 0x596   :  { %v6367_v2 = vadd.f32 %v2242_v52, %v2153_v0  ;;  %v5457_v52 = vld [vmem:[%s6845_s11 + $0x1b0] sm:$0xff]  }
 0x597   :  { %v5004_v4 = vpop.f32.mrf.mxu0  ;;  %v5461_v0 = vld [vmem:[%s6845_s11 + $0x1f0] sm:$0xff]  }
 0x598   :  { %v5462_v4 = vld [vmem:[%s6845_s11 + $0x198] sm:$0xff]  }
 0x599   :  { %v2156_v6 = vpop.f32.mrf.mxu0 }
 0x59a   :  { %v6369_v60 = vadd.f32 %v2245_v54, %v2156_v6  ;;  %v5459_v54 = vld [vmem:[%s6845_s11 + $0x1f8] sm:$0xff]   ;;  %v5463_v6 = vld [vmem:[%s6845_s11 + $0x1e8] sm:$0xff]  }
 0x59b   :  { %v5005_v62 = vpop.f32.mrf.mxu0 }
 0x59c   :  { %v5465_v62 = vld [vmem:[%s6845_s11 + $0x1e0] sm:$0xff]  }
 0x59d   :  { %v2309_v8 = vpop.f32.mrf.mxu0 }
 0x59f   :  { %v5030_v10 = vpop.f32.mrf.mxu0 }
 0x5a0   :  { %v5467_v10 = vld [vmem:[%s6845_s11 + $0x1d8] sm:$0xff]  }
 0x5a1   :  { %v2312_v7 = vpop.f32.mrf.mxu0 }
 0x5a2   :  { %v2316_v9 = vpack.c.bf16 %v2312_v7, %v2309_v8  ;;  %v5466_v8 = vld [vmem:[%s6845_s11 + $0x188] sm:$0xff]   ;;  %v5468_v7 = vld [vmem:[%s6845_s11 + $0x180] sm:$0xff]  }
 0x5a3   :  { %v5031_v3 = vpop.f32.mrf.mxu0 }
 0x5a4   :  { %5049 = vmatmul.mubr.bf16.vlgmr.msra.gmra.mxu1 %v2316_v9  ;;  %v5469_v9 = vld [vmem:[%s6845_s11 + $0x1d0] sm:$0xff]   ;;  %v5470_v3 = vld [vmem:[%s6845_s11 + $0x1c8] sm:$0xff]  }
 0x5a5   :  { %5079 = vmatpush3.bf16.msra.mxu1 %v6221_v1  ;;  %v2468_v5 = vpop.f32.mrf.mxu0  ;;  %5080 = vmatprep.mubr.msk.bf16.mxu1 %vm5576_vm1, %v5575_v56 }
 0x5a6   :  { %5084 = vmatprep.subr.bf16.mxu1 %v5575_v56 }
 0x5a7   :  { %v5056_v11 = vpop.f32.mrf.mxu0 }
 0x5a9   :  { %v2471_v57 = vpop.f32.mrf.mxu0 }
 0x5aa   :  { %v2475_v58 = vpack.c.bf16 %v2471_v57, %v2468_v5  ;;  %v5471_v5 = vld [vmem:[%s6845_s11 + $0x1c0] sm:$0xff]  }
 0x5ab   :  { %v5057_v14 = vpop.f32.mrf.mxu0 }
 0x5ac   :  { %5075 = vmatmul.mubr.bf16.vlgmr.msra.gmra.mxu0 %v2475_v58  ;;  %5081 = vmatmul.mubr.msk.bf16.vlgmr.msra.gmra.mxu1 %vm1957_vm2, %v5436_v12 }
 0x5ad   :  { %5105 = vmatpush3.bf16.msra.mxu0 %v6221_v1  ;;  %5106 = vmatprep.mubr.msk.bf16.mxu0 %vm5576_vm1, %v5575_v56 }
 0x5ae   :  { %5085 = vmatpush3.bf16.msra.mxu1 %v5438_v63  ;;  %5110 = vmatprep.subr.bf16.mxu0 %v5575_v56 }
 0x5af   :  { %5086 = vmatprep.subr.bf16.mxu1 %v5575_v56  ;;  %5100 = vmatprep.mubr.msk.bf16.mxu1 %vm5576_vm1, %v5575_v56 }
 0x5b2   :  { %5087 = vmatpush3.bf16.msra.mxu1 %v5439_v15 }
 0x5b3   :  { %5088 = vmatprep.subr.bf16.mxu1 %v5575_v56 }
 0x5b4   :  { %5107 = vmatmul.mubr.msk.bf16.vlgmr.msra.gmra.mxu0 %vm1957_vm2, %v5437_v16 }
 0x5b5   :  { %5111 = vmatpush3.bf16.msra.mxu0 %v5441_v17  ;;  %5126 = vmatprep.mubr.msk.bf16.mxu0 %vm5576_vm1, %v5575_v56 }
 0x5b6   :  { %5089 = vmatpush3.bf16.msra.mxu1 %v5440_v19  ;;  %5112 = vmatprep.subr.bf16.mxu0 %v5575_v56 }
 0x5b7   :  { %5090 = vmatprep.subr.bf16.mxu1 %v5575_v56 }
 0x5b9   :  { %5113 = vmatpush3.bf16.msra.mxu0 %v5443_v20 }
 0x5ba   :  { %5091 = vmatpush3.bf16.msra.mxu1 %v5442_v59  ;;  %5114 = vmatprep.subr.bf16.mxu0 %v5575_v56 }
 0x5bb   :  { %5092 = vmatprep.subr.bf16.mxu1 %v5575_v56 }
 0x5bd   :  { %5115 = vmatpush3.bf16.msra.mxu0 %v5445_v61 }
 0x5be   :  { %5093 = vmatpush3.bf16.msra.mxu1 %v5444_v21  ;;  %5116 = vmatprep.subr.bf16.mxu0 %v5575_v56 }
 0x5bf   :  { %5094 = vmatprep.subr.bf16.mxu1 %v5575_v56 }
 0x5c1   :  { %5117 = vmatpush3.bf16.msra.mxu0 %v5447_v23 }
 0x5c2   :  { %5095 = vmatpush3.bf16.msra.mxu1 %v5446_v22  ;;  %5118 = vmatprep.subr.bf16.mxu0 %v5575_v56 }
 0x5c3   :  { %5096 = vmatprep.subr.bf16.mxu1 %v5575_v56 }
 0x5c5   :  { %5119 = vmatpush3.bf16.msra.mxu0 %v5449_v13 }
 0x5c6   :  { %5097 = vmatpush3.bf16.msra.mxu1 %v5448_v24  ;;  %5120 = vmatprep.subr.bf16.mxu0 %v5575_v56 }
 0x5c7   :  { %5098 = vmatprep.subr.bf16.mxu1 %v5575_v56 }
 0x5c9   :  { %5121 = vmatpush3.bf16.msra.mxu0 %v5451_v18  ;;  %v5472_v18 = vld [vmem:[%s6844_s10 + $0x40] sm:$0xff]  }
 0x5ca   :  { %5099 = vmatpush3.bf16.msra.mxu1 %v5450_v25  ;;  %5122 = vmatprep.subr.bf16.mxu0 %v5575_v56 }
 0x5cb   :  { %5130 = vmatprep.subr.bf16.mxu1 %v5575_v56 }
 0x5cd   :  { %5123 = vmatpush3.bf16.msra.mxu0 %v5452_v26 }
 0x5ce   :  { %5124 = vmatprep.subr.bf16.mxu0 %v5575_v56 }
 0x5d1   :  { %5125 = vmatpush3.bf16.msra.mxu0 %v5453_v27  ;;  %v5473_v27 = vld [vmem:[%s6845_s11 + $0x238] sm:$0xff]  }
 0x5d2   :  { %5156 = vmatprep.subr.bf16.mxu0 %v5575_v56 }
 0x664   :  { %v2399_v29 = vpop.f32.mrf.mxu1 }
 0x665   :  { %v2406_v30 = vadd.f32 %v2399_v29, %v6367_v2  ;;  %v5460_v2 = vld [vmem:[%s6845_s11 + $0x1a0] sm:$0xff]  }
 0x666   :  { %v5050_v31 = vpop.f32.mrf.mxu1 }
 0x667   :  { %v5475_v31 = vld [vmem:[%s6845_s11 + $0x228] sm:$0xff]  }
 0x668   :  { %v2402_v32 = vpop.f32.mrf.mxu1 }
 0x669   :  { %v2407_v28 = vadd.f32 %v2402_v32, %v6369_v60  ;;  %v5464_v60 = vld [vmem:[%s6845_s11 + $0x190] sm:$0xff]   ;;  %v5476_v32 = vld [vmem:[%s6845_s11 + $0x220] sm:$0xff]  }
 0x66a   :  { %v5051_v33 = vpop.f32.mrf.mxu1 }
 0x66b   :  { %v5478_v33 = vld [vmem:[%s6845_s11 + $0x210] sm:$0xff]  }
 0x66c   :  { %v2558_v34 = vpop.f32.mrf.mxu0  ;;  %v2627_v35 = vpop.f32.mrf.mxu1 }
 0x66d   :  { %v6457_v36 = vadd.f32 %v2558_v34, %v2406_v30  ;;  %v5479_v34 = vld [vmem:[%s6845_s11 + $0x208] sm:$0xff]  }
 0x66e   :  { %v5076_v37 = vpop.f32.mrf.mxu0  ;;  %v5082_v38 = vpop.f32.mrf.mxu1 }
 0x66f   :  { %v5483_v37 = vld [vmem:[%s6849_s15 + $0xac] ss:$12 sps:$4 sm:$0xff]   ;;  %v5487_v38 = vld [vmem:[%s6849_s15 + $0x94] ss:$12 sps:$4 sm:$0xff]  }
 0x670   :  { %v2561_v39 = vpop.f32.mrf.mxu0  ;;  %v2630_v40 = vpop.f32.mrf.mxu1 }
 0x671   :  { %v6459_v41 = vadd.f32 %v2561_v39, %v2407_v28  ;;  %v2634_v42 = vpack.c.bf16 %v2630_v40, %v2627_v35  ;;  %v5477_v28 = vld [vmem:[%s6845_s11 + $0x218] sm:$0xff]   ;;  %v5480_v35 = vld [vmem:[%s6845_s11 + $0x200] sm:$0xff]  }
 0x672   :  { %v5077_v43 = vpop.f32.mrf.mxu0  ;;  %v5083_v44 = vpop.f32.mrf.mxu1  ;;  %v5485_v39 = vld [vmem:[%s6849_s15 + $0x90] ss:$12 sps:$4 sm:$0xff]  }
 0x673   :  { %5101 = vmatmul.mubr.bf16.vlgmr.msra.gmra.mxu1 %v2634_v42  ;;  %v5491_v40 = vld [vmem:[%s6849_s15 + $0x7c] ss:$12 sps:$4 sm:$0xff]   ;;  %v5495_v42 = vld [vmem:[%s6849_s15 + $0x64] ss:$12 sps:$4 sm:$0xff]   ;;  %v5493_v43 = vld [vmem:[%s6849_s15 + $0x60] ss:$12 sps:$4 sm:$0xff]  }
 0x674   :  { %5131 = vmatpush3.bf16.msra.mxu1 %v6221_v1  ;;  %v2786_v45 = vpop.f32.mrf.mxu0  ;;  %5132 = vmatprep.mubr.msk.bf16.mxu1 %vm5576_vm1, %v5575_v56 }
 0x675   :  { %5136 = vmatprep.subr.bf16.mxu1 %v5575_v56 }
 0x676   :  { %v5108_v46 = vpop.f32.mrf.mxu0 }
 0x678   :  { %v2789_v48 = vpop.f32.mrf.mxu0 }
 0x679   :  { %v2793_v49 = vpack.c.bf16 %v2789_v48, %v2786_v45 }
 0x67a   :  { %v5109_v51 = vpop.f32.mrf.mxu0 }
 0x67b   :  { %5127 = vmatmul.mubr.bf16.vlgmr.msra.gmra.mxu0 %v2793_v49  ;;  %5133 = vmatmul.mubr.msk.bf16.vlgmr.msra.gmra.mxu1 %vm1957_vm2, %v5454_v47 }
 0x67c   :  { %5157 = vmatpush3.bf16.msra.mxu0 %v6221_v1  ;;  %5158 = vmatprep.mubr.msk.bf16.mxu0 %vm5576_vm1, %v5575_v56 }
 0x67d   :  { %5137 = vmatpush3.bf16.msra.mxu1 %v5456_v50  ;;  %5162 = vmatprep.subr.bf16.mxu0 %v5575_v56 }
 0x67e   :  { %5138 = vmatprep.subr.bf16.mxu1 %v5575_v56  ;;  %5152 = vmatprep.mubr.msk.bf16.mxu1 %vm5576_vm1, %v5575_v56 }
 0x681   :  { %5139 = vmatpush3.bf16.msra.mxu1 %v5457_v52 }
 0x682   :  { %5140 = vmatprep.subr.bf16.mxu1 %v5575_v56 }
 0x683   :  { %5159 = vmatmul.mubr.msk.bf16.vlgmr.msra.gmra.mxu0 %vm1957_vm2, %v5455_v53 }
 0x684   :  { %5163 = vmatpush3.bf16.msra.mxu0 %v5459_v54  ;;  %5178 = vmatprep.mubr.msk.bf16.mxu0 %vm5576_vm1, %v5575_v56 }
 0x685   :  { %5141 = vmatpush3.bf16.msra.mxu1 %v5458_v55  ;;  %5164 = vmatprep.subr.bf16.mxu0 %v5575_v56 }
 0x686   :  { %5142 = vmatprep.subr.bf16.mxu1 %v5575_v56 }
 0x688   :  { %5165 = vmatpush3.bf16.msra.mxu0 %v5461_v0 }
 0x689   :  { %5143 = vmatpush3.bf16.msra.mxu1 %v5460_v2  ;;  %5166 = vmatprep.subr.bf16.mxu0 %v5575_v56  ;;  %v5484_v2 = vld [vmem:[%s6849_s15 + $0xb0] ss:$12 sps:$4 sm:$0xff]  }
 0x68a   :  { %5144 = vmatprep.subr.bf16.mxu1 %v5575_v56 }
 0x68c   :  { %5167 = vmatpush3.bf16.msra.mxu0 %v5463_v6 }
 0x68d   :  { %5145 = vmatpush3.bf16.msra.mxu1 %v5462_v4  ;;  %5168 = vmatprep.subr.bf16.mxu0 %v5575_v56 }
 0x68e   :  { %5146 = vmatprep.subr.bf16.mxu1 %v5575_v56 }
 0x690   :  { %5169 = vmatpush3.bf16.msra.mxu0 %v5465_v62 }
 0x691   :  { %5147 = vmatpush3.bf16.msra.mxu1 %v5464_v60  ;;  %5170 = vmatprep.subr.bf16.mxu0 %v5575_v56 }
 0x692   :  { %5148 = vmatprep.subr.bf16.mxu1 %v5575_v56 }
 0x694   :  { %5171 = vmatpush3.bf16.msra.mxu0 %v5467_v10  ;;  %v5492_v10 = vld [vmem:[%s6849_s15 + $0x80] ss:$12 sps:$4 sm:$0xff]  }
 0x695   :  { %5149 = vmatpush3.bf16.msra.mxu1 %v5466_v8  ;;  %5172 = vmatprep.subr.bf16.mxu0 %v5575_v56  ;;  %v5488_v8 = vld [vmem:[%s6849_s15 + $0x98] ss:$12 sps:$4 sm:$0xff]  }
 0x696   :  { %5150 = vmatprep.subr.bf16.mxu1 %v5575_v56 }
 0x698   :  { %5173 = vmatpush3.bf16.msra.mxu0 %v5469_v9  ;;  %v5499_v9 = vld [vmem:[%s6849_s15 + $0x4c] ss:$12 sps:$4 sm:$0xff]  }
 0x699   :  { %5151 = vmatpush3.bf16.msra.mxu1 %v5468_v7  ;;  %5174 = vmatprep.subr.bf16.mxu0 %v5575_v56  ;;  %v5496_v7 = vld [vmem:[%s6849_s15 + $0x68] ss:$12 sps:$4 sm:$0xff]  }
 0x69a   :  { %5182 = vmatprep.subr.bf16.mxu1 %v5575_v56 }
 0x69c   :  { %5175 = vmatpush3.bf16.msra.mxu0 %v5470_v3  ;;  %v5497_v3 = vld [vmem:[%s6849_s15 + $0x48] ss:$12 sps:$4 sm:$0xff]  }
 0x69d   :  { %5176 = vmatprep.subr.bf16.mxu0 %v5575_v56 }
 0x6a0   :  { %5177 = vmatpush3.bf16.msra.mxu0 %v5471_v5  ;;  %v5500_v5 = vld [vmem:[%s6849_s15 + $0x50] ss:$12 sps:$4 sm:$0xff]  }
 0x6a1   :  { %3569 = vmatprep.subr.bf16.mxu0 %v5483_v37  ;;  %v5516_v37 = vld [vmem:[%s6850_s16 + $0x90] ss:$12 sps:$4 sm:$0xff]  }
 0x733   :  { %v2717_v11 = vpop.f32.mrf.mxu1 }
 0x734   :  { %v2724_v12 = vadd.f32 %v2717_v11, %v6457_v36  ;;  %v5481_v36 = vld [vmem:[%s6849_s15 + $0xa8] ss:$12 sps:$4 sm:$0xff]  }
 0x735   :  { %v5102_v57 = vpop.f32.mrf.mxu1  ;;  %v5503_v11 = vld [vmem:[%s6849_s15 + $0x34] ss:$12 sps:$4 sm:$0xff]  }
 0x736   :  { %v5504_v57 = vld [vmem:[%s6849_s15 + $0x38] ss:$12 sps:$4 sm:$0xff]  }
 0x737   :  { %v2720_v58 = vpop.f32.mrf.mxu1 }
 0x738   :  { %v2725_v63 = vadd.f32 %v2720_v58, %v6459_v41  ;;  %v5489_v41 = vld [vmem:[%s6849_s15 + $0x78] ss:$12 sps:$4 sm:$0xff]   ;;  %v5507_v58 = vld [vmem:[%s6849_s15 + $0x1c] ss:$12 sps:$4 sm:$0xff]  }
 0x739   :  { %v5103_v14 = vpop.f32.mrf.mxu1 }
 0x73a   :  { %v5508_v14 = vld [vmem:[%s6849_s15 + $0x20] ss:$12 sps:$4 sm:$0xff]  }
 0x73b   :  { %v2876_v15 = vpop.f32.mrf.mxu0  ;;  %v2945_v16 = vpop.f32.mrf.mxu1 }
 0x73c   :  { %v6546_v17 = vadd.f32 %v2876_v15, %v2724_v12  ;;  %v5501_v12 = vld [vmem:[%s6849_s15 + $0x30] ss:$12 sps:$4 sm:$0xff]  }
 0x73d   :  { %v5128_v19 = vpop.f32.mrf.mxu0  ;;  %v5134_v20 = vpop.f32.mrf.mxu1  ;;  %v5511_v15 = vld [vmem:[%s6849_s15 + $0x4] ss:$12 sps:$4 sm:$0xff]  }
 0x73e   :  { %v5577_v19 = vmov 0   ;;  %v6676_v20 = vld [vmem:[%s6850_s16 + $0xac] ss:$12 sps:$4 sm:$0xff]  }
 0x73f   :  { %v2879_v59 = vpop.f32.mrf.mxu0  ;;  %v2948_v61 = vpop.f32.mrf.mxu1 }
 0x740   :  { %v2884_v21 = vadd.f32 %v2879_v59, %v2725_v63  ;;  %v2952_v22 = vpack.c.bf16 %v2948_v61, %v2945_v16  ;;  %v5505_v63 = vld [vmem:[%s6849_s15 + $0x18] ss:$12 sps:$4 sm:$0xff]   ;;  %v5509_v16 = vld [vmem:[%s6849_s15] ss:$12 sps:$4 sm:$0xff]  }
 0x741   :  { %v5129_v23 = vpop.f32.mrf.mxu0  ;;  %v5135_v24 = vpop.f32.mrf.mxu1  ;;  %v4364_v61 = vld [vmem:[%s6851_s12] ss:$0 sm:$0xff] }
 0x742   :  { %5153 = vmatmul.mubr.bf16.vlgmr.msra.gmra.mxu1 %v2952_v22 }
 0x743   :  { %5183 = vmatpush3.bf16.msra.mxu1 %v6221_v1  ;;  %v3104_v13 = vpop.f32.mrf.mxu0  ;;  %5184 = vmatprep.mubr.msk.bf16.mxu1 %vm5576_vm1, %v5575_v56  ;;  %v5474_v1 = vld [vmem:[%s6845_s11 + $0x230] sm:$0xff]  }
 0x744   :  { %5188 = vmatprep.subr.bf16.mxu1 %v5575_v56 }
 0x745   :  { %v5160_v25 = vpop.f32.mrf.mxu0 }
 0x747   :  { %v3107_v26 = vpop.f32.mrf.mxu0 }
 0x748   :  { %v3111_v29 = vpack.c.bf16 %v3107_v26, %v3104_v13 }
 0x749   :  { %v5161_v30 = vpop.f32.mrf.mxu0 }
 0x74a   :  { %5179 = vmatmul.mubr.bf16.vlgmr.msra.gmra.mxu0 %v3111_v29  ;;  %5185 = vmatmul.mubr.msk.bf16.vlgmr.msra.gmra.mxu1 %vm1957_vm2, %v5472_v18  ;;  %v4365_v18 = vld [vmem:[%s6852_s13] ss:$0 sm:$0xff] }
 0x74b   :  { %5189 = vmatpush3.bf16.msra.mxu1 %v5473_v27  ;;  %5204 = vmatprep.mubr.msk.bf16.mxu1 %vm5576_vm1, %v5575_v56 }
 0x74c   :  { %5190 = vmatprep.subr.bf16.mxu1 %v5575_v56  ;;  %3570 = vmatpush1.bf16.msra.mxu0 %v5481_v36  ;;  %v5537_v36 = vld [vmem:[%s6850_s16 + $0xb0] ss:$12 sps:$4 sm:$0xff]  }
 0x74d   :  { %3571 = vmatprep.subr.bf16.mxu0 %v5487_v38  ;;  %3601 = vmatprep.mubr.bf16.mxu0 %v5577_v19  ;;  %v5521_v38 = vld [vmem:[%s6850_s16 + $0x7c] ss:$12 sps:$4 sm:$0xff]  }
 0x74f   :  { %5191 = vmatpush3.bf16.msra.mxu1 %v5474_v1  ;;  %v4366_v1 = vld [vmem:[%s6853_s14] ss:$0 sm:$0xff] }
 0x750   :  { %5192 = vmatprep.subr.bf16.mxu1 %v5575_v56  ;;  %3572 = vmatpush1.bf16.msra.mxu0 %v5485_v39  ;;  %v5538_v39 = vld [vmem:[%s6850_s16 + $0x98] ss:$12 sps:$4 sm:$0xff]  }
 0x751   :  { %3573 = vmatprep.subr.bf16.mxu0 %v5491_v40  ;;  %v5519_v40 = vld [vmem:[%s6850_s16 + $0x78] ss:$12 sps:$4 sm:$0xff]  }
 0x753   :  { %5193 = vmatpush3.bf16.msra.mxu1 %v5475_v31 }
 0x754   :  { %5194 = vmatprep.subr.bf16.mxu1 %v5575_v56  ;;  %3574 = vmatpush1.bf16.msra.mxu0 %v5489_v41  ;;  %v5524_v41 = vld [vmem:[%s6850_s16 + $0x64] ss:$12 sps:$4 sm:$0xff]  }
 0x755   :  { %3575 = vmatprep.subr.bf16.mxu0 %v5495_v42  ;;  %v5539_v42 = vld [vmem:[%s6850_s16 + $0x80] ss:$12 sps:$4 sm:$0xff]  }
 0x757   :  { %5195 = vmatpush3.bf16.msra.mxu1 %v5476_v32 }
 0x758   :  { %5196 = vmatprep.subr.bf16.mxu1 %v5575_v56  ;;  %3576 = vmatpush1.bf16.msra.mxu0 %v5493_v43  ;;  %v5522_v43 = vld [vmem:[%s6850_s16 + $0x60] ss:$12 sps:$4 sm:$0xff]  }
 0x759   :  { %3577 = vmatprep.subr.bf16.mxu0 %v5499_v9 }
 0x75b   :  { %5197 = vmatpush3.bf16.msra.mxu1 %v5477_v28 }
 0x75c   :  { %5198 = vmatprep.subr.bf16.mxu1 %v5575_v56  ;;  %3578 = vmatpush1.bf16.msra.mxu0 %v5497_v3 }
 0x75d   :  { %3579 = vmatprep.subr.bf16.mxu0 %v5503_v11 }
 0x75f   :  { %5199 = vmatpush3.bf16.msra.mxu1 %v5478_v33  ;;  %v5513_v33 = vld [vmem:[%s6850_s16 + $0xa8] ss:$12 sps:$4 sm:$0xff]  }
 0x760   :  { %5200 = vmatprep.subr.bf16.mxu1 %v5575_v56  ;;  %3580 = vmatpush1.bf16.msra.mxu0 %v5501_v12 }
 0x761   :  { %3581 = vmatprep.subr.bf16.mxu0 %v5507_v58 }
 0x763   :  { %5201 = vmatpush3.bf16.msra.mxu1 %v5479_v34 }
 0x764   :  { %5202 = vmatprep.subr.bf16.mxu1 %v5575_v56  ;;  %3582 = vmatpush1.bf16.msra.mxu0 %v5505_v63 }
 0x765   :  { %3583 = vmatprep.subr.bf16.mxu0 %v5511_v15 }
 0x767   :  { %5203 = vmatpush3.bf16.msra.mxu1 %v5480_v35  ;;  %v5518_v35 = vld [vmem:[%s6850_s16 + $0x94] ss:$12 sps:$4 sm:$0xff]  }
 0x768   :  { %5208 = vmatprep.subr.bf16.mxu1 %v5575_v56  ;;  %3584 = vmatpush1.bf16.msra.mxu0 %v5509_v16 }
 0x769   :  { %3814 = vmatprep.subr.bf16.mxu0 %v6676_v20 }
 0x802   :  { %v3035_v44 = vpop.f32.mrf.mxu1 }
 0x803   :  { %v3042_v45 = vadd.f32 %v3035_v44, %v6546_v17  ;;  %v5512_v17 = vld [vmem:[%s6849_s15 + $0x8] ss:$12 sps:$4 sm:$0xff]   ;;  %v5527_v44 = vld [vmem:[%s6850_s16 + $0x4c] ss:$12 sps:$4 sm:$0xff]  }
 0x804   :  { %v5154_v46 = vpop.f32.mrf.mxu1 }
 0x805   :  { %v5525_v46 = vld [vmem:[%s6850_s16 + $0x48] ss:$12 sps:$4 sm:$0xff]  }
 0x806   :  { %v3038_v47 = vpop.f32.mrf.mxu1 }
 0x807   :  { %v3043_v48 = vadd.f32 %v3038_v47, %v2884_v21  ;;  %v5530_v47 = vld [vmem:[%s6850_s16 + $0x34] ss:$12 sps:$4 sm:$0xff]  }
 0x808   :  { %v5155_v49 = vpop.f32.mrf.mxu1 }
 0x809   :  { %v5528_v49 = vld [vmem:[%s6850_s16 + $0x30] ss:$12 sps:$4 sm:$0xff]  }
 0x80a   :  { %v3194_v50 = vpop.f32.mrf.mxu0  ;;  %v3263_v51 = vpop.f32.mrf.mxu1 }
 0x80b   :  { %v3201_v52 = vadd.f32 %v3194_v50, %v3042_v45  ;;  %v5540_v45 = vld [vmem:[%s6850_s16 + $0x68] ss:$12 sps:$4 sm:$0xff]  }
 0x80c   :  { %v5180_v53 = vpop.f32.mrf.mxu0  ;;  %v5186_v54 = vpop.f32.mrf.mxu1  ;;  %v5533_v50 = vld [vmem:[%s6850_s16 + $0x1c] ss:$12 sps:$4 sm:$0xff]  }
 0x80d   :  { %v5536_v53 = vld [vmem:[%s6850_s16 + $0x4] ss:$12 sps:$4 sm:$0xff]   ;;  %v5543_v54 = vld [vmem:[%s6850_s16 + $0x20] ss:$12 sps:$4 sm:$0xff]  }
 0x80e   :  { %v3197_v55 = vpop.f32.mrf.mxu0  ;;  %v3266_v0 = vpop.f32.mrf.mxu1 }
 0x80f   :  { %v3202_v4 = vadd.f32 %v3197_v55, %v3043_v48  ;;  %v3270_v6 = vpack.c.bf16 %v3266_v0, %v3263_v51  ;;  %v5541_v48 = vld [vmem:[%s6850_s16 + $0x50] ss:$12 sps:$4 sm:$0xff]   ;;  %v5542_v51 = vld [vmem:[%s6850_s16 + $0x38] ss:$12 sps:$4 sm:$0xff]   ;;  %v5534_v55 = vld [vmem:[%s6850_s16] ss:$12 sps:$4 sm:$0xff]  }
 0x810   :  { %v5187_v60 = vpop.f32.mrf.mxu1  ;;  %v5181_v62 = vpop.f32.mrf.mxu0  ;;  %v5544_v0 = vld [vmem:[%s6850_s16 + $0x8] ss:$12 sps:$4 sm:$0xff]  }
 0x811   :  { %5205 = vmatmul.mubr.bf16.vlgmr.msra.gmra.mxu1 %v3270_v6  ;;  %v3424_v62 = vld [vmem:[%s6854_s17] sm:$0x7] }
 0x812   :  { %5209 = vmatpush3.bf16.msra.mxu1 %v5484_v2  ;;  %5224 = vmatprep.mubr.msk.bf16.mxu1 %vm5576_vm1, %v5575_v56  ;;  %v3426_v2 = vlaneseq }
 0x813   :  { %5210 = vmatprep.subr.bf16.mxu1 %v5575_v56 }
 0x816   :  { %5211 = vmatpush3.bf16.msra.mxu1 %v5488_v8 }
 0x817   :  { %5212 = vmatprep.subr.bf16.mxu1 %v5575_v56 }
 0x81a   :  { %5213 = vmatpush3.bf16.msra.mxu1 %v5492_v10 }
 0x81b   :  { %5214 = vmatprep.subr.bf16.mxu1 %v5575_v56 }
 0x81e   :  { %5215 = vmatpush3.bf16.msra.mxu1 %v5496_v7 }
 0x81f   :  { %5216 = vmatprep.subr.bf16.mxu1 %v5575_v56 }
 0x822   :  { %5217 = vmatpush3.bf16.msra.mxu1 %v5500_v5 }
 0x823   :  { %5218 = vmatprep.subr.bf16.mxu1 %v5575_v56 }
 0x826   :  { %5219 = vmatpush3.bf16.msra.mxu1 %v5504_v57 }
 0x827   :  { %5220 = vmatprep.subr.bf16.mxu1 %v5575_v56 }
 0x82a   :  { %5221 = vmatpush3.bf16.msra.mxu1 %v5508_v14 }
 0x82b   :  { %5222 = vmatprep.subr.bf16.mxu1 %v5575_v56 }
 0x82e   :  { %5223 = vmatpush3.bf16.msra.mxu1 %v5512_v17 }
 0x82f   :  { %5228 = vmatprep.subr.bf16.mxu1 %v5575_v56 }
 0x8d1   :  { %v3353_v59 = vpop.f32.mrf.mxu1 }
 0x8d2   :  { %v3360_v21 = vadd.f32 %v3353_v59, %v3201_v52  ;;  %v5531_v52 = vld [vmem:[%s6850_s16 + $0x18] ss:$12 sps:$4 sm:$0xff]  }
 0x8d3   :  { %v5206_v22 = vpop.f32.mrf.mxu1 }
 0x8d4   :  { %v3369_v23 = vadd.f32 %v4364_v61, %v3360_v21 }
 0x8d5   :  { %v3356_v24 = vpop.f32.mrf.mxu1 }
 0x8d6   :  { %v3371_v13 = vmax.f32 %v3369_v23, 0.0  ;;  %v3361_v25 = vadd.f32 %v3356_v24, %v3202_v4  ;;  %v3427_v4 = vshrl.u32 %v3426_v2, 7 }
 0x8d7   :  { %v5207_v26 = vpop.f32.mrf.mxu1 }
 0x8d8   :  { %v3370_v27 = vadd.f32 %v4364_v61, %v3361_v25  ;;  %v3380_v29 = vmul.f32 %v4365_v18, %v3371_v13  ;;  %v3428_v6 = vsub.s32 0, %v3427_v4  ;;  %v3436_v60 = vsub.s32 2, %v3427_v4 }
 0x8d9   :  { %v3432_v7 = vsub.s32 1, %v3427_v4 }
 0x8da   :  { %v3372_v30 = vmax.f32 %v3370_v27, 0.0  ;;  %v3389_v32 = vadd.f32 %v4366_v1, %v3380_v29  ;;  %v3429_v5 = vrot.slane %v3424_v62, %v3428_v6  ;;  %v3437_v11 = vrot.slane %v3424_v62, %v3436_v60 }
 0x8db   :  { %v3433_v58 = vrot.slane %v3424_v62, %v3432_v7 }
 0x8dc   :  { %v3381_v31 = vmul.f32 %v4365_v18, %v3372_v30 }
 0x8de   :  { %v3390_v28 = vadd.f32 %v4366_v1, %v3381_v31 }
 0x8e0   :  { %v3391_v34 = vpack.c.bf16 %v3390_v28, %v3389_v32  ;;  %v4417_v32 = vld [vmem:[%s6855_s18] ss:$0 sm:$0xff] }
 0x8e2   :  { %3602 = vmatmul.mubr.bf16.vlgmr.msra.gmra.mxu0 %v3391_v34  ;;  %5225 = vmatmul.mubr.bf16.vlgmr.msra.gmra.mxu1 %v3391_v34 }
 0x8e3   :  { %3815 = vmatpush1.bf16.msra.mxu0 %v5513_v33  ;;  %3846 = vmatprep.mubr.bf16.mxu0 %v5577_v19 }
 0x8e4   :  { %3816 = vmatprep.subr.bf16.mxu0 %v5518_v35  ;;  %5229 = vmatpush3.bf16.msra.mxu1 %v5537_v36 }
 0x8e5   :  { %5230 = vmatprep.subr.bf16.mxu1 %v5575_v56  ;;  %5244 = vmatprep.mubr.msk.bf16.mxu1 %vm5576_vm1, %v5575_v56 }
 0x8e7   :  { %3817 = vmatpush1.bf16.msra.mxu0 %v5516_v37 }
 0x8e8   :  { %3818 = vmatprep.subr.bf16.mxu0 %v5521_v38  ;;  %5231 = vmatpush3.bf16.msra.mxu1 %v5538_v39 }
 0x8e9   :  { %5232 = vmatprep.subr.bf16.mxu1 %v5575_v56 }
 0x8eb   :  { %3819 = vmatpush1.bf16.msra.mxu0 %v5519_v40 }
 0x8ec   :  { %3820 = vmatprep.subr.bf16.mxu0 %v5524_v41  ;;  %5233 = vmatpush3.bf16.msra.mxu1 %v5539_v42 }
 0x8ed   :  { %5234 = vmatprep.subr.bf16.mxu1 %v5575_v56 }
 0x8ef   :  { %3821 = vmatpush1.bf16.msra.mxu0 %v5522_v43 }
 0x8f0   :  { %3822 = vmatprep.subr.bf16.mxu0 %v5527_v44  ;;  %5235 = vmatpush3.bf16.msra.mxu1 %v5540_v45 }
 0x8f1   :  { %5236 = vmatprep.subr.bf16.mxu1 %v5575_v56 }
 0x8f3   :  { %3823 = vmatpush1.bf16.msra.mxu0 %v5525_v46 }
 0x8f4   :  { %3824 = vmatprep.subr.bf16.mxu0 %v5530_v47  ;;  %5237 = vmatpush3.bf16.msra.mxu1 %v5541_v48 }
 0x8f5   :  { %5238 = vmatprep.subr.bf16.mxu1 %v5575_v56 }
 0x8f7   :  { %3825 = vmatpush1.bf16.msra.mxu0 %v5528_v49 }
 0x8f8   :  { %3826 = vmatprep.subr.bf16.mxu0 %v5533_v50  ;;  %5239 = vmatpush3.bf16.msra.mxu1 %v5542_v51 }
 0x8f9   :  { %5240 = vmatprep.subr.bf16.mxu1 %v5575_v56 }
 0x8fb   :  { %3827 = vmatpush1.bf16.msra.mxu0 %v5531_v52 }
 0x8fc   :  { %3828 = vmatprep.subr.bf16.mxu0 %v5536_v53  ;;  %5241 = vmatpush3.bf16.msra.mxu1 %v5543_v54 }
 0x8fd   :  { %5242 = vmatprep.subr.bf16.mxu1 %v5575_v56 }
 0x8ff   :  { %3829 = vmatpush1.bf16.msra.mxu0 %v5534_v55 }
 0x900   :  { %5243 = vmatpush3.bf16.msra.mxu1 %v5544_v0  ;;  %3924 = vmatprep.subr.bf16.mxu0 %v6676_v20 }
 0x901   :  { %5248 = vmatprep.subr.bf16.mxu1 %v5575_v56 }
 0x902   :  { %3847 = vmatmul.mubr.bf16.vlgmr.msra.gmra.mxu0 %v5577_v19 }
 0x903   :  { %5245 = vmatmul.mubr.bf16.vlgmr.msra.gmra.mxu1 %v5577_v19  ;;  %3925 = vmatpush1.bf16.msra.mxu0 %v5513_v33 }
 0x904   :  { %5249 = vmatpush3.bf16.msra.mxu1 %v5537_v36  ;;  %3926 = vmatprep.subr.bf16.mxu0 %v5518_v35 }
 0x905   :  { %5250 = vmatprep.subr.bf16.mxu1 %v5575_v56  ;;  %3956 = vmatprep.mubr.bf16.mxu0 %v5577_v19 }
 0x906   :  { %5264 = vmatprep.mubr.msk.bf16.mxu1 %vm5576_vm1, %v5575_v56 }
 0x907   :  { %3927 = vmatpush1.bf16.msra.mxu0 %v5516_v37 }
 0x908   :  { %5251 = vmatpush3.bf16.msra.mxu1 %v5538_v39  ;;  %3928 = vmatprep.subr.bf16.mxu0 %v5521_v38 }
 0x909   :  { %5252 = vmatprep.subr.bf16.mxu1 %v5575_v56 }
 0x90b   :  { %3929 = vmatpush1.bf16.msra.mxu0 %v5519_v40 }
 0x90c   :  { %5253 = vmatpush3.bf16.msra.mxu1 %v5539_v42  ;;  %3930 = vmatprep.subr.bf16.mxu0 %v5524_v41 }
 0x90d   :  { %5254 = vmatprep.subr.bf16.mxu1 %v5575_v56 }
 0x90f   :  { %3931 = vmatpush1.bf16.msra.mxu0 %v5522_v43 }
 0x910   :  { %5255 = vmatpush3.bf16.msra.mxu1 %v5540_v45  ;;  %3932 = vmatprep.subr.bf16.mxu0 %v5527_v44  ;;  %v5545_v45 = vld [vmem:[%s6856_s19 + $0x38] sm:$0xff]  }
 0x911   :  { %5256 = vmatprep.subr.bf16.mxu1 %v5575_v56 }
 0x913   :  { %3933 = vmatpush1.bf16.msra.mxu0 %v5525_v46  ;;  %v5546_v46 = vld [vmem:[%s6856_s19 + $0x30] sm:$0xff]  }
 0x914   :  { %5257 = vmatpush3.bf16.msra.mxu1 %v5541_v48  ;;  %3934 = vmatprep.subr.bf16.mxu0 %v5530_v47  ;;  %v5547_v47 = vld [vmem:[%s6856_s19 + $0x28] sm:$0xff]   ;;  %v5548_v48 = vld [vmem:[%s6856_s19 + $0x20] sm:$0xff]  }
 0x915   :  { %5258 = vmatprep.subr.bf16.mxu1 %v5575_v56 }
 0x917   :  { %3935 = vmatpush1.bf16.msra.mxu0 %v5528_v49  ;;  %v5549_v49 = vld [vmem:[%s6856_s19 + $0x18] sm:$0xff]  }
 0x918   :  { %5259 = vmatpush3.bf16.msra.mxu1 %v5542_v51  ;;  %3936 = vmatprep.subr.bf16.mxu0 %v5533_v50  ;;  %v5550_v50 = vld [vmem:[%s6856_s19 + $0x10] sm:$0xff]   ;;  %v5551_v51 = vld [vmem:[%s6856_s19 + $0x8] sm:$0xff]  }
 0x919   :  { %5260 = vmatprep.subr.bf16.mxu1 %v5575_v56 }
 0x91b   :  { %3937 = vmatpush1.bf16.msra.mxu0 %v5531_v52  ;;  %v5552_v52 = vld [vmem:[%s6856_s19] sm:$0xff]  }
 0x91c   :  { %5261 = vmatpush3.bf16.msra.mxu1 %v5543_v54  ;;  %3938 = vmatprep.subr.bf16.mxu0 %v5536_v53 }
 0x91d   :  { %5262 = vmatprep.subr.bf16.mxu1 %v5575_v56 }
 0x91f   :  { %3939 = vmatpush1.bf16.msra.mxu0 %v5534_v55 }
 0x920   :  { %5263 = vmatpush3.bf16.msra.mxu1 %v5544_v0  ;;  %5268 = vmatprep.subr.bf16.mxu0 %v5575_v56 }
 0x9a2   :  { %v3603_v8 = vpop.f32.mrf.mxu0  ;;  %v3646_v10 = vpop.f32.mrf.mxu1 }
 0x9a3   :  { %v3604_v19 = vadd.f32 %v3603_v8, %v3429_v5  ;;  %v3647_v35 = vadd.f32 %v3646_v10, %v3437_v11 }
 0x9a4   :  { %v3605_v9 = vpop.f32.mrf.mxu0  ;;  %v5226_v3 = vpop.f32.mrf.mxu1 }
 0x9a5   :  { %v3606_v13 = vadd.f32 %v3605_v9, %v3433_v58 }
 0x9a6   :  { %v3607_v12 = vpop.f32.mrf.mxu0  ;;  %v3649_v57 = vpop.f32.mrf.mxu1 }
 0x9a7   :  { %v6786_v63 = vadd.f32 %v3607_v12, %v3429_v5  ;;  %v6788_v14 = vadd.f32 %v3649_v57, %v3437_v11 }
 0x9a8   :  { %v3609_v15 = vpop.f32.mrf.mxu0  ;;  %v5227_v16 = vpop.f32.mrf.mxu1 }
 0x9a9   :  { %v6790_v17 = vadd.f32 %v3609_v15, %v3433_v58 }
 0x9c2   :  { %v3848_v20 = vpop.f32.mrf.mxu0 }
 0x9c3   :  { %v3895_v59 = vadd.f32 %v3848_v20, %v3604_v19  ;;  %v3889_v61 = vpop.f32.mrf.mxu1 }
 0x9c4   :  { %v3850_v21 = vpop.f32.mrf.mxu0  ;;  %v3915_v33 = vadd.f32 %v4417_v32, %v3889_v61  ;;  %v4420_v61 = vld [vmem:[%s6857_s20] ss:$0 sm:$0xff] }
 0x9c5   :  { %v4415_v22 = vmul.f32 -1.442695, %v3895_v59  ;;  %v5246_v23 = vpop.f32.mrf.mxu1  ;;  %v3902_v26 = vadd.f32 %v3850_v21, %v3606_v13 }
 0x9c6   :  { %v3852_v24 = vpop.f32.mrf.mxu0 }
 0x9c7   :  { %5553 = vpow2.f32 %v4415_v22  ;;  %v3892_v25 = vpop.f32.mrf.mxu1  ;;  %v4416_v29 = vmul.f32 -1.442695, %v3902_v26 }
 0x9c8   :  { %v3853_v18 = vpop.f32.mrf.mxu0 }
 0x9c9   :  { %v5247_v27 = vpop.f32.mrf.mxu1  ;;  %5555 = vpow2.f32 %v4416_v29 }
 0x9d4   :  { %v5554_v30 = vpop.eup %5553 }
 0x9d5   :  { %v3899_v1 = vadd.f32 1.0, %v5554_v30 }
 0x9d6   :  { %v5556_v31 = vpop.eup %5555 }
 0x9d7   :  { %5557 = vrcp.f32 %v3899_v1  ;;  %v3906_v28 = vadd.f32 1.0, %v5556_v31 }
 0x9d9   :  { %5559 = vrcp.f32 %v3906_v28 }
 0x9e4   :  { %v5558_v34 = vpop.eup %5557 }
 0x9e5   :  { %v3916_v36 = vmul.f32 %v5558_v34, %v3915_v33 }
 0x9e6   :  { %v5560_v38 = vpop.eup %5559 }
 0x9e7   :  { %v3917_v37 = vadd.f32 %v3916_v36, %v3647_v35  ;;  %v3919_v39 = vsub.f32 1.0, %v5560_v38  ;;  %v3921_v42 = vmul.f32 0.0, %v5560_v38 }
 0x9e9   :  { %5561 = vtanh.f32 %v3917_v37 }
 0x9f6   :  { %v5562_v40 = vpop.eup %5561 }
 0x9f7   :  { %v3920_v41 = vmul.f32 %v5562_v40, %v3919_v39 }
 0x9f9   :  { %v3922_v43 = vadd.f32 %v3921_v42, %v3920_v41 }
 0x9fb   :  { %v3923_v44 = vpack.c.bf16 %v3922_v43, %v3922_v43 }
 0x9fd   :  { %3957 = vmatmul.mubr.bf16.vlgmr.msra.gmra.mxu0 %v3923_v44  ;;  %5265 = vmatmul.mubr.bf16.vlgmr.msra.gmra.mxu1 %v3923_v44 }
 0x9fe   :  { %5284 = vmatprep.mubr.msk.bf16.mxu0 %vm5576_vm1, %v5575_v56  ;;  %5269 = vmatpush3.bf16.msra.mxu0 %v5545_v45 }
 0x9ff   :  { %5270 = vmatprep.subr.bf16.mxu0 %v5575_v56 }
 0xa02   :  { %5271 = vmatpush3.bf16.msra.mxu0 %v5546_v46 }
 0xa03   :  { %5272 = vmatprep.subr.bf16.mxu0 %v5575_v56 }
 0xa06   :  { %5273 = vmatpush3.bf16.msra.mxu0 %v5547_v47 }
 0xa07   :  { %5274 = vmatprep.subr.bf16.mxu0 %v5575_v56 }
 0xa0a   :  { %5275 = vmatpush3.bf16.msra.mxu0 %v5548_v48 }
 0xa0b   :  { %5276 = vmatprep.subr.bf16.mxu0 %v5575_v56 }
 0xa0e   :  { %5277 = vmatpush3.bf16.msra.mxu0 %v5549_v49 }
 0xa0f   :  { %5278 = vmatprep.subr.bf16.mxu0 %v5575_v56 }
 0xa12   :  { %5279 = vmatpush3.bf16.msra.mxu0 %v5550_v50 }
 0xa13   :  { %5280 = vmatprep.subr.bf16.mxu0 %v5575_v56 }
 0xa16   :  { %5281 = vmatpush3.bf16.msra.mxu0 %v5551_v51 }
 0xa17   :  { %5282 = vmatprep.subr.bf16.mxu0 %v5575_v56 }
 0xa1a   :  { %5283 = vmatpush3.bf16.msra.mxu0 %v5552_v52 }
 0xabd   :  { %v3958_v53 = vpop.f32.mrf.mxu0  ;;  %v3999_v54 = vpop.f32.mrf.mxu1 }
 0xabe   :  { %v4005_v55 = vadd.f32 %v3958_v53, %v6786_v63  ;;  %v4019_v11 = vadd.f32 %v4417_v32, %v3999_v54 }
 0xabf   :  { %v3960_v0 = vpop.f32.mrf.mxu0  ;;  %v5266_v2 = vpop.f32.mrf.mxu1 }
 0xac0   :  { %v4418_v4 = vmul.f32 -1.442695, %v4005_v55  ;;  %v4012_v10 = vadd.f32 %v3960_v0, %v6790_v17 }
 0xac1   :  { %v3962_v6 = vpop.f32.mrf.mxu0  ;;  %v4002_v60 = vpop.f32.mrf.mxu1 }
 0xac2   :  { %5563 = vpow2.f32 %v4418_v4  ;;  %v4419_v7 = vmul.f32 -1.442695, %v4012_v10 }
 0xac3   :  { %v3963_v62 = vpop.f32.mrf.mxu0  ;;  %v5267_v8 = vpop.f32.mrf.mxu1 }
 0xac4   :  { %5565 = vpow2.f32 %v4419_v7 }
 0xacf   :  { %v5564_v9 = vpop.eup %5563 }
 0xad0   :  { %v4009_v3 = vadd.f32 1.0, %v5564_v9 }
 0xad1   :  { %v5566_v56 = vpop.eup %5565 }
 0xad2   :  { %5567 = vrcp.f32 %v4009_v3  ;;  %v4016_v5 = vadd.f32 1.0, %v5566_v56 }
 0xad4   :  { %5569 = vrcp.f32 %v4016_v5 }
 0xadf   :  { %v5568_v12 = vpop.eup %5567 }
 0xae0   :  { %v4020_v57 = vmul.f32 %v5568_v12, %v4019_v11 }
 0xae1   :  { %v5570_v63 = vpop.eup %5569 }
 0xae2   :  { %v4021_v58 = vadd.f32 %v4020_v57, %v6788_v14  ;;  %v4023_v15 = vsub.f32 1.0, %v5570_v63  ;;  %v4025_v20 = vmul.f32 %v5570_v63, %v3922_v43 }
 0xae4   :  { %5571 = vtanh.f32 %v4021_v58 }
 0xaf1   :  { %v5572_v16 = vpop.eup %5571 }
 0xaf2   :  { %v4024_v19 = vmul.f32 %v5572_v16, %v4023_v15 }
 0xaf4   :  { %v4026_v17 = vadd.f32 %v4025_v20, %v4024_v19 }
 0xaf6   :  { %v4027_v59 = vpack.c.bf16 %v4026_v17, %v4026_v17 }
 0xaf8   :  { %5285 = vmatmul.mubr.bf16.vlgmr.msra.gmra.mxu0 %v4027_v59 }
 0xbb8   :  { %v4133_v21 = vpop.f32.mrf.mxu0 }
 0xbb9   :  { %v4134_v22 = vadd.f32 %v4420_v61, %v4133_v21 }
 0xbba   :  { %v5286_v23 = vpop.f32.mrf.mxu0 }
 0xbbb   :  { %5573 = vtanh.f32 %v4134_v22 }
 0xbbc   :  { %v4136_v24 = vpop.f32.mrf.mxu0 }
 0xbbe   :  { %v5287_v13 = vpop.f32.mrf.mxu0 }
 0xbc8   :  { %v5574_v14 = vpop.eup %5573 }
 0xbc9   :  { %4140 = vst [vmem:[%s6858_s21] sm:$0xff] %v5574_v14 }

</bundles_post_ra>
